<compile_context>
chip_gen: v7x
topology: tpu7x:2x2x1
jax: 0.10.0
libtpu: 0.0.40
codegen_flags: <defaults>
</compile_context>

<pallas_src>
import functools

import jax
import jax.numpy as jnp
import numpy as np
from jax.experimental import pallas as pl
from jax.experimental.pallas import tpu as pltpu

H = 384              # model hidden size
HEADS = 8            # attention heads
HDIM = H // HEADS    # 48
HP = 128             # padded per-head lane slot (48 real + 80 zero lanes)
FF = 1024            # feed-forward hidden size
OUT = 20             # final projection size
OUT_PAD = 128        # lane-dense output slab width

PACKED_ORDER = ("wqkv", "bqkv", "wo", "vecH", "wf1", "bf1", "wf2",
                "wp1", "v256", "wp2", "v128", "wp3", "v20")


def _layernorm(y, g, b, eps=1e-5):
    mu = jnp.mean(y, axis=-1, keepdims=True)
    var = jnp.mean((y - mu) ** 2, axis=-1, keepdims=True)
    return (y - mu) * jax.lax.rsqrt(var + eps) * g + b


def _gelu(x):
    # exact (erf-based) GELU, matching torch.nn.GELU() default
    return 0.5 * x * (1.0 + jax.lax.erf(x * 0.7071067811865475))


def book_kernel(x_ref, m_ref,
                wqkv_ref, bqkv_ref, wo_ref, vecH_ref,
                wf1_ref, bf1_ref, wf2_ref,
                wp1_ref, v256_ref, wp2_ref, v128_ref, wp3_ref, v20_ref,
                out_ref):
    bt, S, _ = x_ref.shape
    n = bt * S                                  # flattened rows this step
    cdt = wqkv_ref.dtype                        # MXU-operand compute dtype

    x = x_ref[...].reshape(n, H)                # (n, H)
    x_f32 = x.astype(jnp.float32)
    m = m_ref[0]                                # (1, n) key mask, f32

    # ---- fused, head-padded QKV projection: (n,H)@(H,3*HEADS*HP) ---------
    # (1/sqrt(HDIM) is pre-folded into the Q weights/bias at pack time)
    qkv = jnp.dot(x, wqkv_ref[...],
                  preferred_element_type=jnp.float32) + bqkv_ref[...]

    # ---- attention bias, hoisted out of the head loop ----------------------
    if bt == 1:
        # single sequence per step: key-padding mask only, (1, n) broadcast
        bias = jnp.where(m > 0.0, 0.0, -1e30)
    else:
        # block-diagonal (same-sequence) + key-padding bias, (n, n)
        row_seq = jax.lax.broadcasted_iota(jnp.int32, (n, 1), 0) // S
        col_seq = jax.lax.broadcasted_iota(jnp.int32, (1, n), 1) // S
        bias = jnp.where((row_seq == col_seq) & (m > 0.0), 0.0, -1e30)

    ctx_heads = []
    for h in range(HEADS):
        qo = h * HP
        ko = HEADS * HP + h * HP
        vo = 2 * HEADS * HP + h * HP
        qh = qkv[:, qo:qo + HP].astype(cdt)     # 128-lane aligned slices
        kh = qkv[:, ko:ko + HP].astype(cdt)
        vh = qkv[:, vo:vo + HP].astype(cdt)
        s = jax.lax.dot_general(qh, kh, (((1,), (1,)), ((), ())),
                                preferred_element_type=jnp.float32)  # (n, n)
        s = s + bias
        s = s - jnp.max(s, axis=-1, keepdims=True)
        p = jnp.exp(s)
        p = p * pl.reciprocal(jnp.sum(p, axis=-1, keepdims=True), approx=True)
        ctx_heads.append(jnp.dot(p.astype(cdt), vh,
                                 preferred_element_type=jnp.float32))

    # ---- fused output projection: one (n, HEADS*HP) @ (HEADS*HP, H) ------
    ctx_all = jnp.concatenate(ctx_heads, axis=-1).astype(cdt)
    bo, gn, bn, bf2 = (vecH_ref[0:1, :], vecH_ref[1:2, :],
                       vecH_ref[2:3, :], vecH_ref[3:4, :])
    attn = jnp.dot(ctx_all, wo_ref[...],
                   preferred_element_type=jnp.float32) + bo

    # ---- residual + LayerNorm --------------------------------------------
    y = _layernorm(attn + x_f32, gn, bn)

    # ---- feed-forward block (dropout = identity in eval) ------------------
    h1 = _gelu(jnp.dot(y.astype(cdt), wf1_ref[...],
                       preferred_element_type=jnp.float32) + bf1_ref[...])
    ff = jnp.dot(h1.astype(cdt), wf2_ref[...],
                 preferred_element_type=jnp.float32) + bf2

    # ---- masked mean pooling as one (bt, n) @ (n, H) matmul ----------------
    if bt == 1:
        pm = m                                                  # (1, n)
    else:
        b_row = jax.lax.broadcasted_iota(jnp.int32, (bt, n), 0)
        c_seq = jax.lax.broadcasted_iota(jnp.int32, (bt, n), 1) // S
        pm = jnp.where(b_row == c_seq, m, 0.0)                  # (bt, n)
    lens = jnp.maximum(jnp.sum(pm, axis=-1, keepdims=True), 1.0)  # guard len=0
    pm = pm * pl.reciprocal(lens, approx=True)
    pooled = jnp.dot(pm.astype(cdt), ff.astype(cdt),
                     preferred_element_type=jnp.float32)        # (bt, H)

    # ---- projection head ---------------------------------------------------
    p1 = _gelu(_layernorm(
        jnp.dot(pooled.astype(cdt), wp1_ref[...],
                preferred_element_type=jnp.float32) + v256_ref[0:1, :],
        v256_ref[1:2, :], v256_ref[2:3, :]))
    p2 = _layernorm(
        jnp.dot(p1.astype(cdt), wp2_ref[...],
                preferred_element_type=jnp.float32) + v128_ref[0:1, :],
        v128_ref[1:2, :], v128_ref[2:3, :])
    p3 = _layernorm(
        jnp.dot(p2.astype(cdt), wp3_ref[...],
                preferred_element_type=jnp.float32) + v20_ref[0:1, :],
        v20_ref[1:2, :], v20_ref[2:3, :])                       # (bt, OUT)

    # ---- F.normalize(p=2, dim=1), stored lane-dense (padded to 128) --------
    nrm = jnp.maximum(jnp.sqrt(jnp.sum(p3 * p3, axis=-1, keepdims=True)), 1e-12)
    p3n = p3 * pl.reciprocal(nrm, approx=True)
    out_ref[0] = jnp.concatenate(
        [p3n, jnp.zeros((bt, OUT_PAD - OUT), jnp.float32)], axis=-1)


def _pack_params(p, cdt):
    """Repack natural (torch-layout) weights into the head-padded kernel layout."""
    scale = 1.0 / (HDIM ** 0.5)                  # fold q-scale into weights

    def pad_heads(w):              # (rows, H) -> (rows, HEADS*HP), zero pads
        r = w.shape[0]
        w = w.reshape(r, HEADS, HDIM)
        w = jnp.pad(w, ((0, 0), (0, 0), (0, HP - HDIM)))
        return w.reshape(r, HEADS * HP)

    wqkv, bqkv = p["wqkv"], p["bqkv"]
    wqkv_pad = jnp.concatenate(
        [pad_heads(wqkv[:, :H] * scale), pad_heads(wqkv[:, H:2 * H]),
         pad_heads(wqkv[:, 2 * H:])], axis=1).astype(cdt)           # (H, 3072)
    bqkv_pad = jnp.concatenate(
        [pad_heads(bqkv[:, :H] * scale), pad_heads(bqkv[:, H:2 * H]),
         pad_heads(bqkv[:, 2 * H:])], axis=1).astype(jnp.float32)   # (1, 3072)
    wo_pad = jnp.pad(p["wo"].reshape(HEADS, HDIM, H),
                     ((0, 0), (0, HP - HDIM), (0, 0))
                     ).reshape(HEADS * HP, H).astype(cdt)           # (1024, H)

    f32 = jnp.float32
    return {
        "wqkv": wqkv_pad, "bqkv": bqkv_pad, "wo": wo_pad,
        "vecH": jnp.concatenate([p["bo"], p["gn"], p["bn"], p["bf2"]],
                                axis=0).astype(f32),                # (4, H)
        "wf1": p["wf1"].astype(cdt), "bf1": p["bf1"].astype(f32),
        "wf2": p["wf2"].astype(cdt),
        "wp1": p["wp1"].astype(cdt),
        "v256": jnp.concatenate([p["bp1"], p["g1"], p["be1"]], axis=0).astype(f32),
        "wp2": p["wp2"].astype(cdt),
        "v128": jnp.concatenate([p["bp2"], p["g2"], p["be2"]], axis=0).astype(f32),
        "wp3": p["wp3"].astype(cdt),
        "v20": jnp.concatenate([p["bp3"], p["g3"], p["be3"]], axis=0).astype(f32),
    }


def _choose_batch_tile(batch, seq, target_rows=256):
    """Pick sequences-per-step so bt*seq ~ MXU rows, keeping >=2 grid steps."""
    bt = max(1, min(batch, max(1, target_rows // seq)))
    if -(-batch // bt) < 2 and batch > 1:
        bt = (batch + 1) // 2       # >=2 steps so both v7x TensorCores get work
    return bt


def _vmem_limit_bytes():
    try:
        cap = pltpu.get_tpu_info().vmem_capacity_bytes
        return int(min(cap * 3 // 4, 100 * 1024 * 1024))
    except Exception:
        return 48 * 1024 * 1024     # safe on every generation (incl. v7x 64 MiB)


def _const_index_map(ndim):
    return lambda t: (0,) * ndim


@functools.partial(jax.jit, static_argnames=("compute_dtype",))
def book_embedding_forward(input_ids, attention_mask, params, *,
                           compute_dtype=jnp.float32):
    # TODO(synk): the frozen MiniLM-L6-v2 encoder is replaced by a
    # deterministic embedding-table lookup (no checkpoint load).
    base = params["emb_table"][input_ids].astype(compute_dtype)    # (B, S, H)
    B, S = input_ids.shape

    bt = _choose_batch_tile(B, S)
    nt = -(-B // bt)
    b_pad = nt * bt
    if b_pad != B:
        base = jnp.pad(base, ((0, b_pad - B), (0, 0), (0, 0)))
        attention_mask = jnp.pad(attention_mask, ((0, b_pad - B), (0, 0)))
    m_flat = attention_mask.astype(jnp.float32).reshape(nt, 1, bt * S)

    packed = _pack_params(params, compute_dtype)
    weights = [packed[k] for k in PACKED_ORDER]

    in_specs = [
        pl.BlockSpec((bt, S, H), lambda t: (t, 0, 0)),
        pl.BlockSpec((1, 1, bt * S), lambda t: (t, 0, 0)),
    ]
    for w in weights:
        in_specs.append(pl.BlockSpec(w.shape, _const_index_map(w.ndim)))

    out = pl.pallas_call(
        book_kernel,
        out_shape=jax.ShapeDtypeStruct((nt, bt, OUT_PAD), jnp.float32),
        grid=(nt,),
        in_specs=in_specs,
        out_specs=pl.BlockSpec((1, bt, OUT_PAD), lambda t: (t, 0, 0)),
        compiler_params=pltpu.CompilerParams(
            dimension_semantics=("parallel",),
            vmem_limit_bytes=_vmem_limit_bytes()),
    )(base, m_flat, *weights)
    return out.reshape(b_pad, OUT_PAD)[:B, :OUT]


def reference_forward(input_ids, attention_mask, p):
    """Pure-JAX reference of the same math (ground truth for the check)."""
    x = p["emb_table"][input_ids].astype(jnp.float32)
    m = attention_mask.astype(jnp.float32)
    B, S, _ = x.shape

    qkv = x @ p["wqkv"] + p["bqkv"]
    q, k, v = qkv[..., :H], qkv[..., H:2 * H], qkv[..., 2 * H:]
    qh = q.reshape(B, S, HEADS, HDIM).transpose(0, 2, 1, 3)
    kh = k.reshape(B, S, HEADS, HDIM).transpose(0, 2, 1, 3)
    vh = v.reshape(B, S, HEADS, HDIM).transpose(0, 2, 1, 3)
    s = jnp.einsum("bhqd,bhkd->bhqk", qh, kh) / (HDIM ** 0.5)
    s = jnp.where(m[:, None, None, :] > 0.0, s, -1e30)
    pw = jax.nn.softmax(s, axis=-1)
    ctx = jnp.einsum("bhqk,bhkd->bhqd", pw, vh).transpose(0, 2, 1, 3).reshape(B, S, H)
    attn = ctx @ p["wo"] + p["bo"]

    y = _layernorm(attn + x, p["gn"], p["bn"])
    h1 = _gelu(y @ p["wf1"] + p["bf1"])
    ff = h1 @ p["wf2"] + p["bf2"]

    pooled = (ff * m[..., None]).sum(1) / m.sum(1, keepdims=True)

    p1 = _gelu(_layernorm(pooled @ p["wp1"] + p["bp1"], p["g1"], p["be1"]))
    p2 = _layernorm(p1 @ p["wp2"] + p["bp2"], p["g2"], p["be2"])
    p3 = _layernorm(p2 @ p["wp3"] + p["bp3"], p["g3"], p["be3"])
    return p3 / jnp.maximum(jnp.linalg.norm(p3, axis=-1, keepdims=True), 1e-12)


def init_params(key, vocab):
    ks = list(jax.random.split(key, 24))

    def nrm(k, shape, scale):
        return scale * jax.random.normal(k, shape, dtype=jnp.float32)

    p = {}
    p["emb_table"] = nrm(ks[0], (vocab, H), 1.0)
    p["wqkv"] = nrm(ks[1], (H, 3 * H), 1.0 / (H ** 0.5))
    p["bqkv"] = nrm(ks[2], (1, 3 * H), 0.02)
    p["wo"] = nrm(ks[3], (H, H), 1.0 / (H ** 0.5))
    p["bo"] = nrm(ks[4], (1, H), 0.02)
    p["gn"] = 1.0 + nrm(ks[5], (1, H), 0.1)
    p["bn"] = nrm(ks[6], (1, H), 0.1)
    p["wf1"] = nrm(ks[7], (H, FF), 1.0 / (H ** 0.5))
    p["bf1"] = nrm(ks[8], (1, FF), 0.02)
    p["wf2"] = nrm(ks[9], (FF, H), 1.0 / (FF ** 0.5))
    p["bf2"] = nrm(ks[10], (1, H), 0.02)
    p["wp1"] = nrm(ks[11], (H, 256), 1.0 / (H ** 0.5))
    p["bp1"] = nrm(ks[12], (1, 256), 0.02)
    p["g1"] = 1.0 + nrm(ks[13], (1, 256), 0.1)
    p["be1"] = nrm(ks[14], (1, 256), 0.1)
    p["wp2"] = nrm(ks[15], (256, 128), 1.0 / (256 ** 0.5))
    p["bp2"] = nrm(ks[16], (1, 128), 0.02)
    p["g2"] = 1.0 + nrm(ks[17], (1, 128), 0.1)
    p["be2"] = nrm(ks[18], (1, 128), 0.1)
    p["wp3"] = nrm(ks[19], (128, OUT), 1.0 / (128 ** 0.5))
    p["bp3"] = nrm(ks[20], (1, OUT), 0.02)
    p["g3"] = 1.0 + nrm(ks[21], (1, OUT), 0.1)
    p["be3"] = nrm(ks[22], (1, OUT), 0.1)
    return p


if __name__ == "__main__":
    key = jax.random.PRNGKey(0)
    VOCAB = 100
    params = init_params(key, VOCAB)

    # ---- primary check: B=2, S=8, f32 compute, one sequence per step -------
    B, S = 2, 8
    k_ids = jax.random.fold_in(key, 123)
    input_ids = jax.random.randint(k_ids, (B, S), 0, VOCAB, dtype=jnp.int32)
    lengths = jnp.array([S, 5], dtype=jnp.int32)
    attention_mask = (jnp.arange(S)[None, :] < lengths[:, None]).astype(jnp.int32)

    out = jax.block_until_ready(
        book_embedding_forward(input_ids, attention_mask, params))
    assert out.shape == (B, OUT)

    with jax.default_matmul_precision("highest"):
        ref = reference_forward(input_ids, attention_mask, params)
    # Tolerance accounts for the approx-reciprocal (EUP) ops used for the
    # softmax denominator, 1/seq_len and the final L2 normalize.
    np.testing.assert_allclose(np.asarray(out), np.asarray(ref),
                               rtol=1e-2, atol=1e-2)

    # ---- bt > 1 path (multiple sequences per grid step, block-diag bias) ---
    B2 = 4
    k_ids2 = jax.random.fold_in(key, 456)
    ids2 = jax.random.randint(k_ids2, (B2, S), 0, VOCAB, dtype=jnp.int32)
    lens2 = jnp.array([S, 5, 3, 7], dtype=jnp.int32)
    mask2 = (jnp.arange(S)[None, :] < lens2[:, None]).astype(jnp.int32)
    out2 = jax.block_until_ready(book_embedding_forward(ids2, mask2, params))
    assert out2.shape == (B2, OUT)
    with jax.default_matmul_precision("highest"):
        ref2 = reference_forward(ids2, mask2, params)
    np.testing.assert_allclose(np.asarray(out2), np.asarray(ref2),
                               rtol=1e-2, atol=1e-2)

    # ---- bf16 compute path (v6e/v7x MXU): compile/run sanity check ---------
    out_bf16 = jax.block_until_ready(
        book_embedding_forward(input_ids, attention_mask, params,
                               compute_dtype=jnp.bfloat16))
    assert out_bf16.shape == (B, OUT)
    assert bool(jnp.all(jnp.isfinite(out_bf16)))

    print("KERNEL_OK")
</pallas_src>

<mosaic_0001>
module attributes {stable_mosaic.version = 11 : i64} {
  func.func @book_kernel(%arg0: i32, %arg1: memref<1x8x384xf32, #tpu.memory_space<vmem>>, %arg2: memref<1x1x8xf32, #tpu.memory_space<vmem>>, %arg3: memref<384x3072xf32, #tpu.memory_space<vmem>>, %arg4: memref<1x3072xf32, #tpu.memory_space<vmem>>, %arg5: memref<1024x384xf32, #tpu.memory_space<vmem>>, %arg6: memref<4x384xf32, #tpu.memory_space<vmem>>, %arg7: memref<384x1024xf32, #tpu.memory_space<vmem>>, %arg8: memref<1x1024xf32, #tpu.memory_space<vmem>>, %arg9: memref<1024x384xf32, #tpu.memory_space<vmem>>, %arg10: memref<384x256xf32, #tpu.memory_space<vmem>>, %arg11: memref<3x256xf32, #tpu.memory_space<vmem>>, %arg12: memref<256x128xf32, #tpu.memory_space<vmem>>, %arg13: memref<3x128xf32, #tpu.memory_space<vmem>>, %arg14: memref<128x20xf32, #tpu.memory_space<vmem>>, %arg15: memref<3x20xf32, #tpu.memory_space<vmem>>, %arg16: memref<1x1x128xf32, #tpu.memory_space<vmem>>) attributes {dimension_semantics = [#tpu.dimension_semantics<parallel>], iteration_bounds = array<i64: 2>, scalar_prefetch = 0 : i64, scratch_operands = 0 : i64, tpu.core_type = #tpu.core_type<tc>, window_params = [{transform_indices = @transform_0, window_bounds = array<i64: 1, 8, 384>}, {transform_indices = @transform_1, window_bounds = array<i64: 1, 1, 8>}, {pipeline_mode = #tpu.pipeline_mode<synchronous>, transform_indices = @transform_2, window_bounds = array<i64: 384, 3072>}, {pipeline_mode = #tpu.pipeline_mode<synchronous>, transform_indices = @transform_3, window_bounds = array<i64: 1, 3072>}, {pipeline_mode = #tpu.pipeline_mode<synchronous>, transform_indices = @transform_4, window_bounds = array<i64: 1024, 384>}, {pipeline_mode = #tpu.pipeline_mode<synchronous>, transform_indices = @transform_5, window_bounds = array<i64: 4, 384>}, {pipeline_mode = #tpu.pipeline_mode<synchronous>, transform_indices = @transform_6, window_bounds = array<i64: 384, 1024>}, {pipeline_mode = #tpu.pipeline_mode<synchronous>, transform_indices = @transform_7, window_bounds = array<i64: 1, 1024>}, {pipeline_mode = #tpu.pipeline_mode<synchronous>, transform_indices = @transform_8, window_bounds = array<i64: 1024, 384>}, {pipeline_mode = #tpu.pipeline_mode<synchronous>, transform_indices = @transform_9, window_bounds = array<i64: 384, 256>}, {pipeline_mode = #tpu.pipeline_mode<synchronous>, transform_indices = @transform_10, window_bounds = array<i64: 3, 256>}, {pipeline_mode = #tpu.pipeline_mode<synchronous>, transform_indices = @transform_11, window_bounds = array<i64: 256, 128>}, {pipeline_mode = #tpu.pipeline_mode<synchronous>, transform_indices = @transform_12, window_bounds = array<i64: 3, 128>}, {pipeline_mode = #tpu.pipeline_mode<synchronous>, transform_indices = @transform_13, window_bounds = array<i64: 128, 20>}, {pipeline_mode = #tpu.pipeline_mode<synchronous>, transform_indices = @transform_14, window_bounds = array<i64: 3, 20>}, {transform_indices = @transform_15, window_bounds = array<i64: 1, 1, 128>}]} {
    %c0 = arith.constant 0 : index
    %c0_0 = arith.constant 0 : index
    %c0_1 = arith.constant 0 : index
    %0 = vector.load %arg1[%c0, %c0_0, %c0_1] : memref<1x8x384xf32, #tpu.memory_space<vmem>>, vector<1x8x384xf32>
    %1 = vector.shape_cast %0 : vector<1x8x384xf32> to vector<8x384xf32>
    %c0_2 = arith.constant 0 : index
    %c0_3 = arith.constant 0 : index
    %c0_4 = arith.constant 0 : index
    %2 = vector.load %arg2[%c0_2, %c0_3, %c0_4] : memref<1x1x8xf32, #tpu.memory_space<vmem>>, vector<1x1x8xf32>
    %3 = vector.shape_cast %2 : vector<1x1x8xf32> to vector<1x8xf32>
    %c0_5 = arith.constant 0 : index
    %c0_6 = arith.constant 0 : index
    %4 = vector.load %arg3[%c0_5, %c0_6] : memref<384x3072xf32, #tpu.memory_space<vmem>>, vector<384x3072xf32>
    %cst = arith.constant dense<0.000000e+00> : vector<8x3072xf32>
    %5 = tpu.matmul %1, %4, %cst {dimension_numbers = #tpu.dot_dimension_numbers<[1], [0], [0], [1], [0, 0, 1, 1], [], []>} : vector<8x384xf32>, vector<384x3072xf32>, vector<8x3072xf32> -> vector<8x3072xf32>
    %c0_7 = arith.constant 0 : index
    %c0_8 = arith.constant 0 : index
    %6 = vector.load %arg4[%c0_7, %c0_8] : memref<1x3072xf32, #tpu.memory_space<vmem>>, vector<1x3072xf32>
    %7 = vector.broadcast %6 : vector<1x3072xf32> to vector<8x3072xf32>
    %8 = arith.addf %5, %7 : vector<8x3072xf32>
    %cst_9 = arith.constant 0.000000e+00 : f32
    %9 = vector.broadcast %cst_9 : f32 to vector<1x8xf32>
    %10 = arith.cmpf ogt, %3, %9 : vector<1x8xf32>
    %cst_10 = arith.constant 0.000000e+00 : f32
    %cst_11 = arith.constant -1.000000e+30 : f32
    %11 = vector.broadcast %cst_10 : f32 to vector<1x8xf32>
    %12 = vector.broadcast %cst_11 : f32 to vector<1x8xf32>
    %13 = arith.select %10, %11, %12 : vector<1x8xi1>, vector<1x8xf32>
    %14 = vector.extract_strided_slice %8 {offsets = [0, 0], sizes = [8, 128], strides = [1, 1]} : vector<8x3072xf32> to vector<8x128xf32>
    %15 = vector.extract_strided_slice %8 {offsets = [0, 1024], sizes = [8, 128], strides = [1, 1]} : vector<8x3072xf32> to vector<8x128xf32>
    %16 = vector.extract_strided_slice %8 {offsets = [0, 2048], sizes = [8, 128], strides = [1, 1]} : vector<8x3072xf32> to vector<8x128xf32>
    %cst_12 = arith.constant dense<0.000000e+00> : vector<8x8xf32>
    %17 = tpu.matmul %14, %15, %cst_12 {dimension_numbers = #tpu.dot_dimension_numbers<[1], [1], [0], [0], [0, 0, 1, 0], [], []>} : vector<8x128xf32>, vector<8x128xf32>, vector<8x8xf32> -> vector<8x8xf32>
    %18 = vector.broadcast %13 : vector<1x8xf32> to vector<8x8xf32>
    %19 = arith.addf %17, %18 : vector<8x8xf32>
    %cst_13 = arith.constant dense<0xFF800000> : vector<8xf32>
    %20 = vector.multi_reduction <maximumf>, %19, %cst_13 [1] : vector<8x8xf32> to vector<8xf32>
    %21 = vector.shape_cast %20 : vector<8xf32> to vector<8x1xf32>
    %22 = vector.broadcast %21 : vector<8x1xf32> to vector<8x8xf32>
    %23 = arith.subf %19, %22 : vector<8x8xf32>
    %24 = math.exp %23 : vector<8x8xf32>
    %cst_14 = arith.constant dense<0.000000e+00> : vector<8xf32>
    %25 = vector.multi_reduction <add>, %24, %cst_14 [1] : vector<8x8xf32> to vector<8xf32>
    %26 = vector.shape_cast %25 : vector<8xf32> to vector<8x1xf32>
    %27 = tpu.reciprocal %26 {approx = true} : vector<8x1xf32> -> vector<8x1xf32>
    %28 = vector.broadcast %27 : vector<8x1xf32> to vector<8x8xf32>
    %29 = arith.mulf %24, %28 : vector<8x8xf32>
    %cst_15 = arith.constant dense<0.000000e+00> : vector<8x128xf32>
    %30 = tpu.matmul %29, %16, %cst_15 {dimension_numbers = #tpu.dot_dimension_numbers<[1], [0], [0], [1], [0, 0, 1, 1], [], []>} : vector<8x8xf32>, vector<8x128xf32>, vector<8x128xf32> -> vector<8x128xf32>
    %31 = vector.extract_strided_slice %8 {offsets = [0, 128], sizes = [8, 128], strides = [1, 1]} : vector<8x3072xf32> to vector<8x128xf32>
    %32 = vector.extract_strided_slice %8 {offsets = [0, 1152], sizes = [8, 128], strides = [1, 1]} : vector<8x3072xf32> to vector<8x128xf32>
    %33 = vector.extract_strided_slice %8 {offsets = [0, 2176], sizes = [8, 128], strides = [1, 1]} : vector<8x3072xf32> to vector<8x128xf32>
    %cst_16 = arith.constant dense<0.000000e+00> : vector<8x8xf32>
    %34 = tpu.matmul %31, %32, %cst_16 {dimension_numbers = #tpu.dot_dimension_numbers<[1], [1], [0], [0], [0, 0, 1, 0], [], []>} : vector<8x128xf32>, vector<8x128xf32>, vector<8x8xf32> -> vector<8x8xf32>
    %35 = vector.broadcast %13 : vector<1x8xf32> to vector<8x8xf32>
    %36 = arith.addf %34, %35 : vector<8x8xf32>
    %cst_17 = arith.constant dense<0xFF800000> : vector<8xf32>
    %37 = vector.multi_reduction <maximumf>, %36, %cst_17 [1] : vector<8x8xf32> to vector<8xf32>
    %38 = vector.shape_cast %37 : vector<8xf32> to vector<8x1xf32>
    %39 = vector.broadcast %38 : vector<8x1xf32> to vector<8x8xf32>
    %40 = arith.subf %36, %39 : vector<8x8xf32>
    %41 = math.exp %40 : vector<8x8xf32>
    %cst_18 = arith.constant dense<0.000000e+00> : vector<8xf32>
    %42 = vector.multi_reduction <add>, %41, %cst_18 [1] : vector<8x8xf32> to vector<8xf32>
    %43 = vector.shape_cast %42 : vector<8xf32> to vector<8x1xf32>
    %44 = tpu.reciprocal %43 {approx = true} : vector<8x1xf32> -> vector<8x1xf32>
    %45 = vector.broadcast %44 : vector<8x1xf32> to vector<8x8xf32>
    %46 = arith.mulf %41, %45 : vector<8x8xf32>
    %cst_19 = arith.constant dense<0.000000e+00> : vector<8x128xf32>
    %47 = tpu.matmul %46, %33, %cst_19 {dimension_numbers = #tpu.dot_dimension_numbers<[1], [0], [0], [1], [0, 0, 1, 1], [], []>} : vector<8x8xf32>, vector<8x128xf32>, vector<8x128xf32> -> vector<8x128xf32>
    %48 = vector.extract_strided_slice %8 {offsets = [0, 256], sizes = [8, 128], strides = [1, 1]} : vector<8x3072xf32> to vector<8x128xf32>
    %49 = vector.extract_strided_slice %8 {offsets = [0, 1280], sizes = [8, 128], strides = [1, 1]} : vector<8x3072xf32> to vector<8x128xf32>
    %50 = vector.extract_strided_slice %8 {offsets = [0, 2304], sizes = [8, 128], strides = [1, 1]} : vector<8x3072xf32> to vector<8x128xf32>
    %cst_20 = arith.constant dense<0.000000e+00> : vector<8x8xf32>
    %51 = tpu.matmul %48, %49, %cst_20 {dimension_numbers = #tpu.dot_dimension_numbers<[1], [1], [0], [0], [0, 0, 1, 0], [], []>} : vector<8x128xf32>, vector<8x128xf32>, vector<8x8xf32> -> vector<8x8xf32>
    %52 = vector.broadcast %13 : vector<1x8xf32> to vector<8x8xf32>
    %53 = arith.addf %51, %52 : vector<8x8xf32>
    %cst_21 = arith.constant dense<0xFF800000> : vector<8xf32>
    %54 = vector.multi_reduction <maximumf>, %53, %cst_21 [1] : vector<8x8xf32> to vector<8xf32>
    %55 = vector.shape_cast %54 : vector<8xf32> to vector<8x1xf32>
    %56 = vector.broadcast %55 : vector<8x1xf32> to vector<8x8xf32>
    %57 = arith.subf %53, %56 : vector<8x8xf32>
    %58 = math.exp %57 : vector<8x8xf32>
    %cst_22 = arith.constant dense<0.000000e+00> : vector<8xf32>
    %59 = vector.multi_reduction <add>, %58, %cst_22 [1] : vector<8x8xf32> to vector<8xf32>
    %60 = vector.shape_cast %59 : vector<8xf32> to vector<8x1xf32>
    %61 = tpu.reciprocal %60 {approx = true} : vector<8x1xf32> -> vector<8x1xf32>
    %62 = vector.broadcast %61 : vector<8x1xf32> to vector<8x8xf32>
    %63 = arith.mulf %58, %62 : vector<8x8xf32>
    %cst_23 = arith.constant dense<0.000000e+00> : vector<8x128xf32>
    %64 = tpu.matmul %63, %50, %cst_23 {dimension_numbers = #tpu.dot_dimension_numbers<[1], [0], [0], [1], [0, 0, 1, 1], [], []>} : vector<8x8xf32>, vector<8x128xf32>, vector<8x128xf32> -> vector<8x128xf32>
    %65 = vector.extract_strided_slice %8 {offsets = [0, 384], sizes = [8, 128], strides = [1, 1]} : vector<8x3072xf32> to vector<8x128xf32>
    %66 = vector.extract_strided_slice %8 {offsets = [0, 1408], sizes = [8, 128], strides = [1, 1]} : vector<8x3072xf32> to vector<8x128xf32>
    %67 = vector.extract_strided_slice %8 {offsets = [0, 2432], sizes = [8, 128], strides = [1, 1]} : vector<8x3072xf32> to vector<8x128xf32>
    %cst_24 = arith.constant dense<0.000000e+00> : vector<8x8xf32>
    %68 = tpu.matmul %65, %66, %cst_24 {dimension_numbers = #tpu.dot_dimension_numbers<[1], [1], [0], [0], [0, 0, 1, 0], [], []>} : vector<8x128xf32>, vector<8x128xf32>, vector<8x8xf32> -> vector<8x8xf32>
    %69 = vector.broadcast %13 : vector<1x8xf32> to vector<8x8xf32>
    %70 = arith.addf %68, %69 : vector<8x8xf32>
    %cst_25 = arith.constant dense<0xFF800000> : vector<8xf32>
    %71 = vector.multi_reduction <maximumf>, %70, %cst_25 [1] : vector<8x8xf32> to vector<8xf32>
    %72 = vector.shape_cast %71 : vector<8xf32> to vector<8x1xf32>
    %73 = vector.broadcast %72 : vector<8x1xf32> to vector<8x8xf32>
    %74 = arith.subf %70, %73 : vector<8x8xf32>
    %75 = math.exp %74 : vector<8x8xf32>
    %cst_26 = arith.constant dense<0.000000e+00> : vector<8xf32>
    %76 = vector.multi_reduction <add>, %75, %cst_26 [1] : vector<8x8xf32> to vector<8xf32>
    %77 = vector.shape_cast %76 : vector<8xf32> to vector<8x1xf32>
    %78 = tpu.reciprocal %77 {approx = true} : vector<8x1xf32> -> vector<8x1xf32>
    %79 = vector.broadcast %78 : vector<8x1xf32> to vector<8x8xf32>
    %80 = arith.mulf %75, %79 : vector<8x8xf32>
    %cst_27 = arith.constant dense<0.000000e+00> : vector<8x128xf32>
    %81 = tpu.matmul %80, %67, %cst_27 {dimension_numbers = #tpu.dot_dimension_numbers<[1], [0], [0], [1], [0, 0, 1, 1], [], []>} : vector<8x8xf32>, vector<8x128xf32>, vector<8x128xf32> -> vector<8x128xf32>
    %82 = vector.extract_strided_slice %8 {offsets = [0, 512], sizes = [8, 128], strides = [1, 1]} : vector<8x3072xf32> to vector<8x128xf32>
    %83 = vector.extract_strided_slice %8 {offsets = [0, 1536], sizes = [8, 128], strides = [1, 1]} : vector<8x3072xf32> to vector<8x128xf32>
    %84 = vector.extract_strided_slice %8 {offsets = [0, 2560], sizes = [8, 128], strides = [1, 1]} : vector<8x3072xf32> to vector<8x128xf32>
    %cst_28 = arith.constant dense<0.000000e+00> : vector<8x8xf32>
    %85 = tpu.matmul %82, %83, %cst_28 {dimension_numbers = #tpu.dot_dimension_numbers<[1], [1], [0], [0], [0, 0, 1, 0], [], []>} : vector<8x128xf32>, vector<8x128xf32>, vector<8x8xf32> -> vector<8x8xf32>
    %86 = vector.broadcast %13 : vector<1x8xf32> to vector<8x8xf32>
    %87 = arith.addf %85, %86 : vector<8x8xf32>
    %cst_29 = arith.constant dense<0xFF800000> : vector<8xf32>
    %88 = vector.multi_reduction <maximumf>, %87, %cst_29 [1] : vector<8x8xf32> to vector<8xf32>
    %89 = vector.shape_cast %88 : vector<8xf32> to vector<8x1xf32>
    %90 = vector.broadcast %89 : vector<8x1xf32> to vector<8x8xf32>
    %91 = arith.subf %87, %90 : vector<8x8xf32>
    %92 = math.exp %91 : vector<8x8xf32>
    %cst_30 = arith.constant dense<0.000000e+00> : vector<8xf32>
    %93 = vector.multi_reduction <add>, %92, %cst_30 [1] : vector<8x8xf32> to vector<8xf32>
    %94 = vector.shape_cast %93 : vector<8xf32> to vector<8x1xf32>
    %95 = tpu.reciprocal %94 {approx = true} : vector<8x1xf32> -> vector<8x1xf32>
    %96 = vector.broadcast %95 : vector<8x1xf32> to vector<8x8xf32>
    %97 = arith.mulf %92, %96 : vector<8x8xf32>
    %cst_31 = arith.constant dense<0.000000e+00> : vector<8x128xf32>
    %98 = tpu.matmul %97, %84, %cst_31 {dimension_numbers = #tpu.dot_dimension_numbers<[1], [0], [0], [1], [0, 0, 1, 1], [], []>} : vector<8x8xf32>, vector<8x128xf32>, vector<8x128xf32> -> vector<8x128xf32>
    %99 = vector.extract_strided_slice %8 {offsets = [0, 640], sizes = [8, 128], strides = [1, 1]} : vector<8x3072xf32> to vector<8x128xf32>
    %100 = vector.extract_strided_slice %8 {offsets = [0, 1664], sizes = [8, 128], strides = [1, 1]} : vector<8x3072xf32> to vector<8x128xf32>
    %101 = vector.extract_strided_slice %8 {offsets = [0, 2688], sizes = [8, 128], strides = [1, 1]} : vector<8x3072xf32> to vector<8x128xf32>
    %cst_32 = arith.constant dense<0.000000e+00> : vector<8x8xf32>
    %102 = tpu.matmul %99, %100, %cst_32 {dimension_numbers = #tpu.dot_dimension_numbers<[1], [1], [0], [0], [0, 0, 1, 0], [], []>} : vector<8x128xf32>, vector<8x128xf32>, vector<8x8xf32> -> vector<8x8xf32>
    %103 = vector.broadcast %13 : vector<1x8xf32> to vector<8x8xf32>
    %104 = arith.addf %102, %103 : vector<8x8xf32>
    %cst_33 = arith.constant dense<0xFF800000> : vector<8xf32>
    %105 = vector.multi_reduction <maximumf>, %104, %cst_33 [1] : vector<8x8xf32> to vector<8xf32>
    %106 = vector.shape_cast %105 : vector<8xf32> to vector<8x1xf32>
    %107 = vector.broadcast %106 : vector<8x1xf32> to vector<8x8xf32>
    %108 = arith.subf %104, %107 : vector<8x8xf32>
    %109 = math.exp %108 : vector<8x8xf32>
    %cst_34 = arith.constant dense<0.000000e+00> : vector<8xf32>
    %110 = vector.multi_reduction <add>, %109, %cst_34 [1] : vector<8x8xf32> to vector<8xf32>
    %111 = vector.shape_cast %110 : vector<8xf32> to vector<8x1xf32>
    %112 = tpu.reciprocal %111 {approx = true} : vector<8x1xf32> -> vector<8x1xf32>
    %113 = vector.broadcast %112 : vector<8x1xf32> to vector<8x8xf32>
    %114 = arith.mulf %109, %113 : vector<8x8xf32>
    %cst_35 = arith.constant dense<0.000000e+00> : vector<8x128xf32>
    %115 = tpu.matmul %114, %101, %cst_35 {dimension_numbers = #tpu.dot_dimension_numbers<[1], [0], [0], [1], [0, 0, 1, 1], [], []>} : vector<8x8xf32>, vector<8x128xf32>, vector<8x128xf32> -> vector<8x128xf32>
    %116 = vector.extract_strided_slice %8 {offsets = [0, 768], sizes = [8, 128], strides = [1, 1]} : vector<8x3072xf32> to vector<8x128xf32>
    %117 = vector.extract_strided_slice %8 {offsets = [0, 1792], sizes = [8, 128], strides = [1, 1]} : vector<8x3072xf32> to vector<8x128xf32>
    %118 = vector.extract_strided_slice %8 {offsets = [0, 2816], sizes = [8, 128], strides = [1, 1]} : vector<8x3072xf32> to vector<8x128xf32>
    %cst_36 = arith.constant dense<0.000000e+00> : vector<8x8xf32>
    %119 = tpu.matmul %116, %117, %cst_36 {dimension_numbers = #tpu.dot_dimension_numbers<[1], [1], [0], [0], [0, 0, 1, 0], [], []>} : vector<8x128xf32>, vector<8x128xf32>, vector<8x8xf32> -> vector<8x8xf32>
    %120 = vector.broadcast %13 : vector<1x8xf32> to vector<8x8xf32>
    %121 = arith.addf %119, %120 : vector<8x8xf32>
    %cst_37 = arith.constant dense<0xFF800000> : vector<8xf32>
    %122 = vector.multi_reduction <maximumf>, %121, %cst_37 [1] : vector<8x8xf32> to vector<8xf32>
    %123 = vector.shape_cast %122 : vector<8xf32> to vector<8x1xf32>
    %124 = vector.broadcast %123 : vector<8x1xf32> to vector<8x8xf32>
    %125 = arith.subf %121, %124 : vector<8x8xf32>
    %126 = math.exp %125 : vector<8x8xf32>
    %cst_38 = arith.constant dense<0.000000e+00> : vector<8xf32>
    %127 = vector.multi_reduction <add>, %126, %cst_38 [1] : vector<8x8xf32> to vector<8xf32>
    %128 = vector.shape_cast %127 : vector<8xf32> to vector<8x1xf32>
    %129 = tpu.reciprocal %128 {approx = true} : vector<8x1xf32> -> vector<8x1xf32>
    %130 = vector.broadcast %129 : vector<8x1xf32> to vector<8x8xf32>
    %131 = arith.mulf %126, %130 : vector<8x8xf32>
    %cst_39 = arith.constant dense<0.000000e+00> : vector<8x128xf32>
    %132 = tpu.matmul %131, %118, %cst_39 {dimension_numbers = #tpu.dot_dimension_numbers<[1], [0], [0], [1], [0, 0, 1, 1], [], []>} : vector<8x8xf32>, vector<8x128xf32>, vector<8x128xf32> -> vector<8x128xf32>
    %133 = vector.extract_strided_slice %8 {offsets = [0, 896], sizes = [8, 128], strides = [1, 1]} : vector<8x3072xf32> to vector<8x128xf32>
    %134 = vector.extract_strided_slice %8 {offsets = [0, 1920], sizes = [8, 128], strides = [1, 1]} : vector<8x3072xf32> to vector<8x128xf32>
    %135 = vector.extract_strided_slice %8 {offsets = [0, 2944], sizes = [8, 128], strides = [1, 1]} : vector<8x3072xf32> to vector<8x128xf32>
    %cst_40 = arith.constant dense<0.000000e+00> : vector<8x8xf32>
    %136 = tpu.matmul %133, %134, %cst_40 {dimension_numbers = #tpu.dot_dimension_numbers<[1], [1], [0], [0], [0, 0, 1, 0], [], []>} : vector<8x128xf32>, vector<8x128xf32>, vector<8x8xf32> -> vector<8x8xf32>
    %137 = vector.broadcast %13 : vector<1x8xf32> to vector<8x8xf32>
    %138 = arith.addf %136, %137 : vector<8x8xf32>
    %cst_41 = arith.constant dense<0xFF800000> : vector<8xf32>
    %139 = vector.multi_reduction <maximumf>, %138, %cst_41 [1] : vector<8x8xf32> to vector<8xf32>
    %140 = vector.shape_cast %139 : vector<8xf32> to vector<8x1xf32>
    %141 = vector.broadcast %140 : vector<8x1xf32> to vector<8x8xf32>
    %142 = arith.subf %138, %141 : vector<8x8xf32>
    %143 = math.exp %142 : vector<8x8xf32>
    %cst_42 = arith.constant dense<0.000000e+00> : vector<8xf32>
    %144 = vector.multi_reduction <add>, %143, %cst_42 [1] : vector<8x8xf32> to vector<8xf32>
    %145 = vector.shape_cast %144 : vector<8xf32> to vector<8x1xf32>
    %146 = tpu.reciprocal %145 {approx = true} : vector<8x1xf32> -> vector<8x1xf32>
    %147 = vector.broadcast %146 : vector<8x1xf32> to vector<8x8xf32>
    %148 = arith.mulf %143, %147 : vector<8x8xf32>
    %cst_43 = arith.constant dense<0.000000e+00> : vector<8x128xf32>
    %149 = tpu.matmul %148, %135, %cst_43 {dimension_numbers = #tpu.dot_dimension_numbers<[1], [0], [0], [1], [0, 0, 1, 1], [], []>} : vector<8x8xf32>, vector<8x128xf32>, vector<8x128xf32> -> vector<8x128xf32>
    %150 = tpu.concatenate %30, %47, %64, %81, %98, %115, %132, %149 in 1 : vector<8x128xf32>, vector<8x128xf32>, vector<8x128xf32>, vector<8x128xf32>, vector<8x128xf32>, vector<8x128xf32>, vector<8x128xf32>, vector<8x128xf32> -> vector<8x1024xf32>
    %c0_44 = arith.constant 0 : index
    %c0_45 = arith.constant 0 : index
    %151 = vector.load %arg6[%c0_44, %c0_45] : memref<4x384xf32, #tpu.memory_space<vmem>>, vector<1x384xf32>
    %c1 = arith.constant 1 : index
    %c0_46 = arith.constant 0 : index
    %152 = vector.load %arg6[%c1, %c0_46] : memref<4x384xf32, #tpu.memory_space<vmem>>, vector<1x384xf32>
    %c2 = arith.constant 2 : index
    %c0_47 = arith.constant 0 : index
    %153 = vector.load %arg6[%c2, %c0_47] : memref<4x384xf32, #tpu.memory_space<vmem>>, vector<1x384xf32>
    %c3 = arith.constant 3 : index
    %c0_48 = arith.constant 0 : index
    %154 = vector.load %arg6[%c3, %c0_48] : memref<4x384xf32, #tpu.memory_space<vmem>>, vector<1x384xf32>
    %c0_49 = arith.constant 0 : index
    %c0_50 = arith.constant 0 : index
    %155 = vector.load %arg5[%c0_49, %c0_50] : memref<1024x384xf32, #tpu.memory_space<vmem>>, vector<1024x384xf32>
    %cst_51 = arith.constant dense<0.000000e+00> : vector<8x384xf32>
    %156 = tpu.matmul %150, %155, %cst_51 {dimension_numbers = #tpu.dot_dimension_numbers<[1], [0], [0], [1], [0, 0, 1, 1], [], []>} : vector<8x1024xf32>, vector<1024x384xf32>, vector<8x384xf32> -> vector<8x384xf32>
    %157 = vector.broadcast %151 : vector<1x384xf32> to vector<8x384xf32>
    %158 = arith.addf %156, %157 : vector<8x384xf32>
    %159 = arith.addf %158, %1 : vector<8x384xf32>
    %cst_52 = arith.constant dense<0.000000e+00> : vector<8xf32>
    %160 = vector.multi_reduction <add>, %159, %cst_52 [1] : vector<8x384xf32> to vector<8xf32>
    %161 = vector.shape_cast %160 : vector<8xf32> to vector<8x1xf32>
    %cst_53 = arith.constant 3.840000e+02 : f32
    %162 = vector.broadcast %cst_53 : f32 to vector<8x1xf32>
    %163 = arith.divf %161, %162 : vector<8x1xf32>
    %164 = vector.broadcast %163 : vector<8x1xf32> to vector<8x384xf32>
    %165 = arith.subf %159, %164 : vector<8x384xf32>
    %166 = arith.mulf %165, %165 : vector<8x384xf32>
    %cst_54 = arith.constant dense<0.000000e+00> : vector<8xf32>
    %167 = vector.multi_reduction <add>, %166, %cst_54 [1] : vector<8x384xf32> to vector<8xf32>
    %168 = vector.shape_cast %167 : vector<8xf32> to vector<8x1xf32>
    %cst_55 = arith.constant 3.840000e+02 : f32
    %169 = vector.broadcast %cst_55 : f32 to vector<8x1xf32>
    %170 = arith.divf %168, %169 : vector<8x1xf32>
    %171 = vector.broadcast %163 : vector<8x1xf32> to vector<8x384xf32>
    %172 = arith.subf %159, %171 : vector<8x384xf32>
    %cst_56 = arith.constant 9.99999974E-6 : f32
    %173 = vector.broadcast %cst_56 : f32 to vector<8x1xf32>
    %174 = arith.addf %170, %173 : vector<8x1xf32>
    %175 = math.rsqrt %174 : vector<8x1xf32>
    %176 = vector.broadcast %175 : vector<8x1xf32> to vector<8x384xf32>
    %177 = arith.mulf %172, %176 : vector<8x384xf32>
    %178 = vector.broadcast %152 : vector<1x384xf32> to vector<8x384xf32>
    %179 = arith.mulf %177, %178 : vector<8x384xf32>
    %180 = vector.broadcast %153 : vector<1x384xf32> to vector<8x384xf32>
    %181 = arith.addf %179, %180 : vector<8x384xf32>
    %c0_57 = arith.constant 0 : index
    %c0_58 = arith.constant 0 : index
    %182 = vector.load %arg7[%c0_57, %c0_58] : memref<384x1024xf32, #tpu.memory_space<vmem>>, vector<384x1024xf32>
    %cst_59 = arith.constant dense<0.000000e+00> : vector<8x1024xf32>
    %183 = tpu.matmul %181, %182, %cst_59 {dimension_numbers = #tpu.dot_dimension_numbers<[1], [0], [0], [1], [0, 0, 1, 1], [], []>} : vector<8x384xf32>, vector<384x1024xf32>, vector<8x1024xf32> -> vector<8x1024xf32>
    %c0_60 = arith.constant 0 : index
    %c0_61 = arith.constant 0 : index
    %184 = vector.load %arg8[%c0_60, %c0_61] : memref<1x1024xf32, #tpu.memory_space<vmem>>, vector<1x1024xf32>
    %185 = vector.broadcast %184 : vector<1x1024xf32> to vector<8x1024xf32>
    %186 = arith.addf %183, %185 : vector<8x1024xf32>
    %cst_62 = arith.constant 5.000000e-01 : f32
    %187 = vector.broadcast %cst_62 : f32 to vector<8x1024xf32>
    %188 = arith.mulf %187, %186 : vector<8x1024xf32>
    %cst_63 = arith.constant 0.707106769 : f32
    %189 = vector.broadcast %cst_63 : f32 to vector<8x1024xf32>
    %190 = arith.mulf %186, %189 : vector<8x1024xf32>
    %191 = math.erf %190 : vector<8x1024xf32>
    %cst_64 = arith.constant 1.000000e+00 : f32
    %192 = vector.broadcast %cst_64 : f32 to vector<8x1024xf32>
    %193 = arith.addf %192, %191 : vector<8x1024xf32>
    %194 = arith.mulf %188, %193 : vector<8x1024xf32>
    %c0_65 = arith.constant 0 : index
    %c0_66 = arith.constant 0 : index
    %195 = vector.load %arg9[%c0_65, %c0_66] : memref<1024x384xf32, #tpu.memory_space<vmem>>, vector<1024x384xf32>
    %cst_67 = arith.constant dense<0.000000e+00> : vector<8x384xf32>
    %196 = tpu.matmul %194, %195, %cst_67 {dimension_numbers = #tpu.dot_dimension_numbers<[1], [0], [0], [1], [0, 0, 1, 1], [], []>} : vector<8x1024xf32>, vector<1024x384xf32>, vector<8x384xf32> -> vector<8x384xf32>
    %197 = vector.broadcast %154 : vector<1x384xf32> to vector<8x384xf32>
    %198 = arith.addf %196, %197 : vector<8x384xf32>
    %cst_68 = arith.constant dense<0.000000e+00> : vector<1xf32>
    %199 = vector.multi_reduction <add>, %3, %cst_68 [1] : vector<1x8xf32> to vector<1xf32>
    %200 = vector.shape_cast %199 : vector<1xf32> to vector<1x1xf32>
    %cst_69 = arith.constant 1.000000e+00 : f32
    %201 = vector.broadcast %cst_69 : f32 to vector<1x1xf32>
    %202 = arith.maximumf %200, %201 : vector<1x1xf32>
    %203 = tpu.reciprocal %202 {approx = true} : vector<1x1xf32> -> vector<1x1xf32>
    %204 = vector.broadcast %203 : vector<1x1xf32> to vector<1x8xf32>
    %205 = arith.mulf %3, %204 : vector<1x8xf32>
    %cst_70 = arith.constant dense<0.000000e+00> : vector<1x384xf32>
    %206 = tpu.matmul %205, %198, %cst_70 {dimension_numbers = #tpu.dot_dimension_numbers<[1], [0], [0], [1], [0, 0, 1, 1], [], []>} : vector<1x8xf32>, vector<8x384xf32>, vector<1x384xf32> -> vector<1x384xf32>
    %c0_71 = arith.constant 0 : index
    %c0_72 = arith.constant 0 : index
    %207 = vector.load %arg10[%c0_71, %c0_72] : memref<384x256xf32, #tpu.memory_space<vmem>>, vector<384x256xf32>
    %cst_73 = arith.constant dense<0.000000e+00> : vector<1x256xf32>
    %208 = tpu.matmul %206, %207, %cst_73 {dimension_numbers = #tpu.dot_dimension_numbers<[1], [0], [0], [1], [0, 0, 1, 1], [], []>} : vector<1x384xf32>, vector<384x256xf32>, vector<1x256xf32> -> vector<1x256xf32>
    %c0_74 = arith.constant 0 : index
    %c0_75 = arith.constant 0 : index
    %209 = vector.load %arg11[%c0_74, %c0_75] : memref<3x256xf32, #tpu.memory_space<vmem>>, vector<1x256xf32>
    %210 = arith.addf %208, %209 : vector<1x256xf32>
    %c1_76 = arith.constant 1 : index
    %c0_77 = arith.constant 0 : index
    %211 = vector.load %arg11[%c1_76, %c0_77] : memref<3x256xf32, #tpu.memory_space<vmem>>, vector<1x256xf32>
    %c2_78 = arith.constant 2 : index
    %c0_79 = arith.constant 0 : index
    %212 = vector.load %arg11[%c2_78, %c0_79] : memref<3x256xf32, #tpu.memory_space<vmem>>, vector<1x256xf32>
    %cst_80 = arith.constant dense<0.000000e+00> : vector<1xf32>
    %213 = vector.multi_reduction <add>, %210, %cst_80 [1] : vector<1x256xf32> to vector<1xf32>
    %214 = vector.shape_cast %213 : vector<1xf32> to vector<1x1xf32>
    %cst_81 = arith.constant 2.560000e+02 : f32
    %215 = vector.broadcast %cst_81 : f32 to vector<1x1xf32>
    %216 = arith.divf %214, %215 : vector<1x1xf32>
    %217 = vector.broadcast %216 : vector<1x1xf32> to vector<1x256xf32>
    %218 = arith.subf %210, %217 : vector<1x256xf32>
    %219 = arith.mulf %218, %218 : vector<1x256xf32>
    %cst_82 = arith.constant dense<0.000000e+00> : vector<1xf32>
    %220 = vector.multi_reduction <add>, %219, %cst_82 [1] : vector<1x256xf32> to vector<1xf32>
    %221 = vector.shape_cast %220 : vector<1xf32> to vector<1x1xf32>
    %cst_83 = arith.constant 2.560000e+02 : f32
    %222 = vector.broadcast %cst_83 : f32 to vector<1x1xf32>
    %223 = arith.divf %221, %222 : vector<1x1xf32>
    %224 = vector.broadcast %216 : vector<1x1xf32> to vector<1x256xf32>
    %225 = arith.subf %210, %224 : vector<1x256xf32>
    %cst_84 = arith.constant 9.99999974E-6 : f32
    %226 = vector.broadcast %cst_84 : f32 to vector<1x1xf32>
    %227 = arith.addf %223, %226 : vector<1x1xf32>
    %228 = math.rsqrt %227 : vector<1x1xf32>
    %229 = vector.broadcast %228 : vector<1x1xf32> to vector<1x256xf32>
    %230 = arith.mulf %225, %229 : vector<1x256xf32>
    %231 = arith.mulf %230, %211 : vector<1x256xf32>
    %232 = arith.addf %231, %212 : vector<1x256xf32>
    %cst_85 = arith.constant 5.000000e-01 : f32
    %233 = vector.broadcast %cst_85 : f32 to vector<1x256xf32>
    %234 = arith.mulf %233, %232 : vector<1x256xf32>
    %cst_86 = arith.constant 0.707106769 : f32
    %235 = vector.broadcast %cst_86 : f32 to vector<1x256xf32>
    %236 = arith.mulf %232, %235 : vector<1x256xf32>
    %237 = math.erf %236 : vector<1x256xf32>
    %cst_87 = arith.constant 1.000000e+00 : f32
    %238 = vector.broadcast %cst_87 : f32 to vector<1x256xf32>
    %239 = arith.addf %238, %237 : vector<1x256xf32>
    %240 = arith.mulf %234, %239 : vector<1x256xf32>
    %c0_88 = arith.constant 0 : index
    %c0_89 = arith.constant 0 : index
    %241 = vector.load %arg12[%c0_88, %c0_89] : memref<256x128xf32, #tpu.memory_space<vmem>>, vector<256x128xf32>
    %cst_90 = arith.constant dense<0.000000e+00> : vector<1x128xf32>
    %242 = tpu.matmul %240, %241, %cst_90 {dimension_numbers = #tpu.dot_dimension_numbers<[1], [0], [0], [1], [0, 0, 1, 1], [], []>} : vector<1x256xf32>, vector<256x128xf32>, vector<1x128xf32> -> vector<1x128xf32>
    %c0_91 = arith.constant 0 : index
    %c0_92 = arith.constant 0 : index
    %243 = vector.load %arg13[%c0_91, %c0_92] : memref<3x128xf32, #tpu.memory_space<vmem>>, vector<1x128xf32>
    %244 = arith.addf %242, %243 : vector<1x128xf32>
    %c1_93 = arith.constant 1 : index
    %c0_94 = arith.constant 0 : index
    %245 = vector.load %arg13[%c1_93, %c0_94] : memref<3x128xf32, #tpu.memory_space<vmem>>, vector<1x128xf32>
    %c2_95 = arith.constant 2 : index
    %c0_96 = arith.constant 0 : index
    %246 = vector.load %arg13[%c2_95, %c0_96] : memref<3x128xf32, #tpu.memory_space<vmem>>, vector<1x128xf32>
    %cst_97 = arith.constant dense<0.000000e+00> : vector<1xf32>
    %247 = vector.multi_reduction <add>, %244, %cst_97 [1] : vector<1x128xf32> to vector<1xf32>
    %248 = vector.shape_cast %247 : vector<1xf32> to vector<1x1xf32>
    %cst_98 = arith.constant 1.280000e+02 : f32
    %249 = vector.broadcast %cst_98 : f32 to vector<1x1xf32>
    %250 = arith.divf %248, %249 : vector<1x1xf32>
    %251 = vector.broadcast %250 : vector<1x1xf32> to vector<1x128xf32>
    %252 = arith.subf %244, %251 : vector<1x128xf32>
    %253 = arith.mulf %252, %252 : vector<1x128xf32>
    %cst_99 = arith.constant dense<0.000000e+00> : vector<1xf32>
    %254 = vector.multi_reduction <add>, %253, %cst_99 [1] : vector<1x128xf32> to vector<1xf32>
    %255 = vector.shape_cast %254 : vector<1xf32> to vector<1x1xf32>
    %cst_100 = arith.constant 1.280000e+02 : f32
    %256 = vector.broadcast %cst_100 : f32 to vector<1x1xf32>
    %257 = arith.divf %255, %256 : vector<1x1xf32>
    %258 = vector.broadcast %250 : vector<1x1xf32> to vector<1x128xf32>
    %259 = arith.subf %244, %258 : vector<1x128xf32>
    %cst_101 = arith.constant 9.99999974E-6 : f32
    %260 = vector.broadcast %cst_101 : f32 to vector<1x1xf32>
    %261 = arith.addf %257, %260 : vector<1x1xf32>
    %262 = math.rsqrt %261 : vector<1x1xf32>
    %263 = vector.broadcast %262 : vector<1x1xf32> to vector<1x128xf32>
    %264 = arith.mulf %259, %263 : vector<1x128xf32>
    %265 = arith.mulf %264, %245 : vector<1x128xf32>
    %266 = arith.addf %265, %246 : vector<1x128xf32>
    %c0_102 = arith.constant 0 : index
    %c0_103 = arith.constant 0 : index
    %267 = vector.load %arg14[%c0_102, %c0_103] : memref<128x20xf32, #tpu.memory_space<vmem>>, vector<128x20xf32>
    %cst_104 = arith.constant dense<0.000000e+00> : vector<1x20xf32>
    %268 = tpu.matmul %266, %267, %cst_104 {dimension_numbers = #tpu.dot_dimension_numbers<[1], [0], [0], [1], [0, 0, 1, 1], [], []>} : vector<1x128xf32>, vector<128x20xf32>, vector<1x20xf32> -> vector<1x20xf32>
    %c0_105 = arith.constant 0 : index
    %c0_106 = arith.constant 0 : index
    %269 = vector.load %arg15[%c0_105, %c0_106] : memref<3x20xf32, #tpu.memory_space<vmem>>, vector<1x20xf32>
    %270 = arith.addf %268, %269 : vector<1x20xf32>
    %c1_107 = arith.constant 1 : index
    %c0_108 = arith.constant 0 : index
    %271 = vector.load %arg15[%c1_107, %c0_108] : memref<3x20xf32, #tpu.memory_space<vmem>>, vector<1x20xf32>
    %c2_109 = arith.constant 2 : index
    %c0_110 = arith.constant 0 : index
    %272 = vector.load %arg15[%c2_109, %c0_110] : memref<3x20xf32, #tpu.memory_space<vmem>>, vector<1x20xf32>
    %cst_111 = arith.constant dense<0.000000e+00> : vector<1xf32>
    %273 = vector.multi_reduction <add>, %270, %cst_111 [1] : vector<1x20xf32> to vector<1xf32>
    %274 = vector.shape_cast %273 : vector<1xf32> to vector<1x1xf32>
    %cst_112 = arith.constant 2.000000e+01 : f32
    %275 = vector.broadcast %cst_112 : f32 to vector<1x1xf32>
    %276 = arith.divf %274, %275 : vector<1x1xf32>
    %277 = vector.broadcast %276 : vector<1x1xf32> to vector<1x20xf32>
    %278 = arith.subf %270, %277 : vector<1x20xf32>
    %279 = arith.mulf %278, %278 : vector<1x20xf32>
    %cst_113 = arith.constant dense<0.000000e+00> : vector<1xf32>
    %280 = vector.multi_reduction <add>, %279, %cst_113 [1] : vector<1x20xf32> to vector<1xf32>
    %281 = vector.shape_cast %280 : vector<1xf32> to vector<1x1xf32>
    %cst_114 = arith.constant 2.000000e+01 : f32
    %282 = vector.broadcast %cst_114 : f32 to vector<1x1xf32>
    %283 = arith.divf %281, %282 : vector<1x1xf32>
    %284 = vector.broadcast %276 : vector<1x1xf32> to vector<1x20xf32>
    %285 = arith.subf %270, %284 : vector<1x20xf32>
    %cst_115 = arith.constant 9.99999974E-6 : f32
    %286 = vector.broadcast %cst_115 : f32 to vector<1x1xf32>
    %287 = arith.addf %283, %286 : vector<1x1xf32>
    %288 = math.rsqrt %287 : vector<1x1xf32>
    %289 = vector.broadcast %288 : vector<1x1xf32> to vector<1x20xf32>
    %290 = arith.mulf %285, %289 : vector<1x20xf32>
    %291 = arith.mulf %290, %271 : vector<1x20xf32>
    %292 = arith.addf %291, %272 : vector<1x20xf32>
    %293 = arith.mulf %292, %292 : vector<1x20xf32>
    %cst_116 = arith.constant dense<0.000000e+00> : vector<1xf32>
    %294 = vector.multi_reduction <add>, %293, %cst_116 [1] : vector<1x20xf32> to vector<1xf32>
    %295 = vector.shape_cast %294 : vector<1xf32> to vector<1x1xf32>
    %296 = math.sqrt %295 : vector<1x1xf32>
    %cst_117 = arith.constant 9.99999996E-13 : f32
    %297 = vector.broadcast %cst_117 : f32 to vector<1x1xf32>
    %298 = arith.maximumf %296, %297 : vector<1x1xf32>
    %299 = tpu.reciprocal %298 {approx = true} : vector<1x1xf32> -> vector<1x1xf32>
    %300 = vector.broadcast %299 : vector<1x1xf32> to vector<1x20xf32>
    %301 = arith.mulf %292, %300 : vector<1x20xf32>
    %cst_118 = arith.constant 0.000000e+00 : f32
    %302 = vector.broadcast %cst_118 : f32 to vector<1x108xf32>
    %303 = tpu.concatenate %301, %302 in 1 : vector<1x20xf32>, vector<1x108xf32> -> vector<1x128xf32>
    %c0_119 = arith.constant 0 : index
    %c0_120 = arith.constant 0 : index
    %c0_121 = arith.constant 0 : index
    %304 = vector.load %arg16[%c0_119, %c0_120, %c0_121] : memref<1x1x128xf32, #tpu.memory_space<vmem>>, vector<1x1x128xf32>
    %305 = vector.shape_cast %304 : vector<1x1x128xf32> to vector<1x128xf32>
    %306 = vector.shape_cast %303 : vector<1x128xf32> to vector<1x1x128xf32>
    tpu.vector_store %arg16[%c0_119, %c0_120, %c0_121], %306 {strides = array<i32>} : memref<1x1x128xf32, #tpu.memory_space<vmem>>, vector<1x1x128xf32>,
    return
  }
  func.func @transform_0(%arg0: i32) -> (i32, i32, i32) {
    %c0_i32 = arith.constant 0 : i32
    %c0_i32_0 = arith.constant 0 : i32
    %c0_i32_1 = arith.constant 0 : i32
    return %arg0, %c0_i32, %c0_i32_0 : i32, i32, i32
  }
  func.func @transform_1(%arg0: i32) -> (i32, i32, i32) {
    %c0_i32 = arith.constant 0 : i32
    %c0_i32_0 = arith.constant 0 : i32
    %c0_i32_1 = arith.constant 0 : i32
    return %arg0, %c0_i32, %c0_i32_0 : i32, i32, i32
  }
  func.func @transform_2(%arg0: i32) -> (i32, i32) {
    %c0_i32 = arith.constant 0 : i32
    %c0_i32_0 = arith.constant 0 : i32
    %c0_i32_1 = arith.constant 0 : i32
    return %c0_i32, %c0_i32_0 : i32, i32
  }
  func.func @transform_3(%arg0: i32) -> (i32, i32) {
    %c0_i32 = arith.constant 0 : i32
    %c0_i32_0 = arith.constant 0 : i32
    %c0_i32_1 = arith.constant 0 : i32
    return %c0_i32, %c0_i32_0 : i32, i32
  }
  func.func @transform_4(%arg0: i32) -> (i32, i32) {
    %c0_i32 = arith.constant 0 : i32
    %c0_i32_0 = arith.constant 0 : i32
    %c0_i32_1 = arith.constant 0 : i32
    return %c0_i32, %c0_i32_0 : i32, i32
  }
  func.func @transform_5(%arg0: i32) -> (i32, i32) {
    %c0_i32 = arith.constant 0 : i32
    %c0_i32_0 = arith.constant 0 : i32
    %c0_i32_1 = arith.constant 0 : i32
    return %c0_i32, %c0_i32_0 : i32, i32
  }
  func.func @transform_6(%arg0: i32) -> (i32, i32) {
    %c0_i32 = arith.constant 0 : i32
    %c0_i32_0 = arith.constant 0 : i32
    %c0_i32_1 = arith.constant 0 : i32
    return %c0_i32, %c0_i32_0 : i32, i32
  }
  func.func @transform_7(%arg0: i32) -> (i32, i32) {
    %c0_i32 = arith.constant 0 : i32
    %c0_i32_0 = arith.constant 0 : i32
    %c0_i32_1 = arith.constant 0 : i32
    return %c0_i32, %c0_i32_0 : i32, i32
  }
  func.func @transform_8(%arg0: i32) -> (i32, i32) {
    %c0_i32 = arith.constant 0 : i32
    %c0_i32_0 = arith.constant 0 : i32
    %c0_i32_1 = arith.constant 0 : i32
    return %c0_i32, %c0_i32_0 : i32, i32
  }
  func.func @transform_9(%arg0: i32) -> (i32, i32) {
    %c0_i32 = arith.constant 0 : i32
    %c0_i32_0 = arith.constant 0 : i32
    %c0_i32_1 = arith.constant 0 : i32
    return %c0_i32, %c0_i32_0 : i32, i32
  }
  func.func @transform_10(%arg0: i32) -> (i32, i32) {
    %c0_i32 = arith.constant 0 : i32
    %c0_i32_0 = arith.constant 0 : i32
    %c0_i32_1 = arith.constant 0 : i32
    return %c0_i32, %c0_i32_0 : i32, i32
  }
  func.func @transform_11(%arg0: i32) -> (i32, i32) {
    %c0_i32 = arith.constant 0 : i32
    %c0_i32_0 = arith.constant 0 : i32
    %c0_i32_1 = arith.constant 0 : i32
    return %c0_i32, %c0_i32_0 : i32, i32
  }
  func.func @transform_12(%arg0: i32) -> (i32, i32) {
    %c0_i32 = arith.constant 0 : i32
    %c0_i32_0 = arith.constant 0 : i32
    %c0_i32_1 = arith.constant 0 : i32
    return %c0_i32, %c0_i32_0 : i32, i32
  }
  func.func @transform_13(%arg0: i32) -> (i32, i32) {
    %c0_i32 = arith.constant 0 : i32
    %c0_i32_0 = arith.constant 0 : i32
    %c0_i32_1 = arith.constant 0 : i32
    return %c0_i32, %c0_i32_0 : i32, i32
  }
  func.func @transform_14(%arg0: i32) -> (i32, i32) {
    %c0_i32 = arith.constant 0 : i32
    %c0_i32_0 = arith.constant 0 : i32
    %c0_i32_1 = arith.constant 0 : i32
    return %c0_i32, %c0_i32_0 : i32, i32
  }
  func.func @transform_15(%arg0: i32) -> (i32, i32, i32) {
    %c0_i32 = arith.constant 0 : i32
    %c0_i32_0 = arith.constant 0 : i32
    %c0_i32_1 = arith.constant 0 : i32
    return %arg0, %c0_i32, %c0_i32_0 : i32, i32, i32
  }
}

</mosaic_0001>

<bundles_post_ra>
// kernel: book_embedding_forward.1
= control target key start
LH: loop header
LB: loop body
LE: loop exit
PB: predicated region body
PF: predicated region fallthrough
CT: control target
= control target key end

     0   :  { %s19869_s0 = inlined_call_operand.vmem [shape: f32[2,8,384], index: 0, kind: input, shape index: {}]   ;;  %s19870_s1 = inlined_call_operand.vmem [shape: f32[2,1,8], index: 1, kind: input, shape index: {}]   ;;  %s19871_s2 = inlined_call_operand.vmem [shape: f32[384,3072], index: 2, kind: input, shape index: {}]   ;;  %s19872_s3 = inlined_call_operand.vmem [shape: f32[1,3072], index: 3, kind: input, shape index: {}]   ;;  %s19873_s4 = inlined_call_operand.vmem [shape: f32[1024,384], index: 4, kind: input, shape index: {}]   ;;  %s19874_s5 = inlined_call_operand.vmem [shape: f32[4,384], index: 5, kind: input, shape index: {}]   ;;  %s19875_s6 = inlined_call_operand.vmem [shape: f32[384,1024], index: 6, kind: input, shape index: {}]   ;;  %s19876_s7 = inlined_call_operand.vmem [shape: f32[1,1024], index: 7, kind: input, shape index: {}]   ;;  %s19877_s8 = inlined_call_operand.vmem [shape: f32[1024,384], index: 8, kind: input, shape index: {}]   ;;  %s19878_s9 = inlined_call_operand.vmem [shape: f32[384,256], index: 9, kind: input, shape index: {}]   ;;  %s19879_s10 = inlined_call_operand.vmem [shape: f32[3,256], index: 10, kind: input, shape index: {}]   ;;  %s19880_s11 = inlined_call_operand.vmem [shape: f32[256,128], index: 11, kind: input, shape index: {}]   ;;  %s19881_s12 = inlined_call_operand.vmem [shape: f32[3,128], index: 12, kind: input, shape index: {}]   ;;  %s19882_s13 = inlined_call_operand.vmem [shape: f32[128,20], index: 13, kind: input, shape index: {}]   ;;  %s19883_s14 = inlined_call_operand.vmem [shape: f32[3,20], index: 14, kind: input, shape index: {}]   ;;  %s19884_s15 = inlined_call_operand.hbm [shape: f32[2,1,128], index: 15, kind: output, shape index: {}]  }
   0x1   :  { %19894 = sst [smem:[#allocation12_spill]] %s19884_s15 }
   0x2   :  { %20 = vsyncpa [#allocation3], 0 }
   0x3   :  { %22 = vsyncpa [#allocation3 + $0x1], 0  ;;  %s11868_s18 = smov 0   ;;  %s11870_s19 = smov 0  }
   0x4   :  { %s11872_s20 = smov 0   ;;  %s11874_s21 = smov 0  }
   0x5 LB: > { %19895 = sst [smem:[#allocation5_spill]] %s11769_s18  ;;  %s11889_s22 = sadd.s32 4294967295, %s11781_s21   ;;  %s11781_s21 = sphi %s11874_s21, %s19909_s21   ;;  %s11777_s20 = sphi %s11872_s20, %s19911_s20   ;;  %s11773_s19 = sphi %s11870_s19, %s19913_s19   ;;  %s11769_s18 = sphi %s11868_s18, %s19912_s18  }
   0x6   : > { %19896 = sst [smem:[#allocation6_spill]] %s11777_s20  ;;  %s8549_s23 = sadd.s32 4294967294, %s11781_s21  }
   0x7   : > { %19897 = sst [smem:[#allocation7_spill]] %s11781_s21  ;;  %s11893_s24 = sadd.s32 1, %s11781_s21  }
   0x8   : > { %19898 = sst [smem:[#allocation8_spill]] %s11893_s24  ;;  %s360_s25 = sadd.s32 1, %s11777_s20 }
   0x9   : > { %s357_s26 = ssub.s32 %s11781_s21, %s11893_s24  ;;  %p370_p0 = scmp.ne.s32.totalorder %s11777_s20, %s11773_s19 }
   0xa   : > { %p358_p1 = scmp.eq.s32.totalorder %s357_s26, 0  ;;  %p371_p2 = scmp.eq.s32.totalorder %s11889_s22, 1 }
   0xb   : > { %p376_p3 = scmp.ne.s32.totalorder %s11773_s19, %s11769_s18  ;;  %p377_p4 = scmp.eq.s32.totalorder %s8549_s23, 1 }
   0xc   : > { %s11904_s27 = scalar_select %p358_p1, %s11777_s20, %s360_s25  }
   0xd   : > { %p11906_p5 = por %p371_p2, %p370_p0  ;;  %p11910_p6 = por %p377_p4, %p376_p3 }
   0xe   : > { %19899 = sst [smem:[#allocation9_spill]] %s11904_s27  ;;  %p8552_p7 = scmp.ge.s32.totalorder %s11781_s21, 1 }
   0xf   : > { %s19900_s28 = scalar_select %p11906_p5, 1, 0 }
  0x10   : > { %s19902_s29 = scalar_select %p11910_p6, 1, 0 }
  0x11   : > { %19901 = sst [smem:[#allocation10_spill]] %s19900_s28  ;;  %p448_p8 = scmp.lt.s32.totalorder %s11781_s21, 3 }
  0x12   : > { %19903 = sst [smem:[#allocation11_spill]] %s19902_s29 }
  0x13   : > { %p449_p9 = pnand %p8552_p7, %p448_p8 }
  0x14   : > { %v511_v0 = vld [vmem:[%s19871_s2 + $0x8] sm:$0xff] (!%p449_p9)  ;;  %v513_v2 = vld [vmem:[%s19871_s2 + $0x18] sm:$0xff] (!%p449_p9)  ;;  %v510_v5 = vld [vmem:[%s19871_s2] sm:$0xff] (!%p449_p9)  ;;  %p498_p10 = scmp.lt.s32.totalorder (!%p449_p9), %s11889_s22, 1  ;;  %vm11784_vm0 = vmmov (!%p449_p9), 0   ;;  %vm3570_vm2 = vcmask (!%p449_p9), 64512  }
  0x15   : > { %452 = sbr.rel (%p449_p9) target bundleno = 5867 (0x16eb), region = 80  ;;  %v535_v1 = vld [vmem:[%s19871_s2 + $0xc8] sm:$0xff] (!%p449_p9)  ;;  %v537_v4 = vld [vmem:[%s19871_s2 + $0xd8] sm:$0xff] (!%p449_p9)  ;;  %v534_v6 = vld [vmem:[%s19871_s2 + $0xc0] sm:$0xff] (!%p449_p9)  ;;  %vm7765_vm3 = vcmask (!%p449_p9), 57344   ;;  %vm8170_vm4 = vcmask (!%p449_p9), 1040384  }
  0x16   : > { %v9058_v3 = vpack.c.bf16 (!%p449_p9), %v535_v1, %v511_v0  ;;  %v9154_v7 = vpack.c.bf16 (!%p449_p9), %v537_v4, %v513_v2  ;;  %v9060_v8 = vpack.c.bf16 (!%p449_p9), %v534_v6, %v510_v5  ;;  %v512_v9 = vld [vmem:[%s19871_s2 + $0x10] sm:$0xff] (!%p449_p9)  ;;  %v559_v11 = vld [vmem:[%s19871_s2 + $0x188] sm:$0xff] (!%p449_p9)  ;;  %v561_v14 = vld [vmem:[%s19871_s2 + $0x198] sm:$0xff] (!%p449_p9)  ;;  %vm8438_vm5 = vcmask (!%p449_p9), 155648   ;;  %s496_s26 = sand.u32 (!%p449_p9), 1, %s11773_s19   ;;  %s8569_s15 = sshll.u32 (!%p449_p9), %s11889_s22, 4 }
  0x17   : > { %v536_v10 = vld [vmem:[%s19871_s2 + $0xd0] sm:$0xff] (!%p449_p9)  ;;  %v583_v13 = vld [vmem:[%s19871_s2 + $0x248] sm:$0xff] (!%p449_p9)  ;;  %v585_v15 = vld [vmem:[%s19871_s2 + $0x258] sm:$0xff] (!%p449_p9)  ;;  %s497_s28 = scalar_lea.vmem (!%p449_p9), [#allocation2], %s496_s26  ;;  %vm8469_vm8 = vcmask (!%p449_p9), 162816   ;;  %s19905_s17 = sld [smem:[#allocation12_spill]] (!%p449_p9) }
  0x18   : > { %9059 = vmatprep.subr.bf16.mxu0 (!%p449_p9), %v9058_v3  ;;  %v9156_v12 = vpack.c.bf16 (!%p449_p9), %v536_v10, %v512_v9  ;;  %9155 = vmatprep.subr.bf16.mxu1 (!%p449_p9), %v9154_v7  ;;  %v9062_v16 = vpack.c.bf16 (!%p449_p9), %v583_v13, %v559_v11  ;;  %v9158_v17 = vpack.c.bf16 (!%p449_p9), %v585_v15, %v561_v14  ;;  %v558_v18 = vld [vmem:[%s19871_s2 + $0x180] sm:$0xff] (!%p449_p9)  ;;  %v560_v20 = vld [vmem:[%s19871_s2 + $0x190] sm:$0xff] (!%p449_p9)  ;;  %v607_v23 = vld [vmem:[%s19871_s2 + $0x308] sm:$0xff] (!%p449_p9)  ;;  %s8473_s25 = scalar_lea.sflag (!%p449_p9), [#allocation3], %s496_s26 }
  0x19   : > { %9061 = vmatpush1.bf16.msra.mxu0 (!%p449_p9), %v9060_v8  ;;  %v582_v19 = vld [vmem:[%s19871_s2 + $0x240] sm:$0xff] (!%p449_p9)  ;;  %v584_v22 = vld [vmem:[%s19871_s2 + $0x250] sm:$0xff] (!%p449_p9)  ;;  %v631_v24 = vld [vmem:[%s19871_s2 + $0x3c8] sm:$0xff] (!%p449_p9) }
  0x1a   : > { %9157 = vmatpush1.bf16.msra.mxu1 (!%p449_p9), %v9156_v12  ;;  %v9064_v21 = vpack.c.bf16 (!%p449_p9), %v582_v19, %v558_v18  ;;  %9063 = vmatprep.subr.bf16.mxu0 (!%p449_p9), %v9062_v16  ;;  %v9160_v25 = vpack.c.bf16 (!%p449_p9), %v584_v22, %v560_v20  ;;  %v9066_v26 = vpack.c.bf16 (!%p449_p9), %v631_v24, %v607_v23  ;;  %v609_v27 = vld [vmem:[%s19871_s2 + $0x318] sm:$0xff] (!%p449_p9)  ;;  %v606_v29 = vld [vmem:[%s19871_s2 + $0x300] sm:$0xff] (!%p449_p9)  ;;  %v608_v32 = vld [vmem:[%s19871_s2 + $0x310] sm:$0xff] (!%p449_p9) }
  0x1b   : > { %9159 = vmatprep.subr.bf16.mxu1 (!%p449_p9), %v9158_v17  ;;  %v633_v28 = vld [vmem:[%s19871_s2 + $0x3d8] sm:$0xff] (!%p449_p9)  ;;  %v630_v31 = vld [vmem:[%s19871_s2 + $0x3c0] sm:$0xff] (!%p449_p9)  ;;  %v632_v33 = vld [vmem:[%s19871_s2 + $0x3d0] sm:$0xff] (!%p449_p9) }
  0x1c   : > { %v9162_v30 = vpack.c.bf16 %v633_v28, %v609_v27  ;;  %v9068_v34 = vpack.c.bf16 %v630_v31, %v606_v29  ;;  %v655_v35 = vld [vmem:[%s19871_s2 + $0x488] sm:$0xff]  ;;  %v657_v37 = vld [vmem:[%s19871_s2 + $0x498] sm:$0xff]  ;;  %v9164_v38 = vpack.c.bf16 %v632_v33, %v608_v32  ;;  %v654_v41 = vld [vmem:[%s19871_s2 + $0x480] sm:$0xff]  ;;  %s12148_s16 = scalar_select %p498_p10, %s11889_s22, 1 }
  0x1d   : > { %9065 = vmatpush1.bf16.msra.mxu0 %v9064_v21  ;;  %v679_v36 = vld [vmem:[%s19871_s2 + $0x548] sm:$0xff]  ;;  %v681_v40 = vld [vmem:[%s19871_s2 + $0x558] sm:$0xff]  ;;  %v678_v42 = vld [vmem:[%s19871_s2 + $0x540] sm:$0xff]  ;;  %s11787_s22 = smov [#allocation2]  }
  0x1e   : > { %9161 = vmatpush1.bf16.msra.mxu1 %v9160_v25  ;;  %9067 = vmatprep.subr.bf16.mxu0 %v9066_v26  ;;  %v9070_v39 = vpack.c.bf16 %v679_v36, %v655_v35  ;;  %v9166_v43 = vpack.c.bf16 %v681_v40, %v657_v37  ;;  %v656_v44 = vld [vmem:[%s19871_s2 + $0x490] sm:$0xff]  ;;  %v703_v46 = vld [vmem:[%s19871_s2 + $0x608] sm:$0xff]  ;;  %v705_v48 = vld [vmem:[%s19871_s2 + $0x618] sm:$0xff]  ;;  %v9072_v50 = vpack.c.bf16 %v678_v42, %v654_v41  ;;  %s11598_s24 = smul.u32 24, %s12148_s16  ;;  %s15582_s18 = scalar_lea.vmem %s19870_s1, %s12148_s16 }
  0x1f   : > { %9163 = vmatprep.subr.bf16.mxu1 %v9162_v30  ;;  %v680_v45 = vld [vmem:[%s19871_s2 + $0x550] sm:$0xff]  ;;  %v727_v47 = vld [vmem:[%s19871_s2 + $0x6c8] sm:$0xff]  ;;  %v729_v49 = vld [vmem:[%s19871_s2 + $0x6d8] sm:$0xff]  ;;  %s11723_s27 = sshll.u32 %s11787_s22, 4  ;;  %s11724_s27 = int_to_ptr.vmem [resolvable:$false] %s11723_s27 }
  0x20   : > { %v9168_v51 = vpack.c.bf16 %v680_v45, %v656_v44  ;;  %v9074_v52 = vpack.c.bf16 %v727_v47, %v703_v46  ;;  %v702_v53 = vld [vmem:[%s19871_s2 + $0x600] sm:$0xff]  ;;  %v704_v55 = vld [vmem:[%s19871_s2 + $0x610] sm:$0xff]  ;;  %v9170_v56 = vpack.c.bf16 %v729_v49, %v705_v48  ;;  %v751_v58 = vld [vmem:[%s19871_s2 + $0x788] sm:$0xff]  ;;  %s12202_s23 = scalar_lea.vmem %s19869_s0, %s11598_s24  ;;  %s8485_s24 = sshll.u32 %s497_s28, 4  ;;  %s19829_s24 = int_to_ptr.vmem [resolvable:$true] %s8485_s24 }
  0x21   : > { %9069 = vmatpush1.bf16.msra.mxu0 %v9068_v34  ;;  %v726_v54 = vld [vmem:[%s19871_s2 + $0x6c0] sm:$0xff]  ;;  %v728_v57 = vld [vmem:[%s19871_s2 + $0x6d0] sm:$0xff]  ;;  %v775_v59 = vld [vmem:[%s19871_s2 + $0x848] sm:$0xff]  ;;  %s11719_s20 = scalar_lea.vmem %s19829_s24, 16  ;;  %s11725_s29 = scalar_lea.vmem %s11724_s27, 32 }
  0x22   : > { %9165 = vmatpush1.bf16.msra.mxu1 %v9164_v38  ;;  %9071 = vmatprep.subr.bf16.mxu0 %v9070_v39  ;;  %v753_v60 = vld [vmem:[%s19871_s2 + $0x798] sm:$0xff]  ;;  %v9076_v62 = vpack.c.bf16 %v726_v54, %v702_v53  ;;  %v9172_v63 = vpack.c.bf16 %v728_v57, %v704_v55  ;;  %v9078_v0 = vpack.c.bf16 %v775_v59, %v751_v58  ;;  %v750_v1 = vld [vmem:[%s19871_s2 + $0x780] sm:$0xff]  ;;  %v752_v3 = vld [vmem:[%s19871_s2 + $0x790] sm:$0xff]  ;;  %p11720_p11 = scmp.ne.s32.totalorder %s19829_s24, %s11719_s20  ;;  %p11726_p0 = scmp.lt.s32.totalorder %s19829_s24, %s11724_s27 }
  0x23   : > { %9167 = vmatprep.subr.bf16.mxu1 %v9166_v43  ;;  %v777_v61 = vld [vmem:[%s19871_s2 + $0x858] sm:$0xff]  ;;  %v774_v2 = vld [vmem:[%s19871_s2 + $0x840] sm:$0xff]  ;;  %v776_v5 = vld [vmem:[%s19871_s2 + $0x850] sm:$0xff]  ;;  %p11727_p1 = scmp.lt.s32.totalorder %s11725_s29, %s11719_s20 }
  0x24   : > { %v9174_v4 = vpack.c.bf16 %v777_v61, %v753_v60  ;;  %v799_v6 = vld [vmem:[%s19871_s2 + $0x908] sm:$0xff]  ;;  %v801_v8 = vld [vmem:[%s19871_s2 + $0x918] sm:$0xff]  ;;  %v9080_v10 = vpack.c.bf16 %v774_v2, %v750_v1  ;;  %v9176_v11 = vpack.c.bf16 %v776_v5, %v752_v3  ;;  %v798_v13 = vld [vmem:[%s19871_s2 + $0x900] sm:$0xff]  ;;  %p11721_p12 = pnand %p11720_p11, %p11906_p5 }
  0x25   : > { %9073 = vmatpush1.bf16.msra.mxu0 %v9072_v50  ;;  %v823_v7 = vld [vmem:[%s19871_s2 + $0x9c8] sm:$0xff]  ;;  %v825_v9 = vld [vmem:[%s19871_s2 + $0x9d8] sm:$0xff]  ;;  %v822_v14 = vld [vmem:[%s19871_s2 + $0x9c0] sm:$0xff]  ;;  %p11728_p2 = por %p11727_p1, %p11726_p0 }
  0x26   : > { %9169 = vmatpush1.bf16.msra.mxu1 %v9168_v51  ;;  %9075 = vmatprep.subr.bf16.mxu0 %v9074_v52  ;;  %v9082_v12 = vpack.c.bf16 %v823_v7, %v799_v6  ;;  %v800_v15 = vld [vmem:[%s19871_s2 + $0x910] sm:$0xff]  ;;  %v9178_v16 = vpack.c.bf16 %v825_v9, %v801_v8  ;;  %v847_v18 = vld [vmem:[%s19871_s2 + $0xa88] sm:$0xff]  ;;  %v849_v20 = vld [vmem:[%s19871_s2 + $0xa98] sm:$0xff]  ;;  %v9084_v22 = vpack.c.bf16 %v822_v14, %v798_v13  ;;  %p11722_p13 = pneg %p11721_p12 }
  0x27   : > { %9171 = vmatprep.subr.bf16.mxu1 %v9170_v56  ;;  %v824_v17 = vld [vmem:[%s19871_s2 + $0x9d0] sm:$0xff]  ;;  %v871_v19 = vld [vmem:[%s19871_s2 + $0xb48] sm:$0xff]  ;;  %v873_v21 = vld [vmem:[%s19871_s2 + $0xb58] sm:$0xff] }
  0x28   : > { %v9180_v23 = vpack.c.bf16 %v824_v17, %v800_v15  ;;  %v9086_v24 = vpack.c.bf16 %v871_v19, %v847_v18  ;;  %v846_v25 = vld [vmem:[%s19871_s2 + $0xa80] sm:$0xff]  ;;  %v848_v27 = vld [vmem:[%s19871_s2 + $0xa90] sm:$0xff]  ;;  %v9182_v28 = vpack.c.bf16 %v873_v21, %v849_v20  ;;  %v895_v30 = vld [vmem:[%s19871_s2 + $0xc08] sm:$0xff]  ;;  %p11729_p3 = pnand %p11728_p2, %p11722_p13 }
  0x29   : > { %9077 = vmatpush1.bf16.msra.mxu0 %v9076_v62  ;;  %v870_v26 = vld [vmem:[%s19871_s2 + $0xb40] sm:$0xff]  ;;  %v872_v29 = vld [vmem:[%s19871_s2 + $0xb50] sm:$0xff]  ;;  %v919_v31 = vld [vmem:[%s19871_s2 + $0xcc8] sm:$0xff] }
  0x2a   : > { %9173 = vmatpush1.bf16.msra.mxu1 %v9172_v63  ;;  %9079 = vmatprep.subr.bf16.mxu0 %v9078_v0  ;;  %v897_v32 = vld [vmem:[%s19871_s2 + $0xc18] sm:$0xff]  ;;  %v9088_v34 = vpack.c.bf16 %v870_v26, %v846_v25  ;;  %v9184_v35 = vpack.c.bf16 %v872_v29, %v848_v27  ;;  %v9090_v36 = vpack.c.bf16 %v919_v31, %v895_v30  ;;  %v894_v37 = vld [vmem:[%s19871_s2 + $0xc00] sm:$0xff]  ;;  %v896_v39 = vld [vmem:[%s19871_s2 + $0xc10] sm:$0xff] }
  0x2b   : > { %9175 = vmatprep.subr.bf16.mxu1 %v9174_v4  ;;  %v921_v33 = vld [vmem:[%s19871_s2 + $0xcd8] sm:$0xff]  ;;  %v918_v38 = vld [vmem:[%s19871_s2 + $0xcc0] sm:$0xff]  ;;  %v920_v41 = vld [vmem:[%s19871_s2 + $0xcd0] sm:$0xff] }
  0x2c   : > { %v9186_v40 = vpack.c.bf16 %v921_v33, %v897_v32  ;;  %v943_v42 = vld [vmem:[%s19871_s2 + $0xd88] sm:$0xff]  ;;  %v945_v44 = vld [vmem:[%s19871_s2 + $0xd98] sm:$0xff]  ;;  %v9092_v46 = vpack.c.bf16 %v918_v38, %v894_v37  ;;  %v9188_v47 = vpack.c.bf16 %v920_v41, %v896_v39  ;;  %v942_v49 = vld [vmem:[%s19871_s2 + $0xd80] sm:$0xff] }
  0x2d   : > { %9081 = vmatpush1.bf16.msra.mxu0 %v9080_v10  ;;  %v967_v43 = vld [vmem:[%s19871_s2 + $0xe48] sm:$0xff]  ;;  %v969_v45 = vld [vmem:[%s19871_s2 + $0xe58] sm:$0xff]  ;;  %v966_v50 = vld [vmem:[%s19871_s2 + $0xe40] sm:$0xff] }
  0x2e   : > { %9177 = vmatpush1.bf16.msra.mxu1 %v9176_v11  ;;  %9083 = vmatprep.subr.bf16.mxu0 %v9082_v12  ;;  %v9094_v48 = vpack.c.bf16 %v967_v43, %v943_v42  ;;  %v944_v51 = vld [vmem:[%s19871_s2 + $0xd90] sm:$0xff]  ;;  %v9190_v52 = vpack.c.bf16 %v969_v45, %v945_v44  ;;  %v991_v54 = vld [vmem:[%s19871_s2 + $0xf08] sm:$0xff]  ;;  %v993_v56 = vld [vmem:[%s19871_s2 + $0xf18] sm:$0xff]  ;;  %v9096_v58 = vpack.c.bf16 %v966_v50, %v942_v49 }
  0x2f   : > { %9179 = vmatprep.subr.bf16.mxu1 %v9178_v16  ;;  %v968_v53 = vld [vmem:[%s19871_s2 + $0xe50] sm:$0xff]  ;;  %v1015_v55 = vld [vmem:[%s19871_s2 + $0xfc8] sm:$0xff]  ;;  %v1017_v57 = vld [vmem:[%s19871_s2 + $0xfd8] sm:$0xff] }
  0x30   : > { %v9192_v59 = vpack.c.bf16 %v968_v53, %v944_v51  ;;  %v9098_v60 = vpack.c.bf16 %v1015_v55, %v991_v54  ;;  %v990_v61 = vld [vmem:[%s19871_s2 + $0xf00] sm:$0xff]  ;;  %v992_v63 = vld [vmem:[%s19871_s2 + $0xf10] sm:$0xff]  ;;  %v9194_v0 = vpack.c.bf16 %v1017_v57, %v993_v56  ;;  %v1039_v2 = vld [vmem:[%s19871_s2 + $0x1088] sm:$0xff] }
  0x31   : > { %9085 = vmatpush1.bf16.msra.mxu0 %v9084_v22  ;;  %v1014_v62 = vld [vmem:[%s19871_s2 + $0xfc0] sm:$0xff]  ;;  %v1016_v1 = vld [vmem:[%s19871_s2 + $0xfd0] sm:$0xff]  ;;  %v1063_v3 = vld [vmem:[%s19871_s2 + $0x1148] sm:$0xff] }
  0x32   : > { %9181 = vmatpush1.bf16.msra.mxu1 %v9180_v23  ;;  %9087 = vmatprep.subr.bf16.mxu0 %v9086_v24  ;;  %v1041_v4 = vld [vmem:[%s19871_s2 + $0x1098] sm:$0xff]  ;;  %v9100_v6 = vpack.c.bf16 %v1014_v62, %v990_v61  ;;  %v1038_v7 = vld [vmem:[%s19871_s2 + $0x1080] sm:$0xff]  ;;  %v9196_v8 = vpack.c.bf16 %v1016_v1, %v992_v63  ;;  %v9102_v9 = vpack.c.bf16 %v1063_v3, %v1039_v2  ;;  %v1040_v11 = vld [vmem:[%s19871_s2 + $0x1090] sm:$0xff] }
  0x33   : > { %9183 = vmatprep.subr.bf16.mxu1 %v9182_v28  ;;  %v1065_v5 = vld [vmem:[%s19871_s2 + $0x1158] sm:$0xff]  ;;  %v1062_v10 = vld [vmem:[%s19871_s2 + $0x1140] sm:$0xff]  ;;  %v1064_v12 = vld [vmem:[%s19871_s2 + $0x1150] sm:$0xff] }
  0x34   : > { %v9198_v13 = vpack.c.bf16 %v1065_v5, %v1041_v4  ;;  %v1087_v14 = vld [vmem:[%s19871_s2 + $0x1208] sm:$0xff]  ;;  %v1089_v17 = vld [vmem:[%s19871_s2 + $0x1218] sm:$0xff]  ;;  %v9104_v19 = vpack.c.bf16 %v1062_v10, %v1038_v7  ;;  %v9200_v20 = vpack.c.bf16 %v1064_v12, %v1040_v11  ;;  %v1086_v22 = vld [vmem:[%s19871_s2 + $0x1200] sm:$0xff] }
  0x35   : > { %9089 = vmatpush1.bf16.msra.mxu0 %v9088_v34  ;;  %v1111_v15 = vld [vmem:[%s19871_s2 + $0x12c8] sm:$0xff]  ;;  %v1113_v18 = vld [vmem:[%s19871_s2 + $0x12d8] sm:$0xff]  ;;  %v1110_v23 = vld [vmem:[%s19871_s2 + $0x12c0] sm:$0xff] }
  0x36   : > { %9185 = vmatpush1.bf16.msra.mxu1 %v9184_v35  ;;  %9091 = vmatprep.subr.bf16.mxu0 %v9090_v36  ;;  %v12223_v16 = vld [vmem:[%s12202_s23 + $0x8] sm:$0xff]  ;;  %v9106_v21 = vpack.c.bf16 %v1111_v15, %v1087_v14  ;;  %v1088_v24 = vld [vmem:[%s19871_s2 + $0x1210] sm:$0xff]  ;;  %v9202_v25 = vpack.c.bf16 %v1113_v18, %v1089_v17  ;;  %v1137_v29 = vld [vmem:[%s19871_s2 + $0x1398] sm:$0xff]  ;;  %v9108_v31 = vpack.c.bf16 %v1110_v23, %v1086_v22 }
  0x37   : > { %9187 = vmatprep.subr.bf16.mxu1 %v9186_v40  ;;  %1852 = vmatprep.mubr.f32.mxu0 %v12223_v16  ;;  %v1112_v26 = vld [vmem:[%s19871_s2 + $0x12d0] sm:$0xff]  ;;  %v1135_v27 = vld [vmem:[%s19871_s2 + $0x1388] sm:$0xff]  ;;  %v1161_v30 = vld [vmem:[%s19871_s2 + $0x1458] sm:$0xff] }
  0x38   : > { %1994 = vmatprep.mubr.f32.mxu1 %v12223_v16  ;;  %v1159_v28 = vld [vmem:[%s19871_s2 + $0x1448] sm:$0xff]  ;;  %v9204_v32 = vpack.c.bf16 %v1112_v26, %v1088_v24  ;;  %v1134_v34 = vld [vmem:[%s19871_s2 + $0x1380] sm:$0xff]  ;;  %v1136_v36 = vld [vmem:[%s19871_s2 + $0x1390] sm:$0xff]  ;;  %v9206_v37 = vpack.c.bf16 %v1161_v30, %v1137_v29 }
  0x39   : > { %9093 = vmatpush1.bf16.msra.mxu0 %v9092_v46  ;;  %v9110_v33 = vpack.c.bf16 %v1159_v28, %v1135_v27  ;;  %v1158_v35 = vld [vmem:[%s19871_s2 + $0x1440] sm:$0xff]  ;;  %v1160_v38 = vld [vmem:[%s19871_s2 + $0x1450] sm:$0xff]  ;;  %v1183_v39 = vld [vmem:[%s19871_s2 + $0x1508] sm:$0xff] }
  0x3a   : > { %9189 = vmatpush1.bf16.msra.mxu1 %v9188_v47  ;;  %9095 = vmatprep.subr.bf16.mxu0 %v9094_v48  ;;  %v1207_v40 = vld [vmem:[%s19871_s2 + $0x15c8] sm:$0xff]  ;;  %v1185_v41 = vld [vmem:[%s19871_s2 + $0x1518] sm:$0xff]  ;;  %v9112_v43 = vpack.c.bf16 %v1158_v35, %v1134_v34  ;;  %v9208_v44 = vpack.c.bf16 %v1160_v38, %v1136_v36  ;;  %v1182_v46 = vld [vmem:[%s19871_s2 + $0x1500] sm:$0xff] }
  0x3b   : > { %9191 = vmatprep.subr.bf16.mxu1 %v9190_v52  ;;  %v1209_v42 = vld [vmem:[%s19871_s2 + $0x15d8] sm:$0xff]  ;;  %v9114_v45 = vpack.c.bf16 %v1207_v40, %v1183_v39  ;;  %v1206_v47 = vld [vmem:[%s19871_s2 + $0x15c0] sm:$0xff]  ;;  %v1184_v48 = vld [vmem:[%s19871_s2 + $0x1510] sm:$0xff]  ;;  %v11783_v39 = vmov 0.0  }
  0x3c   : > { %v9210_v49 = vpack.c.bf16 %v1209_v42, %v1185_v41  ;;  %v1208_v50 = vld [vmem:[%s19871_s2 + $0x15d0] sm:$0xff]  ;;  %v1231_v51 = vld [vmem:[%s19871_s2 + $0x1688] sm:$0xff]  ;;  %v1233_v53 = vld [vmem:[%s19871_s2 + $0x1698] sm:$0xff]  ;;  %v9116_v55 = vpack.c.bf16 %v1206_v47, %v1182_v46 }
  0x3d   : > { %9097 = vmatpush1.bf16.msra.mxu0 %v9096_v58  ;;  %v1255_v52 = vld [vmem:[%s19871_s2 + $0x1748] sm:$0xff]  ;;  %v1257_v54 = vld [vmem:[%s19871_s2 + $0x1758] sm:$0xff]  ;;  %v9212_v56 = vpack.c.bf16 %v1208_v50, %v1184_v48  ;;  %v1230_v58 = vld [vmem:[%s19871_s2 + $0x1680] sm:$0xff] }
  0x3e   : > { %9193 = vmatpush1.bf16.msra.mxu1 %v9192_v59  ;;  %9099 = vmatprep.subr.bf16.mxu0 %v9098_v60  ;;  %v9118_v57 = vpack.c.bf16 %v1255_v52, %v1231_v51  ;;  %v1254_v59 = vld [vmem:[%s19871_s2 + $0x1740] sm:$0xff]  ;;  %v1232_v60 = vld [vmem:[%s19871_s2 + $0x1690] sm:$0xff]  ;;  %v9214_v61 = vpack.c.bf16 %v1257_v54, %v1233_v53  ;;  %v1279_v63 = vld [vmem:[%s19871_s2 + $0x1808] sm:$0xff] }
  0x3f   : > { %9195 = vmatprep.subr.bf16.mxu1 %v9194_v0  ;;  %v1256_v62 = vld [vmem:[%s19871_s2 + $0x1750] sm:$0xff]  ;;  %v1303_v0 = vld [vmem:[%s19871_s2 + $0x18c8] sm:$0xff]  ;;  %v1281_v1 = vld [vmem:[%s19871_s2 + $0x1818] sm:$0xff]  ;;  %v9120_v3 = vpack.c.bf16 %v1254_v59, %v1230_v58 }
  0x40   : > { %v1305_v2 = vld [vmem:[%s19871_s2 + $0x18d8] sm:$0xff]  ;;  %v9216_v4 = vpack.c.bf16 %v1256_v62, %v1232_v60  ;;  %v9122_v5 = vpack.c.bf16 %v1303_v0, %v1279_v63  ;;  %v1302_v7 = vld [vmem:[%s19871_s2 + $0x18c0] sm:$0xff]  ;;  %v1304_v10 = vld [vmem:[%s19871_s2 + $0x18d0] sm:$0xff] }
  0x41   : > { %9101 = vmatpush1.bf16.msra.mxu0 %v9100_v6  ;;  %v1278_v6 = vld [vmem:[%s19871_s2 + $0x1800] sm:$0xff]  ;;  %v1327_v11 = vld [vmem:[%s19871_s2 + $0x1988] sm:$0xff]  ;;  %v1353_v14 = vld [vmem:[%s19871_s2 + $0x1a58] sm:$0xff] }
  0x42   : > { %9197 = vmatpush1.bf16.msra.mxu1 %v9196_v8  ;;  %9103 = vmatprep.subr.bf16.mxu0 %v9102_v9  ;;  %v1280_v8 = vld [vmem:[%s19871_s2 + $0x1810] sm:$0xff]  ;;  %v9218_v9 = vpack.c.bf16 %v1305_v2, %v1281_v1  ;;  %v1351_v12 = vld [vmem:[%s19871_s2 + $0x1a48] sm:$0xff]  ;;  %v12354_v15 = vld [vmem:[%s12202_s23] sm:$0xff]  ;;  %v9124_v17 = vpack.c.bf16 %v1302_v7, %v1278_v6 }
  0x43   : > { %9199 = vmatprep.subr.bf16.mxu1 %v9198_v13  ;;  %v1329_v13 = vld [vmem:[%s19871_s2 + $0x1998] sm:$0xff]  ;;  %v9220_v18 = vpack.c.bf16 %v1304_v10, %v1280_v8  ;;  %v1328_v22 = vld [vmem:[%s19871_s2 + $0x1990] sm:$0xff]  ;;  %v1399_v26 = vld [vmem:[%s19871_s2 + $0x1bc8] sm:$0xff] }
  0x44   : > { %v9222_v23 = vpack.c.bf16 %v1353_v14, %v1329_v13  ;;  %v1352_v24 = vld [vmem:[%s19871_s2 + $0x1a50] sm:$0xff]  ;;  %v1377_v27 = vld [vmem:[%s19871_s2 + $0x1b18] sm:$0xff]  ;;  %v1447_v38 = vld [vmem:[%s19871_s2 + $0x1d48] sm:$0xff] }
  0x45   : > { %9105 = vmatpush1.bf16.msra.mxu0 %v9104_v19  ;;  %v9126_v19 = vpack.c.bf16 %v1351_v12, %v1327_v11  ;;  %v1401_v28 = vld [vmem:[%s19871_s2 + $0x1bd8] sm:$0xff]  ;;  %v9224_v30 = vpack.c.bf16 %v1352_v24, %v1328_v22  ;;  %v1376_v34 = vld [vmem:[%s19871_s2 + $0x1b10] sm:$0xff]  ;;  %v1446_v46 = vld [vmem:[%s19871_s2 + $0x1d40] sm:$0xff] }
  0x46   : > { %9201 = vmatpush1.bf16.msra.mxu1 %v9200_v20  ;;  %9107 = vmatprep.subr.bf16.mxu0 %v9106_v21  ;;  %v1326_v20 = vld [vmem:[%s19871_s2 + $0x1980] sm:$0xff]  ;;  %v9226_v35 = vpack.c.bf16 %v1401_v28, %v1377_v27  ;;  %v1400_v36 = vld [vmem:[%s19871_s2 + $0x1bd0] sm:$0xff]  ;;  %v1425_v40 = vld [vmem:[%s19871_s2 + $0x1c98] sm:$0xff] }
  0x47   : > { %9203 = vmatprep.subr.bf16.mxu1 %v9202_v25  ;;  %v1350_v21 = vld [vmem:[%s19871_s2 + $0x1a40] sm:$0xff]  ;;  %v1375_v25 = vld [vmem:[%s19871_s2 + $0x1b08] sm:$0xff]  ;;  %v1449_v41 = vld [vmem:[%s19871_s2 + $0x1d58] sm:$0xff] }
  0x48   : > { %v9128_v29 = vpack.c.bf16 %v1350_v21, %v1326_v20  ;;  %v1424_v47 = vld [vmem:[%s19871_s2 + $0x1c90] sm:$0xff]  ;;  %v9230_v48 = vpack.c.bf16 %v1449_v41, %v1425_v40  ;;  %v1471_v50 = vld [vmem:[%s19871_s2 + $0x1e08] sm:$0xff]  ;;  %v1473_v52 = vld [vmem:[%s19871_s2 + $0x1e18] sm:$0xff] }
  0x49   : > { %9109 = vmatpush1.bf16.msra.mxu0 %v9108_v31  ;;  %v9130_v31 = vpack.c.bf16 %v1399_v26, %v1375_v25  ;;  %v1495_v51 = vld [vmem:[%s19871_s2 + $0x1ec8] sm:$0xff]  ;;  %v1497_v53 = vld [vmem:[%s19871_s2 + $0x1ed8] sm:$0xff]  ;;  %v1494_v58 = vld [vmem:[%s19871_s2 + $0x1ec0] sm:$0xff] }
  0x4a   : > { %9205 = vmatpush1.bf16.msra.mxu1 %v9204_v32  ;;  %9111 = vmatprep.subr.bf16.mxu0 %v9110_v33  ;;  %v1374_v32 = vld [vmem:[%s19871_s2 + $0x1b00] sm:$0xff]  ;;  %v1472_v59 = vld [vmem:[%s19871_s2 + $0x1e10] sm:$0xff]  ;;  %v9234_v60 = vpack.c.bf16 %v1497_v53, %v1473_v52  ;;  %v1519_v62 = vld [vmem:[%s19871_s2 + $0x1f88] sm:$0xff] }
  0x4b   : > { %9207 = vmatprep.subr.bf16.mxu1 %v9206_v37  ;;  %v1398_v33 = vld [vmem:[%s19871_s2 + $0x1bc0] sm:$0xff]  ;;  %v1423_v37 = vld [vmem:[%s19871_s2 + $0x1c88] sm:$0xff]  ;;  %v1521_v0 = vld [vmem:[%s19871_s2 + $0x1f98] sm:$0xff] }
  0x4c   : > { %v9132_v42 = vpack.c.bf16 %v1398_v33, %v1374_v32  ;;  %v1543_v63 = vld [vmem:[%s19871_s2 + $0x2048] sm:$0xff]  ;;  %v1545_v1 = vld [vmem:[%s19871_s2 + $0x2058] sm:$0xff]  ;;  %v1542_v6 = vld [vmem:[%s19871_s2 + $0x2040] sm:$0xff] }
  0x4d   : > { %9113 = vmatpush1.bf16.msra.mxu0 %v9112_v43  ;;  %v9228_v43 = vpack.c.bf16 %v1400_v36, %v1376_v34  ;;  %v1520_v7 = vld [vmem:[%s19871_s2 + $0x1f90] sm:$0xff]  ;;  %v9238_v8 = vpack.c.bf16 %v1545_v1, %v1521_v0  ;;  %v1567_v10 = vld [vmem:[%s19871_s2 + $0x2108] sm:$0xff]  ;;  %v1569_v12 = vld [vmem:[%s19871_s2 + $0x2118] sm:$0xff] }
  0x4e   : > { %9209 = vmatpush1.bf16.msra.mxu1 %v9208_v44  ;;  %9115 = vmatprep.subr.bf16.mxu0 %v9114_v45  ;;  %v9134_v44 = vpack.c.bf16 %v1447_v38, %v1423_v37  ;;  %v1422_v45 = vld [vmem:[%s19871_s2 + $0x1c80] sm:$0xff]  ;;  %v1591_v11 = vld [vmem:[%s19871_s2 + $0x21c8] sm:$0xff]  ;;  %v1593_v13 = vld [vmem:[%s19871_s2 + $0x21d8] sm:$0xff] }
  0x4f   : > { %9211 = vmatprep.subr.bf16.mxu1 %v9210_v49  ;;  %v1448_v49 = vld [vmem:[%s19871_s2 + $0x1d50] sm:$0xff]  ;;  %v9136_v54 = vpack.c.bf16 %v1446_v46, %v1422_v45  ;;  %v1590_v20 = vld [vmem:[%s19871_s2 + $0x21c0] sm:$0xff]  ;;  %v9242_v22 = vpack.c.bf16 %v1593_v13, %v1569_v12  ;;  %v1615_v24 = vld [vmem:[%s19871_s2 + $0x2288] sm:$0xff] }
  0x50   : > { %v1568_v21 = vld [vmem:[%s19871_s2 + $0x2110] sm:$0xff]  ;;  %v1639_v25 = vld [vmem:[%s19871_s2 + $0x2348] sm:$0xff]  ;;  %v1617_v26 = vld [vmem:[%s19871_s2 + $0x2298] sm:$0xff] }
  0x51   : > { %9117 = vmatpush1.bf16.msra.mxu0 %v9116_v55  ;;  %v9232_v55 = vpack.c.bf16 %v1448_v49, %v1424_v47  ;;  %v1641_v27 = vld [vmem:[%s19871_s2 + $0x2358] sm:$0xff]  ;;  %v1638_v32 = vld [vmem:[%s19871_s2 + $0x2340] sm:$0xff]  ;;  %v1616_v33 = vld [vmem:[%s19871_s2 + $0x2290] sm:$0xff] }
  0x52   : > { %9213 = vmatpush1.bf16.msra.mxu1 %v9212_v56  ;;  %9119 = vmatprep.subr.bf16.mxu0 %v9118_v57  ;;  %v9138_v56 = vpack.c.bf16 %v1495_v51, %v1471_v50  ;;  %v1470_v57 = vld [vmem:[%s19871_s2 + $0x1e00] sm:$0xff]  ;;  %v9246_v34 = vpack.c.bf16 %v1641_v27, %v1617_v26  ;;  %v515_v36 = vld [vmem:[%s19871_s2 + $0x28] sm:$0xff]  ;;  %v517_v38 = vld [vmem:[%s19871_s2 + $0x38] sm:$0xff] }
  0x53   : > { %9215 = vmatprep.subr.bf16.mxu1 %v9214_v61  ;;  %v1496_v61 = vld [vmem:[%s19871_s2 + $0x1ed0] sm:$0xff]  ;;  %v9140_v2 = vpack.c.bf16 %v1494_v58, %v1470_v57  ;;  %v539_v37 = vld [vmem:[%s19871_s2 + $0xe8] sm:$0xff]  ;;  %v541_v40 = vld [vmem:[%s19871_s2 + $0xf8] sm:$0xff] }
  0x54   : > { %v538_v45 = vld [vmem:[%s19871_s2 + $0xe0] sm:$0xff]  ;;  %v516_v46 = vld [vmem:[%s19871_s2 + $0x30] sm:$0xff]  ;;  %v9346_v47 = vpack.c.bf16 %v541_v40, %v517_v38  ;;  %v563_v49 = vld [vmem:[%s19871_s2 + $0x1a8] sm:$0xff] }
  0x55   : > { %9121 = vmatpush1.bf16.msra.mxu0 %v9120_v3  ;;  %v9236_v3 = vpack.c.bf16 %v1496_v61, %v1472_v59  ;;  %v587_v50 = vld [vmem:[%s19871_s2 + $0x268] sm:$0xff]  ;;  %v565_v51 = vld [vmem:[%s19871_s2 + $0x1b8] sm:$0xff]  ;;  %v12553_v53 = vld [vmem:[%s12202_s23 + $0x10] sm:$0xff] }
  0x56   : > { %9217 = vmatpush1.bf16.msra.mxu1 %v9216_v4  ;;  %9123 = vmatprep.subr.bf16.mxu0 %v9122_v5  ;;  %v9142_v4 = vpack.c.bf16 %v1543_v63, %v1519_v62  ;;  %v1518_v5 = vld [vmem:[%s19871_s2 + $0x1f80] sm:$0xff]  ;;  %v589_v52 = vld [vmem:[%s19871_s2 + $0x278] sm:$0xff]  ;;  %v564_v59 = vld [vmem:[%s19871_s2 + $0x1b0] sm:$0xff] }
  0x57   : > { %9219 = vmatprep.subr.bf16.mxu1 %v9218_v9  ;;  %v1544_v9 = vld [vmem:[%s19871_s2 + $0x2050] sm:$0xff]  ;;  %v9144_v14 = vpack.c.bf16 %v1542_v6, %v1518_v5  ;;  %v562_v57 = vld [vmem:[%s19871_s2 + $0x1a0] sm:$0xff]  ;;  %v611_v62 = vld [vmem:[%s19871_s2 + $0x328] sm:$0xff] }
  0x58   : > { %1853 = vmatmul.mubr.f32.vlgmr.msra.gmra.mrb[0].mxu0 %v12354_v15  ;;  %v586_v58 = vld [vmem:[%s19871_s2 + $0x260] sm:$0xff]  ;;  %v588_v61 = vld [vmem:[%s19871_s2 + $0x270] sm:$0xff]  ;;  %v635_v63 = vld [vmem:[%s19871_s2 + $0x3e8] sm:$0xff] }
  0x59   : > { %9125 = vmatpush1.bf16.msra.mxu0 %v9124_v17  ;;  %1995 = vmatmul.mubr.f32.vlgmr.msra.gmra.mrb[0].mxu1 %v12354_v15  ;;  %v9240_v17 = vpack.c.bf16 %v1544_v9, %v1520_v7  ;;  %v613_v0 = vld [vmem:[%s19871_s2 + $0x338] sm:$0xff]  ;;  %v610_v5 = vld [vmem:[%s19871_s2 + $0x320] sm:$0xff]  ;;  %v612_v7 = vld [vmem:[%s19871_s2 + $0x330] sm:$0xff] }
  0x5a   : > { %9221 = vmatpush1.bf16.msra.mxu1 %v9220_v18  ;;  %9127 = vmatprep.subr.bf16.mxu0 %v9126_v19  ;;  %v9146_v18 = vpack.c.bf16 %v1591_v11, %v1567_v10  ;;  %v1566_v19 = vld [vmem:[%s19871_s2 + $0x2100] sm:$0xff]  ;;  %v637_v1 = vld [vmem:[%s19871_s2 + $0x3f8] sm:$0xff]  ;;  %v636_v9 = vld [vmem:[%s19871_s2 + $0x3f0] sm:$0xff] }
  0x5b   : > { %9223 = vmatprep.subr.bf16.mxu1 %v9222_v23  ;;  %2065 = vmatprep.mubr.f32.mxu1 %v11783_v39  ;;  %v1592_v23 = vld [vmem:[%s19871_s2 + $0x21d0] sm:$0xff]  ;;  %v9148_v28 = vpack.c.bf16 %v1590_v20, %v1566_v19  ;;  %v634_v6 = vld [vmem:[%s19871_s2 + $0x3e0] sm:$0xff]  ;;  %v659_v10 = vld [vmem:[%s19871_s2 + $0x4a8] sm:$0xff] }
  0x5c   : > { %1923 = vmatprep.mubr.f32.mxu0 %v11783_v39  ;;  %v683_v11 = vld [vmem:[%s19871_s2 + $0x568] sm:$0xff]  ;;  %v661_v12 = vld [vmem:[%s19871_s2 + $0x4b8] sm:$0xff]  ;;  %v658_v19 = vld [vmem:[%s19871_s2 + $0x4a0] sm:$0xff] }
  0x5d   : > { %9129 = vmatpush1.bf16.msra.mxu0 %v9128_v29  ;;  %v9244_v29 = vpack.c.bf16 %v1592_v23, %v1568_v21  ;;  %v685_v13 = vld [vmem:[%s19871_s2 + $0x578] sm:$0xff]  ;;  %v682_v20 = vld [vmem:[%s19871_s2 + $0x560] sm:$0xff]  ;;  %v660_v21 = vld [vmem:[%s19871_s2 + $0x4b0] sm:$0xff] }
  0x5e   : > { %9225 = vmatpush1.bf16.msra.mxu1 %v9224_v30  ;;  %9131 = vmatprep.subr.bf16.mxu0 %v9130_v31  ;;  %v9150_v30 = vpack.c.bf16 %v1639_v25, %v1615_v24  ;;  %v1614_v31 = vld [vmem:[%s19871_s2 + $0x2280] sm:$0xff]  ;;  %v707_v23 = vld [vmem:[%s19871_s2 + $0x628] sm:$0xff]  ;;  %v709_v25 = vld [vmem:[%s19871_s2 + $0x638] sm:$0xff]  ;;  %v9264_v27 = vpack.c.bf16 %v682_v20, %v658_v19 }
  0x5f   : > { %9227 = vmatprep.subr.bf16.mxu1 %v9226_v35  ;;  %v1640_v35 = vld [vmem:[%s19871_s2 + $0x2350] sm:$0xff]  ;;  %v9152_v41 = vpack.c.bf16 %v1638_v32, %v1614_v31  ;;  %v731_v24 = vld [vmem:[%s19871_s2 + $0x6e8] sm:$0xff]  ;;  %v733_v26 = vld [vmem:[%s19871_s2 + $0x6f8] sm:$0xff] }
  0x60   : > { %v730_v31 = vld [vmem:[%s19871_s2 + $0x6e0] sm:$0xff]  ;;  %v708_v32 = vld [vmem:[%s19871_s2 + $0x630] sm:$0xff]  ;;  %v781_v38 = vld [vmem:[%s19871_s2 + $0x878] sm:$0xff] }
  0x61   : > { %9133 = vmatpush1.bf16.msra.mxu0 %v9132_v42  ;;  %v9248_v42 = vpack.c.bf16 %v1640_v35, %v1616_v33  ;;  %v9362_v33 = vpack.c.bf16 %v733_v26, %v709_v25  ;;  %v755_v35 = vld [vmem:[%s19871_s2 + $0x7a8] sm:$0xff]  ;;  %v922_v19 = vld [vmem:[%s19871_s2 + $0xce0] sm:$0xff]  ;;  %v900_v20 = vld [vmem:[%s19871_s2 + $0xc30] sm:$0xff] }
  0x62   : > { %9229 = vmatpush1.bf16.msra.mxu1 %v9228_v43  ;;  %9135 = vmatprep.subr.bf16.mxu0 %v9134_v44  ;;  %v9250_v43 = vpack.c.bf16 %v539_v37, %v515_v36  ;;  %v514_v44 = vld [vmem:[%s19871_s2 + $0x20] sm:$0xff]  ;;  %v779_v36 = vld [vmem:[%s19871_s2 + $0x868] sm:$0xff]  ;;  %v757_v37 = vld [vmem:[%s19871_s2 + $0x7b8] sm:$0xff] }
  0x63   : > { %9231 = vmatprep.subr.bf16.mxu1 %v9230_v48  ;;  %v540_v48 = vld [vmem:[%s19871_s2 + $0xf0] sm:$0xff]  ;;  %v973_v25 = vld [vmem:[%s19871_s2 + $0xe78] sm:$0xff] }
  0x65   : > { %9137 = vmatpush1.bf16.msra.mxu0 %v9136_v54  ;;  %v9252_v54 = vpack.c.bf16 %v538_v45, %v514_v44  ;;  %v778_v44 = vld [vmem:[%s19871_s2 + $0x860] sm:$0xff]  ;;  %v756_v45 = vld [vmem:[%s19871_s2 + $0x7b0] sm:$0xff] }
  0x66   : > { %9233 = vmatpush1.bf16.msra.mxu1 %v9232_v55  ;;  %9139 = vmatprep.subr.bf16.mxu0 %v9138_v56  ;;  %v9348_v55 = vpack.c.bf16 %v540_v48, %v516_v46  ;;  %v9254_v56 = vpack.c.bf16 %v587_v50, %v563_v49  ;;  %v9366_v46 = vpack.c.bf16 %v781_v38, %v757_v37  ;;  %v803_v48 = vld [vmem:[%s19871_s2 + $0x928] sm:$0xff]  ;;  %v805_v50 = vld [vmem:[%s19871_s2 + $0x938] sm:$0xff] }
  0x67   : > { %9235 = vmatprep.subr.bf16.mxu1 %v9234_v60  ;;  %v9350_v60 = vpack.c.bf16 %v589_v52, %v565_v51  ;;  %v827_v49 = vld [vmem:[%s19871_s2 + $0x9e8] sm:$0xff]  ;;  %v829_v51 = vld [vmem:[%s19871_s2 + $0x9f8] sm:$0xff] }
  0x68   : > { %v1021_v37 = vld [vmem:[%s19871_s2 + $0xff8] sm:$0xff] }
  0x69   : > { %9141 = vmatpush1.bf16.msra.mxu0 %v9140_v2  ;;  %v9256_v2 = vpack.c.bf16 %v586_v58, %v562_v57  ;;  %v826_v57 = vld [vmem:[%s19871_s2 + $0x9e0] sm:$0xff]  ;;  %v804_v58 = vld [vmem:[%s19871_s2 + $0x930] sm:$0xff] }
  0x6a   : > { %9237 = vmatpush1.bf16.msra.mxu1 %v9236_v3  ;;  %9143 = vmatprep.subr.bf16.mxu0 %v9142_v4  ;;  %v9352_v3 = vpack.c.bf16 %v588_v61, %v564_v59  ;;  %v9258_v4 = vpack.c.bf16 %v635_v63, %v611_v62  ;;  %v9370_v59 = vpack.c.bf16 %v829_v51, %v805_v50  ;;  %v851_v61 = vld [vmem:[%s19871_s2 + $0xaa8] sm:$0xff]  ;;  %v853_v63 = vld [vmem:[%s19871_s2 + $0xab8] sm:$0xff] }
  0x6b   : > { %9239 = vmatprep.subr.bf16.mxu1 %v9238_v8  ;;  %v9354_v8 = vpack.c.bf16 %v637_v1, %v613_v0  ;;  %v875_v62 = vld [vmem:[%s19871_s2 + $0xb68] sm:$0xff]  ;;  %v877_v0 = vld [vmem:[%s19871_s2 + $0xb78] sm:$0xff] }
  0x6c   : > { %v1069_v50 = vld [vmem:[%s19871_s2 + $0x1178] sm:$0xff] }
  0x6d   : > { %9145 = vmatpush1.bf16.msra.mxu0 %v9144_v14  ;;  %v9260_v14 = vpack.c.bf16 %v634_v6, %v610_v5  ;;  %v874_v5 = vld [vmem:[%s19871_s2 + $0xb60] sm:$0xff]  ;;  %v852_v6 = vld [vmem:[%s19871_s2 + $0xab0] sm:$0xff] }
  0x6e   : > { %9241 = vmatpush1.bf16.msra.mxu1 %v9240_v17  ;;  %9147 = vmatprep.subr.bf16.mxu0 %v9146_v18  ;;  %v9356_v17 = vpack.c.bf16 %v636_v9, %v612_v7  ;;  %v9262_v18 = vpack.c.bf16 %v683_v11, %v659_v10  ;;  %v9374_v7 = vpack.c.bf16 %v877_v0, %v853_v63  ;;  %v899_v9 = vld [vmem:[%s19871_s2 + $0xc28] sm:$0xff]  ;;  %v901_v11 = vld [vmem:[%s19871_s2 + $0xc38] sm:$0xff] }
  0x6f   : > { %9243 = vmatprep.subr.bf16.mxu1 %v9242_v22  ;;  %v684_v22 = vld [vmem:[%s19871_s2 + $0x570] sm:$0xff]  ;;  %v923_v10 = vld [vmem:[%s19871_s2 + $0xce8] sm:$0xff]  ;;  %v1117_v63 = vld [vmem:[%s19871_s2 + $0x12f8] sm:$0xff] }
  0x71   : > { %9149 = vmatpush1.bf16.msra.mxu0 %v9148_v28  ;;  %v9360_v28 = vpack.c.bf16 %v684_v22, %v660_v21  ;;  %v947_v22 = vld [vmem:[%s19871_s2 + $0xda8] sm:$0xff] }
  0x72   : > { %9245 = vmatpush1.bf16.msra.mxu1 %v9244_v29  ;;  %9151 = vmatprep.subr.bf16.mxu0 %v9150_v30  ;;  %v9266_v29 = vpack.c.bf16 %v731_v24, %v707_v23  ;;  %v706_v30 = vld [vmem:[%s19871_s2 + $0x620] sm:$0xff]  ;;  %v971_v23 = vld [vmem:[%s19871_s2 + $0xe68] sm:$0xff]  ;;  %v949_v24 = vld [vmem:[%s19871_s2 + $0xdb8] sm:$0xff] }
  0x73   : > { %9247 = vmatprep.subr.bf16.mxu1 %v9246_v34  ;;  %v732_v34 = vld [vmem:[%s19871_s2 + $0x6f0] sm:$0xff]  ;;  %v9268_v40 = vpack.c.bf16 %v730_v31, %v706_v30  ;;  %v970_v30 = vld [vmem:[%s19871_s2 + $0xe60] sm:$0xff] }
  0x74   : > { %v948_v31 = vld [vmem:[%s19871_s2 + $0xdb0] sm:$0xff] }
  0x75   : > { %9153 = vmatpush1.bf16.msra.mxu0 %v9152_v41  ;;  %v9364_v41 = vpack.c.bf16 %v732_v34, %v708_v32  ;;  %v9382_v32 = vpack.c.bf16 %v973_v25, %v949_v24  ;;  %v995_v34 = vld [vmem:[%s19871_s2 + $0xf28] sm:$0xff]  ;;  %v1213_v24 = vld [vmem:[%s19871_s2 + $0x15f8] sm:$0xff] }
  0x76   : > { %9249 = vmatpush1.bf16.msra.mxu1 %v9248_v42  ;;  %9251 = vmatprep.subr.bf16.mxu0 %v9250_v43  ;;  %v9270_v42 = vpack.c.bf16 %v779_v36, %v755_v35  ;;  %v754_v43 = vld [vmem:[%s19871_s2 + $0x7a0] sm:$0xff]  ;;  %v1019_v35 = vld [vmem:[%s19871_s2 + $0xfe8] sm:$0xff]  ;;  %v997_v36 = vld [vmem:[%s19871_s2 + $0xf38] sm:$0xff] }
  0x77   : > { %9347 = vmatprep.subr.bf16.mxu1 %v9346_v47  ;;  %v780_v47 = vld [vmem:[%s19871_s2 + $0x870] sm:$0xff]  ;;  %v9272_v52 = vpack.c.bf16 %v778_v44, %v754_v43  ;;  %v1018_v43 = vld [vmem:[%s19871_s2 + $0xfe0] sm:$0xff] }
  0x78   : > { %1924 = vmatmul.mubr.f32.vlgmr.msra.gmra.mrb[0].mxu0 %v12553_v53  ;;  %v996_v44 = vld [vmem:[%s19871_s2 + $0xf30] sm:$0xff] }
  0x79   : > { %2066 = vmatmul.mubr.f32.vlgmr.msra.gmra.mrb[0].mxu1 %v12553_v53  ;;  %9253 = vmatpush1.bf16.msra.mxu0 %v9252_v54  ;;  %v9368_v54 = vpack.c.bf16 %v780_v47, %v756_v45  ;;  %v9386_v45 = vpack.c.bf16 %v1021_v37, %v997_v36  ;;  %v1043_v47 = vld [vmem:[%s19871_s2 + $0x10a8] sm:$0xff]  ;;  %v1261_v36 = vld [vmem:[%s19871_s2 + $0x1778] sm:$0xff] }
  0x7a   : > { %9349 = vmatpush1.bf16.msra.mxu1 %v9348_v55  ;;  %9255 = vmatprep.subr.bf16.mxu0 %v9254_v56  ;;  %v9274_v55 = vpack.c.bf16 %v827_v49, %v803_v48  ;;  %v802_v56 = vld [vmem:[%s19871_s2 + $0x920] sm:$0xff]  ;;  %v1067_v48 = vld [vmem:[%s19871_s2 + $0x1168] sm:$0xff]  ;;  %v1045_v49 = vld [vmem:[%s19871_s2 + $0x10b8] sm:$0xff] }
  0x7b   : > { %9351 = vmatprep.subr.bf16.mxu1 %v9350_v60  ;;  %2136 = vmatprep.mubr.f32.mxu0 %v12223_v16  ;;  %v828_v60 = vld [vmem:[%s19871_s2 + $0x9f0] sm:$0xff]  ;;  %v9276_v1 = vpack.c.bf16 %v826_v57, %v802_v56  ;;  %v1066_v56 = vld [vmem:[%s19871_s2 + $0x1160] sm:$0xff] }
  0x7c   : > { %2278 = vmatprep.mubr.f32.mxu1 %v12223_v16  ;;  %v9358_v16 = vpack.c.bf16 %v685_v13, %v661_v12  ;;  %v925_v12 = vld [vmem:[%s19871_s2 + $0xcf8] sm:$0xff]  ;;  %v1044_v57 = vld [vmem:[%s19871_s2 + $0x10b0] sm:$0xff] }
  0x7d   : > { %9257 = vmatpush1.bf16.msra.mxu0 %v9256_v2  ;;  %v9372_v2 = vpack.c.bf16 %v828_v60, %v804_v58  ;;  %v9378_v21 = vpack.c.bf16 %v925_v12, %v901_v11  ;;  %v9390_v58 = vpack.c.bf16 %v1069_v50, %v1045_v49  ;;  %v1091_v60 = vld [vmem:[%s19871_s2 + $0x1228] sm:$0xff]  ;;  %v1165_v11 = vld [vmem:[%s19871_s2 + $0x1478] sm:$0xff] }
  0x7e   : > { %9353 = vmatpush1.bf16.msra.mxu1 %v9352_v3  ;;  %9259 = vmatprep.subr.bf16.mxu0 %v9258_v4  ;;  %v9278_v3 = vpack.c.bf16 %v875_v62, %v851_v61  ;;  %v850_v4 = vld [vmem:[%s19871_s2 + $0xaa0] sm:$0xff]  ;;  %v1115_v61 = vld [vmem:[%s19871_s2 + $0x12e8] sm:$0xff]  ;;  %v1093_v62 = vld [vmem:[%s19871_s2 + $0x1238] sm:$0xff] }
  0x7f   : > { %9355 = vmatprep.subr.bf16.mxu1 %v9354_v8  ;;  %v876_v8 = vld [vmem:[%s19871_s2 + $0xb70] sm:$0xff]  ;;  %v9280_v13 = vpack.c.bf16 %v874_v5, %v850_v4  ;;  %v1114_v4 = vld [vmem:[%s19871_s2 + $0x12e0] sm:$0xff]  ;;  %v1309_v49 = vld [vmem:[%s19871_s2 + $0x18f8] sm:$0xff] }
  0x80   : > { %v1092_v5 = vld [vmem:[%s19871_s2 + $0x1230] sm:$0xff] }
  0x81   : > { %9261 = vmatpush1.bf16.msra.mxu0 %v9260_v14  ;;  %v9376_v14 = vpack.c.bf16 %v876_v8, %v852_v6  ;;  %v9394_v6 = vpack.c.bf16 %v1117_v63, %v1093_v62  ;;  %v1139_v8 = vld [vmem:[%s19871_s2 + $0x13a8] sm:$0xff]  ;;  %v1357_v62 = vld [vmem:[%s19871_s2 + $0x1a78] sm:$0xff] }
  0x82   : > { %9357 = vmatpush1.bf16.msra.mxu1 %v9356_v17  ;;  %9263 = vmatprep.subr.bf16.mxu0 %v9262_v18  ;;  %v9282_v17 = vpack.c.bf16 %v923_v10, %v899_v9  ;;  %v898_v18 = vld [vmem:[%s19871_s2 + $0xc20] sm:$0xff]  ;;  %v1163_v9 = vld [vmem:[%s19871_s2 + $0x1468] sm:$0xff]  ;;  %v1141_v10 = vld [vmem:[%s19871_s2 + $0x13b8] sm:$0xff] }
  0x83   : > { %9359 = vmatprep.subr.bf16.mxu1 %v9358_v16  ;;  %v924_v16 = vld [vmem:[%s19871_s2 + $0xcf0] sm:$0xff]  ;;  %v9284_v26 = vpack.c.bf16 %v922_v19, %v898_v18  ;;  %v1162_v18 = vld [vmem:[%s19871_s2 + $0x1460] sm:$0xff] }
  0x84   : > { %v1140_v19 = vld [vmem:[%s19871_s2 + $0x13b0] sm:$0xff] }
  0x85   : > { %9265 = vmatpush1.bf16.msra.mxu0 %v9264_v27  ;;  %v9380_v27 = vpack.c.bf16 %v924_v16, %v900_v20  ;;  %v9398_v20 = vpack.c.bf16 %v1165_v11, %v1141_v10  ;;  %v1187_v16 = vld [vmem:[%s19871_s2 + $0x1528] sm:$0xff]  ;;  %v1405_v10 = vld [vmem:[%s19871_s2 + $0x1bf8] sm:$0xff] }
  0x86   : > { %9361 = vmatpush1.bf16.msra.mxu1 %v9360_v28  ;;  %9267 = vmatprep.subr.bf16.mxu0 %v9266_v29  ;;  %v9286_v28 = vpack.c.bf16 %v971_v23, %v947_v22  ;;  %v946_v29 = vld [vmem:[%s19871_s2 + $0xda0] sm:$0xff]  ;;  %v1211_v22 = vld [vmem:[%s19871_s2 + $0x15e8] sm:$0xff]  ;;  %v1189_v23 = vld [vmem:[%s19871_s2 + $0x1538] sm:$0xff] }
  0x87   : > { %9363 = vmatprep.subr.bf16.mxu1 %v9362_v33  ;;  %v972_v33 = vld [vmem:[%s19871_s2 + $0xe70] sm:$0xff]  ;;  %v9288_v38 = vpack.c.bf16 %v970_v30, %v946_v29  ;;  %v1210_v29 = vld [vmem:[%s19871_s2 + $0x15e0] sm:$0xff] }
  0x88   : > { %v1188_v30 = vld [vmem:[%s19871_s2 + $0x1530] sm:$0xff] }
  0x89   : > { %9269 = vmatpush1.bf16.msra.mxu0 %v9268_v40  ;;  %v9384_v40 = vpack.c.bf16 %v972_v33, %v948_v31  ;;  %v9402_v31 = vpack.c.bf16 %v1213_v24, %v1189_v23  ;;  %v1235_v33 = vld [vmem:[%s19871_s2 + $0x16a8] sm:$0xff] }
  0x8a   : > { %9365 = vmatpush1.bf16.msra.mxu1 %v9364_v41  ;;  %9271 = vmatprep.subr.bf16.mxu0 %v9270_v42  ;;  %v9290_v41 = vpack.c.bf16 %v1019_v35, %v995_v34  ;;  %v994_v42 = vld [vmem:[%s19871_s2 + $0xf20] sm:$0xff]  ;;  %v1259_v34 = vld [vmem:[%s19871_s2 + $0x1768] sm:$0xff]  ;;  %v1237_v35 = vld [vmem:[%s19871_s2 + $0x16b8] sm:$0xff] }
  0x8b   : > { %9367 = vmatprep.subr.bf16.mxu1 %v9366_v46  ;;  %v1020_v46 = vld [vmem:[%s19871_s2 + $0xff0] sm:$0xff]  ;;  %v9292_v51 = vpack.c.bf16 %v1018_v43, %v994_v42  ;;  %v1258_v42 = vld [vmem:[%s19871_s2 + $0x1760] sm:$0xff] }
  0x8c   : > { %v1236_v43 = vld [vmem:[%s19871_s2 + $0x16b0] sm:$0xff] }
  0x8d   : > { %9273 = vmatpush1.bf16.msra.mxu0 %v9272_v52  ;;  %v9388_v52 = vpack.c.bf16 %v1020_v46, %v996_v44  ;;  %v9406_v44 = vpack.c.bf16 %v1261_v36, %v1237_v35  ;;  %v1283_v46 = vld [vmem:[%s19871_s2 + $0x1828] sm:$0xff] }
  0x8e   : > { %9369 = vmatpush1.bf16.msra.mxu1 %v9368_v54  ;;  %9275 = vmatprep.subr.bf16.mxu0 %v9274_v55  ;;  %v9294_v54 = vpack.c.bf16 %v1067_v48, %v1043_v47  ;;  %v1042_v55 = vld [vmem:[%s19871_s2 + $0x10a0] sm:$0xff]  ;;  %v1307_v47 = vld [vmem:[%s19871_s2 + $0x18e8] sm:$0xff]  ;;  %v1285_v48 = vld [vmem:[%s19871_s2 + $0x1838] sm:$0xff] }
  0x8f   : > { %9371 = vmatprep.subr.bf16.mxu1 %v9370_v59  ;;  %v1068_v59 = vld [vmem:[%s19871_s2 + $0x1170] sm:$0xff]  ;;  %v9296_v0 = vpack.c.bf16 %v1066_v56, %v1042_v55  ;;  %v1306_v55 = vld [vmem:[%s19871_s2 + $0x18e0] sm:$0xff] }
  0x90   : > { %v1284_v56 = vld [vmem:[%s19871_s2 + $0x1830] sm:$0xff] }
  0x91   : > { %9277 = vmatpush1.bf16.msra.mxu0 %v9276_v1  ;;  %v9392_v1 = vpack.c.bf16 %v1068_v59, %v1044_v57  ;;  %v9410_v57 = vpack.c.bf16 %v1309_v49, %v1285_v48  ;;  %v1331_v59 = vld [vmem:[%s19871_s2 + $0x19a8] sm:$0xff] }
  0x92   : > { %9373 = vmatpush1.bf16.msra.mxu1 %v9372_v2  ;;  %9279 = vmatprep.subr.bf16.mxu0 %v9278_v3  ;;  %v9298_v2 = vpack.c.bf16 %v1115_v61, %v1091_v60  ;;  %v1090_v3 = vld [vmem:[%s19871_s2 + $0x1220] sm:$0xff]  ;;  %v1355_v60 = vld [vmem:[%s19871_s2 + $0x1a68] sm:$0xff]  ;;  %v1333_v61 = vld [vmem:[%s19871_s2 + $0x19b8] sm:$0xff] }
  0x93   : > { %9375 = vmatprep.subr.bf16.mxu1 %v9374_v7  ;;  %v1116_v7 = vld [vmem:[%s19871_s2 + $0x12f0] sm:$0xff]  ;;  %v9300_v12 = vpack.c.bf16 %v1114_v4, %v1090_v3  ;;  %v1354_v3 = vld [vmem:[%s19871_s2 + $0x1a60] sm:$0xff] }
  0x94   : > { %v1332_v4 = vld [vmem:[%s19871_s2 + $0x19b0] sm:$0xff] }
  0x95   : > { %9281 = vmatpush1.bf16.msra.mxu0 %v9280_v13  ;;  %v9396_v13 = vpack.c.bf16 %v1116_v7, %v1092_v5  ;;  %v9414_v5 = vpack.c.bf16 %v1357_v62, %v1333_v61  ;;  %v1379_v7 = vld [vmem:[%s19871_s2 + $0x1b28] sm:$0xff] }
  0x96   : > { %9377 = vmatpush1.bf16.msra.mxu1 %v9376_v14  ;;  %9283 = vmatprep.subr.bf16.mxu0 %v9282_v17  ;;  %v9302_v14 = vpack.c.bf16 %v1163_v9, %v1139_v8  ;;  %v1138_v17 = vld [vmem:[%s19871_s2 + $0x13a0] sm:$0xff]  ;;  %v1403_v8 = vld [vmem:[%s19871_s2 + $0x1be8] sm:$0xff]  ;;  %v1381_v9 = vld [vmem:[%s19871_s2 + $0x1b38] sm:$0xff] }
  0x97   : > { %9379 = vmatprep.subr.bf16.mxu1 %v9378_v21  ;;  %v1164_v21 = vld [vmem:[%s19871_s2 + $0x1470] sm:$0xff]  ;;  %v9304_v25 = vpack.c.bf16 %v1162_v18, %v1138_v17  ;;  %v1402_v17 = vld [vmem:[%s19871_s2 + $0x1be0] sm:$0xff] }
  0x98   : > { %v1380_v18 = vld [vmem:[%s19871_s2 + $0x1b30] sm:$0xff] }
  0x99   : > { %9285 = vmatpush1.bf16.msra.mxu0 %v9284_v26  ;;  %v9400_v26 = vpack.c.bf16 %v1164_v21, %v1140_v19  ;;  %v9418_v19 = vpack.c.bf16 %v1405_v10, %v1381_v9  ;;  %v1451_v21 = vld [vmem:[%s19871_s2 + $0x1d68] sm:$0xff] }
  0x9a   : > { %9381 = vmatpush1.bf16.msra.mxu1 %v9380_v27  ;;  %9287 = vmatprep.subr.bf16.mxu0 %v9286_v28  ;;  %v9306_v27 = vpack.c.bf16 %v1211_v22, %v1187_v16  ;;  %v1186_v28 = vld [vmem:[%s19871_s2 + $0x1520] sm:$0xff]  ;;  %v1429_v16 = vld [vmem:[%s19871_s2 + $0x1cb8] sm:$0xff] }
  0x9b   : > { %9383 = vmatprep.subr.bf16.mxu1 %v9382_v32  ;;  %v1212_v32 = vld [vmem:[%s19871_s2 + $0x15f0] sm:$0xff]  ;;  %v9308_v37 = vpack.c.bf16 %v1210_v29, %v1186_v28  ;;  %v1453_v22 = vld [vmem:[%s19871_s2 + $0x1d78] sm:$0xff] }
  0x9c   : > { %v1428_v28 = vld [vmem:[%s19871_s2 + $0x1cb0] sm:$0xff]  ;;  %v9422_v29 = vpack.c.bf16 %v1453_v22, %v1429_v16 }
  0x9d   : > { %9289 = vmatpush1.bf16.msra.mxu0 %v9288_v38  ;;  %v9404_v38 = vpack.c.bf16 %v1212_v32, %v1188_v30  ;;  %v1452_v30 = vld [vmem:[%s19871_s2 + $0x1d70] sm:$0xff]  ;;  %v1499_v32 = vld [vmem:[%s19871_s2 + $0x1ee8] sm:$0xff] }
  0x9e   : > { %9385 = vmatpush1.bf16.msra.mxu1 %v9384_v40  ;;  %9291 = vmatprep.subr.bf16.mxu0 %v9290_v41  ;;  %v9310_v40 = vpack.c.bf16 %v1259_v34, %v1235_v33  ;;  %v1234_v41 = vld [vmem:[%s19871_s2 + $0x16a0] sm:$0xff]  ;;  %v1477_v33 = vld [vmem:[%s19871_s2 + $0x1e38] sm:$0xff]  ;;  %v9424_v36 = vpack.c.bf16 %v1452_v30, %v1428_v28  ;;  %v544_v28 = vld [vmem:[%s19871_s2 + $0x110] sm:$0xff] }
  0x9f   : > { %9387 = vmatprep.subr.bf16.mxu1 %v9386_v45  ;;  %v1260_v45 = vld [vmem:[%s19871_s2 + $0x1770] sm:$0xff]  ;;  %v9312_v50 = vpack.c.bf16 %v1258_v42, %v1234_v41  ;;  %v1501_v34 = vld [vmem:[%s19871_s2 + $0x1ef8] sm:$0xff]  ;;  %v591_v30 = vld [vmem:[%s19871_s2 + $0x288] sm:$0xff] }
  0xa0   : > { %v1476_v41 = vld [vmem:[%s19871_s2 + $0x1e30] sm:$0xff]  ;;  %v9426_v42 = vpack.c.bf16 %v1501_v34, %v1477_v33 }
  0xa1   : > { %9293 = vmatpush1.bf16.msra.mxu0 %v9292_v51  ;;  %v9408_v51 = vpack.c.bf16 %v1260_v45, %v1236_v43  ;;  %v1500_v43 = vld [vmem:[%s19871_s2 + $0x1ef0] sm:$0xff]  ;;  %v1547_v45 = vld [vmem:[%s19871_s2 + $0x2068] sm:$0xff] }
  0xa2   : > { %9389 = vmatpush1.bf16.msra.mxu1 %v9388_v52  ;;  %9295 = vmatprep.subr.bf16.mxu0 %v9294_v54  ;;  %v9314_v52 = vpack.c.bf16 %v1307_v47, %v1283_v46  ;;  %v1282_v54 = vld [vmem:[%s19871_s2 + $0x1820] sm:$0xff]  ;;  %v1525_v46 = vld [vmem:[%s19871_s2 + $0x1fb8] sm:$0xff]  ;;  %v9428_v49 = vpack.c.bf16 %v1500_v43, %v1476_v41  ;;  %v592_v41 = vld [vmem:[%s19871_s2 + $0x290] sm:$0xff] }
  0xa3   : > { %9391 = vmatprep.subr.bf16.mxu1 %v9390_v58  ;;  %v1308_v58 = vld [vmem:[%s19871_s2 + $0x18f0] sm:$0xff]  ;;  %v9316_v63 = vpack.c.bf16 %v1306_v55, %v1282_v54  ;;  %v1549_v47 = vld [vmem:[%s19871_s2 + $0x2078] sm:$0xff]  ;;  %v639_v43 = vld [vmem:[%s19871_s2 + $0x408] sm:$0xff] }
  0xa4   : > { %v1524_v54 = vld [vmem:[%s19871_s2 + $0x1fb0] sm:$0xff]  ;;  %v9430_v55 = vpack.c.bf16 %v1549_v47, %v1525_v46 }
  0xa5   : > { %9297 = vmatpush1.bf16.msra.mxu0 %v9296_v0  ;;  %v9412_v0 = vpack.c.bf16 %v1308_v58, %v1284_v56  ;;  %v1548_v56 = vld [vmem:[%s19871_s2 + $0x2070] sm:$0xff]  ;;  %v1595_v58 = vld [vmem:[%s19871_s2 + $0x21e8] sm:$0xff] }
  0xa6   : > { %9393 = vmatpush1.bf16.msra.mxu1 %v9392_v1  ;;  %9299 = vmatprep.subr.bf16.mxu0 %v9298_v2  ;;  %v9318_v1 = vpack.c.bf16 %v1355_v60, %v1331_v59  ;;  %v1330_v2 = vld [vmem:[%s19871_s2 + $0x19a0] sm:$0xff]  ;;  %v1573_v59 = vld [vmem:[%s19871_s2 + $0x2138] sm:$0xff]  ;;  %v9432_v62 = vpack.c.bf16 %v1548_v56, %v1524_v54  ;;  %v663_v54 = vld [vmem:[%s19871_s2 + $0x4c8] sm:$0xff] }
  0xa7   : > { %9395 = vmatprep.subr.bf16.mxu1 %v9394_v6  ;;  %v1356_v6 = vld [vmem:[%s19871_s2 + $0x1a70] sm:$0xff]  ;;  %v9320_v11 = vpack.c.bf16 %v1354_v3, %v1330_v2  ;;  %v1597_v60 = vld [vmem:[%s19871_s2 + $0x21f8] sm:$0xff]  ;;  %v13184_v56 = vld [vmem:[%s12202_s23 + $0x8] sm:$0xff] }
  0xa8   : > { %v1572_v2 = vld [vmem:[%s19871_s2 + $0x2130] sm:$0xff]  ;;  %v9434_v3 = vpack.c.bf16 %v1597_v60, %v1573_v59 }
  0xa9   : > { %9301 = vmatpush1.bf16.msra.mxu0 %v9300_v12  ;;  %v9416_v12 = vpack.c.bf16 %v1356_v6, %v1332_v4  ;;  %v1596_v4 = vld [vmem:[%s19871_s2 + $0x21f0] sm:$0xff]  ;;  %v1643_v6 = vld [vmem:[%s19871_s2 + $0x2368] sm:$0xff] }
  0xaa   : > { %9397 = vmatpush1.bf16.msra.mxu1 %v9396_v13  ;;  %9303 = vmatprep.subr.bf16.mxu0 %v9302_v14  ;;  %v9322_v13 = vpack.c.bf16 %v1403_v8, %v1379_v7  ;;  %v1378_v14 = vld [vmem:[%s19871_s2 + $0x1b20] sm:$0xff]  ;;  %v1621_v7 = vld [vmem:[%s19871_s2 + $0x22b8] sm:$0xff]  ;;  %v9436_v10 = vpack.c.bf16 %v1596_v4, %v1572_v2  ;;  %v688_v2 = vld [vmem:[%s19871_s2 + $0x590] sm:$0xff] }
  0xab   : > { %9399 = vmatprep.subr.bf16.mxu1 %v9398_v20  ;;  %v1427_v20 = vld [vmem:[%s19871_s2 + $0x1ca8] sm:$0xff]  ;;  %v9324_v23 = vpack.c.bf16 %v1402_v17, %v1378_v14  ;;  %v1645_v8 = vld [vmem:[%s19871_s2 + $0x2378] sm:$0xff]  ;;  %v1620_v14 = vld [vmem:[%s19871_s2 + $0x22b0] sm:$0xff] }
  0xac   : > { %v9438_v17 = vpack.c.bf16 %v1645_v8, %v1621_v7  ;;  %v735_v4 = vld [vmem:[%s19871_s2 + $0x708] sm:$0xff] }
  0xad   : > { %9305 = vmatpush1.bf16.msra.mxu0 %v9304_v25  ;;  %v9326_v25 = vpack.c.bf16 %v1451_v21, %v1427_v20  ;;  %v521_v20 = vld [vmem:[%s19871_s2 + $0x58] sm:$0xff] }
  0xae   : > { %9401 = vmatpush1.bf16.msra.mxu1 %v9400_v26  ;;  %9307 = vmatprep.subr.bf16.mxu0 %v9306_v27  ;;  %v1426_v26 = vld [vmem:[%s19871_s2 + $0x1ca0] sm:$0xff]  ;;  %v545_v21 = vld [vmem:[%s19871_s2 + $0x118] sm:$0xff] }
  0xaf   : > { %9403 = vmatprep.subr.bf16.mxu1 %v9402_v31  ;;  %v1450_v27 = vld [vmem:[%s19871_s2 + $0x1d60] sm:$0xff]  ;;  %v1475_v31 = vld [vmem:[%s19871_s2 + $0x1e28] sm:$0xff] }
  0xb0   : > { %v9328_v35 = vpack.c.bf16 %v1450_v27, %v1426_v26  ;;  %v520_v26 = vld [vmem:[%s19871_s2 + $0x50] sm:$0xff]  ;;  %v9538_v27 = vpack.c.bf16 %v545_v21, %v521_v20 }
  0xb1   : > { %9309 = vmatpush1.bf16.msra.mxu0 %v9308_v37  ;;  %v9330_v37 = vpack.c.bf16 %v1499_v32, %v1475_v31  ;;  %v569_v31 = vld [vmem:[%s19871_s2 + $0x1d8] sm:$0xff]  ;;  %v9540_v34 = vpack.c.bf16 %v544_v28, %v520_v26  ;;  %v784_v26 = vld [vmem:[%s19871_s2 + $0x890] sm:$0xff]  ;;  %v831_v28 = vld [vmem:[%s19871_s2 + $0xa08] sm:$0xff] }
  0xb2   : > { %9405 = vmatpush1.bf16.msra.mxu1 %v9404_v38  ;;  %9311 = vmatprep.subr.bf16.mxu0 %v9310_v40  ;;  %v1474_v38 = vld [vmem:[%s19871_s2 + $0x1e20] sm:$0xff]  ;;  %v593_v32 = vld [vmem:[%s19871_s2 + $0x298] sm:$0xff] }
  0xb3   : > { %9407 = vmatprep.subr.bf16.mxu1 %v9406_v44  ;;  %v1498_v40 = vld [vmem:[%s19871_s2 + $0x1ee0] sm:$0xff]  ;;  %v1523_v44 = vld [vmem:[%s19871_s2 + $0x1fa8] sm:$0xff] }
  0xb4   : > { %v9332_v48 = vpack.c.bf16 %v1498_v40, %v1474_v38  ;;  %v568_v38 = vld [vmem:[%s19871_s2 + $0x1d0] sm:$0xff]  ;;  %v9542_v40 = vpack.c.bf16 %v593_v32, %v569_v31 }
  0xb5   : > { %9313 = vmatpush1.bf16.msra.mxu0 %v9312_v50  ;;  %v9334_v50 = vpack.c.bf16 %v1547_v45, %v1523_v44  ;;  %v617_v44 = vld [vmem:[%s19871_s2 + $0x358] sm:$0xff]  ;;  %v9544_v47 = vpack.c.bf16 %v592_v41, %v568_v38  ;;  %v832_v38 = vld [vmem:[%s19871_s2 + $0xa10] sm:$0xff]  ;;  %v879_v41 = vld [vmem:[%s19871_s2 + $0xb88] sm:$0xff] }
  0xb6   : > { %9409 = vmatpush1.bf16.msra.mxu1 %v9408_v51  ;;  %9315 = vmatprep.subr.bf16.mxu0 %v9314_v52  ;;  %v1522_v51 = vld [vmem:[%s19871_s2 + $0x1fa0] sm:$0xff]  ;;  %v641_v45 = vld [vmem:[%s19871_s2 + $0x418] sm:$0xff] }
  0xb7   : > { %9411 = vmatprep.subr.bf16.mxu1 %v9410_v57  ;;  %v1546_v52 = vld [vmem:[%s19871_s2 + $0x2060] sm:$0xff]  ;;  %v1571_v57 = vld [vmem:[%s19871_s2 + $0x2128] sm:$0xff] }
  0xb8   : > { %2137 = vmatmul.mubr.f32.vlgmr.msra.gmra.mrb[2].mxu0 %v12354_v15  ;;  %v9336_v61 = vpack.c.bf16 %v1546_v52, %v1522_v51  ;;  %v616_v51 = vld [vmem:[%s19871_s2 + $0x350] sm:$0xff] }
  0xb9   : > { %9317 = vmatpush1.bf16.msra.mxu0 %v9316_v63  ;;  %2279 = vmatmul.mubr.f32.vlgmr.msra.gmra.mrb[2].mxu1 %v12354_v15  ;;  %v1404_v15 = vld [vmem:[%s19871_s2 + $0x1bf0] sm:$0xff]  ;;  %v9338_v63 = vpack.c.bf16 %v1595_v58, %v1571_v57  ;;  %v665_v57 = vld [vmem:[%s19871_s2 + $0x4d8] sm:$0xff] }
  0xba   : > { %9413 = vmatpush1.bf16.msra.mxu1 %v9412_v0  ;;  %9319 = vmatprep.subr.bf16.mxu0 %v9318_v1  ;;  %v9420_v24 = vpack.c.bf16 %v1404_v15, %v1380_v18  ;;  %v1570_v0 = vld [vmem:[%s19871_s2 + $0x2120] sm:$0xff]  ;;  %v1644_v18 = vld [vmem:[%s19871_s2 + $0x2370] sm:$0xff]  ;;  %v543_v15 = vld [vmem:[%s19871_s2 + $0x108] sm:$0xff] }
  0xbb   : > { %9415 = vmatprep.subr.bf16.mxu1 %v9414_v5  ;;  %2349 = vmatprep.mubr.f32.mxu1 %v11783_v39  ;;  %v1594_v1 = vld [vmem:[%s19871_s2 + $0x21e0] sm:$0xff]  ;;  %v1619_v5 = vld [vmem:[%s19871_s2 + $0x22a8] sm:$0xff]  ;;  %v9440_v22 = vpack.c.bf16 %v1644_v18, %v1620_v14  ;;  %v640_v52 = vld [vmem:[%s19871_s2 + $0x410] sm:$0xff] }
  0xbc   : > { %2207 = vmatprep.mubr.f32.mxu0 %v11783_v39  ;;  %v9340_v9 = vpack.c.bf16 %v1594_v1, %v1570_v0  ;;  %v689_v58 = vld [vmem:[%s19871_s2 + $0x598] sm:$0xff]  ;;  %v9548_v60 = vpack.c.bf16 %v640_v52, %v616_v51  ;;  %v664_v0 = vld [vmem:[%s19871_s2 + $0x4d0] sm:$0xff]  ;;  %v783_v18 = vld [vmem:[%s19871_s2 + $0x888] sm:$0xff] }
  0xbd   : > { %9321 = vmatpush1.bf16.msra.mxu0 %v9320_v11  ;;  %v9342_v11 = vpack.c.bf16 %v1643_v6, %v1619_v5  ;;  %v9550_v1 = vpack.c.bf16 %v689_v58, %v665_v57  ;;  %v713_v5 = vld [vmem:[%s19871_s2 + $0x658] sm:$0xff]  ;;  %v9552_v8 = vpack.c.bf16 %v688_v2, %v664_v0  ;;  %v736_v14 = vld [vmem:[%s19871_s2 + $0x710] sm:$0xff]  ;;  %v927_v52 = vld [vmem:[%s19871_s2 + $0xd08] sm:$0xff] }
  0xbe   : > { %9417 = vmatpush1.bf16.msra.mxu1 %v9416_v12  ;;  %9323 = vmatprep.subr.bf16.mxu0 %v9322_v13  ;;  %v1618_v12 = vld [vmem:[%s19871_s2 + $0x22a0] sm:$0xff]  ;;  %v737_v6 = vld [vmem:[%s19871_s2 + $0x718] sm:$0xff]  ;;  %v880_v51 = vld [vmem:[%s19871_s2 + $0xb90] sm:$0xff] }
  0xbf   : > { %9419 = vmatprep.subr.bf16.mxu1 %v9418_v19  ;;  %v1642_v13 = vld [vmem:[%s19871_s2 + $0x2360] sm:$0xff]  ;;  %v519_v19 = vld [vmem:[%s19871_s2 + $0x48] sm:$0xff]  ;;  %v928_v0 = vld [vmem:[%s19871_s2 + $0xd10] sm:$0xff] }
  0xc0   : > { %v9344_v16 = vpack.c.bf16 %v1642_v13, %v1618_v12  ;;  %v712_v12 = vld [vmem:[%s19871_s2 + $0x650] sm:$0xff]  ;;  %v9554_v13 = vpack.c.bf16 %v737_v6, %v713_v5  ;;  %v975_v2 = vld [vmem:[%s19871_s2 + $0xe88] sm:$0xff] }
  0xc1   : > { %9325 = vmatpush1.bf16.msra.mxu0 %v9324_v23  ;;  %v9442_v23 = vpack.c.bf16 %v543_v15, %v519_v19  ;;  %v761_v19 = vld [vmem:[%s19871_s2 + $0x7d8] sm:$0xff]  ;;  %v9556_v21 = vpack.c.bf16 %v736_v14, %v712_v12  ;;  %v976_v12 = vld [vmem:[%s19871_s2 + $0xe90] sm:$0xff]  ;;  %v1023_v14 = vld [vmem:[%s19871_s2 + $0x1008] sm:$0xff] }
  0xc2   : > { %9421 = vmatpush1.bf16.msra.mxu1 %v9420_v24  ;;  %9327 = vmatprep.subr.bf16.mxu0 %v9326_v25  ;;  %v518_v24 = vld [vmem:[%s19871_s2 + $0x40] sm:$0xff]  ;;  %v785_v15 = vld [vmem:[%s19871_s2 + $0x898] sm:$0xff] }
  0xc3   : > { %9423 = vmatprep.subr.bf16.mxu1 %v9422_v29  ;;  %v542_v25 = vld [vmem:[%s19871_s2 + $0x100] sm:$0xff]  ;;  %v567_v29 = vld [vmem:[%s19871_s2 + $0x1c8] sm:$0xff] }
  0xc4   : > { %v9444_v33 = vpack.c.bf16 %v542_v25, %v518_v24  ;;  %v760_v24 = vld [vmem:[%s19871_s2 + $0x7d0] sm:$0xff]  ;;  %v9558_v25 = vpack.c.bf16 %v785_v15, %v761_v19 }
  0xc5   : > { %9329 = vmatpush1.bf16.msra.mxu0 %v9328_v35  ;;  %v9446_v35 = vpack.c.bf16 %v591_v30, %v567_v29  ;;  %v809_v29 = vld [vmem:[%s19871_s2 + $0x958] sm:$0xff]  ;;  %v9560_v32 = vpack.c.bf16 %v784_v26, %v760_v24  ;;  %v1024_v24 = vld [vmem:[%s19871_s2 + $0x1010] sm:$0xff]  ;;  %v1071_v26 = vld [vmem:[%s19871_s2 + $0x1188] sm:$0xff] }
  0xc6   : > { %9425 = vmatpush1.bf16.msra.mxu1 %v9424_v36  ;;  %9331 = vmatprep.subr.bf16.mxu0 %v9330_v37  ;;  %v566_v36 = vld [vmem:[%s19871_s2 + $0x1c0] sm:$0xff]  ;;  %v833_v30 = vld [vmem:[%s19871_s2 + $0xa18] sm:$0xff] }
  0xc7   : > { %9427 = vmatprep.subr.bf16.mxu1 %v9426_v42  ;;  %v590_v37 = vld [vmem:[%s19871_s2 + $0x280] sm:$0xff]  ;;  %v615_v42 = vld [vmem:[%s19871_s2 + $0x348] sm:$0xff] }
  0xc8   : > { %v9448_v46 = vpack.c.bf16 %v590_v37, %v566_v36  ;;  %v808_v36 = vld [vmem:[%s19871_s2 + $0x950] sm:$0xff]  ;;  %v9562_v37 = vpack.c.bf16 %v833_v30, %v809_v29 }
  0xc9   : > { %9333 = vmatpush1.bf16.msra.mxu0 %v9332_v48  ;;  %v9450_v48 = vpack.c.bf16 %v639_v43, %v615_v42  ;;  %v857_v42 = vld [vmem:[%s19871_s2 + $0xad8] sm:$0xff] }
  0xca   : > { %9429 = vmatpush1.bf16.msra.mxu1 %v9428_v49  ;;  %9335 = vmatprep.subr.bf16.mxu0 %v9334_v50  ;;  %v614_v49 = vld [vmem:[%s19871_s2 + $0x340] sm:$0xff]  ;;  %v881_v43 = vld [vmem:[%s19871_s2 + $0xb98] sm:$0xff] }
  0xcb   : > { %9431 = vmatprep.subr.bf16.mxu1 %v9430_v55  ;;  %v638_v50 = vld [vmem:[%s19871_s2 + $0x400] sm:$0xff]  ;;  %v687_v55 = vld [vmem:[%s19871_s2 + $0x588] sm:$0xff] }
  0xcc   : > { %v9452_v59 = vpack.c.bf16 %v638_v50, %v614_v49  ;;  %v856_v49 = vld [vmem:[%s19871_s2 + $0xad0] sm:$0xff]  ;;  %v9566_v50 = vpack.c.bf16 %v881_v43, %v857_v42 }
  0xcd   : > { %9337 = vmatpush1.bf16.msra.mxu0 %v9336_v61  ;;  %v9454_v61 = vpack.c.bf16 %v687_v55, %v663_v54  ;;  %v905_v54 = vld [vmem:[%s19871_s2 + $0xc58] sm:$0xff]  ;;  %v9568_v58 = vpack.c.bf16 %v880_v51, %v856_v49  ;;  %v1120_v49 = vld [vmem:[%s19871_s2 + $0x1310] sm:$0xff]  ;;  %v1167_v51 = vld [vmem:[%s19871_s2 + $0x1488] sm:$0xff] }
  0xce   : > { %9433 = vmatpush1.bf16.msra.mxu1 %v9432_v62  ;;  %9339 = vmatprep.subr.bf16.mxu0 %v9338_v63  ;;  %v662_v62 = vld [vmem:[%s19871_s2 + $0x4c0] sm:$0xff]  ;;  %v929_v55 = vld [vmem:[%s19871_s2 + $0xd18] sm:$0xff] }
  0xcf   : > { %9435 = vmatprep.subr.bf16.mxu1 %v9434_v3  ;;  %v686_v63 = vld [vmem:[%s19871_s2 + $0x580] sm:$0xff]  ;;  %v711_v3 = vld [vmem:[%s19871_s2 + $0x648] sm:$0xff] }
  0xd0   : > { %v9456_v7 = vpack.c.bf16 %v686_v63, %v662_v62  ;;  %v904_v62 = vld [vmem:[%s19871_s2 + $0xc50] sm:$0xff]  ;;  %v9570_v63 = vpack.c.bf16 %v929_v55, %v905_v54 }
  0xd1   : > { %9341 = vmatpush1.bf16.msra.mxu0 %v9340_v9  ;;  %v9458_v9 = vpack.c.bf16 %v735_v4, %v711_v3  ;;  %v953_v3 = vld [vmem:[%s19871_s2 + $0xdd8] sm:$0xff]  ;;  %v9572_v6 = vpack.c.bf16 %v928_v0, %v904_v62  ;;  %v1168_v62 = vld [vmem:[%s19871_s2 + $0x1490] sm:$0xff]  ;;  %v1215_v0 = vld [vmem:[%s19871_s2 + $0x1608] sm:$0xff] }
  0xd2   : > { %9437 = vmatpush1.bf16.msra.mxu1 %v9436_v10  ;;  %9343 = vmatprep.subr.bf16.mxu0 %v9342_v11  ;;  %v710_v10 = vld [vmem:[%s19871_s2 + $0x640] sm:$0xff]  ;;  %v977_v4 = vld [vmem:[%s19871_s2 + $0xe98] sm:$0xff] }
  0xd3   : > { %9439 = vmatprep.subr.bf16.mxu1 %v9438_v17  ;;  %v734_v11 = vld [vmem:[%s19871_s2 + $0x700] sm:$0xff]  ;;  %v759_v17 = vld [vmem:[%s19871_s2 + $0x7c8] sm:$0xff] }
  0xd4   : > { %v9460_v20 = vpack.c.bf16 %v734_v11, %v710_v10  ;;  %v952_v10 = vld [vmem:[%s19871_s2 + $0xdd0] sm:$0xff]  ;;  %v9574_v11 = vpack.c.bf16 %v977_v4, %v953_v3 }
  0xd5   : > { %9345 = vmatpush1.bf16.msra.mxu0 %v9344_v16  ;;  %v9462_v16 = vpack.c.bf16 %v783_v18, %v759_v17  ;;  %v1001_v17 = vld [vmem:[%s19871_s2 + $0xf58] sm:$0xff]  ;;  %v9576_v15 = vpack.c.bf16 %v976_v12, %v952_v10  ;;  %v1216_v10 = vld [vmem:[%s19871_s2 + $0x1610] sm:$0xff]  ;;  %v1263_v12 = vld [vmem:[%s19871_s2 + $0x1788] sm:$0xff] }
  0xd6   : > { %9441 = vmatpush1.bf16.msra.mxu1 %v9440_v22  ;;  %9443 = vmatprep.subr.bf16.mxu0 %v9442_v23  ;;  %v758_v22 = vld [vmem:[%s19871_s2 + $0x7c0] sm:$0xff]  ;;  %v1025_v18 = vld [vmem:[%s19871_s2 + $0x1018] sm:$0xff] }
  0xd7   : > { %9539 = vmatprep.subr.bf16.mxu1 %v9538_v27  ;;  %v782_v23 = vld [vmem:[%s19871_s2 + $0x880] sm:$0xff]  ;;  %v807_v27 = vld [vmem:[%s19871_s2 + $0x948] sm:$0xff] }
  0xd8   : > { %2208 = vmatmul.mubr.f32.vlgmr.msra.gmra.mrb[2].mxu0 %v12553_v53  ;;  %v9464_v31 = vpack.c.bf16 %v782_v23, %v758_v22  ;;  %v1000_v22 = vld [vmem:[%s19871_s2 + $0xf50] sm:$0xff]  ;;  %v9578_v23 = vpack.c.bf16 %v1025_v18, %v1001_v17 }
  0xd9   : > { %2350 = vmatmul.mubr.f32.vlgmr.msra.gmra.mrb[2].mxu1 %v12553_v53  ;;  %9445 = vmatpush1.bf16.msra.mxu0 %v9444_v33  ;;  %v9546_v53 = vpack.c.bf16 %v641_v45, %v617_v44  ;;  %v9466_v33 = vpack.c.bf16 %v831_v28, %v807_v27  ;;  %v9564_v45 = vpack.c.bf16 %v832_v38, %v808_v36  ;;  %v1049_v27 = vld [vmem:[%s19871_s2 + $0x10d8] sm:$0xff]  ;;  %v1072_v36 = vld [vmem:[%s19871_s2 + $0x1190] sm:$0xff]  ;;  %v1119_v38 = vld [vmem:[%s19871_s2 + $0x1308] sm:$0xff] }
  0xda   : > { %9541 = vmatpush1.bf16.msra.mxu1 %v9540_v34  ;;  %9447 = vmatprep.subr.bf16.mxu0 %v9446_v35  ;;  %v806_v34 = vld [vmem:[%s19871_s2 + $0x940] sm:$0xff]  ;;  %v1073_v28 = vld [vmem:[%s19871_s2 + $0x1198] sm:$0xff]  ;;  %v9580_v30 = vpack.c.bf16 %v1024_v24, %v1000_v22  ;;  %v1264_v22 = vld [vmem:[%s19871_s2 + $0x1790] sm:$0xff] }
  0xdb   : > { %9543 = vmatprep.subr.bf16.mxu1 %v9542_v40  ;;  %2420 = vmatprep.mubr.f32.mxu0 %v13184_v56  ;;  %v830_v35 = vld [vmem:[%s19871_s2 + $0xa00] sm:$0xff]  ;;  %v855_v40 = vld [vmem:[%s19871_s2 + $0xac8] sm:$0xff] }
  0xdc   : > { %2562 = vmatprep.mubr.f32.mxu1 %v13184_v56  ;;  %v9468_v44 = vpack.c.bf16 %v830_v35, %v806_v34  ;;  %v1048_v34 = vld [vmem:[%s19871_s2 + $0x10d0] sm:$0xff]  ;;  %v9582_v35 = vpack.c.bf16 %v1073_v28, %v1049_v27  ;;  %v1311_v24 = vld [vmem:[%s19871_s2 + $0x1908] sm:$0xff] }
  0xdd   : > { %9449 = vmatpush1.bf16.msra.mxu0 %v9448_v46  ;;  %v9470_v46 = vpack.c.bf16 %v879_v41, %v855_v40  ;;  %v1097_v40 = vld [vmem:[%s19871_s2 + $0x1258] sm:$0xff]  ;;  %v9584_v43 = vpack.c.bf16 %v1072_v36, %v1048_v34  ;;  %v1312_v34 = vld [vmem:[%s19871_s2 + $0x1910] sm:$0xff]  ;;  %v1359_v36 = vld [vmem:[%s19871_s2 + $0x1a88] sm:$0xff] }
  0xde   : > { %9545 = vmatpush1.bf16.msra.mxu1 %v9544_v47  ;;  %9451 = vmatprep.subr.bf16.mxu0 %v9450_v48  ;;  %v854_v47 = vld [vmem:[%s19871_s2 + $0xac0] sm:$0xff]  ;;  %v1121_v41 = vld [vmem:[%s19871_s2 + $0x1318] sm:$0xff] }
  0xdf   : > { %9547 = vmatprep.subr.bf16.mxu1 %v9546_v53  ;;  %v878_v48 = vld [vmem:[%s19871_s2 + $0xb80] sm:$0xff]  ;;  %v903_v53 = vld [vmem:[%s19871_s2 + $0xc48] sm:$0xff] }
  0xe0   : > { %v9472_v57 = vpack.c.bf16 %v878_v48, %v854_v47  ;;  %v1096_v47 = vld [vmem:[%s19871_s2 + $0x1250] sm:$0xff]  ;;  %v9586_v48 = vpack.c.bf16 %v1121_v41, %v1097_v40 }
  0xe1   : > { %9453 = vmatpush1.bf16.msra.mxu0 %v9452_v59  ;;  %v9474_v59 = vpack.c.bf16 %v927_v52, %v903_v53  ;;  %v1145_v53 = vld [vmem:[%s19871_s2 + $0x13d8] sm:$0xff]  ;;  %v9588_v55 = vpack.c.bf16 %v1120_v49, %v1096_v47  ;;  %v1360_v47 = vld [vmem:[%s19871_s2 + $0x1a90] sm:$0xff]  ;;  %v1407_v49 = vld [vmem:[%s19871_s2 + $0x1c08] sm:$0xff] }
  0xe2   : > { %9549 = vmatpush1.bf16.msra.mxu1 %v9548_v60  ;;  %9455 = vmatprep.subr.bf16.mxu0 %v9454_v61  ;;  %v902_v60 = vld [vmem:[%s19871_s2 + $0xc40] sm:$0xff]  ;;  %v1169_v52 = vld [vmem:[%s19871_s2 + $0x1498] sm:$0xff] }
  0xe3   : > { %9551 = vmatprep.subr.bf16.mxu1 %v9550_v1  ;;  %v926_v61 = vld [vmem:[%s19871_s2 + $0xd00] sm:$0xff]  ;;  %v951_v1 = vld [vmem:[%s19871_s2 + $0xdc8] sm:$0xff] }
  0xe4   : > { %v9476_v5 = vpack.c.bf16 %v926_v61, %v902_v60  ;;  %v1144_v60 = vld [vmem:[%s19871_s2 + $0x13d0] sm:$0xff]  ;;  %v9590_v61 = vpack.c.bf16 %v1169_v52, %v1145_v53  ;;  %v1409_v53 = vld [vmem:[%s19871_s2 + $0x1c18] sm:$0xff] }
  0xe5   : > { %9457 = vmatpush1.bf16.msra.mxu0 %v9456_v7  ;;  %v9478_v7 = vpack.c.bf16 %v975_v2, %v951_v1  ;;  %v1193_v1 = vld [vmem:[%s19871_s2 + $0x1558] sm:$0xff]  ;;  %v9592_v4 = vpack.c.bf16 %v1168_v62, %v1144_v60  ;;  %v1431_v62 = vld [vmem:[%s19871_s2 + $0x1cc8] sm:$0xff] }
  0xe6   : > { %9553 = vmatpush1.bf16.msra.mxu1 %v9552_v8  ;;  %9459 = vmatprep.subr.bf16.mxu0 %v9458_v9  ;;  %v950_v8 = vld [vmem:[%s19871_s2 + $0xdc0] sm:$0xff]  ;;  %v1217_v2 = vld [vmem:[%s19871_s2 + $0x1618] sm:$0xff] }
  0xe7   : > { %9555 = vmatprep.subr.bf16.mxu1 %v9554_v13  ;;  %v974_v9 = vld [vmem:[%s19871_s2 + $0xe80] sm:$0xff]  ;;  %v999_v13 = vld [vmem:[%s19871_s2 + $0xf48] sm:$0xff] }
  0xe8   : > { %v9480_v19 = vpack.c.bf16 %v974_v9, %v950_v8  ;;  %v1192_v8 = vld [vmem:[%s19871_s2 + $0x1550] sm:$0xff]  ;;  %v9594_v9 = vpack.c.bf16 %v1217_v2, %v1193_v1  ;;  %v1457_v1 = vld [vmem:[%s19871_s2 + $0x1d98] sm:$0xff] }
  0xe9   : > { %9461 = vmatpush1.bf16.msra.mxu0 %v9460_v20  ;;  %v9482_v20 = vpack.c.bf16 %v1023_v14, %v999_v13  ;;  %v1241_v13 = vld [vmem:[%s19871_s2 + $0x16d8] sm:$0xff]  ;;  %v9596_v18 = vpack.c.bf16 %v1216_v10, %v1192_v8  ;;  %v1479_v10 = vld [vmem:[%s19871_s2 + $0x1e48] sm:$0xff] }
  0xea   : > { %9557 = vmatpush1.bf16.msra.mxu1 %v9556_v21  ;;  %9463 = vmatprep.subr.bf16.mxu0 %v9462_v16  ;;  %v998_v21 = vld [vmem:[%s19871_s2 + $0xf40] sm:$0xff]  ;;  %v1265_v14 = vld [vmem:[%s19871_s2 + $0x1798] sm:$0xff] }
  0xeb   : > { %9559 = vmatprep.subr.bf16.mxu1 %v9558_v25  ;;  %v1022_v16 = vld [vmem:[%s19871_s2 + $0x1000] sm:$0xff]  ;;  %v1047_v25 = vld [vmem:[%s19871_s2 + $0x10c8] sm:$0xff] }
  0xec   : > { %v9484_v29 = vpack.c.bf16 %v1022_v16, %v998_v21  ;;  %v1240_v21 = vld [vmem:[%s19871_s2 + $0x16d0] sm:$0xff]  ;;  %v9598_v16 = vpack.c.bf16 %v1265_v14, %v1241_v13  ;;  %v1505_v13 = vld [vmem:[%s19871_s2 + $0x1f18] sm:$0xff] }
  0xed   : > { %9465 = vmatpush1.bf16.msra.mxu0 %v9464_v31  ;;  %v9486_v31 = vpack.c.bf16 %v1071_v26, %v1047_v25  ;;  %v1289_v25 = vld [vmem:[%s19871_s2 + $0x1858] sm:$0xff]  ;;  %v9600_v28 = vpack.c.bf16 %v1264_v22, %v1240_v21  ;;  %v1527_v22 = vld [vmem:[%s19871_s2 + $0x1fc8] sm:$0xff] }
  0xee   : > { %9561 = vmatpush1.bf16.msra.mxu1 %v9560_v32  ;;  %9467 = vmatprep.subr.bf16.mxu0 %v9466_v33  ;;  %v1046_v32 = vld [vmem:[%s19871_s2 + $0x10c0] sm:$0xff]  ;;  %v1313_v26 = vld [vmem:[%s19871_s2 + $0x1918] sm:$0xff] }
  0xef   : > { %9563 = vmatprep.subr.bf16.mxu1 %v9562_v37  ;;  %v1070_v33 = vld [vmem:[%s19871_s2 + $0x1180] sm:$0xff]  ;;  %v1095_v37 = vld [vmem:[%s19871_s2 + $0x1248] sm:$0xff] }
  0xf0   : > { %v9488_v42 = vpack.c.bf16 %v1070_v33, %v1046_v32  ;;  %v1288_v32 = vld [vmem:[%s19871_s2 + $0x1850] sm:$0xff]  ;;  %v9602_v33 = vpack.c.bf16 %v1313_v26, %v1289_v25  ;;  %v1553_v25 = vld [vmem:[%s19871_s2 + $0x2098] sm:$0xff] }
  0xf1   : > { %9469 = vmatpush1.bf16.msra.mxu0 %v9468_v44  ;;  %v9490_v44 = vpack.c.bf16 %v1119_v38, %v1095_v37  ;;  %v1337_v37 = vld [vmem:[%s19871_s2 + $0x19d8] sm:$0xff]  ;;  %v9604_v41 = vpack.c.bf16 %v1312_v34, %v1288_v32  ;;  %v1575_v34 = vld [vmem:[%s19871_s2 + $0x2148] sm:$0xff] }
  0xf2   : > { %9565 = vmatpush1.bf16.msra.mxu1 %v9564_v45  ;;  %9471 = vmatprep.subr.bf16.mxu0 %v9470_v46  ;;  %v1094_v45 = vld [vmem:[%s19871_s2 + $0x1240] sm:$0xff]  ;;  %v1361_v38 = vld [vmem:[%s19871_s2 + $0x1a98] sm:$0xff] }
  0xf3   : > { %9567 = vmatprep.subr.bf16.mxu1 %v9566_v50  ;;  %v1118_v46 = vld [vmem:[%s19871_s2 + $0x1300] sm:$0xff]  ;;  %v1143_v50 = vld [vmem:[%s19871_s2 + $0x13c8] sm:$0xff] }
  0xf4   : > { %v9492_v54 = vpack.c.bf16 %v1118_v46, %v1094_v45  ;;  %v1336_v45 = vld [vmem:[%s19871_s2 + $0x19d0] sm:$0xff]  ;;  %v9606_v46 = vpack.c.bf16 %v1361_v38, %v1337_v37  ;;  %v1601_v37 = vld [vmem:[%s19871_s2 + $0x2218] sm:$0xff] }
  0xf5   : > { %9473 = vmatpush1.bf16.msra.mxu0 %v9472_v57  ;;  %v9494_v57 = vpack.c.bf16 %v1167_v51, %v1143_v50  ;;  %v13549_v50 = vld [vmem:[%s12202_s23] sm:$0xff]  ;;  %v1385_v51 = vld [vmem:[%s19871_s2 + $0x1b58] sm:$0xff] }
  0xf6   : > { %9569 = vmatpush1.bf16.msra.mxu1 %v9568_v58  ;;  %9475 = vmatprep.subr.bf16.mxu0 %v9474_v59  ;;  %v1142_v58 = vld [vmem:[%s19871_s2 + $0x13c0] sm:$0xff]  ;;  %v9610_v60 = vpack.c.bf16 %v1409_v53, %v1385_v51  ;;  %v1649_v51 = vld [vmem:[%s19871_s2 + $0x2398] sm:$0xff] }
  0xf7   : > { %9571 = vmatprep.subr.bf16.mxu1 %v9570_v63  ;;  %v1166_v59 = vld [vmem:[%s19871_s2 + $0x1480] sm:$0xff]  ;;  %v1191_v63 = vld [vmem:[%s19871_s2 + $0x1548] sm:$0xff] }
  0xf8   : > { %v9496_v3 = vpack.c.bf16 %v1166_v59, %v1142_v58  ;;  %v1406_v58 = vld [vmem:[%s19871_s2 + $0x1c00] sm:$0xff]  ;;  %v1384_v59 = vld [vmem:[%s19871_s2 + $0x1b50] sm:$0xff] }
  0xf9   : > { %9477 = vmatpush1.bf16.msra.mxu0 %v9476_v5  ;;  %v9498_v5 = vpack.c.bf16 %v1215_v0, %v1191_v63  ;;  %v1455_v63 = vld [vmem:[%s19871_s2 + $0x1d88] sm:$0xff]  ;;  %v1433_v0 = vld [vmem:[%s19871_s2 + $0x1cd8] sm:$0xff] }
  0xfa   : > { %9573 = vmatpush1.bf16.msra.mxu1 %v9572_v6  ;;  %9479 = vmatprep.subr.bf16.mxu0 %v9478_v7  ;;  %v1190_v6 = vld [vmem:[%s19871_s2 + $0x1540] sm:$0xff]  ;;  %v9614_v8 = vpack.c.bf16 %v1457_v1, %v1433_v0  ;;  %v549_v0 = vld [vmem:[%s19871_s2 + $0x138] sm:$0xff] }
  0xfb   : > { %9575 = vmatprep.subr.bf16.mxu1 %v9574_v11  ;;  %v1214_v7 = vld [vmem:[%s19871_s2 + $0x1600] sm:$0xff]  ;;  %v1239_v11 = vld [vmem:[%s19871_s2 + $0x16c8] sm:$0xff] }
  0xfc   : > { %v9500_v17 = vpack.c.bf16 %v1214_v7, %v1190_v6  ;;  %v1454_v6 = vld [vmem:[%s19871_s2 + $0x1d80] sm:$0xff]  ;;  %v1432_v7 = vld [vmem:[%s19871_s2 + $0x1cd0] sm:$0xff] }
  0xfd   : > { %9481 = vmatpush1.bf16.msra.mxu0 %v9480_v19  ;;  %v9502_v19 = vpack.c.bf16 %v1263_v12, %v1239_v11  ;;  %v1503_v11 = vld [vmem:[%s19871_s2 + $0x1f08] sm:$0xff]  ;;  %v1481_v12 = vld [vmem:[%s19871_s2 + $0x1e58] sm:$0xff] }
  0xfe   : > { %9577 = vmatpush1.bf16.msra.mxu1 %v9576_v15  ;;  %9483 = vmatprep.subr.bf16.mxu0 %v9482_v20  ;;  %v1238_v15 = vld [vmem:[%s19871_s2 + $0x16c0] sm:$0xff]  ;;  %v9618_v21 = vpack.c.bf16 %v1505_v13, %v1481_v12  ;;  %v597_v12 = vld [vmem:[%s19871_s2 + $0x2b8] sm:$0xff] }
  0xff   : > { %9579 = vmatprep.subr.bf16.mxu1 %v9578_v23  ;;  %v1262_v20 = vld [vmem:[%s19871_s2 + $0x1780] sm:$0xff]  ;;  %v1287_v23 = vld [vmem:[%s19871_s2 + $0x1848] sm:$0xff] }
 0x100   : > { %v9504_v27 = vpack.c.bf16 %v1262_v20, %v1238_v15  ;;  %v1502_v15 = vld [vmem:[%s19871_s2 + $0x1f00] sm:$0xff]  ;;  %v1480_v20 = vld [vmem:[%s19871_s2 + $0x1e50] sm:$0xff] }
 0x101   : > { %9485 = vmatpush1.bf16.msra.mxu0 %v9484_v29  ;;  %v9506_v29 = vpack.c.bf16 %v1311_v24, %v1287_v23  ;;  %v1551_v23 = vld [vmem:[%s19871_s2 + $0x2088] sm:$0xff]  ;;  %v1529_v24 = vld [vmem:[%s19871_s2 + $0x1fd8] sm:$0xff] }
 0x102   : > { %9581 = vmatpush1.bf16.msra.mxu1 %v9580_v30  ;;  %9487 = vmatprep.subr.bf16.mxu0 %v9486_v31  ;;  %v1286_v30 = vld [vmem:[%s19871_s2 + $0x1840] sm:$0xff]  ;;  %v9622_v32 = vpack.c.bf16 %v1553_v25, %v1529_v24  ;;  %v621_v24 = vld [vmem:[%s19871_s2 + $0x378] sm:$0xff] }
 0x103   : > { %9583 = vmatprep.subr.bf16.mxu1 %v9582_v35  ;;  %v1310_v31 = vld [vmem:[%s19871_s2 + $0x1900] sm:$0xff]  ;;  %v1335_v35 = vld [vmem:[%s19871_s2 + $0x19c8] sm:$0xff]  ;;  %v645_v25 = vld [vmem:[%s19871_s2 + $0x438] sm:$0xff] }
 0x104   : > { %v9508_v40 = vpack.c.bf16 %v1310_v31, %v1286_v30  ;;  %v1550_v30 = vld [vmem:[%s19871_s2 + $0x2080] sm:$0xff]  ;;  %v1528_v31 = vld [vmem:[%s19871_s2 + $0x1fd0] sm:$0xff] }
 0x105   : > { %9489 = vmatpush1.bf16.msra.mxu0 %v9488_v42  ;;  %v9510_v42 = vpack.c.bf16 %v1359_v36, %v1335_v35  ;;  %v1599_v35 = vld [vmem:[%s19871_s2 + $0x2208] sm:$0xff]  ;;  %v1577_v36 = vld [vmem:[%s19871_s2 + $0x2158] sm:$0xff] }
 0x106   : > { %9585 = vmatpush1.bf16.msra.mxu1 %v9584_v43  ;;  %9491 = vmatprep.subr.bf16.mxu0 %v9490_v44  ;;  %v1334_v43 = vld [vmem:[%s19871_s2 + $0x19c0] sm:$0xff] }
 0x107   : > { %9587 = vmatprep.subr.bf16.mxu1 %v9586_v48  ;;  %v1358_v44 = vld [vmem:[%s19871_s2 + $0x1a80] sm:$0xff]  ;;  %v1383_v48 = vld [vmem:[%s19871_s2 + $0x1b48] sm:$0xff] }
 0x108   : > { %v9512_v52 = vpack.c.bf16 %v1358_v44, %v1334_v43  ;;  %v1598_v43 = vld [vmem:[%s19871_s2 + $0x2200] sm:$0xff]  ;;  %v1576_v44 = vld [vmem:[%s19871_s2 + $0x2150] sm:$0xff] }
 0x109   : > { %9493 = vmatpush1.bf16.msra.mxu0 %v9492_v54  ;;  %v9608_v54 = vpack.c.bf16 %v1360_v47, %v1336_v45  ;;  %v9626_v45 = vpack.c.bf16 %v1601_v37, %v1577_v36  ;;  %v1623_v47 = vld [vmem:[%s19871_s2 + $0x22c8] sm:$0xff]  ;;  %v669_v36 = vld [vmem:[%s19871_s2 + $0x4f8] sm:$0xff] }
 0x10a   : > { %9589 = vmatpush1.bf16.msra.mxu1 %v9588_v55  ;;  %9495 = vmatprep.subr.bf16.mxu0 %v9494_v57  ;;  %v9514_v55 = vpack.c.bf16 %v1407_v49, %v1383_v48  ;;  %v1382_v57 = vld [vmem:[%s19871_s2 + $0x1b40] sm:$0xff]  ;;  %v1647_v48 = vld [vmem:[%s19871_s2 + $0x2388] sm:$0xff]  ;;  %v1625_v49 = vld [vmem:[%s19871_s2 + $0x22d8] sm:$0xff] }
 0x10b   : > { %9591 = vmatprep.subr.bf16.mxu1 %v9590_v61  ;;  %v1408_v61 = vld [vmem:[%s19871_s2 + $0x1c10] sm:$0xff]  ;;  %v9516_v2 = vpack.c.bf16 %v1406_v58, %v1382_v57  ;;  %v1646_v57 = vld [vmem:[%s19871_s2 + $0x2380] sm:$0xff]  ;;  %v693_v37 = vld [vmem:[%s19871_s2 + $0x5b8] sm:$0xff] }
 0x10c   : > { %v1624_v58 = vld [vmem:[%s19871_s2 + $0x22d0] sm:$0xff] }
 0x10d   : > { %9497 = vmatpush1.bf16.msra.mxu0 %v9496_v3  ;;  %v9612_v3 = vpack.c.bf16 %v1408_v61, %v1384_v59  ;;  %v9630_v59 = vpack.c.bf16 %v1649_v51, %v1625_v49  ;;  %v523_v61 = vld [vmem:[%s19871_s2 + $0x68] sm:$0xff]  ;;  %v741_v49 = vld [vmem:[%s19871_s2 + $0x738] sm:$0xff] }
 0x10e   : > { %9593 = vmatpush1.bf16.msra.mxu1 %v9592_v4  ;;  %9499 = vmatprep.subr.bf16.mxu0 %v9498_v5  ;;  %v9518_v4 = vpack.c.bf16 %v1455_v63, %v1431_v62  ;;  %v1430_v5 = vld [vmem:[%s19871_s2 + $0x1cc0] sm:$0xff]  ;;  %v547_v62 = vld [vmem:[%s19871_s2 + $0x128] sm:$0xff]  ;;  %v525_v63 = vld [vmem:[%s19871_s2 + $0x78] sm:$0xff] }
 0x10f   : > { %9595 = vmatprep.subr.bf16.mxu1 %v9594_v9  ;;  %v1456_v9 = vld [vmem:[%s19871_s2 + $0x1d90] sm:$0xff]  ;;  %v9520_v14 = vpack.c.bf16 %v1454_v6, %v1430_v5  ;;  %v546_v5 = vld [vmem:[%s19871_s2 + $0x120] sm:$0xff] }
 0x110   : > { %v524_v6 = vld [vmem:[%s19871_s2 + $0x70] sm:$0xff] }
 0x111   : > { %9501 = vmatpush1.bf16.msra.mxu0 %v9500_v17  ;;  %v9616_v17 = vpack.c.bf16 %v1456_v9, %v1432_v7  ;;  %v9730_v7 = vpack.c.bf16 %v549_v0, %v525_v63  ;;  %v571_v9 = vld [vmem:[%s19871_s2 + $0x1e8] sm:$0xff]  ;;  %v789_v63 = vld [vmem:[%s19871_s2 + $0x8b8] sm:$0xff] }
 0x112   : > { %9597 = vmatpush1.bf16.msra.mxu1 %v9596_v18  ;;  %9503 = vmatprep.subr.bf16.mxu0 %v9502_v19  ;;  %v9522_v18 = vpack.c.bf16 %v1503_v11, %v1479_v10  ;;  %v1478_v19 = vld [vmem:[%s19871_s2 + $0x1e40] sm:$0xff]  ;;  %v595_v10 = vld [vmem:[%s19871_s2 + $0x2a8] sm:$0xff]  ;;  %v573_v11 = vld [vmem:[%s19871_s2 + $0x1f8] sm:$0xff] }
 0x113   : > { %9599 = vmatprep.subr.bf16.mxu1 %v9598_v16  ;;  %v1504_v16 = vld [vmem:[%s19871_s2 + $0x1f10] sm:$0xff]  ;;  %v9524_v26 = vpack.c.bf16 %v1502_v15, %v1478_v19  ;;  %v594_v19 = vld [vmem:[%s19871_s2 + $0x2a0] sm:$0xff] }
 0x114   : > { %v572_v15 = vld [vmem:[%s19871_s2 + $0x1f0] sm:$0xff] }
 0x115   : > { %9505 = vmatpush1.bf16.msra.mxu0 %v9504_v27  ;;  %v9620_v27 = vpack.c.bf16 %v1504_v16, %v1480_v20  ;;  %v9734_v20 = vpack.c.bf16 %v597_v12, %v573_v11  ;;  %v619_v16 = vld [vmem:[%s19871_s2 + $0x368] sm:$0xff]  ;;  %v837_v11 = vld [vmem:[%s19871_s2 + $0xa38] sm:$0xff] }
 0x116   : > { %9601 = vmatpush1.bf16.msra.mxu1 %v9600_v28  ;;  %9507 = vmatprep.subr.bf16.mxu0 %v9506_v29  ;;  %v9526_v28 = vpack.c.bf16 %v1551_v23, %v1527_v22  ;;  %v1526_v29 = vld [vmem:[%s19871_s2 + $0x1fc0] sm:$0xff]  ;;  %v643_v22 = vld [vmem:[%s19871_s2 + $0x428] sm:$0xff]  ;;  %v13748_v23 = vld [vmem:[%s12202_s23 + $0x10] sm:$0xff] }
 0x117   : > { %9603 = vmatprep.subr.bf16.mxu1 %v9602_v33  ;;  %v1552_v33 = vld [vmem:[%s19871_s2 + $0x2090] sm:$0xff]  ;;  %v9528_v38 = vpack.c.bf16 %v1550_v30, %v1526_v29  ;;  %v618_v29 = vld [vmem:[%s19871_s2 + $0x360] sm:$0xff] }
 0x118   : > { %2421 = vmatmul.mubr.f32.vlgmr.msra.gmra.mrb[4].mxu0 %v13549_v50  ;;  %v642_v30 = vld [vmem:[%s19871_s2 + $0x420] sm:$0xff] }
 0x119   : > { %9509 = vmatpush1.bf16.msra.mxu0 %v9508_v40  ;;  %2563 = vmatmul.mubr.f32.vlgmr.msra.gmra.mrb[4].mxu1 %v13549_v50  ;;  %v9624_v40 = vpack.c.bf16 %v1552_v33, %v1528_v31  ;;  %v620_v31 = vld [vmem:[%s19871_s2 + $0x370] sm:$0xff] }
 0x11a   : > { %9605 = vmatpush1.bf16.msra.mxu1 %v9604_v41  ;;  %9511 = vmatprep.subr.bf16.mxu0 %v9510_v42  ;;  %v9530_v41 = vpack.c.bf16 %v1599_v35, %v1575_v34  ;;  %v1574_v42 = vld [vmem:[%s19871_s2 + $0x2140] sm:$0xff]  ;;  %v644_v33 = vld [vmem:[%s19871_s2 + $0x430] sm:$0xff]  ;;  %v667_v34 = vld [vmem:[%s19871_s2 + $0x4e8] sm:$0xff] }
 0x11b   : > { %9607 = vmatprep.subr.bf16.mxu1 %v9606_v46  ;;  %2633 = vmatprep.mubr.f32.mxu1 %v11783_v39  ;;  %v1600_v46 = vld [vmem:[%s19871_s2 + $0x2210] sm:$0xff]  ;;  %v9532_v53 = vpack.c.bf16 %v1598_v43, %v1574_v42  ;;  %v691_v35 = vld [vmem:[%s19871_s2 + $0x5a8] sm:$0xff]  ;;  %v666_v42 = vld [vmem:[%s19871_s2 + $0x4e0] sm:$0xff] }
 0x11c   : > { %2491 = vmatprep.mubr.f32.mxu0 %v11783_v39  ;;  %v690_v43 = vld [vmem:[%s19871_s2 + $0x5a0] sm:$0xff] }
 0x11d   : > { %9513 = vmatpush1.bf16.msra.mxu0 %v9512_v52  ;;  %v9628_v52 = vpack.c.bf16 %v1600_v46, %v1576_v44  ;;  %v668_v44 = vld [vmem:[%s19871_s2 + $0x4f0] sm:$0xff]  ;;  %v715_v46 = vld [vmem:[%s19871_s2 + $0x668] sm:$0xff]  ;;  %v9648_v51 = vpack.c.bf16 %v690_v43, %v666_v42 }
 0x11e   : > { %9609 = vmatpush1.bf16.msra.mxu1 %v9608_v54  ;;  %9515 = vmatprep.subr.bf16.mxu0 %v9514_v55  ;;  %v9534_v54 = vpack.c.bf16 %v1647_v48, %v1623_v47  ;;  %v1622_v55 = vld [vmem:[%s19871_s2 + $0x22c0] sm:$0xff]  ;;  %v739_v47 = vld [vmem:[%s19871_s2 + $0x728] sm:$0xff]  ;;  %v717_v48 = vld [vmem:[%s19871_s2 + $0x678] sm:$0xff] }
 0x11f   : > { %9611 = vmatprep.subr.bf16.mxu1 %v9610_v60  ;;  %v1648_v60 = vld [vmem:[%s19871_s2 + $0x2390] sm:$0xff]  ;;  %v9536_v1 = vpack.c.bf16 %v1646_v57, %v1622_v55  ;;  %v738_v55 = vld [vmem:[%s19871_s2 + $0x720] sm:$0xff] }
 0x120   : > { %v716_v57 = vld [vmem:[%s19871_s2 + $0x670] sm:$0xff] }
 0x121   : > { %9517 = vmatpush1.bf16.msra.mxu0 %v9516_v2  ;;  %v9632_v2 = vpack.c.bf16 %v1648_v60, %v1624_v58  ;;  %v9746_v58 = vpack.c.bf16 %v741_v49, %v717_v48  ;;  %v763_v60 = vld [vmem:[%s19871_s2 + $0x7e8] sm:$0xff]  ;;  %v932_v48 = vld [vmem:[%s19871_s2 + $0xd30] sm:$0xff] }
 0x122   : > { %9613 = vmatpush1.bf16.msra.mxu1 %v9612_v3  ;;  %9519 = vmatprep.subr.bf16.mxu0 %v9518_v4  ;;  %v9634_v3 = vpack.c.bf16 %v547_v62, %v523_v61  ;;  %v522_v4 = vld [vmem:[%s19871_s2 + $0x60] sm:$0xff]  ;;  %v787_v61 = vld [vmem:[%s19871_s2 + $0x8a8] sm:$0xff]  ;;  %v765_v62 = vld [vmem:[%s19871_s2 + $0x7f8] sm:$0xff] }
 0x123   : > { %9615 = vmatprep.subr.bf16.mxu1 %v9614_v8  ;;  %v548_v8 = vld [vmem:[%s19871_s2 + $0x130] sm:$0xff]  ;;  %v9636_v13 = vpack.c.bf16 %v546_v5, %v522_v4  ;;  %v786_v4 = vld [vmem:[%s19871_s2 + $0x8a0] sm:$0xff]  ;;  %v955_v49 = vld [vmem:[%s19871_s2 + $0xde8] sm:$0xff] }
 0x124   : > { %v764_v5 = vld [vmem:[%s19871_s2 + $0x7f0] sm:$0xff] }
 0x125   : > { %9521 = vmatpush1.bf16.msra.mxu0 %v9520_v14  ;;  %v9732_v14 = vpack.c.bf16 %v548_v8, %v524_v6  ;;  %v9750_v6 = vpack.c.bf16 %v789_v63, %v765_v62  ;;  %v811_v8 = vld [vmem:[%s19871_s2 + $0x968] sm:$0xff]  ;;  %v980_v62 = vld [vmem:[%s19871_s2 + $0xeb0] sm:$0xff] }
 0x126   : > { %9617 = vmatpush1.bf16.msra.mxu1 %v9616_v17  ;;  %9523 = vmatprep.subr.bf16.mxu0 %v9522_v18  ;;  %v9638_v17 = vpack.c.bf16 %v595_v10, %v571_v9  ;;  %v570_v18 = vld [vmem:[%s19871_s2 + $0x1e0] sm:$0xff]  ;;  %v835_v9 = vld [vmem:[%s19871_s2 + $0xa28] sm:$0xff]  ;;  %v813_v10 = vld [vmem:[%s19871_s2 + $0x978] sm:$0xff] }
 0x127   : > { %9619 = vmatprep.subr.bf16.mxu1 %v9618_v21  ;;  %v596_v21 = vld [vmem:[%s19871_s2 + $0x2b0] sm:$0xff]  ;;  %v1003_v63 = vld [vmem:[%s19871_s2 + $0xf68] sm:$0xff] }
 0x129   : > { %9525 = vmatpush1.bf16.msra.mxu0 %v9524_v26  ;;  %v9640_v26 = vpack.c.bf16 %v594_v19, %v570_v18  ;;  %v834_v18 = vld [vmem:[%s19871_s2 + $0xa20] sm:$0xff]  ;;  %v812_v19 = vld [vmem:[%s19871_s2 + $0x970] sm:$0xff] }
 0x12a   : > { %9621 = vmatpush1.bf16.msra.mxu1 %v9620_v27  ;;  %9527 = vmatprep.subr.bf16.mxu0 %v9526_v28  ;;  %v9736_v27 = vpack.c.bf16 %v596_v21, %v572_v15  ;;  %v9642_v28 = vpack.c.bf16 %v643_v22, %v619_v16  ;;  %v9754_v15 = vpack.c.bf16 %v837_v11, %v813_v10  ;;  %v859_v21 = vld [vmem:[%s19871_s2 + $0xae8] sm:$0xff]  ;;  %v1028_v10 = vld [vmem:[%s19871_s2 + $0x1030] sm:$0xff] }
 0x12b   : > { %9623 = vmatprep.subr.bf16.mxu1 %v9622_v32  ;;  %v9738_v32 = vpack.c.bf16 %v645_v25, %v621_v24  ;;  %v883_v16 = vld [vmem:[%s19871_s2 + $0xba8] sm:$0xff]  ;;  %v861_v25 = vld [vmem:[%s19871_s2 + $0xaf8] sm:$0xff] }
 0x12c   : > { %v1051_v11 = vld [vmem:[%s19871_s2 + $0x10e8] sm:$0xff] }
 0x12d   : > { %9529 = vmatpush1.bf16.msra.mxu0 %v9528_v38  ;;  %v9644_v38 = vpack.c.bf16 %v642_v30, %v618_v29 }
 0x12e   : > { %9625 = vmatpush1.bf16.msra.mxu1 %v9624_v40  ;;  %9531 = vmatprep.subr.bf16.mxu0 %v9530_v41  ;;  %v9740_v40 = vpack.c.bf16 %v644_v33, %v620_v31  ;;  %v9646_v41 = vpack.c.bf16 %v691_v35, %v667_v34  ;;  %v9662_v31 = vpack.c.bf16 %v883_v16, %v859_v21  ;;  %v882_v33 = vld [vmem:[%s19871_s2 + $0xba0] sm:$0xff]  ;;  %v860_v34 = vld [vmem:[%s19871_s2 + $0xaf0] sm:$0xff] }
 0x12f   : > { %9627 = vmatprep.subr.bf16.mxu1 %v9626_v45  ;;  %v692_v45 = vld [vmem:[%s19871_s2 + $0x5b0] sm:$0xff] }
 0x130   : > { %v1052_v21 = vld [vmem:[%s19871_s2 + $0x10f0] sm:$0xff] }
 0x131   : > { %9533 = vmatpush1.bf16.msra.mxu0 %v9532_v53  ;;  %v9744_v53 = vpack.c.bf16 %v692_v45, %v668_v44  ;;  %v930_v45 = vld [vmem:[%s19871_s2 + $0xd20] sm:$0xff] }
 0x132   : > { %9629 = vmatpush1.bf16.msra.mxu1 %v9628_v52  ;;  %9535 = vmatprep.subr.bf16.mxu0 %v9534_v54  ;;  %v9650_v52 = vpack.c.bf16 %v739_v47, %v715_v46  ;;  %v714_v54 = vld [vmem:[%s19871_s2 + $0x660] sm:$0xff]  ;;  %v908_v46 = vld [vmem:[%s19871_s2 + $0xc70] sm:$0xff] }
 0x133   : > { %9631 = vmatprep.subr.bf16.mxu1 %v9630_v59  ;;  %v740_v59 = vld [vmem:[%s19871_s2 + $0x730] sm:$0xff]  ;;  %v9652_v0 = vpack.c.bf16 %v738_v55, %v714_v54  ;;  %v9764_v55 = vpack.c.bf16 %v932_v48, %v908_v46  ;;  %v1170_v48 = vld [vmem:[%s19871_s2 + $0x14a0] sm:$0xff] }
 0x135   : > { %9537 = vmatpush1.bf16.msra.mxu0 %v9536_v1  ;;  %v9748_v1 = vpack.c.bf16 %v740_v59, %v716_v57  ;;  %v978_v59 = vld [vmem:[%s19871_s2 + $0xea0] sm:$0xff] }
 0x136   : > { %9633 = vmatpush1.bf16.msra.mxu1 %v9632_v2  ;;  %9635 = vmatprep.subr.bf16.mxu0 %v9634_v3  ;;  %v9654_v2 = vpack.c.bf16 %v787_v61, %v763_v60  ;;  %v762_v3 = vld [vmem:[%s19871_s2 + $0x7e0] sm:$0xff]  ;;  %v956_v60 = vld [vmem:[%s19871_s2 + $0xdf0] sm:$0xff] }
 0x137   : > { %9731 = vmatprep.subr.bf16.mxu1 %v9730_v7  ;;  %v788_v7 = vld [vmem:[%s19871_s2 + $0x8b0] sm:$0xff]  ;;  %v9656_v12 = vpack.c.bf16 %v786_v4, %v762_v3  ;;  %v9768_v4 = vpack.c.bf16 %v980_v62, %v956_v60  ;;  %v1218_v62 = vld [vmem:[%s19871_s2 + $0x1620] sm:$0xff] }
 0x138   : > { %2492 = vmatmul.mubr.f32.vlgmr.msra.gmra.mrb[4].mxu0 %v13748_v23 }
 0x139   : > { %2634 = vmatmul.mubr.f32.vlgmr.msra.gmra.mrb[4].mxu1 %v13748_v23  ;;  %9637 = vmatpush1.bf16.msra.mxu0 %v9636_v13  ;;  %v9752_v13 = vpack.c.bf16 %v788_v7, %v764_v5  ;;  %v1026_v7 = vld [vmem:[%s19871_s2 + $0x1020] sm:$0xff] }
 0x13a   : > { %9733 = vmatpush1.bf16.msra.mxu1 %v9732_v14  ;;  %9639 = vmatprep.subr.bf16.mxu0 %v9638_v17  ;;  %v9658_v14 = vpack.c.bf16 %v835_v9, %v811_v8  ;;  %v810_v17 = vld [vmem:[%s19871_s2 + $0x960] sm:$0xff]  ;;  %v1004_v8 = vld [vmem:[%s19871_s2 + $0xf70] sm:$0xff] }
 0x13b   : > { %9735 = vmatprep.subr.bf16.mxu1 %v9734_v20  ;;  %2704 = vmatprep.mubr.f32.mxu0 %v13184_v56  ;;  %v836_v20 = vld [vmem:[%s19871_s2 + $0xa30] sm:$0xff]  ;;  %v9660_v29 = vpack.c.bf16 %v834_v18, %v810_v17  ;;  %v9772_v18 = vpack.c.bf16 %v1028_v10, %v1004_v8  ;;  %v1266_v10 = vld [vmem:[%s19871_s2 + $0x17a0] sm:$0xff] }
 0x13c   : > { %2846 = vmatprep.mubr.f32.mxu1 %v13184_v56  ;;  %v9742_v56 = vpack.c.bf16 %v693_v37, %v669_v36  ;;  %v9756_v30 = vpack.c.bf16 %v836_v20, %v812_v19  ;;  %v884_v36 = vld [vmem:[%s19871_s2 + $0xbb0] sm:$0xff]  ;;  %v907_v37 = vld [vmem:[%s19871_s2 + $0xc68] sm:$0xff]  ;;  %v1074_v20 = vld [vmem:[%s19871_s2 + $0x11a0] sm:$0xff] }
 0x13d   : > { %9641 = vmatpush1.bf16.msra.mxu0 %v9640_v26  ;;  %v885_v26 = vld [vmem:[%s19871_s2 + $0xbb8] sm:$0xff]  ;;  %v9760_v43 = vpack.c.bf16 %v884_v36, %v860_v34  ;;  %v1122_v36 = vld [vmem:[%s19871_s2 + $0x1320] sm:$0xff] }
 0x13e   : > { %9737 = vmatpush1.bf16.msra.mxu1 %v9736_v27  ;;  %9643 = vmatprep.subr.bf16.mxu0 %v9642_v28  ;;  %v9758_v35 = vpack.c.bf16 %v885_v26, %v861_v25  ;;  %v1076_v25 = vld [vmem:[%s19871_s2 + $0x11b0] sm:$0xff]  ;;  %v1099_v26 = vld [vmem:[%s19871_s2 + $0x1268] sm:$0xff] }
 0x13f   : > { %9739 = vmatprep.subr.bf16.mxu1 %v9738_v32  ;;  %v858_v32 = vld [vmem:[%s19871_s2 + $0xae0] sm:$0xff] }
 0x140   : > { %v9664_v42 = vpack.c.bf16 %v882_v33, %v858_v32  ;;  %v9776_v33 = vpack.c.bf16 %v1076_v25, %v1052_v21  ;;  %v1314_v25 = vld [vmem:[%s19871_s2 + $0x1920] sm:$0xff] }
 0x141   : > { %9645 = vmatpush1.bf16.msra.mxu0 %v9644_v38  ;;  %v931_v38 = vld [vmem:[%s19871_s2 + $0xd28] sm:$0xff] }
 0x142   : > { %9741 = vmatpush1.bf16.msra.mxu1 %v9740_v40  ;;  %9647 = vmatprep.subr.bf16.mxu0 %v9646_v41  ;;  %v909_v40 = vld [vmem:[%s19871_s2 + $0xc78] sm:$0xff]  ;;  %v9666_v44 = vpack.c.bf16 %v931_v38, %v907_v37  ;;  %v1100_v37 = vld [vmem:[%s19871_s2 + $0x1270] sm:$0xff] }
 0x143   : > { %9743 = vmatprep.subr.bf16.mxu1 %v9742_v56  ;;  %v933_v41 = vld [vmem:[%s19871_s2 + $0xd38] sm:$0xff]  ;;  %v906_v56 = vld [vmem:[%s19871_s2 + $0xc60] sm:$0xff] }
 0x144   : > { %v9762_v47 = vpack.c.bf16 %v933_v41, %v909_v40  ;;  %v9668_v54 = vpack.c.bf16 %v930_v45, %v906_v56  ;;  %v1124_v40 = vld [vmem:[%s19871_s2 + $0x1330] sm:$0xff]  ;;  %v1147_v41 = vld [vmem:[%s19871_s2 + $0x13e8] sm:$0xff] }
 0x145   : > { %9649 = vmatpush1.bf16.msra.mxu0 %v9648_v51  ;;  %v979_v51 = vld [vmem:[%s19871_s2 + $0xea8] sm:$0xff]  ;;  %v9780_v45 = vpack.c.bf16 %v1124_v40, %v1100_v37  ;;  %v1362_v40 = vld [vmem:[%s19871_s2 + $0x1aa0] sm:$0xff] }
 0x146   : > { %9745 = vmatpush1.bf16.msra.mxu1 %v9744_v53  ;;  %9651 = vmatprep.subr.bf16.mxu0 %v9650_v52  ;;  %v957_v53 = vld [vmem:[%s19871_s2 + $0xdf8] sm:$0xff]  ;;  %v9670_v57 = vpack.c.bf16 %v979_v51, %v955_v49  ;;  %v1148_v49 = vld [vmem:[%s19871_s2 + $0x13f0] sm:$0xff] }
 0x147   : > { %9747 = vmatprep.subr.bf16.mxu1 %v9746_v58  ;;  %v981_v52 = vld [vmem:[%s19871_s2 + $0xeb8] sm:$0xff]  ;;  %v954_v58 = vld [vmem:[%s19871_s2 + $0xde0] sm:$0xff] }
 0x148   : > { %v9766_v61 = vpack.c.bf16 %v981_v52, %v957_v53  ;;  %v9672_v3 = vpack.c.bf16 %v978_v59, %v954_v58  ;;  %v1172_v53 = vld [vmem:[%s19871_s2 + $0x14b0] sm:$0xff]  ;;  %v1195_v52 = vld [vmem:[%s19871_s2 + $0x1568] sm:$0xff] }
 0x149   : > { %9653 = vmatpush1.bf16.msra.mxu0 %v9652_v0  ;;  %v1027_v0 = vld [vmem:[%s19871_s2 + $0x1028] sm:$0xff]  ;;  %v9784_v59 = vpack.c.bf16 %v1172_v53, %v1148_v49  ;;  %v1410_v53 = vld [vmem:[%s19871_s2 + $0x1c20] sm:$0xff] }
 0x14a   : > { %9749 = vmatpush1.bf16.msra.mxu1 %v9748_v1  ;;  %9655 = vmatprep.subr.bf16.mxu0 %v9654_v2  ;;  %v1005_v1 = vld [vmem:[%s19871_s2 + $0xf78] sm:$0xff]  ;;  %v9674_v5 = vpack.c.bf16 %v1027_v0, %v1003_v63  ;;  %v1196_v63 = vld [vmem:[%s19871_s2 + $0x1570] sm:$0xff] }
 0x14b   : > { %9751 = vmatprep.subr.bf16.mxu1 %v9750_v6  ;;  %v13874_v22 = vpop.f32.mrb[0].mxu0  ;;  %v1029_v2 = vld [vmem:[%s19871_s2 + $0x1038] sm:$0xff]  ;;  %v1002_v6 = vld [vmem:[%s19871_s2 + $0xf60] sm:$0xff] }
 0x14c   : > { %v13876_v24 = vpop.f32.mrb[0].mxu1  ;;  %v13884_v27 = vpop.f32.mrb[1].mxu0  ;;  %v9770_v9 = vpack.c.bf16 %v1029_v2, %v1005_v1  ;;  %v9676_v17 = vpack.c.bf16 %v1026_v7, %v1002_v6  ;;  %v1220_v1 = vld [vmem:[%s19871_s2 + $0x1630] sm:$0xff]  ;;  %v1243_v2 = vld [vmem:[%s19871_s2 + $0x16e8] sm:$0xff] }
 0x14d   : > { %v13886_v28 = vpop.f32.mrb[1].mxu1  ;;  %9657 = vmatpush1.bf16.msra.mxu0 %v9656_v12  ;;  %v1075_v12 = vld [vmem:[%s19871_s2 + $0x11a8] sm:$0xff]  ;;  %v9788_v7 = vpack.c.bf16 %v1220_v1, %v1196_v63  ;;  %v1434_v63 = vld [vmem:[%s19871_s2 + $0x1ce0] sm:$0xff]  ;;  %v1436_v1 = vld [vmem:[%s19871_s2 + $0x1cf0] sm:$0xff] }
 0x14e   : > { %9753 = vmatpush1.bf16.msra.mxu1 %v9752_v13  ;;  %9659 = vmatprep.subr.bf16.mxu0 %v9658_v14  ;;  %v1053_v13 = vld [vmem:[%s19871_s2 + $0x10f8] sm:$0xff]  ;;  %v9678_v19 = vpack.c.bf16 %v1075_v12, %v1051_v11  ;;  %v1244_v11 = vld [vmem:[%s19871_s2 + $0x16f0] sm:$0xff] }
 0x14f   : > { %9755 = vmatprep.subr.bf16.mxu1 %v9754_v15  ;;  %v1077_v14 = vld [vmem:[%s19871_s2 + $0x11b8] sm:$0xff]  ;;  %v1050_v15 = vld [vmem:[%s19871_s2 + $0x10e0] sm:$0xff] }
 0x150   : > { %v9774_v16 = vpack.c.bf16 %v1077_v14, %v1053_v13  ;;  %v9680_v32 = vpack.c.bf16 %v1074_v20, %v1050_v15  ;;  %v1268_v13 = vld [vmem:[%s19871_s2 + $0x17b0] sm:$0xff]  ;;  %v1291_v14 = vld [vmem:[%s19871_s2 + $0x1868] sm:$0xff] }
 0x151   : > { %9661 = vmatpush1.bf16.msra.mxu0 %v9660_v29  ;;  %v1123_v29 = vld [vmem:[%s19871_s2 + $0x1328] sm:$0xff]  ;;  %v9792_v20 = vpack.c.bf16 %v1268_v13, %v1244_v11  ;;  %v1482_v11 = vld [vmem:[%s19871_s2 + $0x1e60] sm:$0xff]  ;;  %v1484_v13 = vld [vmem:[%s19871_s2 + $0x1e70] sm:$0xff] }
 0x152   : > { %9757 = vmatpush1.bf16.msra.mxu1 %v9756_v30  ;;  %9663 = vmatprep.subr.bf16.mxu0 %v9662_v31  ;;  %v1101_v30 = vld [vmem:[%s19871_s2 + $0x1278] sm:$0xff]  ;;  %v9682_v34 = vpack.c.bf16 %v1123_v29, %v1099_v26  ;;  %v1292_v26 = vld [vmem:[%s19871_s2 + $0x1870] sm:$0xff] }
 0x153   : > { %9759 = vmatprep.subr.bf16.mxu1 %v9758_v35  ;;  %v1125_v31 = vld [vmem:[%s19871_s2 + $0x1338] sm:$0xff]  ;;  %v1098_v35 = vld [vmem:[%s19871_s2 + $0x1260] sm:$0xff] }
 0x154   : > { %v9778_v38 = vpack.c.bf16 %v1125_v31, %v1101_v30  ;;  %v9684_v56 = vpack.c.bf16 %v1122_v36, %v1098_v35  ;;  %v1316_v30 = vld [vmem:[%s19871_s2 + $0x1930] sm:$0xff]  ;;  %v1339_v31 = vld [vmem:[%s19871_s2 + $0x19e8] sm:$0xff] }
 0x155   : > { %9665 = vmatpush1.bf16.msra.mxu0 %v9664_v42  ;;  %v1171_v42 = vld [vmem:[%s19871_s2 + $0x14a8] sm:$0xff]  ;;  %v9796_v36 = vpack.c.bf16 %v1316_v30, %v1292_v26  ;;  %v1530_v26 = vld [vmem:[%s19871_s2 + $0x1fe0] sm:$0xff]  ;;  %v1532_v30 = vld [vmem:[%s19871_s2 + $0x1ff0] sm:$0xff] }
 0x156   : > { %9761 = vmatpush1.bf16.msra.mxu1 %v9760_v43  ;;  %9667 = vmatprep.subr.bf16.mxu0 %v9666_v44  ;;  %v1149_v43 = vld [vmem:[%s19871_s2 + $0x13f8] sm:$0xff]  ;;  %v9686_v46 = vpack.c.bf16 %v1171_v42, %v1147_v41  ;;  %v1340_v41 = vld [vmem:[%s19871_s2 + $0x19f0] sm:$0xff] }
 0x157   : > { %9763 = vmatprep.subr.bf16.mxu1 %v9762_v47  ;;  %v1173_v44 = vld [vmem:[%s19871_s2 + $0x14b8] sm:$0xff]  ;;  %v1146_v47 = vld [vmem:[%s19871_s2 + $0x13e0] sm:$0xff] }
 0x158   : > { %v9782_v51 = vpack.c.bf16 %v1173_v44, %v1149_v43  ;;  %v9688_v58 = vpack.c.bf16 %v1170_v48, %v1146_v47  ;;  %v1364_v43 = vld [vmem:[%s19871_s2 + $0x1ab0] sm:$0xff]  ;;  %v1387_v44 = vld [vmem:[%s19871_s2 + $0x1b68] sm:$0xff] }
 0x159   : > { %9669 = vmatpush1.bf16.msra.mxu0 %v9668_v54  ;;  %v1219_v54 = vld [vmem:[%s19871_s2 + $0x1628] sm:$0xff]  ;;  %v9800_v48 = vpack.c.bf16 %v1364_v43, %v1340_v41  ;;  %v1578_v41 = vld [vmem:[%s19871_s2 + $0x2160] sm:$0xff]  ;;  %v1580_v43 = vld [vmem:[%s19871_s2 + $0x2170] sm:$0xff] }
 0x15a   : > { %9765 = vmatpush1.bf16.msra.mxu1 %v9764_v55  ;;  %9671 = vmatprep.subr.bf16.mxu0 %v9670_v57  ;;  %v1197_v55 = vld [vmem:[%s19871_s2 + $0x1578] sm:$0xff]  ;;  %v9690_v60 = vpack.c.bf16 %v1219_v54, %v1195_v52  ;;  %v1388_v52 = vld [vmem:[%s19871_s2 + $0x1b70] sm:$0xff] }
 0x15b   : > { %9767 = vmatprep.subr.bf16.mxu1 %v9766_v61  ;;  %v1221_v57 = vld [vmem:[%s19871_s2 + $0x1638] sm:$0xff]  ;;  %v1194_v61 = vld [vmem:[%s19871_s2 + $0x1560] sm:$0xff] }
 0x15c   : > { %v9786_v0 = vpack.c.bf16 %v1221_v57, %v1197_v55  ;;  %v9692_v6 = vpack.c.bf16 %v1218_v62, %v1194_v61  ;;  %v1435_v55 = vld [vmem:[%s19871_s2 + $0x1ce8] sm:$0xff] }
 0x15d   : > { %9673 = vmatpush1.bf16.msra.mxu0 %v9672_v3  ;;  %v1267_v3 = vld [vmem:[%s19871_s2 + $0x17a8] sm:$0xff] }
 0x15e   : > { %9769 = vmatpush1.bf16.msra.mxu1 %v9768_v4  ;;  %9675 = vmatprep.subr.bf16.mxu0 %v9674_v5  ;;  %v1245_v4 = vld [vmem:[%s19871_s2 + $0x16f8] sm:$0xff]  ;;  %v9694_v8 = vpack.c.bf16 %v1267_v3, %v1243_v2  ;;  %v1459_v57 = vld [vmem:[%s19871_s2 + $0x1da8] sm:$0xff]  ;;  %v1460_v3 = vld [vmem:[%s19871_s2 + $0x1db0] sm:$0xff] }
 0x15f   : > { %9771 = vmatprep.subr.bf16.mxu1 %v9770_v9  ;;  %v1269_v5 = vld [vmem:[%s19871_s2 + $0x17b8] sm:$0xff]  ;;  %v1242_v9 = vld [vmem:[%s19871_s2 + $0x16e0] sm:$0xff]  ;;  %v9710_v62 = vpack.c.bf16 %v1459_v57, %v1435_v55  ;;  %v1652_v57 = vld [vmem:[%s19871_s2 + $0x23b0] sm:$0xff] }
 0x160   : > { %v9790_v12 = vpack.c.bf16 %v1269_v5, %v1245_v4  ;;  %v9696_v15 = vpack.c.bf16 %v1266_v10, %v1242_v9  ;;  %v1483_v4 = vld [vmem:[%s19871_s2 + $0x1e68] sm:$0xff]  ;;  %v9808_v9 = vpack.c.bf16 %v1460_v3, %v1436_v1  ;;  %v526_v1 = vld [vmem:[%s19871_s2 + $0x80] sm:$0xff]  ;;  %v528_v3 = vld [vmem:[%s19871_s2 + $0x90] sm:$0xff] }
 0x161   : > { %9677 = vmatpush1.bf16.msra.mxu0 %v9676_v17  ;;  %v1315_v17 = vld [vmem:[%s19871_s2 + $0x1928] sm:$0xff] }
 0x162   : > { %9773 = vmatpush1.bf16.msra.mxu1 %v9772_v18  ;;  %9679 = vmatprep.subr.bf16.mxu0 %v9678_v19  ;;  %v1293_v18 = vld [vmem:[%s19871_s2 + $0x1878] sm:$0xff]  ;;  %v9698_v21 = vpack.c.bf16 %v1315_v17, %v1291_v14  ;;  %v1507_v5 = vld [vmem:[%s19871_s2 + $0x1f28] sm:$0xff]  ;;  %v1508_v17 = vld [vmem:[%s19871_s2 + $0x1f30] sm:$0xff] }
 0x163   : > { %9775 = vmatprep.subr.bf16.mxu1 %v9774_v16  ;;  %v1317_v19 = vld [vmem:[%s19871_s2 + $0x1938] sm:$0xff]  ;;  %v1290_v16 = vld [vmem:[%s19871_s2 + $0x1860] sm:$0xff]  ;;  %v9714_v10 = vpack.c.bf16 %v1507_v5, %v1483_v4  ;;  %v552_v5 = vld [vmem:[%s19871_s2 + $0x150] sm:$0xff] }
 0x164   : > { %v9794_v29 = vpack.c.bf16 %v1317_v19, %v1293_v18  ;;  %v9700_v35 = vpack.c.bf16 %v1314_v25, %v1290_v16  ;;  %v1531_v18 = vld [vmem:[%s19871_s2 + $0x1fe8] sm:$0xff]  ;;  %v9812_v16 = vpack.c.bf16 %v1508_v17, %v1484_v13  ;;  %v574_v13 = vld [vmem:[%s19871_s2 + $0x200] sm:$0xff]  ;;  %v576_v17 = vld [vmem:[%s19871_s2 + $0x210] sm:$0xff] }
 0x165   : > { %9681 = vmatpush1.bf16.msra.mxu0 %v9680_v32  ;;  %v1363_v32 = vld [vmem:[%s19871_s2 + $0x1aa8] sm:$0xff] }
 0x166   : > { %9777 = vmatpush1.bf16.msra.mxu1 %v9776_v33  ;;  %9683 = vmatprep.subr.bf16.mxu0 %v9682_v34  ;;  %v1341_v33 = vld [vmem:[%s19871_s2 + $0x19f8] sm:$0xff]  ;;  %v9702_v37 = vpack.c.bf16 %v1363_v32, %v1339_v31  ;;  %v1555_v19 = vld [vmem:[%s19871_s2 + $0x20a8] sm:$0xff]  ;;  %v1556_v32 = vld [vmem:[%s19871_s2 + $0x20b0] sm:$0xff] }
 0x167   : > { %9779 = vmatprep.subr.bf16.mxu1 %v9778_v38  ;;  %v1365_v34 = vld [vmem:[%s19871_s2 + $0x1ab8] sm:$0xff]  ;;  %v1338_v38 = vld [vmem:[%s19871_s2 + $0x19e0] sm:$0xff]  ;;  %v9718_v25 = vpack.c.bf16 %v1555_v19, %v1531_v18  ;;  %v600_v19 = vld [vmem:[%s19871_s2 + $0x2d0] sm:$0xff] }
 0x168   : > { %v9798_v42 = vpack.c.bf16 %v1365_v34, %v1341_v33  ;;  %v9704_v47 = vpack.c.bf16 %v1362_v40, %v1338_v38  ;;  %v1579_v33 = vld [vmem:[%s19871_s2 + $0x2168] sm:$0xff]  ;;  %v9816_v38 = vpack.c.bf16 %v1556_v32, %v1532_v30  ;;  %v622_v30 = vld [vmem:[%s19871_s2 + $0x380] sm:$0xff]  ;;  %v624_v32 = vld [vmem:[%s19871_s2 + $0x390] sm:$0xff] }
 0x169   : > { %9685 = vmatpush1.bf16.msra.mxu0 %v9684_v56  ;;  %v1411_v56 = vld [vmem:[%s19871_s2 + $0x1c28] sm:$0xff] }
 0x16a   : > { %9781 = vmatpush1.bf16.msra.mxu1 %v9780_v45  ;;  %9687 = vmatprep.subr.bf16.mxu0 %v9686_v46  ;;  %v1389_v45 = vld [vmem:[%s19871_s2 + $0x1b78] sm:$0xff]  ;;  %v9706_v49 = vpack.c.bf16 %v1411_v56, %v1387_v44  ;;  %v1603_v34 = vld [vmem:[%s19871_s2 + $0x2228] sm:$0xff]  ;;  %v1604_v56 = vld [vmem:[%s19871_s2 + $0x2230] sm:$0xff] }
 0x16b   : > { %9783 = vmatprep.subr.bf16.mxu1 %v9782_v51  ;;  %v1413_v46 = vld [vmem:[%s19871_s2 + $0x1c38] sm:$0xff]  ;;  %v1386_v51 = vld [vmem:[%s19871_s2 + $0x1b60] sm:$0xff]  ;;  %v9722_v40 = vpack.c.bf16 %v1603_v34, %v1579_v33  ;;  %v648_v33 = vld [vmem:[%s19871_s2 + $0x450] sm:$0xff] }
 0x16c   : > { %v9802_v54 = vpack.c.bf16 %v1413_v46, %v1389_v45  ;;  %v1627_v45 = vld [vmem:[%s19871_s2 + $0x22e8] sm:$0xff] }
 0x16d   : > { %9689 = vmatpush1.bf16.msra.mxu0 %v9688_v58  ;;  %v1437_v58 = vld [vmem:[%s19871_s2 + $0x1cf8] sm:$0xff]  ;;  %v1651_v46 = vld [vmem:[%s19871_s2 + $0x23a8] sm:$0xff] }
 0x16e   : > { %9785 = vmatpush1.bf16.msra.mxu1 %v9784_v59  ;;  %9691 = vmatprep.subr.bf16.mxu0 %v9690_v60  ;;  %v1461_v59 = vld [vmem:[%s19871_s2 + $0x1db8] sm:$0xff]  ;;  %v9708_v60 = vpack.c.bf16 %v1410_v53, %v1386_v51  ;;  %v9820_v51 = vpack.c.bf16 %v1604_v56, %v1580_v43  ;;  %v9726_v53 = vpack.c.bf16 %v1651_v46, %v1627_v45  ;;  %v671_v34 = vld [vmem:[%s19871_s2 + $0x508] sm:$0xff]  ;;  %v670_v43 = vld [vmem:[%s19871_s2 + $0x500] sm:$0xff] }
 0x16f   : > { %9787 = vmatprep.subr.bf16.mxu1 %v9786_v0  ;;  %v1458_v0 = vld [vmem:[%s19871_s2 + $0x1da0] sm:$0xff]  ;;  %v9806_v2 = vpack.c.bf16 %v1461_v59, %v1437_v58  ;;  %v527_v58 = vld [vmem:[%s19871_s2 + $0x88] sm:$0xff]  ;;  %v672_v56 = vld [vmem:[%s19871_s2 + $0x510] sm:$0xff] }
 0x170   : > { %v551_v59 = vld [vmem:[%s19871_s2 + $0x148] sm:$0xff]  ;;  %v696_v46 = vld [vmem:[%s19871_s2 + $0x5d0] sm:$0xff] }
 0x171   : > { %9693 = vmatpush1.bf16.msra.mxu0 %v9692_v6  ;;  %v1485_v6 = vld [vmem:[%s19871_s2 + $0x1e78] sm:$0xff] }
 0x172   : > { %9789 = vmatpush1.bf16.msra.mxu1 %v9788_v7  ;;  %9695 = vmatprep.subr.bf16.mxu0 %v9694_v8  ;;  %v1509_v7 = vld [vmem:[%s19871_s2 + $0x1f38] sm:$0xff]  ;;  %v9712_v8 = vpack.c.bf16 %v1458_v0, %v1434_v63  ;;  %v9826_v0 = vpack.c.bf16 %v551_v59, %v527_v58  ;;  %v744_v59 = vld [vmem:[%s19871_s2 + $0x750] sm:$0xff] }
 0x173   : > { %9791 = vmatprep.subr.bf16.mxu1 %v9790_v12  ;;  %v1506_v12 = vld [vmem:[%s19871_s2 + $0x1f20] sm:$0xff]  ;;  %v9810_v14 = vpack.c.bf16 %v1509_v7, %v1485_v6  ;;  %v575_v6 = vld [vmem:[%s19871_s2 + $0x208] sm:$0xff] }
 0x174   : > { %v599_v7 = vld [vmem:[%s19871_s2 + $0x2c8] sm:$0xff] }
 0x175   : > { %9697 = vmatpush1.bf16.msra.mxu0 %v9696_v15  ;;  %v1533_v15 = vld [vmem:[%s19871_s2 + $0x1ff8] sm:$0xff] }
 0x176   : > { %9793 = vmatpush1.bf16.msra.mxu1 %v9792_v20  ;;  %9699 = vmatprep.subr.bf16.mxu0 %v9698_v21  ;;  %v1557_v20 = vld [vmem:[%s19871_s2 + $0x20b8] sm:$0xff]  ;;  %v9716_v21 = vpack.c.bf16 %v1506_v12, %v1482_v11  ;;  %v9924_v11 = vpack.c.bf16 %v552_v5, %v528_v3  ;;  %v9830_v12 = vpack.c.bf16 %v599_v7, %v575_v6  ;;  %v766_v3 = vld [vmem:[%s19871_s2 + $0x800] sm:$0xff]  ;;  %v768_v5 = vld [vmem:[%s19871_s2 + $0x810] sm:$0xff] }
 0x177   : > { %9795 = vmatprep.subr.bf16.mxu1 %v9794_v29  ;;  %v1554_v29 = vld [vmem:[%s19871_s2 + $0x20a0] sm:$0xff]  ;;  %v9814_v31 = vpack.c.bf16 %v1557_v20, %v1533_v15  ;;  %v623_v15 = vld [vmem:[%s19871_s2 + $0x388] sm:$0xff]  ;;  %v792_v7 = vld [vmem:[%s19871_s2 + $0x8d0] sm:$0xff] }
 0x178   : > { %2705 = vmatmul.mubr.f32.vlgmr.msra.gmra.mrb[6].mxu0 %v13549_v50  ;;  %v647_v20 = vld [vmem:[%s19871_s2 + $0x448] sm:$0xff] }
 0x179   : > { %9701 = vmatpush1.bf16.msra.mxu0 %v9700_v35  ;;  %2847 = vmatmul.mubr.f32.vlgmr.msra.gmra.mrb[6].mxu1 %v13549_v50  ;;  %v1412_v50 = vld [vmem:[%s19871_s2 + $0x1c30] sm:$0xff]  ;;  %v1581_v35 = vld [vmem:[%s19871_s2 + $0x2178] sm:$0xff] }
 0x17a   : > { %9797 = vmatpush1.bf16.msra.mxu1 %v9796_v36  ;;  %9703 = vmatprep.subr.bf16.mxu0 %v9702_v37  ;;  %v9804_v61 = vpack.c.bf16 %v1412_v50, %v1388_v52  ;;  %v1605_v36 = vld [vmem:[%s19871_s2 + $0x2238] sm:$0xff]  ;;  %v9720_v37 = vpack.c.bf16 %v1554_v29, %v1530_v26  ;;  %v1626_v52 = vld [vmem:[%s19871_s2 + $0x22e0] sm:$0xff]  ;;  %v1628_v50 = vld [vmem:[%s19871_s2 + $0x22f0] sm:$0xff]  ;;  %v9928_v26 = vpack.c.bf16 %v600_v19, %v576_v17 }
 0x17b   : > { %9799 = vmatprep.subr.bf16.mxu1 %v9798_v42  ;;  %2775 = vmatprep.mubr.f32.mxu0 %v11783_v39  ;;  %v1602_v42 = vld [vmem:[%s19871_s2 + $0x2220] sm:$0xff]  ;;  %v9818_v44 = vpack.c.bf16 %v1605_v36, %v1581_v35  ;;  %v9824_v63 = vpack.c.bf16 %v1652_v57, %v1628_v50  ;;  %v9834_v29 = vpack.c.bf16 %v647_v20, %v623_v15  ;;  %v695_v35 = vld [vmem:[%s19871_s2 + $0x5c8] sm:$0xff]  ;;  %v720_v57 = vld [vmem:[%s19871_s2 + $0x690] sm:$0xff] }
 0x17c   : > { %2917 = vmatprep.mubr.f32.mxu1 %v11783_v39  ;;  %v14369_v36 = vld [vmem:[%s12202_s23 + $0x8] sm:$0xff]  ;;  %v718_v50 = vld [vmem:[%s19871_s2 + $0x680] sm:$0xff]  ;;  %v816_v19 = vld [vmem:[%s19871_s2 + $0x990] sm:$0xff] }
 0x17d   : > { %9705 = vmatpush1.bf16.msra.mxu0 %v9704_v47  ;;  %v1629_v47 = vld [vmem:[%s19871_s2 + $0x22f8] sm:$0xff]  ;;  %v814_v17 = vld [vmem:[%s19871_s2 + $0x980] sm:$0xff]  ;;  %v840_v20 = vld [vmem:[%s19871_s2 + $0xa50] sm:$0xff] }
 0x17e   : > { %9801 = vmatpush1.bf16.msra.mxu1 %v9800_v48  ;;  %9707 = vmatprep.subr.bf16.mxu0 %v9706_v49  ;;  %v1653_v48 = vld [vmem:[%s19871_s2 + $0x23b8] sm:$0xff]  ;;  %v9724_v49 = vpack.c.bf16 %v1602_v42, %v1578_v41  ;;  %v9932_v41 = vpack.c.bf16 %v648_v33, %v624_v32  ;;  %v9838_v42 = vpack.c.bf16 %v695_v35, %v671_v34  ;;  %v862_v35 = vld [vmem:[%s19871_s2 + $0xb00] sm:$0xff] }
 0x17f   : > { %9803 = vmatprep.subr.bf16.mxu1 %v9802_v54  ;;  %v1650_v54 = vld [vmem:[%s19871_s2 + $0x23a0] sm:$0xff]  ;;  %v9822_v55 = vpack.c.bf16 %v1653_v48, %v1629_v47  ;;  %v719_v47 = vld [vmem:[%s19871_s2 + $0x688] sm:$0xff]  ;;  %v9948_v33 = vpack.c.bf16 %v840_v20, %v816_v19  ;;  %v1081_v19 = vld [vmem:[%s19871_s2 + $0x11d8] sm:$0xff] }
 0x180   : > { %v743_v48 = vld [vmem:[%s19871_s2 + $0x748] sm:$0xff] }
 0x181   : > { %9709 = vmatpush1.bf16.msra.mxu0 %v9708_v60  ;;  %v529_v60 = vld [vmem:[%s19871_s2 + $0x98] sm:$0xff] }
 0x182   : > { %9805 = vmatpush1.bf16.msra.mxu1 %v9804_v61  ;;  %9711 = vmatprep.subr.bf16.mxu0 %v9710_v62  ;;  %v553_v61 = vld [vmem:[%s19871_s2 + $0x158] sm:$0xff]  ;;  %v9728_v62 = vpack.c.bf16 %v1650_v54, %v1626_v52  ;;  %v9936_v52 = vpack.c.bf16 %v696_v46, %v672_v56  ;;  %v9842_v54 = vpack.c.bf16 %v743_v48, %v719_v47  ;;  %v910_v48 = vld [vmem:[%s19871_s2 + $0xc80] sm:$0xff] }
 0x183   : > { %9807 = vmatprep.subr.bf16.mxu1 %v9806_v2  ;;  %v550_v2 = vld [vmem:[%s19871_s2 + $0x140] sm:$0xff]  ;;  %v9922_v4 = vpack.c.bf16 %v553_v61, %v529_v60  ;;  %v767_v60 = vld [vmem:[%s19871_s2 + $0x808] sm:$0xff]  ;;  %v937_v56 = vld [vmem:[%s19871_s2 + $0xd58] sm:$0xff] }
 0x184   : > { %v791_v61 = vld [vmem:[%s19871_s2 + $0x8c8] sm:$0xff] }
 0x185   : > { %9713 = vmatpush1.bf16.msra.mxu0 %v9712_v8  ;;  %v577_v8 = vld [vmem:[%s19871_s2 + $0x218] sm:$0xff] }
 0x186   : > { %9809 = vmatpush1.bf16.msra.mxu1 %v9808_v9  ;;  %9715 = vmatprep.subr.bf16.mxu0 %v9714_v10  ;;  %v601_v9 = vld [vmem:[%s19871_s2 + $0x2d8] sm:$0xff]  ;;  %v9828_v10 = vpack.c.bf16 %v550_v2, %v526_v1  ;;  %v9940_v1 = vpack.c.bf16 %v744_v59, %v720_v57  ;;  %v9846_v2 = vpack.c.bf16 %v791_v61, %v767_v60  ;;  %v958_v61 = vld [vmem:[%s19871_s2 + $0xe00] sm:$0xff] }
 0x187   : > { %9811 = vmatprep.subr.bf16.mxu1 %v9810_v14  ;;  %v598_v14 = vld [vmem:[%s19871_s2 + $0x2c0] sm:$0xff]  ;;  %v9926_v18 = vpack.c.bf16 %v601_v9, %v577_v8  ;;  %v815_v8 = vld [vmem:[%s19871_s2 + $0x988] sm:$0xff]  ;;  %v985_v57 = vld [vmem:[%s19871_s2 + $0xed8] sm:$0xff] }
 0x188   : > { %v839_v9 = vld [vmem:[%s19871_s2 + $0xa48] sm:$0xff] }
 0x189   : > { %9717 = vmatpush1.bf16.msra.mxu0 %v9716_v21  ;;  %v625_v21 = vld [vmem:[%s19871_s2 + $0x398] sm:$0xff] }
 0x18a   : > { %9813 = vmatpush1.bf16.msra.mxu1 %v9812_v16  ;;  %9719 = vmatprep.subr.bf16.mxu0 %v9718_v25  ;;  %v649_v16 = vld [vmem:[%s19871_s2 + $0x458] sm:$0xff]  ;;  %v9832_v25 = vpack.c.bf16 %v598_v14, %v574_v13  ;;  %v9944_v13 = vpack.c.bf16 %v792_v7, %v768_v5  ;;  %v9850_v14 = vpack.c.bf16 %v839_v9, %v815_v8  ;;  %v1006_v9 = vld [vmem:[%s19871_s2 + $0xf80] sm:$0xff] }
 0x18b   : > { %9815 = vmatprep.subr.bf16.mxu1 %v9814_v31  ;;  %v646_v31 = vld [vmem:[%s19871_s2 + $0x440] sm:$0xff]  ;;  %v1033_v5 = vld [vmem:[%s19871_s2 + $0x1058] sm:$0xff] }
 0x18d   : > { %9721 = vmatpush1.bf16.msra.mxu0 %v9720_v37  ;;  %v673_v37 = vld [vmem:[%s19871_s2 + $0x518] sm:$0xff] }
 0x18e   : > { %9817 = vmatpush1.bf16.msra.mxu1 %v9816_v38  ;;  %9723 = vmatprep.subr.bf16.mxu0 %v9722_v40  ;;  %v697_v38 = vld [vmem:[%s19871_s2 + $0x5d8] sm:$0xff]  ;;  %v9836_v40 = vpack.c.bf16 %v646_v31, %v622_v30 }
 0x18f   : > { %9819 = vmatprep.subr.bf16.mxu1 %v9818_v44  ;;  %v694_v44 = vld [vmem:[%s19871_s2 + $0x5c0] sm:$0xff]  ;;  %v9934_v45 = vpack.c.bf16 %v697_v38, %v673_v37  ;;  %v889_v30 = vld [vmem:[%s19871_s2 + $0xbd8] sm:$0xff]  ;;  %v864_v38 = vld [vmem:[%s19871_s2 + $0xb10] sm:$0xff] }
 0x190   : > { %v886_v37 = vld [vmem:[%s19871_s2 + $0xbc0] sm:$0xff] }
 0x191   : > { %9725 = vmatpush1.bf16.msra.mxu0 %v9724_v49  ;;  %v721_v49 = vld [vmem:[%s19871_s2 + $0x698] sm:$0xff] }
 0x192   : > { %9821 = vmatpush1.bf16.msra.mxu1 %v9820_v51  ;;  %9727 = vmatprep.subr.bf16.mxu0 %v9726_v53  ;;  %v745_v51 = vld [vmem:[%s19871_s2 + $0x758] sm:$0xff]  ;;  %v9840_v53 = vpack.c.bf16 %v694_v44, %v670_v43  ;;  %v935_v43 = vld [vmem:[%s19871_s2 + $0xd48] sm:$0xff] }
 0x193   : > { %9823 = vmatprep.subr.bf16.mxu1 %v9822_v55  ;;  %v742_v55 = vld [vmem:[%s19871_s2 + $0x740] sm:$0xff]  ;;  %v9938_v58 = vpack.c.bf16 %v745_v51, %v721_v49  ;;  %v913_v44 = vld [vmem:[%s19871_s2 + $0xc98] sm:$0xff]  ;;  %v912_v51 = vld [vmem:[%s19871_s2 + $0xc90] sm:$0xff] }
 0x194   : > { %v934_v49 = vld [vmem:[%s19871_s2 + $0xd40] sm:$0xff] }
 0x195   : > { %9729 = vmatpush1.bf16.msra.mxu0 %v9728_v62  ;;  %v769_v62 = vld [vmem:[%s19871_s2 + $0x818] sm:$0xff] }
 0x196   : > { %9825 = vmatpush1.bf16.msra.mxu1 %v9824_v63  ;;  %9827 = vmatprep.subr.bf16.mxu0 %v9826_v0  ;;  %v793_v63 = vld [vmem:[%s19871_s2 + $0x8d8] sm:$0xff]  ;;  %v9844_v0 = vpack.c.bf16 %v742_v55, %v718_v50  ;;  %v983_v50 = vld [vmem:[%s19871_s2 + $0xec8] sm:$0xff] }
 0x197   : > { %9923 = vmatprep.subr.bf16.mxu1 %v9922_v4  ;;  %v790_v4 = vld [vmem:[%s19871_s2 + $0x8c0] sm:$0xff]  ;;  %v9942_v6 = vpack.c.bf16 %v793_v63, %v769_v62  ;;  %v961_v55 = vld [vmem:[%s19871_s2 + $0xe18] sm:$0xff]  ;;  %v960_v63 = vld [vmem:[%s19871_s2 + $0xe10] sm:$0xff] }
 0x198   : > { %2776 = vmatmul.mubr.f32.vlgmr.msra.gmra.mrb[6].mxu0 %v13748_v23  ;;  %v982_v62 = vld [vmem:[%s19871_s2 + $0xec0] sm:$0xff] }
 0x199   : > { %2918 = vmatmul.mubr.f32.vlgmr.msra.gmra.mrb[6].mxu1 %v13748_v23  ;;  %9829 = vmatpush1.bf16.msra.mxu0 %v9828_v10  ;;  %v9930_v23 = vpack.c.bf16 %v649_v16, %v625_v21  ;;  %v817_v10 = vld [vmem:[%s19871_s2 + $0x998] sm:$0xff]  ;;  %v863_v21 = vld [vmem:[%s19871_s2 + $0xb08] sm:$0xff] }
 0x19a   : > { %9925 = vmatpush1.bf16.msra.mxu1 %v9924_v11  ;;  %9831 = vmatprep.subr.bf16.mxu0 %v9830_v12  ;;  %v841_v11 = vld [vmem:[%s19871_s2 + $0xa58] sm:$0xff]  ;;  %v9848_v12 = vpack.c.bf16 %v790_v4, %v766_v3  ;;  %v887_v16 = vld [vmem:[%s19871_s2 + $0xbc8] sm:$0xff] }
 0x19b   : > { %9927 = vmatprep.subr.bf16.mxu1 %v9926_v18  ;;  %2988 = vmatprep.mubr.f32.mxu0 %v14369_v36  ;;  %v838_v18 = vld [vmem:[%s19871_s2 + $0xa40] sm:$0xff]  ;;  %v9946_v15 = vpack.c.bf16 %v841_v11, %v817_v10  ;;  %v9854_v34 = vpack.c.bf16 %v887_v16, %v863_v21  ;;  %v1031_v3 = vld [vmem:[%s19871_s2 + $0x1048] sm:$0xff]  ;;  %v1009_v4 = vld [vmem:[%s19871_s2 + $0xf98] sm:$0xff] }
 0x19c   : > { %3130 = vmatprep.mubr.f32.mxu1 %v14369_v36  ;;  %v1030_v10 = vld [vmem:[%s19871_s2 + $0x1040] sm:$0xff]  ;;  %v1008_v11 = vld [vmem:[%s19871_s2 + $0xf90] sm:$0xff] }
 0x19d   : > { %9833 = vmatpush1.bf16.msra.mxu0 %v9832_v25  ;;  %v1054_v16 = vld [vmem:[%s19871_s2 + $0x1100] sm:$0xff] }
 0x19e   : > { %9929 = vmatpush1.bf16.msra.mxu1 %v9928_v26  ;;  %9835 = vmatprep.subr.bf16.mxu0 %v9834_v29  ;;  %v865_v29 = vld [vmem:[%s19871_s2 + $0xb18] sm:$0xff] }
 0x19f   : > { %9931 = vmatprep.subr.bf16.mxu1 %v9930_v23  ;;  %v9852_v23 = vpack.c.bf16 %v838_v18, %v814_v17  ;;  %v1079_v17 = vld [vmem:[%s19871_s2 + $0x11c8] sm:$0xff]  ;;  %v1057_v18 = vld [vmem:[%s19871_s2 + $0x1118] sm:$0xff] }
 0x1a1   : > { %9837 = vmatpush1.bf16.msra.mxu0 %v9836_v40  ;;  %v9950_v40 = vpack.c.bf16 %v889_v30, %v865_v29  ;;  %v1078_v29 = vld [vmem:[%s19871_s2 + $0x11c0] sm:$0xff]  ;;  %v1056_v30 = vld [vmem:[%s19871_s2 + $0x1110] sm:$0xff] }
 0x1a2   : > { %9933 = vmatpush1.bf16.msra.mxu1 %v9932_v41  ;;  %9839 = vmatprep.subr.bf16.mxu0 %v9838_v42  ;;  %v888_v41 = vld [vmem:[%s19871_s2 + $0xbd0] sm:$0xff]  ;;  %v911_v42 = vld [vmem:[%s19871_s2 + $0xc88] sm:$0xff] }
 0x1a3   : > { %9935 = vmatprep.subr.bf16.mxu1 %v9934_v45  ;;  %v9856_v45 = vpack.c.bf16 %v886_v37, %v862_v35  ;;  %v9952_v46 = vpack.c.bf16 %v888_v41, %v864_v38  ;;  %v9858_v47 = vpack.c.bf16 %v935_v43, %v911_v42  ;;  %v1127_v35 = vld [vmem:[%s19871_s2 + $0x1348] sm:$0xff]  ;;  %v1105_v37 = vld [vmem:[%s19871_s2 + $0x1298] sm:$0xff]  ;;  %v1102_v43 = vld [vmem:[%s19871_s2 + $0x1280] sm:$0xff] }
 0x1a4   : > { %v1129_v38 = vld [vmem:[%s19871_s2 + $0x1358] sm:$0xff] }
 0x1a5   : > { %9841 = vmatpush1.bf16.msra.mxu0 %v9840_v53  ;;  %v9954_v53 = vpack.c.bf16 %v937_v56, %v913_v44  ;;  %v1126_v44 = vld [vmem:[%s19871_s2 + $0x1340] sm:$0xff]  ;;  %v1104_v56 = vld [vmem:[%s19871_s2 + $0x1290] sm:$0xff] }
 0x1a6   : > { %9937 = vmatpush1.bf16.msra.mxu1 %v9936_v52  ;;  %9843 = vmatprep.subr.bf16.mxu0 %v9842_v54  ;;  %v936_v52 = vld [vmem:[%s19871_s2 + $0xd50] sm:$0xff]  ;;  %v959_v54 = vld [vmem:[%s19871_s2 + $0xe08] sm:$0xff] }
 0x1a7   : > { %9939 = vmatprep.subr.bf16.mxu1 %v9938_v58  ;;  %v9860_v58 = vpack.c.bf16 %v934_v49, %v910_v48  ;;  %v9956_v59 = vpack.c.bf16 %v936_v52, %v912_v51  ;;  %v9862_v60 = vpack.c.bf16 %v983_v50, %v959_v54  ;;  %v1175_v48 = vld [vmem:[%s19871_s2 + $0x14c8] sm:$0xff]  ;;  %v1153_v49 = vld [vmem:[%s19871_s2 + $0x1418] sm:$0xff]  ;;  %v1150_v50 = vld [vmem:[%s19871_s2 + $0x1400] sm:$0xff] }
 0x1a8   : > { %v1177_v51 = vld [vmem:[%s19871_s2 + $0x14d8] sm:$0xff] }
 0x1a9   : > { %9845 = vmatpush1.bf16.msra.mxu0 %v9844_v0  ;;  %v9958_v0 = vpack.c.bf16 %v985_v57, %v961_v55  ;;  %v1174_v55 = vld [vmem:[%s19871_s2 + $0x14c0] sm:$0xff]  ;;  %v1152_v57 = vld [vmem:[%s19871_s2 + $0x1410] sm:$0xff] }
 0x1aa   : > { %9941 = vmatpush1.bf16.msra.mxu1 %v9940_v1  ;;  %9847 = vmatprep.subr.bf16.mxu0 %v9846_v2  ;;  %v984_v1 = vld [vmem:[%s19871_s2 + $0xed0] sm:$0xff]  ;;  %v1007_v2 = vld [vmem:[%s19871_s2 + $0xf88] sm:$0xff] }
 0x1ab   : > { %9943 = vmatprep.subr.bf16.mxu1 %v9942_v6  ;;  %v14469_v25 = vpop.f32.mrb[2].mxu0  ;;  %v9864_v6 = vpack.c.bf16 %v982_v62, %v958_v61  ;;  %v9960_v7 = vpack.c.bf16 %v984_v1, %v960_v63  ;;  %v9866_v8 = vpack.c.bf16 %v1031_v3, %v1007_v2  ;;  %v1223_v61 = vld [vmem:[%s19871_s2 + $0x1648] sm:$0xff]  ;;  %v1201_v62 = vld [vmem:[%s19871_s2 + $0x1598] sm:$0xff]  ;;  %v1198_v3 = vld [vmem:[%s19871_s2 + $0x1580] sm:$0xff] }
 0x1ac   : > { %v14471_v26 = vpop.f32.mrb[2].mxu1  ;;  %v14479_v31 = vpop.f32.mrb[3].mxu0  ;;  %v1225_v63 = vld [vmem:[%s19871_s2 + $0x1658] sm:$0xff] }
 0x1ad   : > { %v14481_v32 = vpop.f32.mrb[3].mxu1  ;;  %9849 = vmatpush1.bf16.msra.mxu0 %v9848_v12  ;;  %v9962_v12 = vpack.c.bf16 %v1033_v5, %v1009_v4  ;;  %v1222_v4 = vld [vmem:[%s19871_s2 + $0x1640] sm:$0xff]  ;;  %v1200_v5 = vld [vmem:[%s19871_s2 + $0x1590] sm:$0xff] }
 0x1ae   : > { %9945 = vmatpush1.bf16.msra.mxu1 %v9944_v13  ;;  %9851 = vmatprep.subr.bf16.mxu0 %v9850_v14  ;;  %v1032_v13 = vld [vmem:[%s19871_s2 + $0x1050] sm:$0xff]  ;;  %v1055_v14 = vld [vmem:[%s19871_s2 + $0x1108] sm:$0xff] }
 0x1af   : > { %9947 = vmatprep.subr.bf16.mxu1 %v9946_v15  ;;  %v9868_v15 = vpack.c.bf16 %v1030_v10, %v1006_v9  ;;  %v9964_v20 = vpack.c.bf16 %v1032_v13, %v1008_v11  ;;  %v9870_v21 = vpack.c.bf16 %v1079_v17, %v1055_v14  ;;  %v1271_v9 = vld [vmem:[%s19871_s2 + $0x17c8] sm:$0xff]  ;;  %v1249_v10 = vld [vmem:[%s19871_s2 + $0x1718] sm:$0xff]  ;;  %v1246_v17 = vld [vmem:[%s19871_s2 + $0x1700] sm:$0xff] }
 0x1b0   : > { %v1273_v11 = vld [vmem:[%s19871_s2 + $0x17d8] sm:$0xff] }
 0x1b1   : > { %9853 = vmatpush1.bf16.msra.mxu0 %v9852_v23  ;;  %v9966_v23 = vpack.c.bf16 %v1081_v19, %v1057_v18  ;;  %v1270_v18 = vld [vmem:[%s19871_s2 + $0x17c0] sm:$0xff]  ;;  %v1248_v19 = vld [vmem:[%s19871_s2 + $0x1710] sm:$0xff] }
 0x1b2   : > { %9949 = vmatpush1.bf16.msra.mxu1 %v9948_v33  ;;  %9855 = vmatprep.subr.bf16.mxu0 %v9854_v34  ;;  %v1080_v33 = vld [vmem:[%s19871_s2 + $0x11d0] sm:$0xff]  ;;  %v1103_v34 = vld [vmem:[%s19871_s2 + $0x1288] sm:$0xff] }
 0x1b3   : > { %9951 = vmatprep.subr.bf16.mxu1 %v9950_v40  ;;  %v9872_v40 = vpack.c.bf16 %v1078_v29, %v1054_v16  ;;  %v9968_v41 = vpack.c.bf16 %v1080_v33, %v1056_v30  ;;  %v9874_v42 = vpack.c.bf16 %v1127_v35, %v1103_v34  ;;  %v1319_v16 = vld [vmem:[%s19871_s2 + $0x1948] sm:$0xff]  ;;  %v1297_v29 = vld [vmem:[%s19871_s2 + $0x1898] sm:$0xff]  ;;  %v1294_v35 = vld [vmem:[%s19871_s2 + $0x1880] sm:$0xff] }
 0x1b4   : > { %v1321_v30 = vld [vmem:[%s19871_s2 + $0x1958] sm:$0xff] }
 0x1b5   : > { %9857 = vmatpush1.bf16.msra.mxu0 %v9856_v45  ;;  %v9970_v45 = vpack.c.bf16 %v1129_v38, %v1105_v37  ;;  %v1318_v37 = vld [vmem:[%s19871_s2 + $0x1940] sm:$0xff]  ;;  %v1296_v38 = vld [vmem:[%s19871_s2 + $0x1890] sm:$0xff] }
 0x1b6   : > { %9953 = vmatpush1.bf16.msra.mxu1 %v9952_v46  ;;  %9859 = vmatprep.subr.bf16.mxu0 %v9858_v47  ;;  %v1128_v46 = vld [vmem:[%s19871_s2 + $0x1350] sm:$0xff]  ;;  %v1151_v47 = vld [vmem:[%s19871_s2 + $0x1408] sm:$0xff] }
 0x1b7   : > { %9955 = vmatprep.subr.bf16.mxu1 %v9954_v53  ;;  %v9876_v53 = vpack.c.bf16 %v1126_v44, %v1102_v43  ;;  %v9972_v52 = vpack.c.bf16 %v1128_v46, %v1104_v56  ;;  %v9878_v54 = vpack.c.bf16 %v1175_v48, %v1151_v47  ;;  %v1367_v43 = vld [vmem:[%s19871_s2 + $0x1ac8] sm:$0xff]  ;;  %v1345_v44 = vld [vmem:[%s19871_s2 + $0x1a18] sm:$0xff]  ;;  %v1342_v48 = vld [vmem:[%s19871_s2 + $0x1a00] sm:$0xff] }
 0x1b8   : > { %v1369_v56 = vld [vmem:[%s19871_s2 + $0x1ad8] sm:$0xff] }
 0x1b9   : > { %9861 = vmatpush1.bf16.msra.mxu0 %v9860_v58  ;;  %v9974_v58 = vpack.c.bf16 %v1177_v51, %v1153_v49  ;;  %v1366_v49 = vld [vmem:[%s19871_s2 + $0x1ac0] sm:$0xff]  ;;  %v1344_v51 = vld [vmem:[%s19871_s2 + $0x1a10] sm:$0xff] }
 0x1ba   : > { %9957 = vmatpush1.bf16.msra.mxu1 %v9956_v59  ;;  %9863 = vmatprep.subr.bf16.mxu0 %v9862_v60  ;;  %v1176_v59 = vld [vmem:[%s19871_s2 + $0x14d0] sm:$0xff]  ;;  %v1199_v60 = vld [vmem:[%s19871_s2 + $0x1588] sm:$0xff] }
 0x1bb   : > { %9959 = vmatprep.subr.bf16.mxu1 %v9958_v0  ;;  %v9880_v0 = vpack.c.bf16 %v1174_v55, %v1150_v50  ;;  %v9976_v1 = vpack.c.bf16 %v1176_v59, %v1152_v57  ;;  %v9882_v2 = vpack.c.bf16 %v1223_v61, %v1199_v60  ;;  %v1415_v50 = vld [vmem:[%s19871_s2 + $0x1c48] sm:$0xff]  ;;  %v14742_v55 = vld [vmem:[%s12202_s23] sm:$0xff]  ;;  %v1393_v57 = vld [vmem:[%s19871_s2 + $0x1b98] sm:$0xff]  ;;  %v9896_v59 = vpack.c.bf16 %v1366_v49, %v1342_v48 }
 0x1bc   : > { %v1583_v48 = vld [vmem:[%s19871_s2 + $0x2188] sm:$0xff] }
 0x1bd   : > { %9865 = vmatpush1.bf16.msra.mxu0 %v9864_v6  ;;  %v9978_v6 = vpack.c.bf16 %v1225_v63, %v1201_v62  ;;  %v1390_v62 = vld [vmem:[%s19871_s2 + $0x1b80] sm:$0xff]  ;;  %v1607_v49 = vld [vmem:[%s19871_s2 + $0x2248] sm:$0xff] }
 0x1be   : > { %9961 = vmatpush1.bf16.msra.mxu1 %v9960_v7  ;;  %9867 = vmatprep.subr.bf16.mxu0 %v9866_v8  ;;  %v1224_v7 = vld [vmem:[%s19871_s2 + $0x1650] sm:$0xff]  ;;  %v1247_v8 = vld [vmem:[%s19871_s2 + $0x1708] sm:$0xff]  ;;  %v1414_v63 = vld [vmem:[%s19871_s2 + $0x1c40] sm:$0xff] }
 0x1bf   : > { %9963 = vmatprep.subr.bf16.mxu1 %v9962_v12  ;;  %v9884_v12 = vpack.c.bf16 %v1222_v4, %v1198_v3  ;;  %v9980_v13 = vpack.c.bf16 %v1224_v7, %v1200_v5  ;;  %v9886_v14 = vpack.c.bf16 %v1271_v9, %v1247_v8  ;;  %v1439_v3 = vld [vmem:[%s19871_s2 + $0x1d08] sm:$0xff]  ;;  %v1441_v5 = vld [vmem:[%s19871_s2 + $0x1d18] sm:$0xff]  ;;  %v9900_v7 = vpack.c.bf16 %v1414_v63, %v1390_v62 }
 0x1c0   : > { %v1463_v4 = vld [vmem:[%s19871_s2 + $0x1dc8] sm:$0xff] }
 0x1c1   : > { %9869 = vmatpush1.bf16.msra.mxu0 %v9868_v15  ;;  %v9982_v15 = vpack.c.bf16 %v1273_v11, %v1249_v10  ;;  %v9902_v9 = vpack.c.bf16 %v1463_v4, %v1439_v3  ;;  %v1438_v10 = vld [vmem:[%s19871_s2 + $0x1d00] sm:$0xff]  ;;  %v1631_v62 = vld [vmem:[%s19871_s2 + $0x2308] sm:$0xff] }
 0x1c2   : > { %9965 = vmatpush1.bf16.msra.mxu1 %v9964_v20  ;;  %9871 = vmatprep.subr.bf16.mxu0 %v9870_v21  ;;  %v1272_v20 = vld [vmem:[%s19871_s2 + $0x17d0] sm:$0xff]  ;;  %v1295_v21 = vld [vmem:[%s19871_s2 + $0x1888] sm:$0xff]  ;;  %v1462_v11 = vld [vmem:[%s19871_s2 + $0x1dc0] sm:$0xff] }
 0x1c3   : > { %9967 = vmatprep.subr.bf16.mxu1 %v9966_v23  ;;  %v9888_v23 = vpack.c.bf16 %v1270_v18, %v1246_v17  ;;  %v9984_v33 = vpack.c.bf16 %v1272_v20, %v1248_v19  ;;  %v9890_v34 = vpack.c.bf16 %v1319_v16, %v1295_v21  ;;  %v1487_v17 = vld [vmem:[%s19871_s2 + $0x1e88] sm:$0xff]  ;;  %v1489_v19 = vld [vmem:[%s19871_s2 + $0x1e98] sm:$0xff]  ;;  %v9904_v20 = vpack.c.bf16 %v1462_v11, %v1438_v10 }
 0x1c4   : > { %v1511_v18 = vld [vmem:[%s19871_s2 + $0x1f48] sm:$0xff] }
 0x1c5   : > { %9873 = vmatpush1.bf16.msra.mxu0 %v9872_v40  ;;  %v9986_v40 = vpack.c.bf16 %v1321_v30, %v1297_v29  ;;  %v9906_v16 = vpack.c.bf16 %v1511_v18, %v1487_v17  ;;  %v1486_v29 = vld [vmem:[%s19871_s2 + $0x1e80] sm:$0xff]  ;;  %v1655_v63 = vld [vmem:[%s19871_s2 + $0x23c8] sm:$0xff] }
 0x1c6   : > { %9969 = vmatpush1.bf16.msra.mxu1 %v9968_v41  ;;  %9875 = vmatprep.subr.bf16.mxu0 %v9874_v42  ;;  %v1320_v41 = vld [vmem:[%s19871_s2 + $0x1950] sm:$0xff]  ;;  %v1343_v42 = vld [vmem:[%s19871_s2 + $0x1a08] sm:$0xff]  ;;  %v1510_v30 = vld [vmem:[%s19871_s2 + $0x1f40] sm:$0xff]  ;;  %v9918_v4 = vpack.c.bf16 %v1655_v63, %v1631_v62 }
 0x1c7   : > { %9971 = vmatprep.subr.bf16.mxu1 %v9970_v45  ;;  %v9892_v45 = vpack.c.bf16 %v1318_v37, %v1294_v35  ;;  %v9988_v46 = vpack.c.bf16 %v1320_v41, %v1296_v38  ;;  %v9894_v47 = vpack.c.bf16 %v1367_v43, %v1343_v42  ;;  %v1535_v35 = vld [vmem:[%s19871_s2 + $0x2008] sm:$0xff]  ;;  %v1537_v38 = vld [vmem:[%s19871_s2 + $0x2018] sm:$0xff]  ;;  %v9908_v41 = vpack.c.bf16 %v1510_v30, %v1486_v29 }
 0x1c8   : > { %v1559_v37 = vld [vmem:[%s19871_s2 + $0x20c8] sm:$0xff] }
 0x1c9   : > { %9877 = vmatpush1.bf16.msra.mxu0 %v9876_v53  ;;  %v9990_v53 = vpack.c.bf16 %v1369_v56, %v1345_v44  ;;  %v9910_v43 = vpack.c.bf16 %v1559_v37, %v1535_v35  ;;  %v1534_v44 = vld [vmem:[%s19871_s2 + $0x2000] sm:$0xff]  ;;  %v531_v10 = vld [vmem:[%s19871_s2 + $0xa8] sm:$0xff] }
 0x1ca   : > { %9973 = vmatpush1.bf16.msra.mxu1 %v9972_v52  ;;  %9879 = vmatprep.subr.bf16.mxu0 %v9878_v54  ;;  %v1368_v52 = vld [vmem:[%s19871_s2 + $0x1ad0] sm:$0xff]  ;;  %v1391_v54 = vld [vmem:[%s19871_s2 + $0x1b88] sm:$0xff]  ;;  %v1558_v56 = vld [vmem:[%s19871_s2 + $0x20c0] sm:$0xff] }
 0x1cb   : > { %9975 = vmatprep.subr.bf16.mxu1 %v9974_v58  ;;  %v1417_v58 = vld [vmem:[%s19871_s2 + $0x1c58] sm:$0xff]  ;;  %v9992_v60 = vpack.c.bf16 %v1368_v52, %v1344_v51  ;;  %v9898_v61 = vpack.c.bf16 %v1415_v50, %v1391_v54  ;;  %v9912_v52 = vpack.c.bf16 %v1558_v56, %v1534_v44  ;;  %v9914_v50 = vpack.c.bf16 %v1607_v49, %v1583_v48  ;;  %v555_v11 = vld [vmem:[%s19871_s2 + $0x168] sm:$0xff] }
 0x1cc   : > { %v1585_v51 = vld [vmem:[%s19871_s2 + $0x2198] sm:$0xff]  ;;  %v10018_v18 = vpack.c.bf16 %v555_v11, %v531_v10  ;;  %v579_v29 = vld [vmem:[%s19871_s2 + $0x228] sm:$0xff] }
 0x1cd   : > { %9881 = vmatpush1.bf16.msra.mxu0 %v9880_v0  ;;  %v1392_v0 = vld [vmem:[%s19871_s2 + $0x1b90] sm:$0xff]  ;;  %v603_v30 = vld [vmem:[%s19871_s2 + $0x2e8] sm:$0xff] }
 0x1ce   : > { %9977 = vmatpush1.bf16.msra.mxu1 %v9976_v1  ;;  %9883 = vmatprep.subr.bf16.mxu0 %v9882_v2  ;;  %v9994_v1 = vpack.c.bf16 %v1417_v58, %v1393_v57  ;;  %v1416_v2 = vld [vmem:[%s19871_s2 + $0x1c50] sm:$0xff]  ;;  %v1582_v57 = vld [vmem:[%s19871_s2 + $0x2180] sm:$0xff]  ;;  %v10022_v37 = vpack.c.bf16 %v603_v30, %v579_v29  ;;  %v627_v44 = vld [vmem:[%s19871_s2 + $0x3a8] sm:$0xff] }
 0x1cf   : > { %9979 = vmatprep.subr.bf16.mxu1 %v9978_v6  ;;  %v1465_v6 = vld [vmem:[%s19871_s2 + $0x1dd8] sm:$0xff]  ;;  %v9996_v8 = vpack.c.bf16 %v1416_v2, %v1392_v0  ;;  %v1606_v58 = vld [vmem:[%s19871_s2 + $0x2240] sm:$0xff]  ;;  %v651_v56 = vld [vmem:[%s19871_s2 + $0x468] sm:$0xff] }
 0x1d0   : > { %v1633_v0 = vld [vmem:[%s19871_s2 + $0x2318] sm:$0xff]  ;;  %v9916_v2 = vpack.c.bf16 %v1606_v58, %v1582_v57  ;;  %v652_v57 = vld [vmem:[%s19871_s2 + $0x470] sm:$0xff]  ;;  %v675_v58 = vld [vmem:[%s19871_s2 + $0x528] sm:$0xff] }
 0x1d1   : > { %9885 = vmatpush1.bf16.msra.mxu0 %v9884_v12  ;;  %v1440_v12 = vld [vmem:[%s19871_s2 + $0x1d10] sm:$0xff] }
 0x1d2   : > { %9981 = vmatpush1.bf16.msra.mxu1 %v9980_v13  ;;  %9887 = vmatprep.subr.bf16.mxu0 %v9886_v14  ;;  %v9998_v13 = vpack.c.bf16 %v1465_v6, %v1441_v5  ;;  %v1464_v14 = vld [vmem:[%s19871_s2 + $0x1dd0] sm:$0xff]  ;;  %v1630_v5 = vld [vmem:[%s19871_s2 + $0x2300] sm:$0xff] }
 0x1d3   : > { %9983 = vmatprep.subr.bf16.mxu1 %v9982_v15  ;;  %v1513_v15 = vld [vmem:[%s19871_s2 + $0x1f58] sm:$0xff]  ;;  %v10000_v21 = vpack.c.bf16 %v1464_v14, %v1440_v12  ;;  %v1654_v6 = vld [vmem:[%s19871_s2 + $0x23c0] sm:$0xff] }
 0x1d4   : > { %v533_v12 = vld [vmem:[%s19871_s2 + $0xb8] sm:$0xff]  ;;  %v9920_v14 = vpack.c.bf16 %v1654_v6, %v1630_v5  ;;  %v723_v5 = vld [vmem:[%s19871_s2 + $0x6a8] sm:$0xff] }
 0x1d5   : > { %9889 = vmatpush1.bf16.msra.mxu0 %v9888_v23  ;;  %v1488_v23 = vld [vmem:[%s19871_s2 + $0x1e90] sm:$0xff]  ;;  %v747_v6 = vld [vmem:[%s19871_s2 + $0x768] sm:$0xff] }
 0x1d6   : > { %9985 = vmatpush1.bf16.msra.mxu1 %v9984_v33  ;;  %9891 = vmatprep.subr.bf16.mxu0 %v9890_v34  ;;  %v10002_v33 = vpack.c.bf16 %v1513_v15, %v1489_v19  ;;  %v1512_v34 = vld [vmem:[%s19871_s2 + $0x1f50] sm:$0xff]  ;;  %v530_v19 = vld [vmem:[%s19871_s2 + $0xa0] sm:$0xff]  ;;  %v10034_v11 = vpack.c.bf16 %v747_v6, %v723_v5  ;;  %v939_v5 = vld [vmem:[%s19871_s2 + $0xd68] sm:$0xff] }
 0x1d7   : > { %9987 = vmatprep.subr.bf16.mxu1 %v9986_v40  ;;  %v1561_v40 = vld [vmem:[%s19871_s2 + $0x20d8] sm:$0xff]  ;;  %v10004_v42 = vpack.c.bf16 %v1512_v34, %v1488_v23  ;;  %v554_v15 = vld [vmem:[%s19871_s2 + $0x160] sm:$0xff] }
 0x1d8   : > { %2989 = vmatmul.mubr.f32.vlgmr.msra.gmra.mrb[8].mxu0 %v14742_v55  ;;  %v581_v23 = vld [vmem:[%s19871_s2 + $0x238] sm:$0xff]  ;;  %v10020_v34 = vpack.c.bf16 %v554_v15, %v530_v19  ;;  %v771_v19 = vld [vmem:[%s19871_s2 + $0x828] sm:$0xff] }
 0x1d9   : > { %9893 = vmatpush1.bf16.msra.mxu0 %v9892_v45  ;;  %3131 = vmatmul.mubr.f32.vlgmr.msra.gmra.mrb[8].mxu1 %v14742_v55  ;;  %v1536_v45 = vld [vmem:[%s19871_s2 + $0x2010] sm:$0xff]  ;;  %v795_v15 = vld [vmem:[%s19871_s2 + $0x8e8] sm:$0xff]  ;;  %v917_v6 = vld [vmem:[%s19871_s2 + $0xcb8] sm:$0xff] }
 0x1da   : > { %9989 = vmatpush1.bf16.msra.mxu1 %v9988_v46  ;;  %9895 = vmatprep.subr.bf16.mxu0 %v9894_v47  ;;  %v10006_v46 = vpack.c.bf16 %v1561_v40, %v1537_v38  ;;  %v1560_v47 = vld [vmem:[%s19871_s2 + $0x20d0] sm:$0xff]  ;;  %v578_v38 = vld [vmem:[%s19871_s2 + $0x220] sm:$0xff]  ;;  %v10038_v30 = vpack.c.bf16 %v795_v15, %v771_v19  ;;  %v987_v19 = vld [vmem:[%s19871_s2 + $0xee8] sm:$0xff] }
 0x1db   : > { %9991 = vmatprep.subr.bf16.mxu1 %v9990_v53  ;;  %3201 = vmatprep.mubr.f32.mxu1 %v11783_v39  ;;  %v1609_v53 = vld [vmem:[%s19871_s2 + $0x2258] sm:$0xff]  ;;  %v10008_v54 = vpack.c.bf16 %v1560_v47, %v1536_v45  ;;  %v602_v40 = vld [vmem:[%s19871_s2 + $0x2e0] sm:$0xff]  ;;  %v14941_v45 = vld [vmem:[%s12202_s23 + $0x10] sm:$0xff] }
 0x1dc   : > { %3059 = vmatprep.mubr.f32.mxu0 %v11783_v39  ;;  %v653_v47 = vld [vmem:[%s19871_s2 + $0x478] sm:$0xff]  ;;  %v10024_v48 = vpack.c.bf16 %v602_v40, %v578_v38  ;;  %v819_v38 = vld [vmem:[%s19871_s2 + $0x9a8] sm:$0xff] }
 0x1dd   : > { %9897 = vmatpush1.bf16.msra.mxu0 %v9896_v59  ;;  %v1584_v59 = vld [vmem:[%s19871_s2 + $0x2190] sm:$0xff]  ;;  %v843_v40 = vld [vmem:[%s19871_s2 + $0xa68] sm:$0xff]  ;;  %v965_v15 = vld [vmem:[%s19871_s2 + $0xe38] sm:$0xff] }
 0x1de   : > { %9993 = vmatpush1.bf16.msra.mxu1 %v9992_v60  ;;  %9899 = vmatprep.subr.bf16.mxu0 %v9898_v61  ;;  %v10010_v60 = vpack.c.bf16 %v1609_v53, %v1585_v51  ;;  %v1608_v61 = vld [vmem:[%s19871_s2 + $0x2250] sm:$0xff]  ;;  %v10026_v51 = vpack.c.bf16 %v651_v56, %v627_v44  ;;  %v626_v53 = vld [vmem:[%s19871_s2 + $0x3a0] sm:$0xff]  ;;  %v10042_v56 = vpack.c.bf16 %v843_v40, %v819_v38  ;;  %v1035_v38 = vld [vmem:[%s19871_s2 + $0x1068] sm:$0xff] }
 0x1df   : > { %9995 = vmatprep.subr.bf16.mxu1 %v9994_v1  ;;  %v1657_v1 = vld [vmem:[%s19871_s2 + $0x23d8] sm:$0xff]  ;;  %v10012_v3 = vpack.c.bf16 %v1608_v61, %v1584_v59  ;;  %v699_v59 = vld [vmem:[%s19871_s2 + $0x5e8] sm:$0xff] }
 0x1e0   : > { %v701_v61 = vld [vmem:[%s19871_s2 + $0x5f8] sm:$0xff] }
 0x1e1   : > { %9901 = vmatpush1.bf16.msra.mxu0 %v9900_v7  ;;  %v1632_v7 = vld [vmem:[%s19871_s2 + $0x2310] sm:$0xff]  ;;  %v1013_v40 = vld [vmem:[%s19871_s2 + $0xfb8] sm:$0xff] }
 0x1e2   : > { %9997 = vmatpush1.bf16.msra.mxu1 %v9996_v8  ;;  %9903 = vmatprep.subr.bf16.mxu0 %v9902_v9  ;;  %v10014_v8 = vpack.c.bf16 %v1657_v1, %v1633_v0  ;;  %v1656_v9 = vld [vmem:[%s19871_s2 + $0x23d0] sm:$0xff]  ;;  %v10030_v0 = vpack.c.bf16 %v699_v59, %v675_v58  ;;  %v674_v1 = vld [vmem:[%s19871_s2 + $0x520] sm:$0xff]  ;;  %v893_v58 = vld [vmem:[%s19871_s2 + $0xbf8] sm:$0xff] }
 0x1e3   : > { %9999 = vmatprep.subr.bf16.mxu1 %v9998_v13  ;;  %v557_v13 = vld [vmem:[%s19871_s2 + $0x178] sm:$0xff]  ;;  %v10016_v17 = vpack.c.bf16 %v1656_v9, %v1632_v7 }
 0x1e4   : > { %v725_v7 = vld [vmem:[%s19871_s2 + $0x6b8] sm:$0xff] }
 0x1e5   : > { %9905 = vmatpush1.bf16.msra.mxu0 %v9904_v20  ;;  %v532_v20 = vld [vmem:[%s19871_s2 + $0xb0] sm:$0xff] }
 0x1e6   : > { %10001 = vmatpush1.bf16.msra.mxu1 %v10000_v21  ;;  %9907 = vmatprep.subr.bf16.mxu0 %v9906_v16  ;;  %v10114_v21 = vpack.c.bf16 %v557_v13, %v533_v12  ;;  %v556_v16 = vld [vmem:[%s19871_s2 + $0x170] sm:$0xff]  ;;  %v722_v12 = vld [vmem:[%s19871_s2 + $0x6a0] sm:$0xff] }
 0x1e7   : > { %10003 = vmatprep.subr.bf16.mxu1 %v10002_v33  ;;  %v605_v33 = vld [vmem:[%s19871_s2 + $0x2f8] sm:$0xff]  ;;  %v10116_v35 = vpack.c.bf16 %v556_v16, %v532_v20  ;;  %v746_v13 = vld [vmem:[%s19871_s2 + $0x760] sm:$0xff] }
 0x1e8   : > { %v773_v20 = vld [vmem:[%s19871_s2 + $0x838] sm:$0xff]  ;;  %v10036_v16 = vpack.c.bf16 %v746_v13, %v722_v12  ;;  %v938_v12 = vld [vmem:[%s19871_s2 + $0xd60] sm:$0xff]  ;;  %v916_v13 = vld [vmem:[%s19871_s2 + $0xcb0] sm:$0xff] }
 0x1e9   : > { %9909 = vmatpush1.bf16.msra.mxu0 %v9908_v41  ;;  %v580_v41 = vld [vmem:[%s19871_s2 + $0x230] sm:$0xff] }
 0x1ea   : > { %10005 = vmatpush1.bf16.msra.mxu1 %v10004_v42  ;;  %9911 = vmatprep.subr.bf16.mxu0 %v9910_v43  ;;  %v10118_v42 = vpack.c.bf16 %v605_v33, %v581_v23  ;;  %v604_v43 = vld [vmem:[%s19871_s2 + $0x2f0] sm:$0xff]  ;;  %v770_v23 = vld [vmem:[%s19871_s2 + $0x820] sm:$0xff] }
 0x1eb   : > { %10007 = vmatprep.subr.bf16.mxu1 %v10006_v46  ;;  %v629_v46 = vld [vmem:[%s19871_s2 + $0x3b8] sm:$0xff]  ;;  %v10120_v49 = vpack.c.bf16 %v604_v43, %v580_v41  ;;  %v794_v33 = vld [vmem:[%s19871_s2 + $0x8e0] sm:$0xff] }
 0x1ec   : > { %v821_v41 = vld [vmem:[%s19871_s2 + $0x9b8] sm:$0xff]  ;;  %v10040_v43 = vpack.c.bf16 %v794_v33, %v770_v23  ;;  %v986_v23 = vld [vmem:[%s19871_s2 + $0xee0] sm:$0xff]  ;;  %v964_v33 = vld [vmem:[%s19871_s2 + $0xe30] sm:$0xff] }
 0x1ed   : > { %9913 = vmatpush1.bf16.msra.mxu0 %v9912_v52  ;;  %v650_v52 = vld [vmem:[%s19871_s2 + $0x460] sm:$0xff] }
 0x1ee   : > { %10009 = vmatpush1.bf16.msra.mxu1 %v10008_v54  ;;  %9915 = vmatprep.subr.bf16.mxu0 %v9914_v50  ;;  %v628_v54 = vld [vmem:[%s19871_s2 + $0x3b0] sm:$0xff]  ;;  %v10122_v50 = vpack.c.bf16 %v653_v47, %v629_v46  ;;  %v10028_v62 = vpack.c.bf16 %v650_v52, %v626_v53  ;;  %v818_v46 = vld [vmem:[%s19871_s2 + $0x9a0] sm:$0xff]  ;;  %v867_v53 = vld [vmem:[%s19871_s2 + $0xb28] sm:$0xff] }
 0x1ef   : > { %10011 = vmatprep.subr.bf16.mxu1 %v10010_v60  ;;  %v677_v60 = vld [vmem:[%s19871_s2 + $0x538] sm:$0xff]  ;;  %v10124_v63 = vpack.c.bf16 %v652_v57, %v628_v54  ;;  %v842_v47 = vld [vmem:[%s19871_s2 + $0xa60] sm:$0xff]  ;;  %v891_v52 = vld [vmem:[%s19871_s2 + $0xbe8] sm:$0xff] }
 0x1f0   : > { %v869_v57 = vld [vmem:[%s19871_s2 + $0xb38] sm:$0xff] }
 0x1f1   : > { %9917 = vmatpush1.bf16.msra.mxu0 %v9916_v2  ;;  %v698_v2 = vld [vmem:[%s19871_s2 + $0x5e0] sm:$0xff] }
 0x1f2   : > { %10013 = vmatpush1.bf16.msra.mxu1 %v10012_v3  ;;  %9919 = vmatprep.subr.bf16.mxu0 %v9918_v4  ;;  %v676_v3 = vld [vmem:[%s19871_s2 + $0x530] sm:$0xff]  ;;  %v10032_v9 = vpack.c.bf16 %v698_v2, %v674_v1  ;;  %v890_v1 = vld [vmem:[%s19871_s2 + $0xbe0] sm:$0xff] }
 0x1f3   : > { %10015 = vmatprep.subr.bf16.mxu1 %v10014_v8  ;;  %v700_v4 = vld [vmem:[%s19871_s2 + $0x5f0] sm:$0xff]  ;;  %v749_v8 = vld [vmem:[%s19871_s2 + $0x778] sm:$0xff] }
 0x1f4   : > { %v10128_v10 = vpack.c.bf16 %v700_v4, %v676_v3  ;;  %v868_v2 = vld [vmem:[%s19871_s2 + $0xb30] sm:$0xff]  ;;  %v10142_v3 = vpack.c.bf16 %v893_v58, %v869_v57  ;;  %v915_v4 = vld [vmem:[%s19871_s2 + $0xca8] sm:$0xff]  ;;  %v1085_v57 = vld [vmem:[%s19871_s2 + $0x11f8] sm:$0xff] }
 0x1f5   : > { %9921 = vmatpush1.bf16.msra.mxu0 %v9920_v14  ;;  %v724_v14 = vld [vmem:[%s19871_s2 + $0x6b0] sm:$0xff] }
 0x1f6   : > { %10017 = vmatpush1.bf16.msra.mxu1 %v10016_v17  ;;  %10019 = vmatprep.subr.bf16.mxu0 %v10018_v18  ;;  %v10130_v17 = vpack.c.bf16 %v749_v8, %v725_v7  ;;  %v748_v18 = vld [vmem:[%s19871_s2 + $0x770] sm:$0xff]  ;;  %v941_v7 = vld [vmem:[%s19871_s2 + $0xd78] sm:$0xff] }
 0x1f7   : > { %10115 = vmatprep.subr.bf16.mxu1 %v10114_v21  ;;  %v797_v21 = vld [vmem:[%s19871_s2 + $0x8f8] sm:$0xff]  ;;  %v10132_v29 = vpack.c.bf16 %v748_v18, %v724_v14  ;;  %v10146_v14 = vpack.c.bf16 %v941_v7, %v917_v6  ;;  %v963_v18 = vld [vmem:[%s19871_s2 + $0xe28] sm:$0xff] }
 0x1f8   : > { %3060 = vmatmul.mubr.f32.vlgmr.msra.gmra.mrb[8].mxu0 %v14941_v45  ;;  %v1133_v6 = vld [vmem:[%s19871_s2 + $0x1378] sm:$0xff] }
 0x1f9   : > { %3202 = vmatmul.mubr.f32.vlgmr.msra.gmra.mrb[8].mxu1 %v14941_v45  ;;  %10021 = vmatpush1.bf16.msra.mxu0 %v10020_v34  ;;  %v772_v34 = vld [vmem:[%s19871_s2 + $0x830] sm:$0xff] }
 0x1fa   : > { %10117 = vmatpush1.bf16.msra.mxu1 %v10116_v35  ;;  %10023 = vmatprep.subr.bf16.mxu0 %v10022_v37  ;;  %v10134_v35 = vpack.c.bf16 %v797_v21, %v773_v20  ;;  %v796_v37 = vld [vmem:[%s19871_s2 + $0x8f0] sm:$0xff]  ;;  %v989_v20 = vld [vmem:[%s19871_s2 + $0xef8] sm:$0xff] }
 0x1fb   : > { %10119 = vmatprep.subr.bf16.mxu1 %v10118_v42  ;;  %3272 = vmatprep.mubr.f32.mxu0 %v14369_v36  ;;  %v845_v42 = vld [vmem:[%s19871_s2 + $0xa78] sm:$0xff]  ;;  %v10136_v44 = vpack.c.bf16 %v796_v37, %v772_v34  ;;  %v10150_v34 = vpack.c.bf16 %v989_v20, %v965_v15  ;;  %v1011_v37 = vld [vmem:[%s19871_s2 + $0xfa8] sm:$0xff] }
 0x1fc   : > { %3414 = vmatprep.mubr.f32.mxu1 %v14369_v36  ;;  %v10126_v36 = vpack.c.bf16 %v701_v61, %v677_v60  ;;  %v10044_v61 = vpack.c.bf16 %v842_v47, %v818_v46  ;;  %v1034_v46 = vld [vmem:[%s19871_s2 + $0x1060] sm:$0xff]  ;;  %v1012_v47 = vld [vmem:[%s19871_s2 + $0xfb0] sm:$0xff]  ;;  %v1181_v15 = vld [vmem:[%s19871_s2 + $0x14f8] sm:$0xff] }
 0x1fd   : > { %10025 = vmatpush1.bf16.msra.mxu0 %v10024_v48  ;;  %v820_v48 = vld [vmem:[%s19871_s2 + $0x9b0] sm:$0xff] }
 0x1fe   : > { %10121 = vmatpush1.bf16.msra.mxu1 %v10120_v49  ;;  %10027 = vmatprep.subr.bf16.mxu0 %v10026_v51  ;;  %v10138_v49 = vpack.c.bf16 %v845_v42, %v821_v41  ;;  %v844_v51 = vld [vmem:[%s19871_s2 + $0xa70] sm:$0xff]  ;;  %v1037_v41 = vld [vmem:[%s19871_s2 + $0x1078] sm:$0xff] }
 0x1ff   : > { %10123 = vmatprep.subr.bf16.mxu1 %v10122_v50 }
 0x201   : > { %10029 = vmatpush1.bf16.msra.mxu0 %v10028_v62  ;;  %v10140_v62 = vpack.c.bf16 %v844_v51, %v820_v48  ;;  %v10154_v48 = vpack.c.bf16 %v1037_v41, %v1013_v40  ;;  %v1059_v51 = vld [vmem:[%s19871_s2 + $0x1128] sm:$0xff]  ;;  %v1229_v40 = vld [vmem:[%s19871_s2 + $0x1678] sm:$0xff] }
 0x202   : > { %10125 = vmatpush1.bf16.msra.mxu1 %v10124_v63  ;;  %10031 = vmatprep.subr.bf16.mxu0 %v10030_v0  ;;  %v10046_v63 = vpack.c.bf16 %v891_v52, %v867_v53  ;;  %v866_v0 = vld [vmem:[%s19871_s2 + $0xb20] sm:$0xff]  ;;  %v1083_v53 = vld [vmem:[%s19871_s2 + $0x11e8] sm:$0xff]  ;;  %v1061_v52 = vld [vmem:[%s19871_s2 + $0x1138] sm:$0xff] }
 0x203   : > { %10127 = vmatprep.subr.bf16.mxu1 %v10126_v36  ;;  %v892_v36 = vld [vmem:[%s19871_s2 + $0xbf0] sm:$0xff]  ;;  %v10048_v8 = vpack.c.bf16 %v890_v1, %v866_v0  ;;  %v1082_v0 = vld [vmem:[%s19871_s2 + $0x11e0] sm:$0xff] }
 0x204   : > { %v1060_v1 = vld [vmem:[%s19871_s2 + $0x1130] sm:$0xff] }
 0x205   : > { %10033 = vmatpush1.bf16.msra.mxu0 %v10032_v9  ;;  %v10144_v9 = vpack.c.bf16 %v892_v36, %v868_v2  ;;  %v10158_v2 = vpack.c.bf16 %v1085_v57, %v1061_v52  ;;  %v1107_v36 = vld [vmem:[%s19871_s2 + $0x12a8] sm:$0xff]  ;;  %v1277_v52 = vld [vmem:[%s19871_s2 + $0x17f8] sm:$0xff] }
 0x206   : > { %10129 = vmatpush1.bf16.msra.mxu1 %v10128_v10  ;;  %10035 = vmatprep.subr.bf16.mxu0 %v10034_v11  ;;  %v10050_v10 = vpack.c.bf16 %v939_v5, %v915_v4  ;;  %v914_v11 = vld [vmem:[%s19871_s2 + $0xca0] sm:$0xff]  ;;  %v1131_v4 = vld [vmem:[%s19871_s2 + $0x1368] sm:$0xff]  ;;  %v1109_v5 = vld [vmem:[%s19871_s2 + $0x12b8] sm:$0xff] }
 0x207   : > { %10131 = vmatprep.subr.bf16.mxu1 %v10130_v17  ;;  %v940_v17 = vld [vmem:[%s19871_s2 + $0xd70] sm:$0xff]  ;;  %v10052_v21 = vpack.c.bf16 %v938_v12, %v914_v11  ;;  %v1130_v11 = vld [vmem:[%s19871_s2 + $0x1360] sm:$0xff] }
 0x208   : > { %v1108_v12 = vld [vmem:[%s19871_s2 + $0x12b0] sm:$0xff] }
 0x209   : > { %10037 = vmatpush1.bf16.msra.mxu0 %v10036_v16  ;;  %v10148_v16 = vpack.c.bf16 %v940_v17, %v916_v13  ;;  %v10162_v13 = vpack.c.bf16 %v1133_v6, %v1109_v5  ;;  %v1155_v17 = vld [vmem:[%s19871_s2 + $0x1428] sm:$0xff]  ;;  %v1325_v5 = vld [vmem:[%s19871_s2 + $0x1978] sm:$0xff] }
 0x20a   : > { %10133 = vmatpush1.bf16.msra.mxu1 %v10132_v29  ;;  %10039 = vmatprep.subr.bf16.mxu0 %v10038_v30  ;;  %v10054_v29 = vpack.c.bf16 %v987_v19, %v963_v18  ;;  %v962_v30 = vld [vmem:[%s19871_s2 + $0xe20] sm:$0xff]  ;;  %v1179_v18 = vld [vmem:[%s19871_s2 + $0x14e8] sm:$0xff]  ;;  %v1157_v19 = vld [vmem:[%s19871_s2 + $0x1438] sm:$0xff] }
 0x20b   : > { %10135 = vmatprep.subr.bf16.mxu1 %v10134_v35  ;;  %v15067_v54 = vpop.f32.mrb[4].mxu0  ;;  %v988_v35 = vld [vmem:[%s19871_s2 + $0xef0] sm:$0xff]  ;;  %v10056_v42 = vpack.c.bf16 %v986_v23, %v962_v30  ;;  %v1178_v30 = vld [vmem:[%s19871_s2 + $0x14e0] sm:$0xff] }
 0x20c   : > { %v15069_v50 = vpop.f32.mrb[4].mxu1  ;;  %v15077_v59 = vpop.f32.mrb[5].mxu0  ;;  %v1156_v23 = vld [vmem:[%s19871_s2 + $0x1430] sm:$0xff] }
 0x20d   : > { %v15079_v60 = vpop.f32.mrb[5].mxu1  ;;  %10041 = vmatpush1.bf16.msra.mxu0 %v10040_v43  ;;  %v10152_v43 = vpack.c.bf16 %v988_v35, %v964_v33  ;;  %v10166_v33 = vpack.c.bf16 %v1181_v15, %v1157_v19  ;;  %v1203_v35 = vld [vmem:[%s19871_s2 + $0x15a8] sm:$0xff]  ;;  %v1373_v19 = vld [vmem:[%s19871_s2 + $0x1af8] sm:$0xff] }
 0x20e   : > { %10137 = vmatpush1.bf16.msra.mxu1 %v10136_v44  ;;  %10043 = vmatprep.subr.bf16.mxu0 %v10042_v56  ;;  %v10058_v44 = vpack.c.bf16 %v1035_v38, %v1011_v37  ;;  %v1010_v56 = vld [vmem:[%s19871_s2 + $0xfa0] sm:$0xff]  ;;  %v1227_v37 = vld [vmem:[%s19871_s2 + $0x1668] sm:$0xff]  ;;  %v1205_v38 = vld [vmem:[%s19871_s2 + $0x15b8] sm:$0xff] }
 0x20f   : > { %10139 = vmatprep.subr.bf16.mxu1 %v10138_v49  ;;  %v1036_v49 = vld [vmem:[%s19871_s2 + $0x1070] sm:$0xff]  ;;  %v10060_v58 = vpack.c.bf16 %v1034_v46, %v1010_v56  ;;  %v1226_v56 = vld [vmem:[%s19871_s2 + $0x1660] sm:$0xff] }
 0x210   : > { %v1204_v46 = vld [vmem:[%s19871_s2 + $0x15b0] sm:$0xff] }
 0x211   : > { %10045 = vmatpush1.bf16.msra.mxu0 %v10044_v61  ;;  %v10156_v61 = vpack.c.bf16 %v1036_v49, %v1012_v47  ;;  %v10170_v47 = vpack.c.bf16 %v1229_v40, %v1205_v38  ;;  %v1251_v49 = vld [vmem:[%s19871_s2 + $0x1728] sm:$0xff]  ;;  %v1421_v38 = vld [vmem:[%s19871_s2 + $0x1c78] sm:$0xff] }
 0x212   : > { %10141 = vmatpush1.bf16.msra.mxu1 %v10140_v62  ;;  %10047 = vmatprep.subr.bf16.mxu0 %v10046_v63  ;;  %v10062_v62 = vpack.c.bf16 %v1083_v53, %v1059_v51  ;;  %v1058_v63 = vld [vmem:[%s19871_s2 + $0x1120] sm:$0xff]  ;;  %v1275_v51 = vld [vmem:[%s19871_s2 + $0x17e8] sm:$0xff]  ;;  %v1253_v53 = vld [vmem:[%s19871_s2 + $0x1738] sm:$0xff] }
 0x213   : > { %10143 = vmatprep.subr.bf16.mxu1 %v10142_v3  ;;  %v1084_v3 = vld [vmem:[%s19871_s2 + $0x11f0] sm:$0xff]  ;;  %v10064_v7 = vpack.c.bf16 %v1082_v0, %v1058_v63  ;;  %v1274_v63 = vld [vmem:[%s19871_s2 + $0x17e0] sm:$0xff] }
 0x214   : > { %v1252_v0 = vld [vmem:[%s19871_s2 + $0x1730] sm:$0xff] }
 0x215   : > { %10049 = vmatpush1.bf16.msra.mxu0 %v10048_v8  ;;  %v10160_v8 = vpack.c.bf16 %v1084_v3, %v1060_v1  ;;  %v10174_v1 = vpack.c.bf16 %v1277_v52, %v1253_v53  ;;  %v1299_v3 = vld [vmem:[%s19871_s2 + $0x18a8] sm:$0xff] }
 0x216   : > { %10145 = vmatpush1.bf16.msra.mxu1 %v10144_v9  ;;  %10051 = vmatprep.subr.bf16.mxu0 %v10050_v10  ;;  %v10066_v9 = vpack.c.bf16 %v1131_v4, %v1107_v36  ;;  %v1106_v10 = vld [vmem:[%s19871_s2 + $0x12a0] sm:$0xff]  ;;  %v1323_v36 = vld [vmem:[%s19871_s2 + $0x1968] sm:$0xff]  ;;  %v1301_v4 = vld [vmem:[%s19871_s2 + $0x18b8] sm:$0xff] }
 0x217   : > { %10147 = vmatprep.subr.bf16.mxu1 %v10146_v14  ;;  %v1132_v14 = vld [vmem:[%s19871_s2 + $0x1370] sm:$0xff]  ;;  %v10068_v20 = vpack.c.bf16 %v1130_v11, %v1106_v10  ;;  %v1322_v10 = vld [vmem:[%s19871_s2 + $0x1960] sm:$0xff] }
 0x218   : > { %v1300_v11 = vld [vmem:[%s19871_s2 + $0x18b0] sm:$0xff] }
 0x219   : > { %10053 = vmatpush1.bf16.msra.mxu0 %v10052_v21  ;;  %v10164_v21 = vpack.c.bf16 %v1132_v14, %v1108_v12  ;;  %v10178_v12 = vpack.c.bf16 %v1325_v5, %v1301_v4  ;;  %v1347_v14 = vld [vmem:[%s19871_s2 + $0x1a28] sm:$0xff] }
 0x21a   : > { %10149 = vmatpush1.bf16.msra.mxu1 %v10148_v16  ;;  %10055 = vmatprep.subr.bf16.mxu0 %v10054_v29  ;;  %v10070_v16 = vpack.c.bf16 %v1179_v18, %v1155_v17  ;;  %v1154_v29 = vld [vmem:[%s19871_s2 + $0x1420] sm:$0xff]  ;;  %v1371_v17 = vld [vmem:[%s19871_s2 + $0x1ae8] sm:$0xff]  ;;  %v1349_v18 = vld [vmem:[%s19871_s2 + $0x1a38] sm:$0xff] }
 0x21b   : > { %10151 = vmatprep.subr.bf16.mxu1 %v10150_v34  ;;  %v1180_v34 = vld [vmem:[%s19871_s2 + $0x14f0] sm:$0xff]  ;;  %v10072_v41 = vpack.c.bf16 %v1178_v30, %v1154_v29  ;;  %v1370_v29 = vld [vmem:[%s19871_s2 + $0x1ae0] sm:$0xff] }
 0x21c   : > { %v1348_v30 = vld [vmem:[%s19871_s2 + $0x1a30] sm:$0xff] }
 0x21d   : > { %10057 = vmatpush1.bf16.msra.mxu0 %v10056_v42  ;;  %v10168_v42 = vpack.c.bf16 %v1180_v34, %v1156_v23  ;;  %v10182_v23 = vpack.c.bf16 %v1373_v19, %v1349_v18  ;;  %v1395_v34 = vld [vmem:[%s19871_s2 + $0x1ba8] sm:$0xff] }
 0x21e   : > { %10153 = vmatpush1.bf16.msra.mxu1 %v10152_v43  ;;  %10059 = vmatprep.subr.bf16.mxu0 %v10058_v44  ;;  %v10074_v43 = vpack.c.bf16 %v1227_v37, %v1203_v35  ;;  %v1202_v44 = vld [vmem:[%s19871_s2 + $0x15a0] sm:$0xff]  ;;  %v1419_v35 = vld [vmem:[%s19871_s2 + $0x1c68] sm:$0xff]  ;;  %v1397_v37 = vld [vmem:[%s19871_s2 + $0x1bb8] sm:$0xff] }
 0x21f   : > { %10155 = vmatprep.subr.bf16.mxu1 %v10154_v48  ;;  %v1228_v48 = vld [vmem:[%s19871_s2 + $0x1670] sm:$0xff]  ;;  %v10076_v57 = vpack.c.bf16 %v1226_v56, %v1202_v44  ;;  %v1418_v44 = vld [vmem:[%s19871_s2 + $0x1c60] sm:$0xff] }
 0x220   : > { %v1396_v56 = vld [vmem:[%s19871_s2 + $0x1bb0] sm:$0xff] }
 0x221   : > { %10061 = vmatpush1.bf16.msra.mxu0 %v10060_v58  ;;  %v10172_v58 = vpack.c.bf16 %v1228_v48, %v1204_v46  ;;  %v10186_v46 = vpack.c.bf16 %v1421_v38, %v1397_v37  ;;  %v1467_v48 = vld [vmem:[%s19871_s2 + $0x1de8] sm:$0xff] }
 0x222   : > { %10157 = vmatpush1.bf16.msra.mxu1 %v10156_v61  ;;  %10063 = vmatprep.subr.bf16.mxu0 %v10062_v62  ;;  %v10078_v61 = vpack.c.bf16 %v1275_v51, %v1251_v49  ;;  %v1250_v62 = vld [vmem:[%s19871_s2 + $0x1720] sm:$0xff]  ;;  %v1445_v49 = vld [vmem:[%s19871_s2 + $0x1d38] sm:$0xff] }
 0x223   : > { %10159 = vmatprep.subr.bf16.mxu1 %v10158_v2  ;;  %v1276_v2 = vld [vmem:[%s19871_s2 + $0x17f0] sm:$0xff]  ;;  %v10080_v6 = vpack.c.bf16 %v1274_v63, %v1250_v62  ;;  %v1469_v51 = vld [vmem:[%s19871_s2 + $0x1df8] sm:$0xff] }
 0x224   : > { %v1444_v62 = vld [vmem:[%s19871_s2 + $0x1d30] sm:$0xff]  ;;  %v10190_v63 = vpack.c.bf16 %v1469_v51, %v1445_v49  ;;  %v1668_v51 = vlaneseq }
 0x225   : > { %10065 = vmatpush1.bf16.msra.mxu0 %v10064_v7  ;;  %v10176_v7 = vpack.c.bf16 %v1276_v2, %v1252_v0  ;;  %v1468_v0 = vld [vmem:[%s19871_s2 + $0x1df0] sm:$0xff]  ;;  %v1515_v2 = vld [vmem:[%s19871_s2 + $0x1f68] sm:$0xff] }
 0x226   : > { %10161 = vmatpush1.bf16.msra.mxu1 %v10160_v8  ;;  %10067 = vmatprep.subr.bf16.mxu0 %v10066_v9  ;;  %v10082_v8 = vpack.c.bf16 %v1323_v36, %v1299_v3  ;;  %v1298_v9 = vld [vmem:[%s19871_s2 + $0x18a0] sm:$0xff]  ;;  %v1493_v3 = vld [vmem:[%s19871_s2 + $0x1eb8] sm:$0xff]  ;;  %v10192_v5 = vpack.c.bf16 %v1468_v0, %v1444_v62  ;;  %v1636_v62 = vld [vmem:[%s19871_s2 + $0x2330] sm:$0xff] }
 0x227   : > { %10163 = vmatprep.subr.bf16.mxu1 %v10162_v13  ;;  %v1324_v13 = vld [vmem:[%s19871_s2 + $0x1970] sm:$0xff]  ;;  %v10084_v15 = vpack.c.bf16 %v1322_v10, %v1298_v9  ;;  %v1517_v36 = vld [vmem:[%s19871_s2 + $0x1f78] sm:$0xff] }
 0x228   : > { %v1492_v9 = vld [vmem:[%s19871_s2 + $0x1eb0] sm:$0xff]  ;;  %v10194_v10 = vpack.c.bf16 %v1517_v36, %v1493_v3  ;;  %v15486_v3 = vld [vmem:[%s19872_s3 + $0x8] sm:$0xff] }
 0x229   : > { %10069 = vmatpush1.bf16.msra.mxu0 %v10068_v20  ;;  %v10180_v20 = vpack.c.bf16 %v1324_v13, %v1300_v11  ;;  %v1516_v11 = vld [vmem:[%s19871_s2 + $0x1f70] sm:$0xff]  ;;  %v1563_v13 = vld [vmem:[%s19871_s2 + $0x20e8] sm:$0xff] }
 0x22a   : > { %10165 = vmatpush1.bf16.msra.mxu1 %v10164_v21  ;;  %10071 = vmatprep.subr.bf16.mxu0 %v10070_v16  ;;  %v10086_v21 = vpack.c.bf16 %v1371_v17, %v1347_v14  ;;  %v1346_v16 = vld [vmem:[%s19871_s2 + $0x1a20] sm:$0xff]  ;;  %v1541_v14 = vld [vmem:[%s19871_s2 + $0x2038] sm:$0xff]  ;;  %v10196_v19 = vpack.c.bf16 %v1516_v11, %v1492_v9 }
 0x22b   : > { %10167 = vmatprep.subr.bf16.mxu1 %v10166_v33  ;;  %v1372_v33 = vld [vmem:[%s19871_s2 + $0x1af0] sm:$0xff]  ;;  %v10088_v40 = vpack.c.bf16 %v1370_v29, %v1346_v16  ;;  %v1565_v17 = vld [vmem:[%s19871_s2 + $0x20f8] sm:$0xff] }
 0x22c   : > { %v1540_v16 = vld [vmem:[%s19871_s2 + $0x2030] sm:$0xff]  ;;  %v10198_v29 = vpack.c.bf16 %v1565_v17, %v1541_v14 }
 0x22d   : > { %10073 = vmatpush1.bf16.msra.mxu0 %v10072_v41  ;;  %v10184_v41 = vpack.c.bf16 %v1372_v33, %v1348_v30  ;;  %v1564_v30 = vld [vmem:[%s19871_s2 + $0x20f0] sm:$0xff]  ;;  %v1611_v33 = vld [vmem:[%s19871_s2 + $0x2268] sm:$0xff] }
 0x22e   : > { %10169 = vmatpush1.bf16.msra.mxu1 %v10168_v42  ;;  %10075 = vmatprep.subr.bf16.mxu0 %v10074_v43  ;;  %v10090_v42 = vpack.c.bf16 %v1419_v35, %v1395_v34  ;;  %v1394_v43 = vld [vmem:[%s19871_s2 + $0x1ba0] sm:$0xff]  ;;  %v1589_v34 = vld [vmem:[%s19871_s2 + $0x21b8] sm:$0xff]  ;;  %v10200_v38 = vpack.c.bf16 %v1564_v30, %v1540_v16 }
 0x22f   : > { %10171 = vmatprep.subr.bf16.mxu1 %v10170_v47  ;;  %v1443_v47 = vld [vmem:[%s19871_s2 + $0x1d28] sm:$0xff]  ;;  %v10092_v53 = vpack.c.bf16 %v1418_v44, %v1394_v43  ;;  %v1613_v35 = vld [vmem:[%s19871_s2 + $0x2278] sm:$0xff]  ;;  %v1588_v43 = vld [vmem:[%s19871_s2 + $0x21b0] sm:$0xff] }
 0x230   : > { %v10202_v44 = vpack.c.bf16 %v1613_v35, %v1589_v34 }
 0x231   : > { %10077 = vmatpush1.bf16.msra.mxu0 %v10076_v57  ;;  %v10094_v57 = vpack.c.bf16 %v1467_v48, %v1443_v47  ;;  %v1637_v47 = vld [vmem:[%s19871_s2 + $0x2338] sm:$0xff] }
 0x232   : > { %10173 = vmatpush1.bf16.msra.mxu1 %v10172_v58  ;;  %10079 = vmatprep.subr.bf16.mxu0 %v10078_v61  ;;  %v1442_v58 = vld [vmem:[%s19871_s2 + $0x1d20] sm:$0xff]  ;;  %v1661_v48 = vld [vmem:[%s19871_s2 + $0x23f8] sm:$0xff] }
 0x233   : > { %10175 = vmatprep.subr.bf16.mxu1 %v10174_v1  ;;  %v1466_v61 = vld [vmem:[%s19871_s2 + $0x1de0] sm:$0xff]  ;;  %v1491_v1 = vld [vmem:[%s19871_s2 + $0x1ea8] sm:$0xff] }
 0x234   : > { %v10096_v4 = vpack.c.bf16 %v1466_v61, %v1442_v58  ;;  %v1658_v58 = vld [vmem:[%s19871_s2 + $0x23e0] sm:$0xff]  ;;  %v10206_v61 = vpack.c.bf16 %v1661_v48, %v1637_v47 }
 0x235   : > { %10081 = vmatpush1.bf16.msra.mxu0 %v10080_v6  ;;  %v10098_v6 = vpack.c.bf16 %v1515_v2, %v1491_v1  ;;  %v15481_v1 = vshrl.u32 %v1668_v51, 7  ;;  %v11785_v51 = vmov -1e+30  }
 0x236   : > { %10177 = vmatpush1.bf16.msra.mxu1 %v10176_v7  ;;  %10083 = vmatprep.subr.bf16.mxu0 %v10082_v8  ;;  %v1490_v7 = vld [vmem:[%s19871_s2 + $0x1ea0] sm:$0xff] }
 0x237   : > { %10179 = vmatprep.subr.bf16.mxu1 %v10178_v12  ;;  %v1514_v8 = vld [vmem:[%s19871_s2 + $0x1f60] sm:$0xff]  ;;  %v1539_v12 = vld [vmem:[%s19871_s2 + $0x2028] sm:$0xff]  ;;  %v15489_v36 = vsub.s32 3, %v15481_v1 }
 0x238   : > { %3273 = vmatmul.mubr.f32.vlgmr.msra.gmra.mrb[10].mxu0 %v14742_v55  ;;  %v10100_v18 = vpack.c.bf16 %v1514_v8, %v1490_v7 }
 0x239   : > { %10085 = vmatpush1.bf16.msra.mxu0 %v10084_v15  ;;  %3415 = vmatmul.mubr.f32.vlgmr.msra.gmra.mrb[10].mxu1 %v14742_v55  ;;  %v1420_v55 = vld [vmem:[%s19871_s2 + $0x1c70] sm:$0xff]  ;;  %v10102_v15 = vpack.c.bf16 %v1563_v13, %v1539_v12 }
 0x23a   : > { %10181 = vmatpush1.bf16.msra.mxu1 %v10180_v20  ;;  %10087 = vmatprep.subr.bf16.mxu0 %v10086_v21  ;;  %v10188_v52 = vpack.c.bf16 %v1420_v55, %v1396_v56  ;;  %v1538_v20 = vld [vmem:[%s19871_s2 + $0x2020] sm:$0xff]  ;;  %v1612_v56 = vld [vmem:[%s19871_s2 + $0x2270] sm:$0xff]  ;;  %v1659_v55 = vld [vmem:[%s19871_s2 + $0x23e8] sm:$0xff] }
 0x23b   : > { %10183 = vmatprep.subr.bf16.mxu1 %v10182_v23  ;;  %3485 = vmatprep.mubr.f32.mxu1 %v11783_v39  ;;  %v1562_v21 = vld [vmem:[%s19871_s2 + $0x20e0] sm:$0xff]  ;;  %v1587_v23 = vld [vmem:[%s19871_s2 + $0x21a8] sm:$0xff] }
 0x23c   : > { %3343 = vmatprep.mubr.f32.mxu0 %v11783_v39  ;;  %v10104_v37 = vpack.c.bf16 %v1562_v21, %v1538_v20  ;;  %v15538_v20 = vsub.s32 6, %v15481_v1 }
 0x23d   : > { %10089 = vmatpush1.bf16.msra.mxu0 %v10088_v40  ;;  %v10106_v40 = vpack.c.bf16 %v1611_v33, %v1587_v23  ;;  %v15547_v23 = vsub.s32 7, %v15481_v1 }
 0x23e   : > { %10185 = vmatpush1.bf16.msra.mxu1 %v10184_v41  ;;  %10091 = vmatprep.subr.bf16.mxu0 %v10090_v42  ;;  %v1586_v41 = vld [vmem:[%s19871_s2 + $0x21a0] sm:$0xff]  ;;  %v1727_v30 = vrot.slane %v15486_v3, %v15538_v20 }
 0x23f   : > { %10187 = vmatprep.subr.bf16.mxu1 %v10186_v46  ;;  %v1610_v42 = vld [vmem:[%s19871_s2 + $0x2260] sm:$0xff]  ;;  %v1635_v46 = vld [vmem:[%s19871_s2 + $0x2328] sm:$0xff]  ;;  %v1731_v35 = vrot.slane %v15486_v3, %v15547_v23 }
 0x240   : > { %v10108_v49 = vpack.c.bf16 %v1610_v42, %v1586_v41  ;;  %v15569_v41 = vld [vmem:[%s19872_s3 + $0x10] sm:$0xff] }
 0x241   : > { %10093 = vmatpush1.bf16.msra.mxu0 %v10092_v53  ;;  %v10204_v53 = vpack.c.bf16 %v1612_v56, %v1588_v43 }
 0x242   : > { %10189 = vmatpush1.bf16.msra.mxu1 %v10188_v52  ;;  %10095 = vmatprep.subr.bf16.mxu0 %v10094_v57  ;;  %v10110_v52 = vpack.c.bf16 %v1659_v55, %v1635_v46  ;;  %v1634_v57 = vld [vmem:[%s19871_s2 + $0x2320] sm:$0xff] }
 0x243   : > { %10191 = vmatprep.subr.bf16.mxu1 %v10190_v63  ;;  %v1660_v63 = vld [vmem:[%s19871_s2 + $0x23f0] sm:$0xff]  ;;  %v10112_v0 = vpack.c.bf16 %v1658_v58, %v1634_v57 }
 0x244   : > { %v10208_v2 = vpack.c.bf16 %v1660_v63, %v1636_v62 }
 0x245   : > { %10097 = vmatpush1.bf16.msra.mxu0 %v10096_v4  ;;  %v15493_v4 = vsub.s32 0, %v15481_v1 }
 0x246   : > { %10193 = vmatpush1.bf16.msra.mxu1 %v10192_v5  ;;  %10099 = vmatprep.subr.bf16.mxu0 %v10098_v6  ;;  %v15499_v5 = vld [vmem:[%s19872_s3] sm:$0xff]  ;;  %v1715_v6 = vrot.slane %v15486_v3, %v15489_v36 }
 0x247   : > { %10195 = vmatprep.subr.bf16.mxu1 %v10194_v10  ;;  %v1703_v7 = vrot.slane %v15486_v3, %v15493_v4  ;;  %v1683_v8 = vrot.slane %v15499_v5, %v15489_v36  ;;  %v1671_v9 = vrot.slane %v15499_v5, %v15493_v4  ;;  %v1695_v33 = vrot.slane %v15499_v5, %v15538_v20 }
 0x248   : > { %v11525_v10 = vadd.f32 %v15079_v60, %v1715_v6 }
 0x249   : > { %10101 = vmatpush1.bf16.msra.mxu0 %v10100_v18  ;;  %v11522_v11 = vadd.f32 %v15067_v54, %v1703_v7  ;;  %v11514_v12 = vadd.f32 %v13874_v22, %v1671_v9  ;;  %v15526_v54 = vsub.s32 4, %v15481_v1 }
 0x24a   : > { %10197 = vmatpush1.bf16.msra.mxu1 %v10196_v19  ;;  %10103 = vmatprep.subr.bf16.mxu0 %v10102_v15 }
 0x24b   : > { %10199 = vmatprep.subr.bf16.mxu1 %v10198_v29  ;;  %v1719_v60 = vrot.slane %v15486_v3, %v15526_v54  ;;  %v1687_v13 = vrot.slane %v15499_v5, %v15526_v54 }
 0x24d   : > { %10105 = vmatpush1.bf16.msra.mxu0 %v10104_v37  ;;  %v11518_v16 = vadd.f32 %v14469_v25, %v1687_v13  ;;  %v11520_v37 = vadd.f32 %v14471_v26, %v1695_v33  ;;  %v1735_v26 = vrot.slane %v15569_v41, %v15493_v4 }
 0x24e   : > { %10201 = vmatpush1.bf16.msra.mxu1 %v10200_v38  ;;  %10107 = vmatprep.subr.bf16.mxu0 %v10106_v40  ;;  %v1699_v38 = vrot.slane %v15499_v5, %v15547_v23 }
 0x24f   : > { %10203 = vmatprep.subr.bf16.mxu1 %v10202_v44 }
 0x250   : > { %v11521_v40 = vadd.f32 %v14481_v32, %v1699_v38  ;;  %v509_v32 = vld [vmem:[%s15582_s18] sm:$0x1] }
 0x251   : > { %10109 = vmatpush1.bf16.msra.mxu0 %v10108_v49  ;;  %vm3492_vm1 = vcmp.gt.f32.partialorder %v509_v32, 0.0 }
 0x252   : > { %10205 = vmatpush1.bf16.msra.mxu1 %v10204_v53  ;;  %10111 = vmatprep.subr.bf16.mxu0 %v10110_v52  ;;  %v3493_v53 = vsel %vm3492_vm1, 0.0, %v11785_v51 }
 0x253   : > { %10207 = vmatprep.subr.bf16.mxu1 %v10206_v61  ;;  %v15594_v52 = vrot.slane %v3493_v53, %v15493_v4 }
 0x255   : > { %10113 = vmatpush1.bf16.msra.mxu0 %v10112_v0 }
 0x256   : > { %10209 = vmatpush1.bf16.msra.mxu1 %v10208_v2  ;;  %8968 = vmatprep.subr.mxu0 %v11783_v39 }
 0x257   : > { %8938 = vmatprep.subr.mxu1 %v11783_v39 }
 0x258   : > { %3344 = vmatmul.mubr.f32.vlgmr.msra.gmra.mrb[10].mxu0 %v14941_v45 }
 0x259   : > { %3486 = vmatmul.mubr.f32.vlgmr.msra.gmra.mrb[10].mxu1 %v14941_v45  ;;  %8970 = vmatprep.mubr.msk.f32.mxu0 %vm11784_vm0, %v11783_v39  ;;  %v11517_v45 = vadd.f32 %v13886_v28, %v1683_v8  ;;  %v15529_v28 = vsub.s32 5, %v15481_v1 }
 0x25a   : > { %8940 = vmatprep.mubr.msk.f32.mxu1 %vm11784_vm0, %v11783_v39 }
 0x25b   : > { %v1723_v22 = vrot.slane %v15486_v3, %v15529_v28  ;;  %v1691_v29 = vrot.slane %v15499_v5, %v15529_v28 }
 0x25d   : > { %v11519_v25 = vadd.f32 %v14479_v31, %v1691_v29 }
 0x25e   : > { %8969 = vmatpush3.xpose.msra.mxu0 %v11525_v10 }
 0x25f   : > { %8939 = vmatpush3.xpose.msra.mxu1 %v11522_v11  ;;  %8978 = vmatprep.subr.mxu0 %v11783_v39 }
 0x260   : > { %8943 = vmatprep.subr.mxu1 %v11783_v39 }
 0x261   : > { %8971 = vmatmul.mubr.f32.vlgmr.msra.gmra.mrb[12].mxu0 %v11517_v45 }
 0x262   : > { %8941 = vmatmul.mubr.f32.vlgmr.msra.gmra.mrb[12].mxu1 %v11514_v12  ;;  %8980 = vmatprep.mubr.msk.f32.mxu0 %vm11784_vm0, %v11783_v39 }
 0x263   : > { %8945 = vmatprep.mubr.msk.f32.mxu1 %vm11784_vm0, %v11783_v39 }
 0x26b   : > { %v2777_v14 = vpop.f32.mrb[6].mxu0 }
 0x26c   : > { %v11526_v17 = vadd.f32 %v2777_v14, %v1719_v60  ;;  %v2919_v18 = vpop.f32.mrb[6].mxu1  ;;  %v2779_v19 = vpop.f32.mrb[7].mxu0 }
 0x26d   : > { %v2921_v15 = vpop.f32.mrb[7].mxu1  ;;  %v11527_v21 = vadd.f32 %v2779_v19, %v1723_v22  ;;  %v11528_v34 = vadd.f32 %v2919_v18, %v1727_v30  ;;  %v15606_v18 = vsub.s32 1, %v15481_v1 }
 0x26e   : > { %8979 = vmatpush3.xpose.msra.mxu0 %v11526_v17  ;;  %v11529_v31 = vadd.f32 %v2921_v15, %v1731_v35 }
 0x26f   : > { %8988 = vmatprep.subr.mxu0 %v11783_v39  ;;  %v1707_v19 = vrot.slane %v15486_v3, %v15606_v18  ;;  %v1739_v30 = vrot.slane %v15569_v41, %v15606_v18 }
 0x271   : > { %8981 = vmatmul.mubr.f32.vlgmr.msra.gmra.mrb[14].mxu0 %v11518_v16  ;;  %v11523_v29 = vadd.f32 %v15077_v59, %v1707_v19 }
 0x272   : > { %8989 = vmatpush3.xpose.msra.mxu0 %v11527_v21  ;;  %8990 = vmatprep.mubr.msk.f32.mxu0 %vm11784_vm0, %v11783_v39  ;;  %v1675_v21 = vrot.slane %v15499_v5, %v15606_v18 }
 0x273   : > { %8998 = vmatprep.subr.mxu0 %v11783_v39 }
 0x274   : > { %v11515_v33 = vadd.f32 %v13884_v27, %v1675_v21  ;;  %v4743_v21 = vld [vmem:[%s19873_s4 + $0x18] sm:$0xff] }
 0x275   : > { %8991 = vmatmul.mubr.f32.vlgmr.msra.gmra.mrb[16].mxu0 %v11519_v25 }
 0x276   : > { %8999 = vmatpush3.xpose.msra.mxu0 %v11528_v34  ;;  %9000 = vmatprep.mubr.msk.f32.mxu0 %vm11784_vm0, %v11783_v39 }
 0x277   : > { %9008 = vmatprep.subr.mxu0 %v11783_v39 }
 0x279   : > { %9001 = vmatmul.mubr.f32.vlgmr.msra.gmra.mrb[18].mxu0 %v11520_v37 }
 0x27a   : > { %9009 = vmatpush3.xpose.msra.mxu0 %v11529_v31  ;;  %9010 = vmatprep.mubr.msk.f32.mxu0 %vm11784_vm0, %v11783_v39 }
 0x27d   : > { %9011 = vmatmul.mubr.f32.vlgmr.msra.gmra.mrb[20].mxu0 %v11521_v40 }
 0x2cb   : > { %v3061_v42 = vpop.f32.mrb[8].mxu0 }
 0x2cc   : > { %v15573_v43 = vpop.f32.mrb[8].mxu1  ;;  %v11530_v44 = vadd.f32 %v3061_v42, %v1735_v26  ;;  %v3063_v56 = vpop.f32.mrb[9].mxu0 }
 0x2cd   : > { %v15575_v46 = vpop.f32.mrb[9].mxu1  ;;  %v11531_v25 = vadd.f32 %v3063_v56, %v1739_v30  ;;  %v4750_v30 = vld [vmem:[%s19873_s4 + $0x50] sm:$0xff] }
 0x2ce   : > { %8944 = vmatpush3.msra.mxu1 %v11530_v44 }
 0x2cf   : > { %8948 = vmatprep.subr.mxu1 %v11783_v39 }
 0x32b   : > { %v15585_v55 = vpop.f32.mrb[10].mxu0 }
 0x32c   : > { %v15587_v47 = vpop.f32.mrb[10].mxu1  ;;  %v15589_v48 = vpop.f32.mrb[11].mxu0 }
 0x32d   : > { %v15591_v49 = vpop.f32.mrb[11].mxu1 }
 0x334   : > { %v4029_v57 = vpop.f32.mrb[12].mxu0 }
 0x335   : > { %v3566_v58 = vpop.f32.mrb[12].mxu1  ;;  %v8972_v61 = vpop.f32.mrb[13].mxu0  ;;  %v4030_v44 = vadd.f32 %v4029_v57, %v15594_v52 }
 0x336   : > { %v3567_v62 = vadd.f32 %v3566_v58, %v15594_v52  ;;  %v8942_v63 = vpop.f32.mrb[13].mxu1 }
 0x337   : > { %v4033_v51 = vsel %vm3570_vm2, %v4030_v44, -inf  ;;  %v15633_v63 = vsub.s32 2, %v15481_v1 }
 0x338   : > { %v3571_v0 = vsel %vm3570_vm2, %v3567_v62, -inf }
 0x339   : > { %3572 = vmax.xlane.f32.xlu0 %v3571_v0 }
 0x344   : > { %v15598_v2 = vpop.f32.mrb[14].mxu0 }
 0x345   : > { %v8982_v6 = vpop.f32.mrb[15].mxu0 }
 0x346   : > { %v1711_v6 = vrot.slane %v15486_v3, %v15633_v63 }
 0x348   : > { %v4337_v7 = vpop.f32.mrb[16].mxu0 }
 0x349   : > { %v8992_v8 = vpop.f32.mrb[17].mxu0  ;;  %v4338_v32 = vadd.f32 %v4337_v7, %v15594_v52 }
 0x34b   : > { %v4341_v53 = vsel %vm3570_vm2, %v4338_v32, -inf }
 0x34c   : > { %v15600_v9 = vpop.f32.mrb[18].mxu0 }
 0x34d   : > { %v9002_v10 = vpop.f32.mrb[19].mxu0 }
 0x350   : > { %v15602_v11 = vpop.f32.mrb[20].mxu0 }
 0x351   : > { %v9012_v45 = vpop.f32.mrb[21].mxu0 }
 0x352   : > { %v1679_v45 = vrot.slane %v15499_v5, %v15633_v63 }
 0x354   : > { %v11516_v1 = vadd.f32 %v13876_v24, %v1679_v45  ;;  %v4770_v45 = vld [vmem:[%s19873_s4 + $0xf0] sm:$0xff] }
 0x3c6   : > { %v3573_v12 = vpop.xlane.xlu0 %3572 }
 0x3c7   : > { %v3574_v60 = vsub.f32 %v3567_v62, %v3573_v12 }
 0x3c9   : > { %v3575_v22 = vmul.f32 1.442695, %v3574_v60  ;;  %v11524_v60 = vadd.f32 %v15069_v50, %v1711_v6  ;;  %v15654_v50 = vadd.f32 %v15602_v11, %v15594_v52  ;;  %v4741_v11 = vld [vmem:[%s19873_s4 + $0x8] sm:$0xff] }
 0x3cb   : > { %11642 = vpow2.f32 %v3575_v22  ;;  %v1743_v22 = vrot.slane %v15569_v41, %v15633_v63  ;;  %v4649_v24 = vsel %vm3570_vm2, %v15654_v50, -inf }
 0x3cd   : > { %v11532_v3 = vadd.f32 %v15573_v43, %v1743_v22  ;;  %v4777_v22 = vld [vmem:[%s19873_s4 + $0x128] sm:$0xff] }
 0x3d5   : > { %v11643_v13 = vpop.eup %11642 }
 0x3d6   : > { %v3577_v14 = vsel %vm3570_vm2, %v11643_v13, 0.0 }
 0x3d7   : > { %3578 = vadd.xlane.f32.xlu0 %v3577_v14 }
 0x464   : > { %v3579_v17 = vpop.xlane.xlu0 %3578 }
 0x465   : > { %11644 = vrcp.f32 %v3579_v17  ;;  %v4744_v17 = vld [vmem:[%s19873_s4 + $0x20] sm:$0xff] }
 0x466   : > { %v10210_v19 = vpack.c.bf16 %v4744_v17, %v4741_v11  ;;  %v4786_v11 = vld [vmem:[%s19873_s4 + $0x170] sm:$0xff] }
 0x468   : > { %10211 = vmatprep.subr.bf16.mxu0 %v10210_v19 }
 0x46f   : > { %v11645_v15 = vpop.eup %11644 }
 0x470   : > { %v3581_v16 = vmul.f32 %v11645_v15, %v11643_v13  ;;  %v4740_v15 = vld [vmem:[%s19873_s4] sm:$0xff] }
 0x472   : > { %8946 = vmatmul.mubr.msk.f32.vlgmr.msra.gmra.mrb[14].mxu1 %vm3570_vm2, %v3581_v16  ;;  %v10212_v16 = vpack.c.bf16 %v4743_v21, %v4740_v15  ;;  %v4782_v15 = vld [vmem:[%s19873_s4 + $0x150] sm:$0xff]  ;;  %v4785_v21 = vld [vmem:[%s19873_s4 + $0x168] sm:$0xff] }
 0x473   : > { %8949 = vmatpush3.xpose.msra.mxu1 %v11523_v29  ;;  %8950 = vmatprep.mubr.msk.f32.mxu1 %vm11784_vm0, %v11783_v39  ;;  %v4747_v29 = vld [vmem:[%s19873_s4 + $0x38] sm:$0xff] }
 0x474   : > { %8953 = vmatprep.subr.mxu1 %v11783_v39  ;;  %10213 = vmatpush1.bf16.msra.mxu0 %v10212_v16  ;;  %v4789_v16 = vld [vmem:[%s19873_s4 + $0x188] sm:$0xff] }
 0x476   : > { %8951 = vmatmul.mubr.f32.vlgmr.msra.gmra.mrb[16].mxu1 %v11515_v33  ;;  %v10214_v33 = vpack.c.bf16 %v4750_v30, %v4747_v29  ;;  %v4792_v29 = vld [vmem:[%s19873_s4 + $0x1a0] sm:$0xff]  ;;  %v10240_v30 = vpack.c.bf16 %v4785_v21, %v4782_v15  ;;  %v4827_v21 = vld [vmem:[%s19873_s4 + $0x2b8] sm:$0xff] }
 0x477   : > { %8954 = vmatpush3.msra.mxu1 %v11531_v25  ;;  %8955 = vmatprep.mubr.msk.f32.mxu1 %vm11784_vm0, %v11783_v39  ;;  %v4746_v25 = vld [vmem:[%s19873_s4 + $0x30] sm:$0xff]  ;;  %v4824_v15 = vld [vmem:[%s19873_s4 + $0x2a0] sm:$0xff] }
 0x478   : > { %8958 = vmatprep.subr.mxu1 %v11783_v39  ;;  %10215 = vmatprep.subr.bf16.mxu0 %v10214_v33  ;;  %v10242_v33 = vpack.c.bf16 %v4792_v29, %v4789_v16  ;;  %v4831_v16 = vld [vmem:[%s19873_s4 + $0x2d8] sm:$0xff]  ;;  %v4834_v29 = vld [vmem:[%s19873_s4 + $0x2f0] sm:$0xff] }
 0x545   : > { %v15623_v59 = vpop.f32.mrb[14].mxu1 }
 0x546   : > { %v8947_v34 = vpop.f32.mrb[15].mxu1 }
 0x547   : > { %v4749_v34 = vld [vmem:[%s19873_s4 + $0x48] sm:$0xff] }
 0x549   : > { %v3721_v35 = vpop.f32.mrb[16].mxu1 }
 0x54a   : > { %v3722_v37 = vadd.f32 %v3721_v35, %v15594_v52  ;;  %v8952_v38 = vpop.f32.mrb[17].mxu1  ;;  %v10216_v35 = vpack.c.bf16 %v4749_v34, %v4746_v25  ;;  %v4788_v25 = vld [vmem:[%s19873_s4 + $0x180] sm:$0xff]  ;;  %v4791_v34 = vld [vmem:[%s19873_s4 + $0x198] sm:$0xff] }
 0x54b   : > { %v4756_v38 = vld [vmem:[%s19873_s4 + $0x80] sm:$0xff] }
 0x54c   : > { %v3725_v31 = vsel %vm3570_vm2, %v3722_v37, -inf  ;;  %10217 = vmatpush1.bf16.msra.mxu0 %v10216_v35  ;;  %v4795_v35 = vld [vmem:[%s19873_s4 + $0x1b8] sm:$0xff] }
 0x54d   : > { %3726 = vmax.xlane.f32.xlu1 %v3725_v31 }
 0x5da   : > { %v3727_v27 = vpop.xlane.xlu1 %3726 }
 0x5db   : > { %v3728_v40 = vsub.f32 %v3722_v37, %v3727_v27  ;;  %v4753_v37 = vld [vmem:[%s19873_s4 + $0x68] sm:$0xff]  ;;  %v4752_v27 = vld [vmem:[%s19873_s4 + $0x60] sm:$0xff] }
 0x5dc   : > { %v10218_v31 = vpack.c.bf16 %v4756_v38, %v4753_v37  ;;  %v4798_v37 = vld [vmem:[%s19873_s4 + $0x1d0] sm:$0xff]  ;;  %v10244_v38 = vpack.c.bf16 %v4791_v34, %v4788_v25  ;;  %v4833_v34 = vld [vmem:[%s19873_s4 + $0x2e8] sm:$0xff] }
 0x5dd   : > { %v3729_v26 = vmul.f32 1.442695, %v3728_v40  ;;  %v4755_v40 = vld [vmem:[%s19873_s4 + $0x78] sm:$0xff]  ;;  %v4830_v25 = vld [vmem:[%s19873_s4 + $0x2d0] sm:$0xff] }
 0x5de   : > { %10219 = vmatprep.subr.bf16.mxu0 %v10218_v31  ;;  %v10246_v31 = vpack.c.bf16 %v4798_v37, %v4795_v35  ;;  %v10272_v35 = vpack.c.bf16 %v4833_v34, %v4830_v25  ;;  %v1759_v25 = vrot.slane %v15569_v41, %v15538_v20 }
 0x5df   : > { %11646 = vpow2.f32 %v3729_v26  ;;  %v10220_v26 = vpack.c.bf16 %v4755_v40, %v4752_v27  ;;  %v4794_v27 = vld [vmem:[%s19873_s4 + $0x1b0] sm:$0xff]  ;;  %v4797_v40 = vld [vmem:[%s19873_s4 + $0x1c8] sm:$0xff] }
 0x5e1   : > { %10221 = vmatpush1.bf16.msra.mxu0 %v10220_v26  ;;  %v4801_v26 = vld [vmem:[%s19873_s4 + $0x1e8] sm:$0xff] }
 0x5e9   : > { %v11647_v42 = vpop.eup %11646 }
 0x5ea   : > { %v3731_v56 = vsel %vm3570_vm2, %v11647_v42, 0.0 }
 0x5eb   : > { %3732 = vadd.xlane.f32.xlu1 %v3731_v56 }
 0x5ef   : > { %4034 = vmax.xlane.f32.xlu1 %v4033_v51  ;;  %v4761_v51 = vld [vmem:[%s19873_s4 + $0xa8] sm:$0xff] }
 0x5f3   : > { %4342 = vmax.xlane.f32.xlu1 %v4341_v53 }
 0x678   : > { %v3733_v58 = vpop.xlane.xlu1 %3732 }
 0x679   : > { %11648 = vrcp.f32 %v3733_v58  ;;  %v4765_v58 = vld [vmem:[%s19873_s4 + $0xc8] sm:$0xff] }
 0x67c   : > { %v4035_v61 = vpop.xlane.xlu1 %4034 }
 0x67d   : > { %v4036_v62 = vsub.f32 %v4030_v44, %v4035_v61  ;;  %v4762_v44 = vld [vmem:[%s19873_s4 + $0xb0] sm:$0xff]  ;;  %v4768_v61 = vld [vmem:[%s19873_s4 + $0xe0] sm:$0xff] }
 0x67f   : > { %v4037_v0 = vmul.f32 1.442695, %v4036_v62  ;;  %v10226_v62 = vpack.c.bf16 %v4768_v61, %v4765_v58  ;;  %v4810_v58 = vld [vmem:[%s19873_s4 + $0x230] sm:$0xff] }
 0x680   : > { %v4343_v57 = vpop.xlane.xlu1 %4342 }
 0x681   : > { %11650 = vpow2.f32 %v4037_v0  ;;  %v4344_v7 = vsub.f32 %v4338_v32, %v4343_v57  ;;  %v4758_v32 = vld [vmem:[%s19873_s4 + $0x90] sm:$0xff]  ;;  %v4764_v0 = vld [vmem:[%s19873_s4 + $0xc0] sm:$0xff]  ;;  %v4767_v57 = vld [vmem:[%s19873_s4 + $0xd8] sm:$0xff] }
 0x682   : > { %v10224_v53 = vpack.c.bf16 %v4761_v51, %v4758_v32  ;;  %v10228_v6 = vpack.c.bf16 %v4767_v57, %v4764_v0  ;;  %v4800_v32 = vld [vmem:[%s19873_s4 + $0x1e0] sm:$0xff]  ;;  %v4803_v51 = vld [vmem:[%s19873_s4 + $0x1f8] sm:$0xff]  ;;  %v4806_v0 = vld [vmem:[%s19873_s4 + $0x210] sm:$0xff] }
 0x683   : > { %v11649_v8 = vpop.eup %11648  ;;  %v4345_v10 = vmul.f32 1.442695, %v4344_v7  ;;  %v4771_v7 = vld [vmem:[%s19873_s4 + $0xf8] sm:$0xff]  ;;  %v10252_v61 = vpack.c.bf16 %v4803_v51, %v4800_v32  ;;  %v4809_v57 = vld [vmem:[%s19873_s4 + $0x228] sm:$0xff] }
 0x684   : > { %v3735_v12 = vmul.f32 %v11649_v8, %v11647_v42  ;;  %v4759_v42 = vld [vmem:[%s19873_s4 + $0x98] sm:$0xff]  ;;  %v4774_v8 = vld [vmem:[%s19873_s4 + $0x110] sm:$0xff] }
 0x685   : > { %11652 = vpow2.f32 %v4345_v10  ;;  %v10222_v56 = vpack.c.bf16 %v4762_v44, %v4759_v42  ;;  %v10230_v10 = vpack.c.bf16 %v4774_v8, %v4771_v7  ;;  %v4804_v42 = vld [vmem:[%s19873_s4 + $0x200] sm:$0xff]  ;;  %v10248_v44 = vpack.c.bf16 %v4797_v40, %v4794_v27 }
 0x686   : > { %8956 = vmatmul.mubr.msk.f32.vlgmr.msra.gmra.mrb[18].mxu1 %vm3570_vm2, %v3735_v12  ;;  %v4773_v12 = vld [vmem:[%s19873_s4 + $0x108] sm:$0xff]  ;;  %v4816_v7 = vld [vmem:[%s19873_s4 + $0x260] sm:$0xff]  ;;  %v10256_v8 = vpack.c.bf16 %v4809_v57, %v4806_v0 }
 0x687   : > { %8959 = vmatpush3.xpose.msra.mxu1 %v11524_v60  ;;  %8960 = vmatprep.mubr.msk.f32.mxu1 %vm11784_vm0, %v11783_v39  ;;  %v10232_v60 = vpack.c.bf16 %v4773_v12, %v4770_v45  ;;  %v4812_v45 = vld [vmem:[%s19873_s4 + $0x240] sm:$0xff]  ;;  %v4815_v12 = vld [vmem:[%s19873_s4 + $0x258] sm:$0xff] }
 0x688   : > { %8963 = vmatprep.subr.mxu1 %v11783_v39  ;;  %10223 = vmatprep.subr.bf16.mxu0 %v10222_v56  ;;  %v10250_v56 = vpack.c.bf16 %v4804_v42, %v4801_v26 }
 0x689   : > { %10225 = vmatpush1.bf16.msra.mxu0 %v10224_v53  ;;  %v4807_v53 = vld [vmem:[%s19873_s4 + $0x218] sm:$0xff] }
 0x68a   : > { %8961 = vmatmul.mubr.f32.vlgmr.msra.gmra.mrb[20].mxu1 %v11516_v1  ;;  %10227 = vmatprep.subr.bf16.mxu0 %v10226_v62  ;;  %v4780_v1 = vld [vmem:[%s19873_s4 + $0x140] sm:$0xff]  ;;  %v10254_v62 = vpack.c.bf16 %v4810_v58, %v4807_v53 }
 0x68b   : > { %v15648_v5 = vpop.eup %11650  ;;  %8964 = vmatpush3.msra.mxu1 %v11532_v3  ;;  %8965 = vmatprep.mubr.msk.f32.mxu1 %vm11784_vm0, %v11783_v39  ;;  %v4776_v3 = vld [vmem:[%s19873_s4 + $0x120] sm:$0xff] }
 0x68c   : > { %v4039_v13 = vsel %vm3570_vm2, %v15648_v5, 0.0  ;;  %8973 = vmatprep.subr.mxu1 %v11783_v39 }
 0x68d   : > { %4040 = vadd.xlane.f32.xlu1 %v4039_v13  ;;  %10229 = vmatpush1.bf16.msra.mxu0 %v10228_v6  ;;  %v10234_v13 = vpack.c.bf16 %v4780_v1, %v4777_v22  ;;  %v4813_v6 = vld [vmem:[%s19873_s4 + $0x248] sm:$0xff]  ;;  %v4822_v22 = vld [vmem:[%s19873_s4 + $0x290] sm:$0xff]  ;;  %v10260_v1 = vpack.c.bf16 %v4815_v12, %v4812_v45 }
 0x68e   : > { %10231 = vmatprep.subr.bf16.mxu0 %v10230_v10  ;;  %v10258_v10 = vpack.c.bf16 %v4816_v7, %v4813_v6 }
 0x68f   : > { %v15661_v43 = vpop.eup %11652 }
 0x690   : > { %v4347_v14 = vsel %vm3570_vm2, %v15661_v43, 0.0 }
 0x691   : > { %4650 = vmax.xlane.f32.xlu1 %v4649_v24  ;;  %v4779_v24 = vld [vmem:[%s19873_s4 + $0x138] sm:$0xff]  ;;  %10233 = vmatpush1.bf16.msra.mxu0 %v10232_v60 }
 0x692   : > { %v10236_v17 = vpack.c.bf16 %v4779_v24, %v4776_v3  ;;  %10235 = vmatprep.subr.bf16.mxu0 %v10234_v13  ;;  %v4819_v60 = vld [vmem:[%s19873_s4 + $0x278] sm:$0xff]  ;;  %v4818_v13 = vld [vmem:[%s19873_s4 + $0x270] sm:$0xff]  ;;  %v4821_v24 = vld [vmem:[%s19873_s4 + $0x288] sm:$0xff] }
 0x693   : > { %v10262_v3 = vpack.c.bf16 %v4822_v22, %v4819_v60 }
 0x695   : > { %4348 = vadd.xlane.f32.xlu1 %v4347_v14  ;;  %v4783_v14 = vld [vmem:[%s19873_s4 + $0x158] sm:$0xff]  ;;  %10237 = vmatpush1.bf16.msra.mxu0 %v10236_v17  ;;  %v10264_v17 = vpack.c.bf16 %v4821_v24, %v4818_v13 }
 0x696   : > { %v10238_v19 = vpack.c.bf16 %v4786_v11, %v4783_v14  ;;  %v4825_v14 = vld [vmem:[%s19873_s4 + $0x2a8] sm:$0xff]  ;;  %v4828_v11 = vld [vmem:[%s19873_s4 + $0x2c0] sm:$0xff] }
 0x698   : > { %10239 = vmatprep.subr.bf16.mxu0 %v10238_v19  ;;  %v10266_v19 = vpack.c.bf16 %v4828_v11, %v4825_v14 }
 0x699   : > { %10241 = vmatpush1.bf16.msra.mxu0 %v10240_v30  ;;  %v10268_v30 = vpack.c.bf16 %v4827_v21, %v4824_v15  ;;  %v1751_v15 = vrot.slane %v15569_v41, %v15526_v54 }
 0x69a   : > { %10243 = vmatprep.subr.bf16.mxu0 %v10242_v33  ;;  %v10270_v33 = vpack.c.bf16 %v4834_v29, %v4831_v16  ;;  %v1755_v29 = vrot.slane %v15569_v41, %v15529_v28 }
 0x69b   : > { %v11534_v16 = vadd.f32 %v15585_v55, %v1751_v15  ;;  %v4876_v15 = vld [vmem:[%s19873_s4 + $0x440] sm:$0xff] }
 0x69c   : > { %v11535_v34 = vadd.f32 %v15589_v48, %v1755_v29  ;;  %v4837_v48 = vld [vmem:[%s19873_s4 + $0x308] sm:$0xff]  ;;  %v4875_v29 = vld [vmem:[%s19873_s4 + $0x438] sm:$0xff] }
 0x69d   : > { %10245 = vmatpush1.bf16.msra.mxu0 %v10244_v38 }
 0x69e   : > { %10247 = vmatprep.subr.bf16.mxu0 %v10246_v31 }
 0x6a1   : > { %10249 = vmatpush1.bf16.msra.mxu0 %v10248_v44 }
 0x6a2   : > { %10251 = vmatprep.subr.bf16.mxu0 %v10250_v56 }
 0x6a5   : > { %10253 = vmatpush1.bf16.msra.mxu0 %v10252_v61 }
 0x6a6   : > { %10255 = vmatprep.subr.bf16.mxu0 %v10254_v62 }
 0x6a9   : > { %10257 = vmatpush1.bf16.msra.mxu0 %v10256_v8 }
 0x6aa   : > { %10259 = vmatprep.subr.bf16.mxu0 %v10258_v10  ;;  %v4492_v10 = vadd.f32 %v15600_v9, %v15594_v52 }
 0x6ac   : > { %v4495_v45 = vsel %vm3570_vm2, %v4492_v10, -inf }
 0x6ad   : > { %10261 = vmatpush1.bf16.msra.mxu0 %v10260_v1 }
 0x6ae   : > { %10263 = vmatprep.subr.bf16.mxu0 %v10262_v3 }
 0x6b1   : > { %10265 = vmatpush1.bf16.msra.mxu0 %v10264_v17 }
 0x6b2   : > { %10267 = vmatprep.subr.bf16.mxu0 %v10266_v19 }
 0x6b5   : > { %10269 = vmatpush1.bf16.msra.mxu0 %v10268_v30 }
 0x6b6   : > { %10271 = vmatprep.subr.bf16.mxu0 %v10270_v33 }
 0x6b9   : > { %10273 = vmatpush1.bf16.msra.mxu0 %v10272_v35 }
 0x71a   : > { %v4041_v37 = vpop.xlane.xlu1 %4040 }
 0x71e   : > { %v4651_v38 = vpop.xlane.xlu1 %4650 }
 0x71f   : > { %v4652_v31 = vsub.f32 %v15654_v50, %v4651_v38  ;;  %v4184_v50 = vadd.f32 %v15598_v2, %v15594_v52 }
 0x721   : > { %v4653_v27 = vmul.f32 1.442695, %v4652_v31  ;;  %v4187_v58 = vsel %vm3570_vm2, %v4184_v50, -inf  ;;  %v4839_v31 = vld [vmem:[%s19873_s4 + $0x318] sm:$0xff] }
 0x722   : > { %v4349_v9 = vpop.xlane.xlu1 %4348 }
 0x723   : > { %11654 = vpow2.f32 %v4653_v27 }
 0x72d   : > { %v15858_v40 = vpop.eup %11654 }
 0x72e   : > { %v4655_v26 = vsel %vm3570_vm2, %v15858_v40, 0.0 }
 0x72f   : > { %4656 = vadd.xlane.f32.xlu1 %v4655_v26  ;;  %v4843_v26 = vld [vmem:[%s19873_s4 + $0x338] sm:$0xff] }
 0x759   : > { %v15862_v42 = vpop.f32.mrb[18].mxu1 }
 0x75a   : > { %v8957_v44 = vpop.f32.mrb[19].mxu1  ;;  %5204 = vmatprep.mubr.f32.mxu0 %v15862_v42 }
 0x75b   : > { %5205 = vmatmul.mubr.f32.vlgmr.msra.gmra.mrb[22].mxu0 %v15623_v59  ;;  %v4846_v44 = vld [vmem:[%s19873_s4 + $0x350] sm:$0xff] }
 0x75d   : > { %v3875_v56 = vpop.f32.mrb[20].mxu1 }
 0x75e   : > { %v3876_v32 = vadd.f32 %v3875_v56, %v15594_v52  ;;  %v8962_v51 = vpop.f32.mrb[21].mxu1  ;;  %v1747_v52 = vrot.slane %v15569_v41, %v15489_v36  ;;  %v10278_v56 = vpack.c.bf16 %v4846_v44, %v4843_v26  ;;  %v4894_v26 = vld [vmem:[%s19873_s4 + $0x4d0] sm:$0xff] }
 0x75f   : > { %v4845_v51 = vld [vmem:[%s19873_s4 + $0x348] sm:$0xff]  ;;  %v4890_v44 = vld [vmem:[%s19873_s4 + $0x4b0] sm:$0xff] }
 0x760   : > { %v3879_v53 = vsel %vm3570_vm2, %v3876_v32, -inf  ;;  %v11533_v19 = vadd.f32 %v15575_v46, %v1747_v52  ;;  %v4870_v52 = vld [vmem:[%s19873_s4 + $0x410] sm:$0xff] }
 0x761   : > { %3880 = vmax.xlane.f32.xlu0 %v3879_v53  ;;  %v4849_v53 = vld [vmem:[%s19873_s4 + $0x368] sm:$0xff] }
 0x765   : > { %4188 = vmax.xlane.f32.xlu0 %v4187_v58  ;;  %v4852_v58 = vld [vmem:[%s19873_s4 + $0x380] sm:$0xff] }
 0x7ee   : > { %v3881_v61 = vpop.xlane.xlu0 %3880 }
 0x7ef   : > { %v3882_v62 = vsub.f32 %v3876_v32, %v3881_v61  ;;  %v4842_v32 = vld [vmem:[%s19873_s4 + $0x330] sm:$0xff]  ;;  %v10282_v61 = vpack.c.bf16 %v4852_v58, %v4849_v53  ;;  %v4900_v53 = vld [vmem:[%s19873_s4 + $0x500] sm:$0xff] }
 0x7f0   : > { %v4896_v58 = vld [vmem:[%s19873_s4 + $0x4e0] sm:$0xff] }
 0x7f1   : > { %v3883_v0 = vmul.f32 1.442695, %v3882_v62  ;;  %v4848_v62 = vld [vmem:[%s19873_s4 + $0x360] sm:$0xff] }
 0x7f2   : > { %v4189_v57 = vpop.xlane.xlu0 %4188 }
 0x7f3   : > { %11656 = vpow2.f32 %v3883_v0  ;;  %v4190_v6 = vsub.f32 %v4184_v50, %v4189_v57  ;;  %v10280_v50 = vpack.c.bf16 %v4845_v51, %v4842_v32  ;;  %v4851_v0 = vld [vmem:[%s19873_s4 + $0x378] sm:$0xff]  ;;  %v4893_v32 = vld [vmem:[%s19873_s4 + $0x4c8] sm:$0xff] }
 0x7f4   : > { %v10284_v57 = vpack.c.bf16 %v4851_v0, %v4848_v62  ;;  %v10312_v51 = vpack.c.bf16 %v4893_v32, %v4890_v44  ;;  %v4899_v62 = vld [vmem:[%s19873_s4 + $0x4f8] sm:$0xff]  ;;  %v4742_v32 = vld [vmem:[%s19873_s4 + $0x10] sm:$0xff] }
 0x7f5   : > { %v4191_v7 = vmul.f32 1.442695, %v4190_v6  ;;  %v4855_v6 = vld [vmem:[%s19873_s4 + $0x398] sm:$0xff]  ;;  %v10316_v0 = vpack.c.bf16 %v4899_v62, %v4896_v58 }
 0x7f7   : > { %11658 = vpow2.f32 %v4191_v7  ;;  %v4858_v7 = vld [vmem:[%s19873_s4 + $0x3b0] sm:$0xff] }
 0x7fd   : > { %v11657_v8 = vpop.eup %11656 }
 0x7fe   : > { %v3885_v2 = vsel %vm3570_vm2, %v11657_v8, 0.0 }
 0x7ff   : > { %3886 = vadd.xlane.f32.xlu0 %v3885_v2  ;;  %v4857_v2 = vld [vmem:[%s19873_s4 + $0x3a8] sm:$0xff] }
 0x801   : > { %v11659_v12 = vpop.eup %11658 }
 0x802   : > { %v4193_v60 = vsel %vm3570_vm2, %v11659_v12, 0.0 }
 0x803   : > { %4496 = vmax.xlane.f32.xlu0 %v4495_v45 }
 0x807   : > { %4194 = vadd.xlane.f32.xlu0 %v4193_v60  ;;  %v4864_v60 = vld [vmem:[%s19873_s4 + $0x3e0] sm:$0xff] }
 0x88c   : > { %v3887_v22 = vpop.xlane.xlu0 %3886 }
 0x88d   : > { %11660 = vrcp.f32 %v3887_v22  ;;  %v4860_v22 = vld [vmem:[%s19873_s4 + $0x3c0] sm:$0xff] }
 0x88e   : > { %11662 = vrcp.f32 %v4041_v37  ;;  %v11536_v37 = vadd.f32 %v15587_v47, %v1759_v25  ;;  %v4836_v47 = vld [vmem:[%s19873_s4 + $0x300] sm:$0xff] }
 0x88f   : > { %v10276_v27 = vpack.c.bf16 %v4839_v31, %v4836_v47  ;;  %v4887_v47 = vld [vmem:[%s19873_s4 + $0x498] sm:$0xff] }
 0x890   : > { %v4497_v1 = vpop.xlane.xlu0 %4496 }
 0x891   : > { %v4498_v3 = vsub.f32 %v4492_v10, %v4497_v1  ;;  %v10286_v10 = vpack.c.bf16 %v4858_v7, %v4855_v6  ;;  %v4906_v6 = vld [vmem:[%s19873_s4 + $0x530] sm:$0xff] }
 0x892   : > { %v4902_v7 = vld [vmem:[%s19873_s4 + $0x510] sm:$0xff] }
 0x893   : > { %v4499_v13 = vmul.f32 1.442695, %v4498_v3  ;;  %v4863_v3 = vld [vmem:[%s19873_s4 + $0x3d8] sm:$0xff] }
 0x894   : > { %v4195_v24 = vpop.xlane.xlu0 %4194 }
 0x895   : > { %11664 = vpow2.f32 %v4499_v13  ;;  %v10292_v13 = vpack.c.bf16 %v4863_v3, %v4860_v22 }
 0x896   : > { %11666 = vrcp.f32 %v4195_v24  ;;  %v4867_v24 = vld [vmem:[%s19873_s4 + $0x3f8] sm:$0xff] }
 0x897   : > { %v11661_v14 = vpop.eup %11660  ;;  %11668 = vrcp.f32 %v4349_v9  ;;  %v4866_v9 = vld [vmem:[%s19873_s4 + $0x3f0] sm:$0xff] }
 0x898   : > { %v3889_v11 = vmul.f32 %v11661_v14, %v11657_v8  ;;  %v11663_v17 = vpop.eup %11662  ;;  %v4854_v8 = vld [vmem:[%s19873_s4 + $0x390] sm:$0xff]  ;;  %v10294_v14 = vpack.c.bf16 %v4870_v52, %v4867_v24 }
 0x899   : > { %v4043_v21 = vmul.f32 %v11663_v17, %v15648_v5  ;;  %v10288_v45 = vpack.c.bf16 %v4857_v2, %v4854_v8  ;;  %v4918_v24 = vld [vmem:[%s19873_s4 + $0x590] sm:$0xff] }
 0x89a   : > { %8966 = vmatmul.mubr.msk.f32.vlgmr.msra.gmra.mrb[22].mxu1 %vm3570_vm2, %v3889_v11  ;;  %v4869_v11 = vld [vmem:[%s19873_s4 + $0x408] sm:$0xff]  ;;  %v4914_v52 = vld [vmem:[%s19873_s4 + $0x570] sm:$0xff] }
 0x89b   : > { %8974 = vmatpush3.msra.mxu1 %v11533_v19  ;;  %8975 = vmatprep.mubr.msk.f32.mxu1 %vm11784_vm0, %v11783_v39  ;;  %v10296_v17 = vpack.c.bf16 %v4869_v11, %v4866_v9  ;;  %v4873_v19 = vld [vmem:[%s19873_s4 + $0x428] sm:$0xff] }
 0x89c   : > { %8983 = vmatprep.subr.mxu1 %v11783_v39 }
 0x89e   : > { %8976 = vmatmul.mubr.msk.f32.vlgmr.msra.gmra.mrb[24].mxu1 %vm3570_vm2, %v4043_v21  ;;  %v4872_v21 = vld [vmem:[%s19873_s4 + $0x420] sm:$0xff] }
 0x89f   : > { %v15890_v46 = vpop.eup %11664  ;;  %8984 = vmatpush3.msra.mxu1 %v11534_v16  ;;  %8985 = vmatprep.mubr.msk.f32.mxu1 %vm11784_vm0, %v11783_v39  ;;  %v10298_v16 = vpack.c.bf16 %v4876_v15, %v4873_v19  ;;  %v4924_v19 = vld [vmem:[%s19873_s4 + $0x5c0] sm:$0xff] }
 0x8a0   : > { %v11667_v30 = vpop.eup %11666  ;;  %8993 = vmatprep.subr.mxu1 %v11783_v39  ;;  %v4501_v5 = vsel %vm3570_vm2, %v15890_v46, 0.0  ;;  %v4920_v15 = vld [vmem:[%s19873_s4 + $0x5a0] sm:$0xff] }
 0x8a1   : > { %v4197_v33 = vmul.f32 %v11667_v30, %v11659_v12  ;;  %4502 = vadd.xlane.f32.xlu0 %v4501_v5  ;;  %v11669_v55 = vpop.eup %11668  ;;  %v4861_v12 = vld [vmem:[%s19873_s4 + $0x3c8] sm:$0xff]  ;;  %v10300_v30 = vpack.c.bf16 %v4875_v29, %v4872_v21  ;;  %v4879_v5 = vld [vmem:[%s19873_s4 + $0x458] sm:$0xff] }
 0x8a2   : > { %v4351_v35 = vmul.f32 %v11669_v55, %v15661_v43  ;;  %v4840_v43 = vld [vmem:[%s19873_s4 + $0x320] sm:$0xff]  ;;  %v10290_v1 = vpack.c.bf16 %v4864_v60, %v4861_v12  ;;  %v4878_v55 = vld [vmem:[%s19873_s4 + $0x450] sm:$0xff] }
 0x8a3   : > { %8986 = vmatmul.mubr.msk.f32.vlgmr.msra.gmra.mrb[26].mxu1 %vm3570_vm2, %v4197_v33  ;;  %v10274_v38 = vpack.c.bf16 %v4840_v43, %v4837_v48  ;;  %v4882_v33 = vld [vmem:[%s19873_s4 + $0x470] sm:$0xff]  ;;  %v4888_v48 = vld [vmem:[%s19873_s4 + $0x4a0] sm:$0xff] }
 0x8a4   : > { %8994 = vmatpush3.msra.mxu1 %v11535_v34  ;;  %8995 = vmatprep.mubr.msk.f32.mxu1 %vm11784_vm0, %v11783_v39  ;;  %v10302_v25 = vpack.c.bf16 %v4882_v33, %v4879_v5  ;;  %v4881_v34 = vld [vmem:[%s19873_s4 + $0x468] sm:$0xff]  ;;  %v4884_v43 = vld [vmem:[%s19873_s4 + $0x480] sm:$0xff]  ;;  %v4930_v5 = vld [vmem:[%s19873_s4 + $0x5f0] sm:$0xff] }
 0x8a5   : > { %9003 = vmatprep.subr.mxu1 %v11783_v39  ;;  %10275 = vmatprep.subr.bf16.mxu0 %v10274_v38  ;;  %v10308_v31 = vpack.c.bf16 %v4887_v47, %v4884_v43  ;;  %v4912_v12 = vld [vmem:[%s19873_s4 + $0x560] sm:$0xff]  ;;  %v4657_v43 = vpop.xlane.xlu1 %4656  ;;  %v1763_v47 = vrot.slane %v15569_v41, %v15547_v23  ;;  %v4745_v41 = vld [vmem:[%s19873_s4 + $0x28] sm:$0xff] }
 0x8a6   : > { %10277 = vmatpush1.bf16.msra.mxu0 %v10276_v27  ;;  %v4891_v27 = vld [vmem:[%s19873_s4 + $0x4b8] sm:$0xff]  ;;  %v4908_v60 = vld [vmem:[%s19873_s4 + $0x540] sm:$0xff]  ;;  %v10468_v58 = vpack.c.bf16 %v4745_v41, %v4742_v32 }
 0x8a7   : > { %8996 = vmatmul.mubr.msk.f32.vlgmr.msra.gmra.mrb[28].mxu1 %vm3570_vm2, %v4351_v35  ;;  %10279 = vmatprep.subr.bf16.mxu0 %v10278_v56  ;;  %v10304_v35 = vpack.c.bf16 %v4881_v34, %v4878_v55  ;;  %v10310_v56 = vpack.c.bf16 %v4894_v26, %v4891_v27  ;;  %v4926_v55 = vld [vmem:[%s19873_s4 + $0x5d0] sm:$0xff]  ;;  %v4793_v27 = vld [vmem:[%s19873_s4 + $0x1a8] sm:$0xff]  ;;  %v4895_v32 = vld [vmem:[%s19873_s4 + $0x4d8] sm:$0xff] }
 0x8a8   : > { %9004 = vmatpush3.msra.mxu1 %v11536_v37  ;;  %9005 = vmatprep.mubr.msk.f32.mxu1 %vm11784_vm0, %v11783_v39  ;;  %v4885_v37 = vld [vmem:[%s19873_s4 + $0x488] sm:$0xff] }
 0x8a9   : > { %9013 = vmatprep.subr.mxu1 %v11783_v39  ;;  %v10306_v38 = vpack.c.bf16 %v4888_v48, %v4885_v37  ;;  %v4936_v37 = vld [vmem:[%s19873_s4 + $0x620] sm:$0xff] }
 0x8aa   : > { %10281 = vmatpush1.bf16.msra.mxu0 %v10280_v50  ;;  %v4897_v50 = vld [vmem:[%s19873_s4 + $0x4e8] sm:$0xff] }
 0x8ab   : > { %10283 = vmatprep.subr.bf16.mxu0 %v10282_v61  ;;  %v10314_v61 = vpack.c.bf16 %v4900_v53, %v4897_v50  ;;  %v11537_v50 = vadd.f32 %v15591_v49, %v1763_v47  ;;  %v4796_v53 = vld [vmem:[%s19873_s4 + $0x1c0] sm:$0xff]  ;;  %v4889_v47 = vld [vmem:[%s19873_s4 + $0x4a8] sm:$0xff] }
 0x8ac   : > { %v4748_v49 = vld [vmem:[%s19873_s4 + $0x40] sm:$0xff] }
 0x8ae   : > { %10285 = vmatpush1.bf16.msra.mxu0 %v10284_v57  ;;  %v4903_v57 = vld [vmem:[%s19873_s4 + $0x518] sm:$0xff] }
 0x8af   : > { %10287 = vmatprep.subr.bf16.mxu0 %v10286_v10  ;;  %v10318_v8 = vpack.c.bf16 %v4906_v6, %v4903_v57  ;;  %v4905_v10 = vld [vmem:[%s19873_s4 + $0x528] sm:$0xff]  ;;  %v4802_v57 = vld [vmem:[%s19873_s4 + $0x1f0] sm:$0xff] }
 0x8b0   : > { %v10320_v2 = vpack.c.bf16 %v4905_v10, %v4902_v7  ;;  %v4805_v6 = vld [vmem:[%s19873_s4 + $0x208] sm:$0xff] }
 0x8b1   : > { %v10474_v7 = vpack.c.bf16 %v4805_v6, %v4802_v57  ;;  %v4757_v10 = vld [vmem:[%s19873_s4 + $0x88] sm:$0xff]  ;;  %v4904_v57 = vld [vmem:[%s19873_s4 + $0x520] sm:$0xff] }
 0x8b2   : > { %10289 = vmatpush1.bf16.msra.mxu0 %v10288_v45  ;;  %v4909_v45 = vld [vmem:[%s19873_s4 + $0x548] sm:$0xff] }
 0x8b3   : > { %10291 = vmatprep.subr.bf16.mxu0 %v10290_v1  ;;  %v10322_v22 = vpack.c.bf16 %v4912_v12, %v4909_v45  ;;  %v4911_v1 = vld [vmem:[%s19873_s4 + $0x558] sm:$0xff] }
 0x8b4   : > { %v10324_v3 = vpack.c.bf16 %v4911_v1, %v4908_v60  ;;  %v4811_v45 = vld [vmem:[%s19873_s4 + $0x238] sm:$0xff]  ;;  %v4760_v60 = vld [vmem:[%s19873_s4 + $0xa0] sm:$0xff]  ;;  %v4814_v1 = vld [vmem:[%s19873_s4 + $0x250] sm:$0xff] }
 0x8b6   : > { %10293 = vmatpush1.bf16.msra.mxu0 %v10292_v13  ;;  %v4915_v13 = vld [vmem:[%s19873_s4 + $0x578] sm:$0xff] }
 0x8b7   : > { %10295 = vmatprep.subr.bf16.mxu0 %v10294_v14  ;;  %v10326_v9 = vpack.c.bf16 %v4918_v24, %v4915_v13  ;;  %v4917_v14 = vld [vmem:[%s19873_s4 + $0x588] sm:$0xff] }
 0x8b8   : > { %v10328_v11 = vpack.c.bf16 %v4917_v14, %v4914_v52  ;;  %v4766_v52 = vld [vmem:[%s19873_s4 + $0xd0] sm:$0xff]  ;;  %v4820_v14 = vld [vmem:[%s19873_s4 + $0x280] sm:$0xff] }
 0x8ba   : > { %10297 = vmatpush1.bf16.msra.mxu0 %v10296_v17  ;;  %v4921_v17 = vld [vmem:[%s19873_s4 + $0x5a8] sm:$0xff] }
 0x8bb   : > { %10299 = vmatprep.subr.bf16.mxu0 %v10298_v16  ;;  %v10330_v21 = vpack.c.bf16 %v4924_v19, %v4921_v17  ;;  %v4923_v16 = vld [vmem:[%s19873_s4 + $0x5b8] sm:$0xff] }
 0x8bc   : > { %v10332_v29 = vpack.c.bf16 %v4923_v16, %v4920_v15  ;;  %v4772_v15 = vld [vmem:[%s19873_s4 + $0x100] sm:$0xff]  ;;  %v4826_v16 = vld [vmem:[%s19873_s4 + $0x2b0] sm:$0xff] }
 0x8be   : > { %10301 = vmatpush1.bf16.msra.mxu0 %v10300_v30  ;;  %v4927_v30 = vld [vmem:[%s19873_s4 + $0x5d8] sm:$0xff] }
 0x8bf   : > { %10303 = vmatprep.subr.bf16.mxu0 %v10302_v25  ;;  %v10334_v33 = vpack.c.bf16 %v4930_v5, %v4927_v30  ;;  %v4929_v25 = vld [vmem:[%s19873_s4 + $0x5e8] sm:$0xff] }
 0x8c0   : > { %v10336_v34 = vpack.c.bf16 %v4929_v25, %v4926_v55  ;;  %v4781_v55 = vld [vmem:[%s19873_s4 + $0x148] sm:$0xff]  ;;  %v4832_v25 = vld [vmem:[%s19873_s4 + $0x2e0] sm:$0xff] }
 0x8c2   : > { %10305 = vmatpush1.bf16.msra.mxu0 %v10304_v35  ;;  %v4933_v35 = vld [vmem:[%s19873_s4 + $0x608] sm:$0xff] }
 0x8c3   : > { %10307 = vmatprep.subr.bf16.mxu0 %v10306_v38  ;;  %v10338_v48 = vpack.c.bf16 %v4936_v37, %v4933_v35 }
 0x8c6   : > { %10309 = vmatpush1.bf16.msra.mxu0 %v10308_v31  ;;  %v4790_v31 = vld [vmem:[%s19873_s4 + $0x190] sm:$0xff] }
 0x8c7   : > { %10311 = vmatprep.subr.bf16.mxu0 %v10310_v56  ;;  %v10466_v56 = vpack.c.bf16 %v4793_v27, %v4790_v31 }
 0x8ca   : > { %10313 = vmatpush1.bf16.msra.mxu0 %v10312_v51 }
 0x8cb   : > { %10315 = vmatprep.subr.bf16.mxu0 %v10314_v61 }
 0x8ce   : > { %10317 = vmatpush1.bf16.msra.mxu0 %v10316_v0  ;;  %v4751_v0 = vld [vmem:[%s19873_s4 + $0x58] sm:$0xff] }
 0x8cf   : > { %10319 = vmatprep.subr.bf16.mxu0 %v10318_v8  ;;  %v4754_v8 = vld [vmem:[%s19873_s4 + $0x70] sm:$0xff] }
 0x8d2   : > { %10321 = vmatpush1.bf16.msra.mxu0 %v10320_v2  ;;  %v4808_v2 = vld [vmem:[%s19873_s4 + $0x220] sm:$0xff] }
 0x8d3   : > { %10323 = vmatprep.subr.bf16.mxu0 %v10322_v22  ;;  %v10478_v12 = vpack.c.bf16 %v4811_v45, %v4808_v2  ;;  %v4763_v22 = vld [vmem:[%s19873_s4 + $0xb8] sm:$0xff]  ;;  %v4913_v2 = vld [vmem:[%s19873_s4 + $0x568] sm:$0xff] }
 0x8d4   : > { %v10480_v13 = vpack.c.bf16 %v4763_v22, %v4760_v60  ;;  %v4865_v60 = vld [vmem:[%s19873_s4 + $0x3e8] sm:$0xff]  ;;  %v4916_v22 = vld [vmem:[%s19873_s4 + $0x580] sm:$0xff] }
 0x8d6   : > { %10325 = vmatpush1.bf16.msra.mxu0 %v10324_v3  ;;  %v4817_v3 = vld [vmem:[%s19873_s4 + $0x268] sm:$0xff] }
 0x8d7   : > { %10327 = vmatprep.subr.bf16.mxu0 %v10326_v9  ;;  %v10482_v24 = vpack.c.bf16 %v4817_v3, %v4814_v1  ;;  %v4769_v9 = vld [vmem:[%s19873_s4 + $0xe8] sm:$0xff]  ;;  %v4919_v1 = vld [vmem:[%s19873_s4 + $0x598] sm:$0xff] }
 0x8d8   : > { %v10484_v17 = vpack.c.bf16 %v4769_v9, %v4766_v52  ;;  %v4935_v52 = vld [vmem:[%s19873_s4 + $0x618] sm:$0xff]  ;;  %v4868_v9 = vld [vmem:[%s19873_s4 + $0x400] sm:$0xff] }
 0x8da   : > { %10329 = vmatpush1.bf16.msra.mxu0 %v10328_v11  ;;  %v4823_v11 = vld [vmem:[%s19873_s4 + $0x298] sm:$0xff] }
 0x8db   : > { %10331 = vmatprep.subr.bf16.mxu0 %v10330_v21  ;;  %v10486_v19 = vpack.c.bf16 %v4823_v11, %v4820_v14  ;;  %v4775_v21 = vld [vmem:[%s19873_s4 + $0x118] sm:$0xff] }
 0x8dc   : > { %v10488_v30 = vpack.c.bf16 %v4775_v21, %v4772_v15  ;;  %v4871_v11 = vld [vmem:[%s19873_s4 + $0x418] sm:$0xff]  ;;  %v10518_v15 = vpack.c.bf16 %v4919_v1, %v4916_v22  ;;  %v4922_v21 = vld [vmem:[%s19873_s4 + $0x5b0] sm:$0xff] }
 0x8dd   : > { %v4991_v22 = vld [vmem:[%s19873_s4 + $0x7d8] sm:$0xff] }
 0x8de   : > { %10333 = vmatpush1.bf16.msra.mxu0 %v10332_v29  ;;  %v4829_v29 = vld [vmem:[%s19873_s4 + $0x2c8] sm:$0xff] }
 0x8df   : > { %10335 = vmatprep.subr.bf16.mxu0 %v10334_v33  ;;  %v10490_v5 = vpack.c.bf16 %v4829_v29, %v4826_v16  ;;  %v4778_v33 = vld [vmem:[%s19873_s4 + $0x130] sm:$0xff]  ;;  %v4925_v16 = vld [vmem:[%s19873_s4 + $0x5c8] sm:$0xff] }
 0x8e0   : > { %v10492_v35 = vpack.c.bf16 %v4781_v55, %v4778_v33  ;;  %v4938_v55 = vld [vmem:[%s19873_s4 + $0x630] sm:$0xff] }
 0x8e2   : > { %10337 = vmatpush1.bf16.msra.mxu0 %v10336_v34  ;;  %v4835_v34 = vld [vmem:[%s19873_s4 + $0x2f8] sm:$0xff] }
 0x8e3   : > { %10339 = vmatprep.subr.bf16.mxu0 %v10338_v48  ;;  %v10494_v37 = vpack.c.bf16 %v4835_v34, %v4832_v25  ;;  %v4784_v48 = vld [vmem:[%s19873_s4 + $0x160] sm:$0xff]  ;;  %v4941_v25 = vld [vmem:[%s19873_s4 + $0x648] sm:$0xff]  ;;  %v4874_v34 = vld [vmem:[%s19873_s4 + $0x430] sm:$0xff] }
 0x92e   : > { %v4503_v38 = vpop.xlane.xlu0 %4502 }
 0x92f   : > { %11670 = vrcp.f32 %v4503_v38  ;;  %v4886_v38 = vld [vmem:[%s19873_s4 + $0x490] sm:$0xff] }
 0x930   : > { %11672 = vrcp.f32 %v4657_v43  ;;  %v4787_v43 = vld [vmem:[%s19873_s4 + $0x178] sm:$0xff]  ;;  %v10498_v27 = vpack.c.bf16 %v4889_v47, %v4886_v38  ;;  %v4948_v38 = vld [vmem:[%s19873_s4 + $0x680] sm:$0xff] }
 0x931   : > { %v10496_v31 = vpack.c.bf16 %v4787_v43, %v4784_v48  ;;  %v4877_v48 = vld [vmem:[%s19873_s4 + $0x448] sm:$0xff]  ;;  %v4928_v47 = vld [vmem:[%s19873_s4 + $0x5e0] sm:$0xff] }
 0x932   : > { %v4945_v43 = vld [vmem:[%s19873_s4 + $0x668] sm:$0xff] }
 0x939   : > { %v11671_v26 = vpop.eup %11670 }
 0x93a   : > { %v4505_v44 = vmul.f32 %v11671_v26, %v15890_v46  ;;  %v11673_v51 = vpop.eup %11672  ;;  %v4799_v46 = vld [vmem:[%s19873_s4 + $0x1d8] sm:$0xff]  ;;  %v4838_v26 = vld [vmem:[%s19873_s4 + $0x310] sm:$0xff] }
 0x93b   : > { %v4659_v61 = vmul.f32 %v11673_v51, %v15858_v40  ;;  %v10470_v62 = vpack.c.bf16 %v4799_v46, %v4796_v53  ;;  %v10472_v40 = vpack.c.bf16 %v4751_v0, %v4748_v49  ;;  %v4847_v53 = vld [vmem:[%s19873_s4 + $0x358] sm:$0xff]  ;;  %v4898_v46 = vld [vmem:[%s19873_s4 + $0x4f0] sm:$0xff]  ;;  %v4853_v0 = vld [vmem:[%s19873_s4 + $0x388] sm:$0xff] }
 0x93c   : > { %9006 = vmatmul.mubr.msk.f32.vlgmr.msra.gmra.mrb[30].mxu1 %vm3570_vm2, %v4505_v44  ;;  %v4841_v44 = vld [vmem:[%s19873_s4 + $0x328] sm:$0xff]  ;;  %v4850_v49 = vld [vmem:[%s19873_s4 + $0x370] sm:$0xff] }
 0x93d   : > { %9014 = vmatpush3.msra.mxu1 %v11537_v50  ;;  %9015 = vmatprep.mubr.msk.f32.mxu1 %vm11784_vm0, %v11783_v39  ;;  %v10500_v41 = vpack.c.bf16 %v4841_v44, %v4838_v26  ;;  %v4844_v50 = vld [vmem:[%s19873_s4 + $0x340] sm:$0xff]  ;;  %v10508_v6 = vpack.c.bf16 %v4853_v0, %v4850_v49  ;;  %v10524_v26 = vpack.c.bf16 %v4877_v48, %v4874_v34  ;;  %v4985_v49 = vld [vmem:[%s19873_s4 + $0x7a8] sm:$0xff] }
 0x93e   : > { %10467 = vmatprep.subr.bf16.mxu1 %v10466_v56  ;;  %v4892_v56 = vld [vmem:[%s19873_s4 + $0x4c0] sm:$0xff]  ;;  %v10346_v44 = vpack.c.bf16 %v4948_v38, %v4945_v43  ;;  %v4949_v34 = vld [vmem:[%s19873_s4 + $0x688] sm:$0xff]  ;;  %v5003_v43 = vld [vmem:[%s19873_s4 + $0x838] sm:$0xff] }
 0x93f   : > { %v10502_v51 = vpack.c.bf16 %v4895_v32, %v4892_v56  ;;  %v4944_v56 = vld [vmem:[%s19873_s4 + $0x660] sm:$0xff]  ;;  %v4947_v32 = vld [vmem:[%s19873_s4 + $0x678] sm:$0xff] }
 0x940   : > { %9016 = vmatmul.mubr.msk.f32.vlgmr.msra.gmra.mrb[32].mxu1 %vm3570_vm2, %v4659_v61  ;;  %v10504_v61 = vpack.c.bf16 %v4847_v53, %v4844_v50  ;;  %v4883_v53 = vld [vmem:[%s19873_s4 + $0x478] sm:$0xff]  ;;  %v10348_v0 = vpack.c.bf16 %v4947_v32, %v4944_v56  ;;  %v5000_v48 = vld [vmem:[%s19873_s4 + $0x820] sm:$0xff] }
 0x941   : > { %10469 = vmatpush3.bf16.msra.mxu1 %v10468_v58  ;;  %5488 = vmatprep.mubr.f32.mxu1 %v15862_v42  ;;  %v10476_v42 = vpack.c.bf16 %v4757_v10, %v4754_v8  ;;  %v4901_v58 = vld [vmem:[%s19873_s4 + $0x508] sm:$0xff]  ;;  %v4859_v8 = vld [vmem:[%s19873_s4 + $0x3b8] sm:$0xff]  ;;  %v4910_v10 = vld [vmem:[%s19873_s4 + $0x550] sm:$0xff]  ;;  %v10542_v56 = vpack.c.bf16 %v5003_v43, %v5000_v48 }
 0x942   : > { %10471 = vmatprep.subr.bf16.mxu1 %v10470_v62  ;;  %v10506_v62 = vpack.c.bf16 %v4901_v58, %v4898_v46  ;;  %v4951_v46 = vld [vmem:[%s19873_s4 + $0x698] sm:$0xff]  ;;  %v4954_v58 = vld [vmem:[%s19873_s4 + $0x6b0] sm:$0xff]  ;;  %v4976_v43 = vld [vmem:[%s19873_s4 + $0x760] sm:$0xff] }
 0x943   : > { %v4955_v32 = vld [vmem:[%s19873_s4 + $0x6b8] sm:$0xff] }
 0x944   : > { %v4995_v48 = vld [vmem:[%s19873_s4 + $0x7f8] sm:$0xff] }
 0x945   : > { %10473 = vmatpush3.bf16.msra.mxu1 %v10472_v40 }
 0x946   : > { %10475 = vmatprep.subr.bf16.mxu1 %v10474_v7  ;;  %v4856_v7 = vld [vmem:[%s19873_s4 + $0x3a0] sm:$0xff] }
 0x947   : > { %v10512_v45 = vpack.c.bf16 %v4859_v8, %v4856_v7 }
 0x949   : > { %10477 = vmatpush3.bf16.msra.mxu1 %v10476_v42  ;;  %v10514_v42 = vpack.c.bf16 %v4913_v2, %v4910_v10  ;;  %v4934_v10 = vld [vmem:[%s19873_s4 + $0x610] sm:$0xff]  ;;  %v4937_v2 = vld [vmem:[%s19873_s4 + $0x628] sm:$0xff] }
 0x94a   : > { %10479 = vmatprep.subr.bf16.mxu1 %v10478_v12  ;;  %v4862_v12 = vld [vmem:[%s19873_s4 + $0x3d0] sm:$0xff] }
 0x94d   : > { %10481 = vmatpush3.bf16.msra.mxu1 %v10480_v13  ;;  %v10516_v13 = vpack.c.bf16 %v4865_v60, %v4862_v12  ;;  %v4960_v12 = vld [vmem:[%s19873_s4 + $0x6e0] sm:$0xff] }
 0x94e   : > { %10483 = vmatprep.subr.bf16.mxu1 %v10482_v24  ;;  %v4932_v24 = vld [vmem:[%s19873_s4 + $0x600] sm:$0xff] }
 0x94f   : > { %v10340_v29 = vpack.c.bf16 %v4935_v52, %v4932_v24  ;;  %v4988_v60 = vld [vmem:[%s19873_s4 + $0x7c0] sm:$0xff]  ;;  %v4959_v52 = vld [vmem:[%s19873_s4 + $0x6d8] sm:$0xff] }
 0x950   : > { %v4956_v24 = vld [vmem:[%s19873_s4 + $0x6c0] sm:$0xff] }
 0x951   : > { %10485 = vmatpush3.bf16.msra.mxu1 %v10484_v17  ;;  %v4939_v17 = vld [vmem:[%s19873_s4 + $0x638] sm:$0xff] }
 0x952   : > { %10487 = vmatprep.subr.bf16.mxu1 %v10486_v19  ;;  %v4942_v19 = vld [vmem:[%s19873_s4 + $0x650] sm:$0xff] }
 0x953   : > { %v10342_v33 = vpack.c.bf16 %v4942_v19, %v4939_v17  ;;  %v4943_v17 = vld [vmem:[%s19873_s4 + $0x658] sm:$0xff] }
 0x954   : > { %v4963_v19 = vld [vmem:[%s19873_s4 + $0x6f8] sm:$0xff] }
 0x955   : > { %10489 = vmatpush3.bf16.msra.mxu1 %v10488_v30 }
 0x956   : > { %10491 = vmatprep.subr.bf16.mxu1 %v10490_v5  ;;  %v10520_v5 = vpack.c.bf16 %v4871_v11, %v4868_v9  ;;  %v4940_v9 = vld [vmem:[%s19873_s4 + $0x640] sm:$0xff]  ;;  %v10534_v11 = vpack.c.bf16 %v4991_v22, %v4988_v60  ;;  %v4983_v60 = vld [vmem:[%s19873_s4 + $0x798] sm:$0xff] }
 0x957   : > { %v4964_v22 = vld [vmem:[%s19873_s4 + $0x700] sm:$0xff] }
 0x959   : > { %10493 = vmatpush3.bf16.msra.mxu1 %v10492_v35 }
 0x95a   : > { %10495 = vmatprep.subr.bf16.mxu1 %v10494_v37  ;;  %v10522_v37 = vpack.c.bf16 %v4925_v16, %v4922_v21  ;;  %v4994_v21 = vld [vmem:[%s19873_s4 + $0x7f0] sm:$0xff]  ;;  %v4997_v16 = vld [vmem:[%s19873_s4 + $0x808] sm:$0xff] }
 0x95d   : > { %10497 = vmatpush3.bf16.msra.mxu1 %v10496_v31  ;;  %v4931_v31 = vld [vmem:[%s19873_s4 + $0x5f8] sm:$0xff] }
 0x95e   : > { %10499 = vmatprep.subr.bf16.mxu1 %v10498_v27  ;;  %v10344_v27 = vpack.c.bf16 %v4941_v25, %v4938_v55  ;;  %v10526_v50 = vpack.c.bf16 %v4931_v31, %v4928_v47  ;;  %v4965_v55 = vld [vmem:[%s19873_s4 + $0x708] sm:$0xff]  ;;  %v4946_v25 = vld [vmem:[%s19873_s4 + $0x670] sm:$0xff] }
 0x95f   : > { %v10540_v47 = vpack.c.bf16 %v4949_v34, %v4946_v25  ;;  %v5027_v25 = vld [vmem:[%s19873_s4 + $0x8f8] sm:$0xff] }
 0x960   : > { %5489 = vmatmul.mubr.f32.vlgmr.msra.gmra.mrb[34].mxu1 %v15623_v59  ;;  %v4907_v59 = vld [vmem:[%s19873_s4 + $0x538] sm:$0xff] }
 0x961   : > { %10501 = vmatpush3.bf16.msra.mxu1 %v10500_v41  ;;  %v10510_v40 = vpack.c.bf16 %v4907_v59, %v4904_v57  ;;  %v4880_v41 = vld [vmem:[%s19873_s4 + $0x460] sm:$0xff]  ;;  %v10350_v59 = vpack.c.bf16 %v4954_v58, %v4951_v46  ;;  %v5009_v46 = vld [vmem:[%s19873_s4 + $0x868] sm:$0xff] }
 0x962   : > { %10503 = vmatprep.subr.bf16.mxu1 %v10502_v51  ;;  %v10528_v57 = vpack.c.bf16 %v4883_v53, %v4880_v41  ;;  %v4975_v41 = vld [vmem:[%s19873_s4 + $0x758] sm:$0xff]  ;;  %v5006_v53 = vld [vmem:[%s19873_s4 + $0x850] sm:$0xff] }
 0x965   : > { %10505 = vmatpush3.bf16.msra.mxu1 %v10504_v61 }
 0x966   : > { %10507 = vmatprep.subr.bf16.mxu1 %v10506_v62  ;;  %v4982_v62 = vld [vmem:[%s19873_s4 + $0x790] sm:$0xff] }
 0x967   : > { %v10530_v8 = vpack.c.bf16 %v4985_v49, %v4982_v62  ;;  %v4974_v49 = vld [vmem:[%s19873_s4 + $0x750] sm:$0xff] }
 0x969   : > { %10509 = vmatpush3.bf16.msra.mxu1 %v10508_v6  ;;  %v4950_v6 = vld [vmem:[%s19873_s4 + $0x690] sm:$0xff] }
 0x96a   : > { %10511 = vmatprep.subr.bf16.mxu1 %v10510_v40  ;;  %v4953_v40 = vld [vmem:[%s19873_s4 + $0x6a8] sm:$0xff] }
 0x96b   : > { %v10352_v1 = vpack.c.bf16 %v4953_v40, %v4950_v6  ;;  %v4961_v6 = vld [vmem:[%s19873_s4 + $0x6e8] sm:$0xff] }
 0x96c   : > { %v4981_v40 = vld [vmem:[%s19873_s4 + $0x788] sm:$0xff] }
 0x96d   : > { %10513 = vmatpush3.bf16.msra.mxu1 %v10512_v45  ;;  %v16281_v3 = vpop.f32.mrb[22].mxu1  ;;  %v4957_v45 = vld [vmem:[%s19873_s4 + $0x6c8] sm:$0xff] }
 0x96e   : > { %v8967_v14 = vpop.f32.mrb[23].mxu1  ;;  %10515 = vmatprep.subr.bf16.mxu1 %v10514_v42 }
 0x96f   : > { %v10354_v14 = vpack.c.bf16 %v4960_v12, %v4957_v45  ;;  %v4980_v12 = vld [vmem:[%s19873_s4 + $0x780] sm:$0xff] }
 0x971   : > { %10517 = vmatpush3.bf16.msra.mxu1 %v10516_v13  ;;  %v4113_v30 = vpop.f32.mrb[24].mxu1  ;;  %v10532_v13 = vpack.c.bf16 %v4937_v2, %v4934_v10  ;;  %v5015_v10 = vld [vmem:[%s19873_s4 + $0x898] sm:$0xff] }
 0x972   : > { %v8977_v35 = vpop.f32.mrb[25].mxu1  ;;  %5275 = vmatprep.mubr.f32.mxu0 %v4113_v30  ;;  %5558 = vmatprep.mubr.f32.mxu1 %v4113_v30  ;;  %v10536_v30 = vpack.c.bf16 %v4943_v17, %v4940_v9  ;;  %v5018_v9 = vld [vmem:[%s19873_s4 + $0x8b0] sm:$0xff] }
 0x973   : > { %5276 = vmatmul.mubr.f32.vlgmr.msra.gmra.mrb[22].mxu0 %v16281_v3  ;;  %10519 = vmatprep.subr.bf16.mxu1 %v10518_v15  ;;  %v4966_v15 = vld [vmem:[%s19873_s4 + $0x710] sm:$0xff]  ;;  %v4969_v35 = vld [vmem:[%s19873_s4 + $0x728] sm:$0xff] }
 0x974   : > { %10341 = vmatpush1.bf16.msra.mxu0 %v10340_v29  ;;  %v10356_v29 = vpack.c.bf16 %v4959_v52, %v4956_v24  ;;  %v4987_v24 = vld [vmem:[%s19873_s4 + $0x7b8] sm:$0xff]  ;;  %v4990_v52 = vld [vmem:[%s19873_s4 + $0x7d0] sm:$0xff] }
 0x975   : > { %10521 = vmatpush3.bf16.msra.mxu1 %v10520_v5  ;;  %10343 = vmatprep.subr.bf16.mxu0 %v10342_v33  ;;  %v10358_v5 = vpack.c.bf16 %v4966_v15, %v4963_v19  ;;  %v4962_v33 = vld [vmem:[%s19873_s4 + $0x6f0] sm:$0xff]  ;;  %v10374_v19 = vpack.c.bf16 %v4990_v52, %v4987_v24  ;;  %v5013_v52 = vld [vmem:[%s19873_s4 + $0x888] sm:$0xff] }
 0x976   : > { %v16341_v51 = vpop.f32.mrb[26].mxu1  ;;  %10523 = vmatprep.subr.bf16.mxu1 %v10522_v37  ;;  %v4972_v37 = vld [vmem:[%s19873_s4 + $0x740] sm:$0xff]  ;;  %v10360_v38 = vpack.c.bf16 %v4965_v55, %v4962_v33  ;;  %v4986_v15 = vld [vmem:[%s19873_s4 + $0x7b0] sm:$0xff] }
 0x977   : > { %v8987_v61 = vpop.f32.mrb[27].mxu1  ;;  %v10362_v31 = vpack.c.bf16 %v4972_v37, %v4969_v35  ;;  %v4996_v33 = vld [vmem:[%s19873_s4 + $0x800] sm:$0xff]  ;;  %v5010_v24 = vld [vmem:[%s19873_s4 + $0x870] sm:$0xff] }
 0x978   : > { %10345 = vmatpush1.bf16.msra.mxu0 %v10344_v27  ;;  %v4968_v27 = vld [vmem:[%s19873_s4 + $0x720] sm:$0xff] }
 0x979   : > { %10525 = vmatpush3.bf16.msra.mxu1 %v10524_v26  ;;  %10347 = vmatprep.subr.bf16.mxu0 %v10346_v44  ;;  %v4971_v26 = vld [vmem:[%s19873_s4 + $0x738] sm:$0xff]  ;;  %v4952_v44 = vld [vmem:[%s19873_s4 + $0x6a0] sm:$0xff] }
 0x97a   : > { %v4421_v7 = vpop.f32.mrb[28].mxu1  ;;  %10527 = vmatprep.subr.bf16.mxu1 %v10526_v50  ;;  %v4978_v50 = vld [vmem:[%s19873_s4 + $0x770] sm:$0xff]  ;;  %v10364_v58 = vpack.c.bf16 %v4971_v26, %v4968_v27  ;;  %v10544_v61 = vpack.c.bf16 %v4955_v32, %v4952_v44  ;;  %v5024_v55 = vld [vmem:[%s19873_s4 + $0x8e0] sm:$0xff]  ;;  %v5081_v44 = vld [vmem:[%s19873_s4 + $0xaa8] sm:$0xff] }
 0x97b   : > { %v8997_v42 = vpop.f32.mrb[29].mxu1  ;;  %5346 = vmatprep.mubr.f32.mxu0 %v4421_v7  ;;  %v10366_v62 = vpack.c.bf16 %v4978_v50, %v4975_v41  ;;  %v4992_v37 = vld [vmem:[%s19873_s4 + $0x7e0] sm:$0xff]  ;;  %v5002_v27 = vld [vmem:[%s19873_s4 + $0x830] sm:$0xff] }
 0x97c   : > { %10349 = vmatpush1.bf16.msra.mxu0 %v10348_v0  ;;  %v4977_v0 = vld [vmem:[%s19873_s4 + $0x768] sm:$0xff]  ;;  %v5078_v26 = vld [vmem:[%s19873_s4 + $0xa90] sm:$0xff] }
 0x97d   : > { %10529 = vmatpush3.bf16.msra.mxu1 %v10528_v57  ;;  %10351 = vmatprep.subr.bf16.mxu0 %v10350_v59  ;;  %v4958_v57 = vld [vmem:[%s19873_s4 + $0x6d0] sm:$0xff]  ;;  %v10546_v59 = vpack.c.bf16 %v5009_v46, %v5006_v53  ;;  %v10368_v2 = vpack.c.bf16 %v4977_v0, %v4974_v49  ;;  %v5001_v53 = vld [vmem:[%s19873_s4 + $0x828] sm:$0xff]  ;;  %v5084_v0 = vld [vmem:[%s19873_s4 + $0xac0] sm:$0xff] }
 0x97e   : > { %10531 = vmatprep.subr.bf16.mxu1 %v10530_v8  ;;  %v5012_v8 = vld [vmem:[%s19873_s4 + $0x880] sm:$0xff]  ;;  %v10548_v45 = vpack.c.bf16 %v4961_v6, %v4958_v57  ;;  %v4998_v50 = vld [vmem:[%s19873_s4 + $0x810] sm:$0xff]  ;;  %v5005_v46 = vld [vmem:[%s19873_s4 + $0x848] sm:$0xff] }
 0x97f   : > { %v5033_v49 = vld [vmem:[%s19873_s4 + $0x928] sm:$0xff]  ;;  %v5087_v57 = vld [vmem:[%s19873_s4 + $0xad8] sm:$0xff] }
 0x980   : > { %10353 = vmatpush1.bf16.msra.mxu0 %v10352_v1  ;;  %5559 = vmatmul.mubr.f32.vlgmr.msra.gmra.mrb[36].mxu1 %v16281_v3  ;;  %v10538_v3 = vpack.c.bf16 %v4997_v16, %v4994_v21  ;;  %v10550_v1 = vpack.c.bf16 %v5015_v10, %v5012_v8  ;;  %v4989_v21 = vld [vmem:[%s19873_s4 + $0x7c8] sm:$0xff]  ;;  %v4970_v16 = vld [vmem:[%s19873_s4 + $0x730] sm:$0xff]  ;;  %v5011_v8 = vld [vmem:[%s19873_s4 + $0x878] sm:$0xff] }
 0x981   : > { %10533 = vmatpush3.bf16.msra.mxu1 %v10532_v13  ;;  %5628 = vmatprep.mubr.f32.mxu1 %v4421_v7  ;;  %v4984_v7 = vld [vmem:[%s19873_s4 + $0x7a0] sm:$0xff]  ;;  %v4967_v13 = vld [vmem:[%s19873_s4 + $0x718] sm:$0xff] }
 0x982   : > { %10355 = vmatprep.subr.bf16.mxu0 %v10354_v14  ;;  %10535 = vmatprep.subr.bf16.mxu1 %v10534_v11  ;;  %v10370_v42 = vpack.c.bf16 %v4984_v7, %v4981_v40  ;;  %v5021_v14 = vld [vmem:[%s19873_s4 + $0x8c8] sm:$0xff]  ;;  %v10372_v11 = vpack.c.bf16 %v4983_v60, %v4980_v12  ;;  %v10552_v17 = vpack.c.bf16 %v4967_v13, %v4964_v22  ;;  %v5004_v40 = vld [vmem:[%s19873_s4 + $0x840] sm:$0xff]  ;;  %v5007_v7 = vld [vmem:[%s19873_s4 + $0x858] sm:$0xff] }
 0x983   : > { %v5039_v12 = vld [vmem:[%s19873_s4 + $0x958] sm:$0xff]  ;;  %v5090_v60 = vld [vmem:[%s19873_s4 + $0xaf0] sm:$0xff]  ;;  %v5093_v22 = vld [vmem:[%s19873_s4 + $0xb08] sm:$0xff] }
 0x984   : > { %10357 = vmatpush1.bf16.msra.mxu0 %v10356_v29  ;;  %v10554_v29 = vpack.c.bf16 %v5021_v14, %v5018_v9  ;;  %v5017_v9 = vld [vmem:[%s19873_s4 + $0x8a8] sm:$0xff] }
 0x985   : > { %10537 = vmatpush3.bf16.msra.mxu1 %v10536_v30  ;;  %10359 = vmatprep.subr.bf16.mxu0 %v10358_v5  ;;  %v4973_v30 = vld [vmem:[%s19873_s4 + $0x748] sm:$0xff] }
 0x986   : > { %10539 = vmatprep.subr.bf16.mxu1 %v10538_v3  ;;  %v4993_v5 = vld [vmem:[%s19873_s4 + $0x7e8] sm:$0xff]  ;;  %v10376_v3 = vpack.c.bf16 %v4989_v21, %v4986_v15  ;;  %v10556_v34 = vpack.c.bf16 %v4973_v30, %v4970_v16  ;;  %v5096_v21 = vld [vmem:[%s19873_s4 + $0xb20] sm:$0xff]  ;;  %v5099_v16 = vld [vmem:[%s19873_s4 + $0xb38] sm:$0xff] }
 0x987   : > { %v10378_v35 = vpack.c.bf16 %v4996_v33, %v4993_v5  ;;  %v5045_v15 = vld [vmem:[%s19873_s4 + $0x988] sm:$0xff]  ;;  %v5016_v5 = vld [vmem:[%s19873_s4 + $0x8a0] sm:$0xff]  ;;  %v5019_v33 = vld [vmem:[%s19873_s4 + $0x8b8] sm:$0xff] }
 0x988   : > { %10361 = vmatpush1.bf16.msra.mxu0 %v10360_v38  ;;  %v10558_v38 = vpack.c.bf16 %v5027_v25, %v5024_v55  ;;  %v5023_v55 = vld [vmem:[%s19873_s4 + $0x8d8] sm:$0xff] }
 0x989   : > { %10541 = vmatpush3.bf16.msra.mxu1 %v10540_v47  ;;  %10363 = vmatprep.subr.bf16.mxu0 %v10362_v31  ;;  %v4979_v47 = vld [vmem:[%s19873_s4 + $0x778] sm:$0xff] }
 0x98a   : > { %10543 = vmatprep.subr.bf16.mxu1 %v10542_v56  ;;  %v4999_v31 = vld [vmem:[%s19873_s4 + $0x818] sm:$0xff]  ;;  %v10380_v56 = vpack.c.bf16 %v4995_v48, %v4992_v37  ;;  %v10560_v32 = vpack.c.bf16 %v4979_v47, %v4976_v43  ;;  %v5102_v48 = vld [vmem:[%s19873_s4 + $0xb50] sm:$0xff]  ;;  %v5105_v43 = vld [vmem:[%s19873_s4 + $0xb68] sm:$0xff] }
 0x98b   : > { %v10382_v41 = vpack.c.bf16 %v5002_v27, %v4999_v31  ;;  %v5051_v37 = vld [vmem:[%s19873_s4 + $0x9b8] sm:$0xff]  ;;  %v5022_v31 = vld [vmem:[%s19873_s4 + $0x8d0] sm:$0xff]  ;;  %v5025_v27 = vld [vmem:[%s19873_s4 + $0x8e8] sm:$0xff] }
 0x98c   : > { %10365 = vmatpush1.bf16.msra.mxu0 %v10364_v58  ;;  %v5008_v58 = vld [vmem:[%s19873_s4 + $0x860] sm:$0xff] }
 0x98d   : > { %10545 = vmatpush3.bf16.msra.mxu1 %v10544_v61  ;;  %10367 = vmatprep.subr.bf16.mxu0 %v10366_v62  ;;  %v10562_v61 = vpack.c.bf16 %v5081_v44, %v5078_v26  ;;  %v5030_v62 = vld [vmem:[%s19873_s4 + $0x910] sm:$0xff]  ;;  %v10386_v6 = vpack.c.bf16 %v5008_v58, %v5005_v46  ;;  %v5029_v26 = vld [vmem:[%s19873_s4 + $0x908] sm:$0xff]  ;;  %v5111_v46 = vld [vmem:[%s19873_s4 + $0xb98] sm:$0xff]  ;;  %v10400_v58 = vpack.c.bf16 %v5025_v27, %v5022_v31 }
 0x98e   : > { %10547 = vmatprep.subr.bf16.mxu1 %v10546_v59  ;;  %v10384_v59 = vpack.c.bf16 %v5001_v53, %v4998_v50  ;;  %v10564_v10 = vpack.c.bf16 %v5033_v49, %v5030_v62  ;;  %v5057_v50 = vld [vmem:[%s19873_s4 + $0x9e8] sm:$0xff]  ;;  %v5108_v53 = vld [vmem:[%s19873_s4 + $0xb80] sm:$0xff]  ;;  %v5031_v49 = vld [vmem:[%s19873_s4 + $0x918] sm:$0xff] }
 0x98f   : > { %v5028_v62 = vld [vmem:[%s19873_s4 + $0x900] sm:$0xff]  ;;  %v5059_v31 = vld [vmem:[%s19873_s4 + $0x9f8] sm:$0xff]  ;;  %v5062_v27 = vld [vmem:[%s19873_s4 + $0xa10] sm:$0xff] }
 0x990   : > { %10369 = vmatpush1.bf16.msra.mxu0 %v10368_v2  ;;  %v5014_v2 = vld [vmem:[%s19873_s4 + $0x890] sm:$0xff] }
 0x991   : > { %10549 = vmatpush3.bf16.msra.mxu1 %v10548_v45  ;;  %10371 = vmatprep.subr.bf16.mxu0 %v10370_v42  ;;  %v10566_v45 = vpack.c.bf16 %v5087_v57, %v5084_v0  ;;  %v5036_v42 = vld [vmem:[%s19873_s4 + $0x940] sm:$0xff]  ;;  %v10390_v13 = vpack.c.bf16 %v5014_v2, %v5011_v8  ;;  %v5035_v0 = vld [vmem:[%s19873_s4 + $0x938] sm:$0xff]  ;;  %v5114_v8 = vld [vmem:[%s19873_s4 + $0xbb0] sm:$0xff]  ;;  %v10404_v2 = vpack.c.bf16 %v5031_v49, %v5028_v62 }
 0x992   : > { %10551 = vmatprep.subr.bf16.mxu1 %v10550_v1  ;;  %v10388_v1 = vpack.c.bf16 %v5007_v7, %v5004_v40  ;;  %v10568_v14 = vpack.c.bf16 %v5039_v12, %v5036_v42  ;;  %v5060_v40 = vld [vmem:[%s19873_s4 + $0xa00] sm:$0xff]  ;;  %v5063_v7 = vld [vmem:[%s19873_s4 + $0xa18] sm:$0xff]  ;;  %v5034_v42 = vld [vmem:[%s19873_s4 + $0x930] sm:$0xff] }
 0x993   : > { %v5037_v12 = vld [vmem:[%s19873_s4 + $0x948] sm:$0xff]  ;;  %v5071_v62 = vld [vmem:[%s19873_s4 + $0xa58] sm:$0xff]  ;;  %v5074_v49 = vld [vmem:[%s19873_s4 + $0xa70] sm:$0xff] }
 0x994   : > { %10373 = vmatpush1.bf16.msra.mxu0 %v10372_v11  ;;  %v5020_v11 = vld [vmem:[%s19873_s4 + $0x8c0] sm:$0xff] }
 0x995   : > { %10553 = vmatpush3.bf16.msra.mxu1 %v10552_v17  ;;  %10375 = vmatprep.subr.bf16.mxu0 %v10374_v19  ;;  %v10570_v17 = vpack.c.bf16 %v5093_v22, %v5090_v60  ;;  %v5042_v19 = vld [vmem:[%s19873_s4 + $0x970] sm:$0xff]  ;;  %v10394_v30 = vpack.c.bf16 %v5020_v11, %v5017_v9  ;;  %v5041_v60 = vld [vmem:[%s19873_s4 + $0x968] sm:$0xff]  ;;  %v10584_v22 = vpack.c.bf16 %v5063_v7, %v5060_v40  ;;  %v5120_v9 = vld [vmem:[%s19873_s4 + $0xbe0] sm:$0xff] }
 0x996   : > { %10555 = vmatprep.subr.bf16.mxu1 %v10554_v29  ;;  %v10392_v29 = vpack.c.bf16 %v5013_v52, %v5010_v24  ;;  %v10572_v25 = vpack.c.bf16 %v5045_v15, %v5042_v19  ;;  %v5066_v24 = vld [vmem:[%s19873_s4 + $0xa30] sm:$0xff]  ;;  %v5069_v52 = vld [vmem:[%s19873_s4 + $0xa48] sm:$0xff]  ;;  %v10408_v11 = vpack.c.bf16 %v5037_v12, %v5034_v42  ;;  %v5040_v19 = vld [vmem:[%s19873_s4 + $0x960] sm:$0xff] }
 0x997   : > { %v5047_v15 = vld [vmem:[%s19873_s4 + $0x998] sm:$0xff]  ;;  %v5077_v40 = vld [vmem:[%s19873_s4 + $0xa88] sm:$0xff]  ;;  %v5080_v7 = vld [vmem:[%s19873_s4 + $0xaa0] sm:$0xff] }
 0x998   : > { %10377 = vmatpush1.bf16.msra.mxu0 %v10376_v3  ;;  %v5026_v3 = vld [vmem:[%s19873_s4 + $0x8f0] sm:$0xff]  ;;  %v5083_v42 = vld [vmem:[%s19873_s4 + $0xab8] sm:$0xff] }
 0x999   : > { %10557 = vmatpush3.bf16.msra.mxu1 %v10556_v34  ;;  %10379 = vmatprep.subr.bf16.mxu0 %v10378_v35  ;;  %v10574_v34 = vpack.c.bf16 %v5099_v16, %v5096_v21  ;;  %v5048_v35 = vld [vmem:[%s19873_s4 + $0x9a0] sm:$0xff]  ;;  %v10398_v47 = vpack.c.bf16 %v5026_v3, %v5023_v55  ;;  %v10588_v21 = vpack.c.bf16 %v5069_v52, %v5066_v24  ;;  %v5050_v16 = vld [vmem:[%s19873_s4 + $0x9b0] sm:$0xff]  ;;  %v5049_v3 = vld [vmem:[%s19873_s4 + $0x9a8] sm:$0xff] }
 0x99a   : > { %10559 = vmatprep.subr.bf16.mxu1 %v10558_v38  ;;  %v10396_v38 = vpack.c.bf16 %v5019_v33, %v5016_v5  ;;  %v10576_v44 = vpack.c.bf16 %v5051_v37, %v5048_v35  ;;  %v5075_v5 = vld [vmem:[%s19873_s4 + $0xa78] sm:$0xff]  ;;  %v10414_v55 = vpack.c.bf16 %v5050_v16, %v5047_v15  ;;  %v5053_v35 = vld [vmem:[%s19873_s4 + $0x9c8] sm:$0xff]  ;;  %v5056_v37 = vld [vmem:[%s19873_s4 + $0x9e0] sm:$0xff] }
 0x99b   : > { %v5086_v12 = vld [vmem:[%s19873_s4 + $0xad0] sm:$0xff]  ;;  %v5089_v24 = vld [vmem:[%s19873_s4 + $0xae8] sm:$0xff]  ;;  %v5092_v52 = vld [vmem:[%s19873_s4 + $0xb00] sm:$0xff] }
 0x99c   : > { %10381 = vmatpush1.bf16.msra.mxu0 %v10380_v56  ;;  %v5032_v56 = vld [vmem:[%s19873_s4 + $0x920] sm:$0xff]  ;;  %v5094_v16 = vld [vmem:[%s19873_s4 + $0xb10] sm:$0xff] }
 0x99d   : > { %10561 = vmatpush3.bf16.msra.mxu1 %v10560_v32  ;;  %10383 = vmatprep.subr.bf16.mxu0 %v10382_v41  ;;  %v10578_v32 = vpack.c.bf16 %v5105_v43, %v5102_v48  ;;  %v5054_v41 = vld [vmem:[%s19873_s4 + $0x9d0] sm:$0xff]  ;;  %v10418_v43 = vpack.c.bf16 %v5056_v37, %v5053_v35 }
 0x99e   : > { %10563 = vmatprep.subr.bf16.mxu1 %v10562_v61  ;;  %v10402_v61 = vpack.c.bf16 %v5032_v56, %v5029_v26  ;;  %v10580_v57 = vpack.c.bf16 %v5057_v50, %v5054_v41  ;;  %v5058_v56 = vld [vmem:[%s19873_s4 + $0x9f0] sm:$0xff]  ;;  %v5065_v41 = vld [vmem:[%s19873_s4 + $0xa28] sm:$0xff]  ;;  %v5068_v50 = vld [vmem:[%s19873_s4 + $0xa40] sm:$0xff] }
 0x99f   : > { %v5110_v35 = vld [vmem:[%s19873_s4 + $0xb90] sm:$0xff] }
 0x9a0   : > { %10385 = vmatpush1.bf16.msra.mxu0 %v10384_v59  ;;  %5629 = vmatmul.mubr.f32.vlgmr.msra.gmra.mrb[38].mxu1 %v16341_v51  ;;  %v5038_v59 = vld [vmem:[%s19873_s4 + $0x950] sm:$0xff] }
 0x9a1   : > { %10387 = vmatprep.subr.bf16.mxu0 %v10386_v6  ;;  %10565 = vmatpush3.bf16.msra.mxu1 %v10564_v10  ;;  %v10582_v6 = vpack.c.bf16 %v5111_v46, %v5108_v53  ;;  %v5117_v10 = vld [vmem:[%s19873_s4 + $0xbc8] sm:$0xff]  ;;  %v10426_v46 = vpack.c.bf16 %v5068_v50, %v5065_v41  ;;  %v5122_v41 = vld [vmem:[%s19873_s4 + $0xbf0] sm:$0xff] }
 0x9a2   : > { %10567 = vmatprep.subr.bf16.mxu1 %v10566_v45  ;;  %v10406_v45 = vpack.c.bf16 %v5038_v59, %v5035_v0  ;;  %v5070_v59 = vld [vmem:[%s19873_s4 + $0xa50] sm:$0xff] }
 0x9a4   : > { %10389 = vmatpush1.bf16.msra.mxu0 %v10388_v1  ;;  %v5044_v1 = vld [vmem:[%s19873_s4 + $0x980] sm:$0xff] }
 0x9a5   : > { %10391 = vmatprep.subr.bf16.mxu0 %v10390_v13  ;;  %10569 = vmatpush3.bf16.msra.mxu1 %v10568_v14  ;;  %v10586_v13 = vpack.c.bf16 %v5117_v10, %v5114_v8  ;;  %v5123_v14 = vld [vmem:[%s19873_s4 + $0xbf8] sm:$0xff]  ;;  %v10434_v10 = vpack.c.bf16 %v5080_v7, %v5077_v40  ;;  %v4733_v7 = vld [vmem:[%s19874_s5] ss:$4 sm:$0x7] }
 0x9a6   : > { %10571 = vmatprep.subr.bf16.mxu1 %v10570_v17  ;;  %v10410_v17 = vpack.c.bf16 %v5044_v1, %v5041_v60  ;;  %v5082_v1 = vld [vmem:[%s19873_s4 + $0xab0] sm:$0xff] }
 0x9a8   : > { %10393 = vmatpush1.bf16.msra.mxu0 %v10392_v29  ;;  %v10590_v29 = vpack.c.bf16 %v5123_v14, %v5120_v9  ;;  %v10442_v14 = vpack.c.bf16 %v5092_v52, %v5089_v24  ;;  %v5128_v24 = vrot.slane %v4733_v7, %v15493_v4  ;;  %v5132_v52 = vrot.slane %v4733_v7, %v15606_v18 }
 0x9a9   : > { %10395 = vmatprep.subr.bf16.mxu0 %v10394_v30  ;;  %10573 = vmatpush3.bf16.msra.mxu1 %v10572_v25  ;;  %v5072_v30 = vld [vmem:[%s19873_s4 + $0xa60] sm:$0xff]  ;;  %v5046_v25 = vld [vmem:[%s19873_s4 + $0x990] sm:$0xff] }
 0x9aa   : > { %10575 = vmatprep.subr.bf16.mxu1 %v10574_v34  ;;  %v10592_v34 = vpack.c.bf16 %v5075_v5, %v5072_v30  ;;  %v10416_v48 = vpack.c.bf16 %v5049_v3, %v5046_v25  ;;  %v5101_v30 = vld [vmem:[%s19873_s4 + $0xb48] sm:$0xff]  ;;  %v5104_v5 = vld [vmem:[%s19873_s4 + $0xb60] sm:$0xff]  ;;  %v5103_v3 = vld [vmem:[%s19873_s4 + $0xb58] sm:$0xff] }
 0x9ab   : > { %v5100_v25 = vld [vmem:[%s19873_s4 + $0xb40] sm:$0xff] }
 0x9ac   : > { %10397 = vmatpush1.bf16.msra.mxu0 %v10396_v38  ;;  %v5052_v38 = vld [vmem:[%s19873_s4 + $0x9c0] sm:$0xff]  ;;  %v10452_v37 = vpack.c.bf16 %v5103_v3, %v5100_v25 }
 0x9ad   : > { %10399 = vmatprep.subr.bf16.mxu0 %v10398_v47  ;;  %10577 = vmatpush3.bf16.msra.mxu1 %v10576_v44  ;;  %v5055_v47 = vld [vmem:[%s19873_s4 + $0x9d8] sm:$0xff]  ;;  %v10422_v44 = vpack.c.bf16 %v5062_v27, %v5059_v31  ;;  %v5116_v31 = vld [vmem:[%s19873_s4 + $0xbc0] sm:$0xff] }
 0x9ae   : > { %10579 = vmatprep.subr.bf16.mxu1 %v10578_v32  ;;  %v10420_v26 = vpack.c.bf16 %v5055_v47, %v5052_v38  ;;  %v5061_v32 = vld [vmem:[%s19873_s4 + $0xa08] sm:$0xff] }
 0x9af   : > { %v10424_v53 = vpack.c.bf16 %v5061_v32, %v5058_v56  ;;  %v5109_v38 = vld [vmem:[%s19873_s4 + $0xb88] sm:$0xff]  ;;  %v5115_v56 = vld [vmem:[%s19873_s4 + $0xbb8] sm:$0xff] }
 0x9b0   : > { %10401 = vmatpush1.bf16.msra.mxu0 %v10400_v58  ;;  %v5064_v58 = vld [vmem:[%s19873_s4 + $0xa20] sm:$0xff]  ;;  %v5113_v47 = vld [vmem:[%s19873_s4 + $0xba8] sm:$0xff]  ;;  %v5119_v32 = vld [vmem:[%s19873_s4 + $0xbd8] sm:$0xff] }
 0x9b1   : > { %10403 = vmatprep.subr.bf16.mxu0 %v10402_v61  ;;  %10581 = vmatpush3.bf16.msra.mxu1 %v10580_v57  ;;  %v5067_v61 = vld [vmem:[%s19873_s4 + $0xa38] sm:$0xff]  ;;  %v10430_v57 = vpack.c.bf16 %v5074_v49, %v5071_v62 }
 0x9b2   : > { %10583 = vmatprep.subr.bf16.mxu1 %v10582_v6  ;;  %v10428_v0 = vpack.c.bf16 %v5067_v61, %v5064_v58  ;;  %v5073_v6 = vld [vmem:[%s19873_s4 + $0xa68] sm:$0xff] }
 0x9b3   : > { %5347 = vmatmul.mubr.f32.vlgmr.msra.gmra.mrb[22].mxu0 %v16341_v51  ;;  %v5043_v51 = vld [vmem:[%s19873_s4 + $0x978] sm:$0xff]  ;;  %v10432_v8 = vpack.c.bf16 %v5073_v6, %v5070_v59  ;;  %v5121_v58 = vld [vmem:[%s19873_s4 + $0xbe8] sm:$0xff] }
 0x9b4   : > { %10405 = vmatpush1.bf16.msra.mxu0 %v10404_v2  ;;  %v10412_v33 = vpack.c.bf16 %v5043_v51, %v5040_v19  ;;  %v5076_v2 = vld [vmem:[%s19873_s4 + $0xa80] sm:$0xff]  ;;  %v5095_v19 = vld [vmem:[%s19873_s4 + $0xb18] sm:$0xff]  ;;  %v5098_v51 = vld [vmem:[%s19873_s4 + $0xb30] sm:$0xff] }
 0x9b5   : > { %10407 = vmatprep.subr.bf16.mxu0 %v10406_v45  ;;  %10585 = vmatpush3.bf16.msra.mxu1 %v10584_v22  ;;  %v5079_v45 = vld [vmem:[%s19873_s4 + $0xa98] sm:$0xff]  ;;  %v10438_v22 = vpack.c.bf16 %v5086_v12, %v5083_v42 }
 0x9b6   : > { %10587 = vmatprep.subr.bf16.mxu1 %v10586_v13  ;;  %v10436_v60 = vpack.c.bf16 %v5079_v45, %v5076_v2  ;;  %v5085_v13 = vld [vmem:[%s19873_s4 + $0xac8] sm:$0xff] }
 0x9b7   : > { %v10440_v9 = vpack.c.bf16 %v5085_v13, %v5082_v1 }
 0x9b8   : > { %10409 = vmatpush1.bf16.msra.mxu0 %v10408_v11  ;;  %v5088_v11 = vld [vmem:[%s19873_s4 + $0xae0] sm:$0xff] }
 0x9b9   : > { %10411 = vmatprep.subr.bf16.mxu0 %v10410_v17  ;;  %10589 = vmatpush3.bf16.msra.mxu1 %v10588_v21  ;;  %v5091_v17 = vld [vmem:[%s19873_s4 + $0xaf8] sm:$0xff]  ;;  %v10446_v21 = vpack.c.bf16 %v5098_v51, %v5095_v19 }
 0x9ba   : > { %10591 = vmatprep.subr.bf16.mxu1 %v10590_v29  ;;  %v10444_v15 = vpack.c.bf16 %v5091_v17, %v5088_v11  ;;  %v5097_v29 = vld [vmem:[%s19873_s4 + $0xb28] sm:$0xff] }
 0x9bc   : > { %10413 = vmatpush1.bf16.msra.mxu0 %v10412_v33  ;;  %v10448_v33 = vpack.c.bf16 %v5097_v29, %v5094_v16  ;;  %v11715_v29 = vld [vmem:[%s12202_s23 + $0x8] sm:$0xff] }
 0x9bd   : > { %10415 = vmatprep.subr.bf16.mxu0 %v10414_v55  ;;  %10593 = vmatpush3.bf16.msra.mxu1 %v10592_v34  ;;  %v10450_v55 = vpack.c.bf16 %v5104_v5, %v5101_v30  ;;  %v5107_v34 = vld [vmem:[%s19873_s4 + $0xb78] sm:$0xff] }
 0x9c0   : > { %10417 = vmatpush1.bf16.msra.mxu0 %v10416_v48  ;;  %v10454_v48 = vpack.c.bf16 %v5110_v35, %v5107_v34  ;;  %v5768_v34 = vld [vmem:[%s19875_s6 + $0x8] sm:$0xff] }
 0x9c1   : > { %10419 = vmatprep.subr.bf16.mxu0 %v10418_v43  ;;  %v5106_v43 = vld [vmem:[%s19873_s4 + $0xb70] sm:$0xff]  ;;  %v5776_v35 = vld [vmem:[%s19875_s6 + $0x48] sm:$0xff] }
 0x9c2   : > { %v10456_v27 = vpack.c.bf16 %v5109_v38, %v5106_v43  ;;  %v5780_v43 = vld [vmem:[%s19875_s6 + $0x68] sm:$0xff]  ;;  %v5767_v38 = vld [vmem:[%s19875_s6] sm:$0xff] }
 0x9c4   : > { %10421 = vmatpush1.bf16.msra.mxu0 %v10420_v26  ;;  %v10458_v26 = vpack.c.bf16 %v5116_v31, %v5113_v47  ;;  %v5775_v47 = vld [vmem:[%s19875_s6 + $0x40] sm:$0xff] }
 0x9c5   : > { %10423 = vmatprep.subr.bf16.mxu0 %v10422_v44  ;;  %v5112_v44 = vld [vmem:[%s19873_s4 + $0xba0] sm:$0xff] }
 0x9c6   : > { %v10460_v50 = vpack.c.bf16 %v5115_v56, %v5112_v44  ;;  %v5779_v44 = vld [vmem:[%s19875_s6 + $0x60] sm:$0xff]  ;;  %v5784_v56 = vld [vmem:[%s19875_s6 + $0x88] sm:$0xff] }
 0x9c8   : > { %10425 = vmatpush1.bf16.msra.mxu0 %v10424_v53  ;;  %v10462_v53 = vpack.c.bf16 %v5122_v41, %v5119_v32  ;;  %v5792_v41 = vld [vmem:[%s19875_s6 + $0xc8] sm:$0xff] }
 0x9c9   : > { %10427 = vmatprep.subr.bf16.mxu0 %v10426_v46  ;;  %v5118_v46 = vld [vmem:[%s19873_s4 + $0xbd0] sm:$0xff] }
 0x9ca   : > { %v10464_v61 = vpack.c.bf16 %v5121_v58, %v5118_v46  ;;  %v10598_v46 = vpack.c.bf16 %v5792_v41, %v5784_v56  ;;  %v5847_v41 = vld [vmem:[%s19875_s6 + $0x280] sm:$0xff] }
 0x9cc   : > { %10429 = vmatpush1.bf16.msra.mxu0 %v10428_v0 }
 0x9cd   : > { %10431 = vmatprep.subr.bf16.mxu0 %v10430_v57 }
 0x9d0   : > { %10433 = vmatpush1.bf16.msra.mxu0 %v10432_v8  ;;  %v5136_v8 = vrot.slane %v4733_v7, %v15633_v63 }
 0x9d1   : > { %10435 = vmatprep.subr.bf16.mxu0 %v10434_v10 }
 0x9d4   : > { %10437 = vmatpush1.bf16.msra.mxu0 %v10436_v60 }
 0x9d5   : > { %10439 = vmatprep.subr.bf16.mxu0 %v10438_v22 }
 0x9d8   : > { %10441 = vmatpush1.bf16.msra.mxu0 %v10440_v9 }
 0x9d9   : > { %10443 = vmatprep.subr.bf16.mxu0 %v10442_v14 }
 0x9dc   : > { %10445 = vmatpush1.bf16.msra.mxu0 %v10444_v15 }
 0x9dd   : > { %10447 = vmatprep.subr.bf16.mxu0 %v10446_v21  ;;  %v11714_v21 = vld [vmem:[%s12202_s23] sm:$0xff] }
 0x9e0   : > { %10449 = vmatpush1.bf16.msra.mxu0 %v10448_v33  ;;  %v11716_v33 = vld [vmem:[%s12202_s23 + $0x10] sm:$0xff]  ;;  %s19827_s23 = scalar_lea.hbm %s19905_s17, %s8569_s15 }
 0x9e1   : > { %10451 = vmatprep.subr.bf16.mxu0 %v10450_v55 }
 0x9e4   : > { %10453 = vmatpush1.bf16.msra.mxu0 %v10452_v37  ;;  %v5772_v37 = vld [vmem:[%s19875_s6 + $0x28] sm:$0xff] }
 0x9e5   : > { %10455 = vmatprep.subr.bf16.mxu0 %v10454_v48  ;;  %v10594_v48 = vpack.c.bf16 %v5776_v35, %v5768_v34  ;;  %v10786_v31 = vpack.c.bf16 %v5780_v43, %v5772_v37  ;;  %v5831_v35 = vld [vmem:[%s19875_s6 + $0x200] sm:$0xff] }
 0x9e6   : > { %v5839_v37 = vld [vmem:[%s19875_s6 + $0x240] sm:$0xff] }
 0x9e7   : > { %10595 = vmatprep.subr.bf16.mxu1 %v10594_v48  ;;  %v5835_v48 = vld [vmem:[%s19875_s6 + $0x220] sm:$0xff] }
 0x9e8   : > { %10457 = vmatpush1.bf16.msra.mxu0 %v10456_v27  ;;  %v10596_v27 = vpack.c.bf16 %v5775_v47, %v5767_v38  ;;  %v5843_v38 = vld [vmem:[%s19875_s6 + $0x260] sm:$0xff]  ;;  %v5848_v47 = vld [vmem:[%s19875_s6 + $0x288] sm:$0xff] }
 0x9e9   : > { %10459 = vmatprep.subr.bf16.mxu0 %v10458_v26  ;;  %v5771_v26 = vld [vmem:[%s19875_s6 + $0x20] sm:$0xff]  ;;  %v10804_v56 = vpack.c.bf16 %v5843_v38, %v5835_v48  ;;  %v5920_v48 = vld [vmem:[%s19875_s6 + $0x4c8] sm:$0xff] }
 0x9ea   : > { %v10788_v32 = vpack.c.bf16 %v5779_v44, %v5771_v26  ;;  %v5860_v26 = vld [vmem:[%s19875_s6 + $0x2e8] sm:$0xff]  ;;  %v10612_v44 = vpack.c.bf16 %v5839_v37, %v5831_v35  ;;  %v5907_v35 = vld [vmem:[%s19875_s6 + $0x460] sm:$0xff] }
 0x9eb   : > { %v5912_v37 = vld [vmem:[%s19875_s6 + $0x488] sm:$0xff] }
 0x9ec   : > { %10461 = vmatpush1.bf16.msra.mxu0 %v10460_v50  ;;  %v5788_v50 = vld [vmem:[%s19875_s6 + $0xa8] sm:$0xff] }
 0x9ed   : > { %10463 = vmatprep.subr.bf16.mxu0 %v10462_v53  ;;  %v5796_v53 = vld [vmem:[%s19875_s6 + $0xe8] sm:$0xff] }
 0x9ee   : > { %v10790_v58 = vpack.c.bf16 %v5796_v53, %v5788_v50  ;;  %v5855_v50 = vld [vmem:[%s19875_s6 + $0x2c0] sm:$0xff]  ;;  %v5924_v38 = vld [vmem:[%s19875_s6 + $0x4e8] sm:$0xff] }
 0x9ef   : > { %v5851_v53 = vld [vmem:[%s19875_s6 + $0x2a0] sm:$0xff] }
 0x9f0   : > { %10465 = vmatpush1.bf16.msra.mxu0 %v10464_v61  ;;  %v5783_v61 = vld [vmem:[%s19875_s6 + $0x80] sm:$0xff] }
 0x9f1   : > { %10787 = vmatprep.subr.bf16.mxu0 %v10786_v31  ;;  %v5856_v31 = vld [vmem:[%s19875_s6 + $0x2c8] sm:$0xff] }
 0xa0f   : > { %v4575_v62 = vpop.f32.mrb[30].mxu1 }
 0xa10   : > { %v9007_v49 = vpop.f32.mrb[31].mxu1 }
 0xa11   : > { %v5787_v49 = vld [vmem:[%s19875_s6 + $0xa0] sm:$0xff] }
 0xa13   : > { %v4729_v0 = vpop.f32.mrb[32].mxu1 }
 0xa14   : > { %v9017_v57 = vpop.f32.mrb[33].mxu1  ;;  %5417 = vmatprep.mubr.f32.mxu0 %v4729_v0  ;;  %5698 = vmatprep.mubr.f32.mxu1 %v4729_v0 }
 0xa15   : > { %5418 = vmatmul.mubr.f32.vlgmr.msra.gmra.mrb[22].mxu0 %v4575_v62  ;;  %5699 = vmatmul.mubr.f32.vlgmr.msra.gmra.mrb[40].mxu1 %v4575_v62  ;;  %v5791_v62 = vld [vmem:[%s19875_s6 + $0xc0] sm:$0xff] }
 0xa16   : > { %10597 = vmatpush1.bf16.msra.mxu1 %v10596_v27  ;;  %10789 = vmatpush1.bf16.msra.mxu0 %v10788_v32  ;;  %v10600_v0 = vpack.c.bf16 %v5791_v62, %v5783_v61  ;;  %v5795_v57 = vld [vmem:[%s19875_s6 + $0xe0] sm:$0xff]  ;;  %v5852_v27 = vld [vmem:[%s19875_s6 + $0x2a8] sm:$0xff]  ;;  %v10614_v32 = vpack.c.bf16 %v5856_v31, %v5848_v47 }
 0xa17   : > { %10599 = vmatprep.subr.bf16.mxu1 %v10598_v46  ;;  %10791 = vmatprep.subr.bf16.mxu0 %v10790_v58  ;;  %v10806_v46 = vpack.c.bf16 %v5860_v26, %v5852_v27  ;;  %v5859_v58 = vld [vmem:[%s19875_s6 + $0x2e0] sm:$0xff]  ;;  %v5864_v61 = vld [vmem:[%s19875_s6 + $0x308] sm:$0xff]  ;;  %v10630_v27 = vpack.c.bf16 %v5920_v48, %v5912_v37 }
 0xa18   : > { %v5872_v62 = vld [vmem:[%s19875_s6 + $0x348] sm:$0xff]  ;;  %v5911_v26 = vld [vmem:[%s19875_s6 + $0x480] sm:$0xff] }
 0xa1a   : > { %10601 = vmatpush1.bf16.msra.mxu1 %v10600_v0  ;;  %v5876_v0 = vld [vmem:[%s19875_s6 + $0x368] sm:$0xff] }
 0xa33   : > { %v8636_v59 = vpop.f32.mrb[34].mxu1 }
 0xa34   : > { %v8637_v6 = vpop.f32.mrb[35].mxu1 }
 0xa35   : > { %v8638_v40 = vadd.f32 %v8637_v6, %v8636_v59  ;;  %v5800_v59 = vld [vmem:[%s19875_s6 + $0x108] sm:$0xff] }
 0xa36   : > { %v5808_v6 = vld [vmem:[%s19875_s6 + $0x148] sm:$0xff] }
 0xa37   : > { %v5491_v45 = vadd.f32 %v8638_v40, %v5136_v8  ;;  %v10792_v40 = vpack.c.bf16 %v5795_v57, %v5787_v49  ;;  %v10602_v7 = vpack.c.bf16 %v5808_v6, %v5800_v59  ;;  %v5804_v8 = vld [vmem:[%s19875_s6 + $0x128] sm:$0xff]  ;;  %v10616_v57 = vpack.c.bf16 %v5855_v50, %v5847_v41  ;;  %v5923_v41 = vld [vmem:[%s19875_s6 + $0x4e0] sm:$0xff] }
 0xa38   : > { %v5868_v49 = vld [vmem:[%s19875_s6 + $0x328] sm:$0xff]  ;;  %v10808_v59 = vpack.c.bf16 %v5859_v58, %v5851_v53  ;;  %v10618_v6 = vpack.c.bf16 %v5872_v62, %v5864_v61 }
 0xa39   : > { %10793 = vmatpush1.bf16.msra.mxu0 %v10792_v40  ;;  %10603 = vmatprep.subr.bf16.mxu1 %v10602_v7  ;;  %v5863_v40 = vld [vmem:[%s19875_s6 + $0x300] sm:$0xff]  ;;  %v5928_v50 = vld [vmem:[%s19875_s6 + $0x508] sm:$0xff] }
 0xa3a   : > { %v5871_v7 = vld [vmem:[%s19875_s6 + $0x340] sm:$0xff]  ;;  %v5936_v53 = vld [vmem:[%s19875_s6 + $0x548] sm:$0xff] }
 0xa3b   : > { %v5940_v58 = vld [vmem:[%s19875_s6 + $0x568] sm:$0xff] }
 0xa53   : > { %v8671_v10 = vpop.f32.mrb[36].mxu1 }
 0xa54   : > { %v8672_v2 = vpop.f32.mrb[37].mxu1 }
 0xa55   : > { %v8673_v42 = vadd.f32 %v8672_v2, %v8671_v10  ;;  %v5812_v10 = vld [vmem:[%s19875_s6 + $0x168] sm:$0xff]  ;;  %v5799_v2 = vld [vmem:[%s19875_s6 + $0x100] sm:$0xff] }
 0xa57   : > { %v5561_v12 = vadd.f32 %v8673_v42, %v5491_v45  ;;  %v10794_v45 = vpack.c.bf16 %v5812_v10, %v5804_v8  ;;  %v5807_v42 = vld [vmem:[%s19875_s6 + $0x140] sm:$0xff]  ;;  %v10810_v10 = vpack.c.bf16 %v5876_v0, %v5868_v49  ;;  %v10634_v49 = vpack.c.bf16 %v5936_v53, %v5928_v50 }
 0xa58   : > { %v5867_v8 = vld [vmem:[%s19875_s6 + $0x320] sm:$0xff] }
 0xa59   : > { %10795 = vmatprep.subr.bf16.mxu0 %v10794_v45  ;;  %v5880_v45 = vld [vmem:[%s19875_s6 + $0x388] sm:$0xff]  ;;  %v5927_v0 = vld [vmem:[%s19875_s6 + $0x500] sm:$0xff] }
 0xa5a   : > { %v5983_v50 = vld [vmem:[%s19875_s6 + $0x6c0] sm:$0xff] }
 0xa5b   : > { %v5979_v53 = vld [vmem:[%s19875_s6 + $0x6a0] sm:$0xff] }
 0xa73   : > { %v8706_v60 = vpop.f32.mrb[38].mxu1 }
 0xa74   : > { %v8707_v22 = vpop.f32.mrb[39].mxu1 }
 0xa75   : > { %v8708_v1 = vadd.f32 %v8707_v22, %v8706_v60  ;;  %v5811_v60 = vld [vmem:[%s19875_s6 + $0x160] sm:$0xff]  ;;  %v10604_v22 = vpack.c.bf16 %v5807_v42, %v5799_v2  ;;  %v5888_v42 = vld [vmem:[%s19875_s6 + $0x3c8] sm:$0xff] }
 0xa76   : > { %v5875_v2 = vld [vmem:[%s19875_s6 + $0x360] sm:$0xff] }
 0xa77   : > { %v5631_v13 = vadd.f32 %v8708_v1, %v5561_v12  ;;  %v5803_v12 = vld [vmem:[%s19875_s6 + $0x120] sm:$0xff]  ;;  %v5816_v1 = vld [vmem:[%s19875_s6 + $0x188] sm:$0xff]  ;;  %10605 = vmatpush1.bf16.msra.mxu1 %v10604_v22  ;;  %v10620_v22 = vpack.c.bf16 %v5871_v7, %v5863_v40 }
 0xa78   : > { %v5939_v40 = vld [vmem:[%s19875_s6 + $0x560] sm:$0xff] }
 0xae8   : > { %v5419_v9 = vpop.f32.mrb[22].mxu0  ;;  %v8741_v14 = vpop.f32.mrb[40].mxu1 }
 0xae9   : > { %v11538_v11 = vadd.f32 %v5419_v9, %v5128_v24  ;;  %v5421_v17 = vpop.f32.mrb[23].mxu0  ;;  %v8742_v19 = vpop.f32.mrb[41].mxu1  ;;  %v5820_v24 = vld [vmem:[%s19875_s6 + $0x1a8] sm:$0xff] }
 0xaea   : > { %v11539_v51 = vadd.f32 %v5421_v17, %v5132_v52  ;;  %v8743_v15 = vadd.f32 %v8742_v19, %v8741_v14  ;;  %v10796_v52 = vpack.c.bf16 %v5811_v60, %v5803_v12  ;;  %v5828_v14 = vld [vmem:[%s19875_s6 + $0x1e8] sm:$0xff]  ;;  %v5823_v17 = vld [vmem:[%s19875_s6 + $0x1c0] sm:$0xff] }
 0xaeb   : > { %v16896_v16 = vadd.f32 %v11714_v21, %v11538_v11  ;;  %v5815_v11 = vld [vmem:[%s19875_s6 + $0x180] sm:$0xff]  ;;  %v10798_v19 = vpack.c.bf16 %v5828_v14, %v5820_v24  ;;  %v5832_v21 = vld [vmem:[%s19875_s6 + $0x208] sm:$0xff] }
 0xaec   : > { %v16899_v30 = vadd.f32 %v11715_v29, %v11539_v51  ;;  %v5701_v5 = vadd.f32 %v8743_v15, %v5631_v13  ;;  %v5824_v13 = vld [vmem:[%s19875_s6 + $0x1c8] sm:$0xff]  ;;  %v5819_v51 = vld [vmem:[%s19875_s6 + $0x1a0] sm:$0xff]  ;;  %10797 = vmatpush1.bf16.msra.mxu0 %v10796_v52 }
 0xaed   : > { %v10606_v9 = vpack.c.bf16 %v5824_v13, %v5816_v1  ;;  %v5827_v15 = vld [vmem:[%s19875_s6 + $0x1e0] sm:$0xff]  ;;  %v5840_v29 = vld [vmem:[%s19875_s6 + $0x248] sm:$0xff]  ;;  %10799 = vmatprep.subr.bf16.mxu0 %v10798_v19  ;;  %v10812_v1 = vpack.c.bf16 %v5875_v2, %v5867_v8  ;;  %v10622_v13 = vpack.c.bf16 %v5888_v42, %v5880_v45 }
 0xaee   : > { %v16902_v55 = vadd.f32 %v11716_v33, %v5701_v5  ;;  %v5707_v25 = vadd.f32 %v16899_v30, %v16896_v16  ;;  %v5836_v5 = vld [vmem:[%s19875_s6 + $0x228] sm:$0xff]  ;;  %v10610_v34 = vpack.c.bf16 %v5840_v29, %v5832_v21  ;;  %v5879_v24 = vld [vmem:[%s19875_s6 + $0x380] sm:$0xff] }
 0xaef   : > { %v5844_v33 = vld [vmem:[%s19875_s6 + $0x268] sm:$0xff]  ;;  %10607 = vmatprep.subr.bf16.mxu1 %v10606_v9  ;;  %v5887_v52 = vld [vmem:[%s19875_s6 + $0x3c0] sm:$0xff] }
 0xaf0   : > { %v5708_v3 = vadd.f32 %v5707_v25, %v16902_v55  ;;  %v10608_v25 = vpack.c.bf16 %v5823_v17, %v5815_v11  ;;  %v10802_v43 = vpack.c.bf16 %v5844_v33, %v5836_v5  ;;  %v5884_v12 = vld [vmem:[%s19875_s6 + $0x3a8] sm:$0xff]  ;;  %v5883_v9 = vld [vmem:[%s19875_s6 + $0x3a0] sm:$0xff]  ;;  %v10624_v21 = vpack.c.bf16 %v5887_v52, %v5879_v24 }
 0xaf1   : > { %v5892_v60 = vld [vmem:[%s19875_s6 + $0x3e8] sm:$0xff]  ;;  %v5891_v11 = vld [vmem:[%s19875_s6 + $0x3e0] sm:$0xff] }
 0xaf2   : > { %5709 = vadd.xlane.f32.xlu0 %v5708_v3  ;;  %v10800_v3 = vpack.c.bf16 %v5827_v15, %v5819_v51  ;;  %10609 = vmatpush1.bf16.msra.mxu1 %v10608_v25  ;;  %v10814_v14 = vpack.c.bf16 %v5892_v60, %v5884_v12  ;;  %v5896_v17 = vld [vmem:[%s19875_s6 + $0x408] sm:$0xff]  ;;  %v10816_v29 = vpack.c.bf16 %v5891_v11, %v5883_v9  ;;  %v5895_v33 = vld [vmem:[%s19875_s6 + $0x400] sm:$0xff] }
 0xaf3   : > { %10611 = vmatprep.subr.bf16.mxu1 %v10610_v34  ;;  %v5904_v19 = vld [vmem:[%s19875_s6 + $0x448] sm:$0xff]  ;;  %v5903_v25 = vld [vmem:[%s19875_s6 + $0x440] sm:$0xff] }
 0xaf4   : > { %10801 = vmatpush1.bf16.msra.mxu0 %v10800_v3  ;;  %v5900_v51 = vld [vmem:[%s19875_s6 + $0x428] sm:$0xff]  ;;  %v10626_v5 = vpack.c.bf16 %v5904_v19, %v5896_v17  ;;  %v5899_v3 = vld [vmem:[%s19875_s6 + $0x420] sm:$0xff]  ;;  %v10628_v47 = vpack.c.bf16 %v5903_v25, %v5895_v33 }
 0xaf5   : > { %10803 = vmatprep.subr.bf16.mxu0 %v10802_v43  ;;  %v5908_v15 = vld [vmem:[%s19875_s6 + $0x468] sm:$0xff]  ;;  %v10820_v31 = vpack.c.bf16 %v5907_v35, %v5899_v3  ;;  %v5951_v11 = vld [vmem:[%s19875_s6 + $0x5c0] sm:$0xff] }
 0xaf6   : > { %10613 = vmatpush1.bf16.msra.mxu1 %v10612_v44  ;;  %v10818_v34 = vpack.c.bf16 %v5908_v15, %v5900_v51  ;;  %v5916_v43 = vld [vmem:[%s19875_s6 + $0x4a8] sm:$0xff]  ;;  %v5919_v44 = vld [vmem:[%s19875_s6 + $0x4c0] sm:$0xff] }
 0xaf7   : > { %10615 = vmatprep.subr.bf16.mxu1 %v10614_v32  ;;  %v10822_v32 = vpack.c.bf16 %v5924_v38, %v5916_v43  ;;  %v10632_v61 = vpack.c.bf16 %v5919_v44, %v5911_v26  ;;  %v5956_v9 = vld [vmem:[%s19875_s6 + $0x5e8] sm:$0xff]  ;;  %v5947_v51 = vld [vmem:[%s19875_s6 + $0x5a0] sm:$0xff] }
 0xaf8   : > { %10805 = vmatpush1.bf16.msra.mxu0 %v10804_v56  ;;  %v5915_v56 = vld [vmem:[%s19875_s6 + $0x4a0] sm:$0xff]  ;;  %v5964_v33 = vld [vmem:[%s19875_s6 + $0x628] sm:$0xff] }
 0xaf9   : > { %10807 = vmatprep.subr.bf16.mxu0 %v10806_v46  ;;  %v5932_v46 = vld [vmem:[%s19875_s6 + $0x528] sm:$0xff]  ;;  %v10824_v62 = vpack.c.bf16 %v5923_v41, %v5915_v56  ;;  %v5955_v15 = vld [vmem:[%s19875_s6 + $0x5e0] sm:$0xff] }
 0xafa   : > { %10617 = vmatpush1.bf16.msra.mxu1 %v10616_v57  ;;  %v5935_v57 = vld [vmem:[%s19875_s6 + $0x540] sm:$0xff]  ;;  %v5972_v3 = vld [vmem:[%s19875_s6 + $0x668] sm:$0xff] }
 0xafb   : > { %10619 = vmatprep.subr.bf16.mxu1 %v10618_v6  ;;  %v5931_v6 = vld [vmem:[%s19875_s6 + $0x520] sm:$0xff]  ;;  %v10636_v7 = vpack.c.bf16 %v5935_v57, %v5927_v0  ;;  %v10834_v37 = vpack.c.bf16 %v5972_v3, %v5964_v33  ;;  %v5980_v26 = vld [vmem:[%s19875_s6 + $0x6a8] sm:$0xff] }
 0xafc   : > { %10809 = vmatpush1.bf16.msra.mxu0 %v10808_v59  ;;  %v10826_v59 = vpack.c.bf16 %v5940_v58, %v5932_v46  ;;  %v10828_v8 = vpack.c.bf16 %v5939_v40, %v5931_v6  ;;  %v5967_v35 = vld [vmem:[%s19875_s6 + $0x640] sm:$0xff]  ;;  %v5988_v44 = vld [vmem:[%s19875_s6 + $0x6e8] sm:$0xff] }
 0xafd   : > { %10811 = vmatprep.subr.bf16.mxu0 %v10810_v10  ;;  %v5963_v43 = vld [vmem:[%s19875_s6 + $0x620] sm:$0xff]  ;;  %v5996_v57 = vld [vmem:[%s19875_s6 + $0x728] sm:$0xff] }
 0xafe   : > { %10621 = vmatpush1.bf16.msra.mxu1 %v10620_v22  ;;  %v5971_v38 = vld [vmem:[%s19875_s6 + $0x660] sm:$0xff] }
 0xaff   : > { %10623 = vmatprep.subr.bf16.mxu1 %v10622_v13  ;;  %v5975_v41 = vld [vmem:[%s19875_s6 + $0x680] sm:$0xff] }
 0xb00   : > { %10813 = vmatpush1.bf16.msra.mxu0 %v10812_v1  ;;  %v10648_v46 = vpack.c.bf16 %v5983_v50, %v5975_v41  ;;  %v5987_v58 = vld [vmem:[%s19875_s6 + $0x6e0] sm:$0xff]  ;;  %v6048_v50 = vld [vmem:[%s19875_s6 + $0x8c8] sm:$0xff] }
 0xb01   : > { %10815 = vmatprep.subr.bf16.mxu0 %v10814_v14  ;;  %v5943_v14 = vld [vmem:[%s19875_s6 + $0x580] sm:$0xff] }
 0xb02   : > { %10625 = vmatpush1.bf16.msra.mxu1 %v10624_v21  ;;  %v10640_v19 = vpack.c.bf16 %v5951_v11, %v5943_v14  ;;  %v10832_v21 = vpack.c.bf16 %v5955_v15, %v5947_v51  ;;  %v5991_v6 = vld [vmem:[%s19875_s6 + $0x700] sm:$0xff]  ;;  %v6032_v51 = vld [vmem:[%s19875_s6 + $0x848] sm:$0xff] }
 0xb03   : > { %10627 = vmatprep.subr.bf16.mxu1 %v10626_v5  ;;  %v5968_v5 = vld [vmem:[%s19875_s6 + $0x648] sm:$0xff]  ;;  %v6019_v14 = vld [vmem:[%s19875_s6 + $0x7e0] sm:$0xff] }
 0xb04   : > { %10817 = vmatpush1.bf16.msra.mxu0 %v10816_v29  ;;  %v5960_v29 = vld [vmem:[%s19875_s6 + $0x608] sm:$0xff] }
 0xb05   : > { %10819 = vmatprep.subr.bf16.mxu0 %v10818_v34  ;;  %v10642_v25 = vpack.c.bf16 %v5968_v5, %v5960_v29  ;;  %v5959_v34 = vld [vmem:[%s19875_s6 + $0x600] sm:$0xff]  ;;  %v6028_v15 = vld [vmem:[%s19875_s6 + $0x828] sm:$0xff] }
 0xb06   : > { %10629 = vmatpush1.bf16.msra.mxu1 %v10628_v47  ;;  %v10644_v48 = vpack.c.bf16 %v5967_v35, %v5959_v34  ;;  %v5976_v47 = vld [vmem:[%s19875_s6 + $0x688] sm:$0xff] }
 0xb07   : > { %10631 = vmatprep.subr.bf16.mxu1 %v10630_v27  ;;  %v5984_v27 = vld [vmem:[%s19875_s6 + $0x6c8] sm:$0xff] }
 0xb08   : > { %10821 = vmatpush1.bf16.msra.mxu0 %v10820_v31  ;;  %v10836_v31 = vpack.c.bf16 %v5971_v38, %v5963_v43  ;;  %v10646_v56 = vpack.c.bf16 %v5984_v27, %v5976_v47  ;;  %v6036_v29 = vld [vmem:[%s19875_s6 + $0x868] sm:$0xff] }
 0xb09   : > { %10823 = vmatprep.subr.bf16.mxu0 %v10822_v32  ;;  %v10838_v32 = vpack.c.bf16 %v5988_v44, %v5980_v26  ;;  %v10850_v5 = vpack.c.bf16 %v6036_v29, %v6028_v15  ;;  %v17321_v34 = vld [vmem:[%s19874_s5 + $0x1] ss:$4 sm:$0x7]  ;;  %v17326_v35 = vld [vmem:[%s19874_s5 + $0x2] ss:$4 sm:$0x7] }
 0xb0a   : > { %10633 = vmatpush1.bf16.msra.mxu1 %v10632_v61  ;;  %v5992_v61 = vld [vmem:[%s19875_s6 + $0x708] sm:$0xff]  ;;  %v5756_v47 = vrot.slane %v17326_v35, %v15606_v18  ;;  %v5752_v27 = vrot.slane %v17326_v35, %v15493_v4  ;;  %v6023_v26 = vld [vmem:[%s19875_s6 + $0x800] sm:$0xff] }
 0xb0b   : > { %10635 = vmatprep.subr.bf16.mxu1 %v10634_v49  ;;  %v10840_v49 = vpack.c.bf16 %v5987_v58, %v5979_v53  ;;  %v6031_v44 = vld [vmem:[%s19875_s6 + $0x840] sm:$0xff]  ;;  %v6044_v53 = vld [vmem:[%s19875_s6 + $0x8a8] sm:$0xff] }
 0xb0c   : > { %10825 = vmatpush1.bf16.msra.mxu0 %v10824_v62  ;;  %v6000_v62 = vld [vmem:[%s19875_s6 + $0x748] sm:$0xff]  ;;  %v6071_v15 = vld [vmem:[%s19875_s6 + $0x980] sm:$0xff] }
 0xb0d   : > { %10827 = vmatprep.subr.bf16.mxu0 %v10826_v59  ;;  %v10650_v0 = vpack.c.bf16 %v6000_v62, %v5992_v61  ;;  %v6004_v59 = vld [vmem:[%s19875_s6 + $0x768] sm:$0xff]  ;;  %v10660_v62 = vpack.c.bf16 %v6031_v44, %v6023_v26  ;;  %v6095_v26 = vld [vmem:[%s19875_s6 + $0xa40] sm:$0xff] }
 0xb0e   : > { %10637 = vmatpush1.bf16.msra.mxu1 %v10636_v7  ;;  %v10842_v40 = vpack.c.bf16 %v6004_v59, %v5996_v57  ;;  %v5999_v7 = vld [vmem:[%s19875_s6 + $0x740] sm:$0xff] }
 0xb0f   : > { %v6047_v57 = vld [vmem:[%s19875_s6 + $0x8c0] sm:$0xff] }
 0xb10   : > { %10829 = vmatpush1.bf16.msra.mxu0 %v10828_v8  ;;  %v5995_v8 = vld [vmem:[%s19875_s6 + $0x720] sm:$0xff] }
 0xb7f   : > { %v5710_v10 = vpop.xlane.xlu0 %5709 }
 0xb80   : > { %v5712_v2 = vmul.f32 0.0026041667, %v5710_v10  ;;  %v6003_v10 = vld [vmem:[%s19875_s6 + $0x760] sm:$0xff] }
 0xb82   : > { %v17172_v45 = vsub.f32 %v16896_v16, %v5712_v2  ;;  %v17175_v42 = vsub.f32 %v16899_v30, %v5712_v2  ;;  %v17178_v12 = vsub.f32 %v16902_v55, %v5712_v2  ;;  %v5944_v16 = vld [vmem:[%s19875_s6 + $0x588] sm:$0xff]  ;;  %v10652_v2 = vpack.c.bf16 %v5999_v7, %v5991_v6  ;;  %v6051_v7 = vld [vmem:[%s19875_s6 + $0x8e0] sm:$0xff] }
 0xb83   : > { %v5952_v30 = vld [vmem:[%s19875_s6 + $0x5c8] sm:$0xff] }
 0xb84   : > { %v5716_v60 = vmul.f32 %v17172_v45, %v17172_v45  ;;  %v5717_v22 = vmul.f32 %v17175_v42, %v17175_v42  ;;  %v5718_v1 = vmul.f32 %v17178_v12, %v17178_v12  ;;  %v5948_v55 = vld [vmem:[%s19875_s6 + $0x5a8] sm:$0xff]  ;;  %v10638_v52 = vpack.c.bf16 %v5952_v30, %v5944_v16  ;;  %v6007_v30 = vld [vmem:[%s19875_s6 + $0x780] sm:$0xff] }
 0xb85   : > { %v10830_v17 = vpack.c.bf16 %v5956_v9, %v5948_v55  ;;  %v6020_v16 = vld [vmem:[%s19875_s6 + $0x7e8] sm:$0xff]  ;;  %v6015_v55 = vld [vmem:[%s19875_s6 + $0x7c0] sm:$0xff] }
 0xb86   : > { %v5719_v13 = vadd.f32 %v5717_v22, %v5716_v60  ;;  %10639 = vmatprep.subr.bf16.mxu1 %v10638_v52  ;;  %v6008_v60 = vld [vmem:[%s19875_s6 + $0x788] sm:$0xff]  ;;  %v6011_v9 = vld [vmem:[%s19875_s6 + $0x7a0] sm:$0xff]  ;;  %v10656_v11 = vpack.c.bf16 %v6015_v55, %v6007_v30 }
 0xb87   : > { %10831 = vmatprep.subr.bf16.mxu0 %v10830_v17  ;;  %10641 = vmatpush1.bf16.msra.mxu1 %v10640_v19  ;;  %v6016_v22 = vld [vmem:[%s19875_s6 + $0x7c8] sm:$0xff]  ;;  %v10848_v17 = vpack.c.bf16 %v6019_v14, %v6011_v9  ;;  %v6059_v55 = vld [vmem:[%s19875_s6 + $0x920] sm:$0xff] }
 0xb88   : > { %v5720_v24 = vadd.f32 %v5719_v13, %v5718_v1  ;;  %10833 = vmatpush1.bf16.msra.mxu0 %v10832_v21  ;;  %10643 = vmatprep.subr.bf16.mxu1 %v10642_v25  ;;  %v6012_v1 = vld [vmem:[%s19875_s6 + $0x7a8] sm:$0xff]  ;;  %v10844_v13 = vpack.c.bf16 %v6003_v10, %v5995_v8 }
 0xb89   : > { %10835 = vmatprep.subr.bf16.mxu0 %v10834_v37  ;;  %v10846_v52 = vpack.c.bf16 %v6020_v16, %v6012_v1  ;;  %v6024_v19 = vld [vmem:[%s19875_s6 + $0x808] sm:$0xff]  ;;  %v5737_v37 = vrot.slane %v17321_v34, %v15606_v18 }
 0xb8a   : > { %5721 = vadd.xlane.f32.xlu1 %v5720_v24  ;;  %v10654_v24 = vpack.c.bf16 %v6016_v22, %v6008_v60  ;;  %v10658_v21 = vpack.c.bf16 %v6032_v51, %v6024_v19  ;;  %v6056_v8 = vld [vmem:[%s19875_s6 + $0x908] sm:$0xff] }
 0xb8b   : > { %10645 = vmatpush1.bf16.msra.mxu1 %v10644_v48  ;;  %v5733_v48 = vrot.slane %v17321_v34, %v15493_v4  ;;  %v6064_v10 = vld [vmem:[%s19875_s6 + $0x948] sm:$0xff] }
 0xb8c   : > { %10837 = vmatpush1.bf16.msra.mxu0 %v10836_v31  ;;  %10647 = vmatprep.subr.bf16.mxu1 %v10646_v56  ;;  %v6035_v56 = vld [vmem:[%s19875_s6 + $0x860] sm:$0xff]  ;;  %v6068_v60 = vld [vmem:[%s19875_s6 + $0x968] sm:$0xff]  ;;  %v10666_v16 = vpack.c.bf16 %v6064_v10, %v6056_v8 }
 0xb8d   : > { %10839 = vmatprep.subr.bf16.mxu0 %v10838_v32  ;;  %v6072_v9 = vld [vmem:[%s19875_s6 + $0x988] sm:$0xff] }
 0xb8e   : > { %v6080_v14 = vld [vmem:[%s19875_s6 + $0x9c8] sm:$0xff] }
 0xb8f   : > { %10649 = vmatpush1.bf16.msra.mxu1 %v10648_v46  ;;  %v6052_v46 = vld [vmem:[%s19875_s6 + $0x8e8] sm:$0xff]  ;;  %v10670_v29 = vpack.c.bf16 %v6080_v14, %v6072_v9 }
 0xb90   : > { %10841 = vmatpush1.bf16.msra.mxu0 %v10840_v49  ;;  %10651 = vmatprep.subr.bf16.mxu1 %v10650_v0  ;;  %v6039_v0 = vld [vmem:[%s19875_s6 + $0x880] sm:$0xff]  ;;  %v10854_v6 = vpack.c.bf16 %v6052_v46, %v6044_v53  ;;  %v6116_v53 = vld [vmem:[%s19875_s6 + $0xae8] sm:$0xff] }
 0xb91   : > { %10843 = vmatprep.subr.bf16.mxu0 %v10842_v40  ;;  %v6043_v40 = vld [vmem:[%s19875_s6 + $0x8a0] sm:$0xff]  ;;  %v10664_v22 = vpack.c.bf16 %v6047_v57, %v6039_v0  ;;  %v6128_v8 = vld [vmem:[%s19875_s6 + $0xb48] sm:$0xff] }
 0xb92   : > { %v10856_v1 = vpack.c.bf16 %v6051_v7, %v6043_v40  ;;  %v6111_v0 = vld [vmem:[%s19875_s6 + $0xac0] sm:$0xff]  ;;  %v6120_v7 = vld [vmem:[%s19875_s6 + $0xb08] sm:$0xff] }
 0xb93   : > { %10653 = vmatpush1.bf16.msra.mxu1 %v10652_v2  ;;  %v6060_v2 = vld [vmem:[%s19875_s6 + $0x928] sm:$0xff]  ;;  %v6115_v40 = vld [vmem:[%s19875_s6 + $0xae0] sm:$0xff] }
 0xb94   : > { %10845 = vmatpush1.bf16.msra.mxu0 %v10844_v13  ;;  %10655 = vmatprep.subr.bf16.mxu1 %v10654_v24  ;;  %v6055_v13 = vld [vmem:[%s19875_s6 + $0x900] sm:$0xff]  ;;  %v10858_v30 = vpack.c.bf16 %v6068_v60, %v6060_v2  ;;  %v6124_v10 = vld [vmem:[%s19875_s6 + $0xb28] sm:$0xff] }
 0xb95   : > { %10847 = vmatprep.subr.bf16.mxu0 %v10846_v52  ;;  %v6063_v24 = vld [vmem:[%s19875_s6 + $0x940] sm:$0xff]  ;;  %v6132_v2 = vld [vmem:[%s19875_s6 + $0xb68] sm:$0xff] }
 0xb96   : > { %v6067_v52 = vld [vmem:[%s19875_s6 + $0x960] sm:$0xff]  ;;  %v10668_v19 = vpack.c.bf16 %v6063_v24, %v6055_v13  ;;  %v10682_v24 = vpack.c.bf16 %v6128_v8, %v6120_v7  ;;  %v6144_v9 = vld [vmem:[%s19875_s6 + $0xbc8] sm:$0xff]  ;;  %v5825_v7 = vld [vmem:[%s19875_s6 + $0x1d0] sm:$0xff] }
 0xb97   : > { %10657 = vmatpush1.bf16.msra.mxu1 %v10656_v11  ;;  %v6076_v11 = vld [vmem:[%s19875_s6 + $0x9a8] sm:$0xff]  ;;  %v10860_v51 = vpack.c.bf16 %v6067_v52, %v6059_v55  ;;  %v6127_v13 = vld [vmem:[%s19875_s6 + $0xb40] sm:$0xff]  ;;  %v5834_v8 = vld [vmem:[%s19875_s6 + $0x218] sm:$0xff] }
 0xb98   : > { %10849 = vmatpush1.bf16.msra.mxu0 %v10848_v17  ;;  %10659 = vmatprep.subr.bf16.mxu1 %v10658_v21  ;;  %v6084_v17 = vld [vmem:[%s19875_s6 + $0x9e8] sm:$0xff]  ;;  %v6079_v21 = vld [vmem:[%s19875_s6 + $0x9c0] sm:$0xff] }
 0xb99   : > { %10851 = vmatprep.subr.bf16.mxu0 %v10850_v5  ;;  %v10862_v5 = vpack.c.bf16 %v6084_v17, %v6076_v11  ;;  %v6131_v55 = vld [vmem:[%s19875_s6 + $0xb60] sm:$0xff]  ;;  %v6136_v52 = vld [vmem:[%s19875_s6 + $0xb88] sm:$0xff] }
 0xb9a   : > { %v6140_v14 = vld [vmem:[%s19875_s6 + $0xba8] sm:$0xff] }
 0xb9b   : > { %v6148_v11 = vld [vmem:[%s19875_s6 + $0xbe8] sm:$0xff] }
 0xc17   : > { %v5722_v33 = vpop.xlane.xlu1 %5721 }
 0xc18   : > { %v5723_v25 = vmul.f32 0.0026041667, %v5722_v33  ;;  %v6075_v33 = vld [vmem:[%s19875_s6 + $0x9a0] sm:$0xff] }
 0xc1a   : > { %v5724_v3 = vadd.f32 1e-05, %v5723_v25  ;;  %v6083_v25 = vld [vmem:[%s19875_s6 + $0x9e0] sm:$0xff] }
 0xc1c   : > { %11674 = vrsqrt.f32 %v5724_v3  ;;  %v6088_v3 = vld [vmem:[%s19875_s6 + $0xa08] sm:$0xff] }
 0xc26   : > { %v17332_v43 = vpop.eup %11674 }
 0xc27   : > { %v5727_v38 = vmul.f32 %v17332_v43, %v17175_v42  ;;  %v5726_v31 = vmul.f32 %v17332_v43, %v17172_v45  ;;  %v6027_v42 = vld [vmem:[%s19875_s6 + $0x820] sm:$0xff]  ;;  %v6040_v45 = vld [vmem:[%s19875_s6 + $0x888] sm:$0xff] }
 0xc28   : > { %v10852_v49 = vpack.c.bf16 %v6035_v56, %v6027_v42  ;;  %v10662_v59 = vpack.c.bf16 %v6048_v50, %v6040_v45  ;;  %v6091_v56 = vld [vmem:[%s19875_s6 + $0xa20] sm:$0xff]  ;;  %v6108_v50 = vld [vmem:[%s19875_s6 + $0xaa8] sm:$0xff] }
 0xc29   : > { %v5746_v32 = vmul.f32 %v5737_v37, %v5727_v38  ;;  %v5745_v41 = vmul.f32 %v5733_v48, %v5726_v31  ;;  %v6096_v37 = vld [vmem:[%s19875_s6 + $0xa48] sm:$0xff]  ;;  %v10864_v31 = vpack.c.bf16 %v6083_v25, %v6075_v33  ;;  %v6099_v45 = vld [vmem:[%s19875_s6 + $0xa60] sm:$0xff] }
 0xc2a   : > { %v6092_v48 = vld [vmem:[%s19875_s6 + $0xa28] sm:$0xff]  ;;  %v10674_v44 = vpack.c.bf16 %v6096_v37, %v6088_v3  ;;  %v6139_v33 = vld [vmem:[%s19875_s6 + $0xba0] sm:$0xff]  ;;  %v5728_v3 = vmul.f32 %v17332_v43, %v17178_v12  ;;  %v5778_v37 = vld [vmem:[%s19875_s6 + $0x58] sm:$0xff] }
 0xc2b   : > { %v17366_v58 = vadd.f32 %v5756_v47, %v5746_v32  ;;  %v17368_v61 = vadd.f32 %v5752_v27, %v5745_v41  ;;  %v6100_v38 = vld [vmem:[%s19875_s6 + $0xa68] sm:$0xff]  ;;  %v10672_v47 = vpack.c.bf16 %v6079_v21, %v6071_v15  ;;  %v6087_v27 = vld [vmem:[%s19875_s6 + $0xa00] sm:$0xff]  ;;  %v5741_v15 = vrot.slane %v17321_v34, %v15633_v63  ;;  %v5770_v34 = vld [vmem:[%s19875_s6 + $0x18] sm:$0xff] }
 0xc2c   : > { %v10866_v42 = vpack.c.bf16 %v6100_v38, %v6092_v48  ;;  %v6104_v32 = vld [vmem:[%s19875_s6 + $0xa88] sm:$0xff]  ;;  %v10676_v46 = vpack.c.bf16 %v6095_v26, %v6087_v27  ;;  %v10686_v21 = vpack.c.bf16 %v6144_v9, %v6136_v52  ;;  %v6147_v25 = vld [vmem:[%s19875_s6 + $0xbe0] sm:$0xff]  ;;  %v10690_v27 = vpack.c.bf16 %v5778_v37, %v5770_v34  ;;  %v5769_v12 = vld [vmem:[%s19875_s6 + $0x10] sm:$0xff] }
 0xc2d   : > { %6257 = vmatprep.mubr.f32.mxu1 %v17366_v58  ;;  %6541 = vmatprep.mubr.f32.mxu0 %v17366_v58  ;;  %v6112_v41 = vld [vmem:[%s19875_s6 + $0xac8] sm:$0xff]  ;;  %v10880_v38 = vpack.c.bf16 %v6147_v25, %v6139_v33  ;;  %v5777_v43 = vld [vmem:[%s19875_s6 + $0x50] sm:$0xff]  ;;  %v5786_v26 = vld [vmem:[%s19875_s6 + $0x98] sm:$0xff] }
 0xc2e   : > { %6258 = vmatmul.mubr.f32.vlgmr.msra.gmra.mrb[42].mxu1 %v17368_v61  ;;  %6542 = vmatmul.mubr.f32.vlgmr.msra.gmra.mrb[24].mxu0 %v17368_v61  ;;  %v10678_v57 = vpack.c.bf16 %v6112_v41, %v6104_v32  ;;  %v5793_v32 = vld [vmem:[%s19875_s6 + $0xd0] sm:$0xff]  ;;  %v5802_v41 = vld [vmem:[%s19875_s6 + $0x118] sm:$0xff] }
 0xc2f   : > { %10661 = vmatpush1.bf16.msra.mxu1 %v10660_v62  ;;  %10853 = vmatpush1.bf16.msra.mxu0 %v10852_v49  ;;  %v10868_v62 = vpack.c.bf16 %v6099_v45, %v6091_v56  ;;  %v6103_v49 = vld [vmem:[%s19875_s6 + $0xa80] sm:$0xff]  ;;  %v5785_v45 = vld [vmem:[%s19875_s6 + $0x90] sm:$0xff]  ;;  %v5866_v9 = vld [vmem:[%s19875_s6 + $0x318] sm:$0xff] }
 0xc30   : > { %10663 = vmatprep.subr.bf16.mxu1 %v10662_v59  ;;  %10855 = vmatprep.subr.bf16.mxu0 %v10854_v6  ;;  %v10870_v59 = vpack.c.bf16 %v6116_v53, %v6108_v50  ;;  %v6107_v6 = vld [vmem:[%s19875_s6 + $0xaa0] sm:$0xff]  ;;  %v10680_v60 = vpack.c.bf16 %v6111_v0, %v6103_v49  ;;  %v5810_v50 = vld [vmem:[%s19875_s6 + $0x158] sm:$0xff]  ;;  %v10696_v53 = vpack.c.bf16 %v5793_v32, %v5785_v45  ;;  %v5809_v49 = vld [vmem:[%s19875_s6 + $0x150] sm:$0xff] }
 0xc31   : > { %6328 = vmatprep.mubr.f32.mxu1 %v11783_v39  ;;  %6612 = vmatprep.mubr.f32.mxu0 %v11783_v39  ;;  %v5818_v0 = vld [vmem:[%s19875_s6 + $0x198] sm:$0xff]  ;;  %v5857_v52 = vld [vmem:[%s19875_s6 + $0x2d0] sm:$0xff] }
 0xc32   : > { %v5881_v33 = vld [vmem:[%s19875_s6 + $0x390] sm:$0xff]  ;;  %v5906_v34 = vld [vmem:[%s19875_s6 + $0x458] sm:$0xff] }
 0xc33   : > { %10665 = vmatpush1.bf16.msra.mxu1 %v10664_v22  ;;  %10857 = vmatpush1.bf16.msra.mxu0 %v10856_v1  ;;  %v10872_v22 = vpack.c.bf16 %v6115_v40, %v6107_v6  ;;  %v6119_v1 = vld [vmem:[%s19875_s6 + $0xb00] sm:$0xff]  ;;  %v5817_v40 = vld [vmem:[%s19875_s6 + $0x190] sm:$0xff] }
 0xc34   : > { %10667 = vmatprep.subr.bf16.mxu1 %v10666_v16  ;;  %10859 = vmatprep.subr.bf16.mxu0 %v10858_v30  ;;  %v10874_v16 = vpack.c.bf16 %v6132_v2, %v6124_v10  ;;  %v6123_v30 = vld [vmem:[%s19875_s6 + $0xb20] sm:$0xff]  ;;  %v10684_v17 = vpack.c.bf16 %v6127_v13, %v6119_v1  ;;  %v5842_v10 = vld [vmem:[%s19875_s6 + $0x258] sm:$0xff]  ;;  %v10704_v2 = vpack.c.bf16 %v5825_v7, %v5817_v40  ;;  %v5841_v1 = vld [vmem:[%s19875_s6 + $0x250] sm:$0xff] }
 0xc35   : > { %v5850_v13 = vld [vmem:[%s19875_s6 + $0x298] sm:$0xff]  ;;  %v5889_v25 = vld [vmem:[%s19875_s6 + $0x3d0] sm:$0xff]  ;;  %v6802_v40 = vld [vmem:[%s19877_s8 + $0x8] sm:$0xff] }
 0xc36   : > { %v10720_v37 = vpack.c.bf16 %v5889_v25, %v5881_v33  ;;  %v6805_v7 = vld [vmem:[%s19877_s8 + $0x20] sm:$0xff]  ;;  %v6814_v33 = vld [vmem:[%s19877_s8 + $0x68] sm:$0xff] }
 0xc37   : > { %10669 = vmatpush1.bf16.msra.mxu1 %v10668_v19  ;;  %10861 = vmatpush1.bf16.msra.mxu0 %v10860_v51  ;;  %v10876_v19 = vpack.c.bf16 %v6131_v55, %v6123_v30  ;;  %v6135_v51 = vld [vmem:[%s19875_s6 + $0xb80] sm:$0xff]  ;;  %v5849_v55 = vld [vmem:[%s19875_s6 + $0x290] sm:$0xff] }
 0xc38   : > { %10671 = vmatprep.subr.bf16.mxu1 %v10670_v29  ;;  %10863 = vmatprep.subr.bf16.mxu0 %v10862_v5  ;;  %v10878_v29 = vpack.c.bf16 %v6148_v11, %v6140_v14  ;;  %v6143_v5 = vld [vmem:[%s19875_s6 + $0xbc0] sm:$0xff]  ;;  %v5874_v14 = vld [vmem:[%s19875_s6 + $0x358] sm:$0xff]  ;;  %v10712_v11 = vpack.c.bf16 %v5857_v52, %v5849_v55  ;;  %v6811_v52 = vld [vmem:[%s19877_s8 + $0x50] sm:$0xff] }
 0xc39   : > { %v10688_v48 = vpack.c.bf16 %v6143_v5, %v6135_v51  ;;  %v5873_v51 = vld [vmem:[%s19875_s6 + $0x350] sm:$0xff]  ;;  %v6808_v55 = vld [vmem:[%s19877_s8 + $0x38] sm:$0xff]  ;;  %v6817_v25 = vld [vmem:[%s19877_s8 + $0x80] sm:$0xff] }
 0xc3b   : > { %10673 = vmatpush1.bf16.msra.mxu1 %v10672_v47  ;;  %10865 = vmatpush1.bf16.msra.mxu0 %v10864_v31  ;;  %v5747_v47 = vmul.f32 %v5741_v15, %v5728_v3  ;;  %v5760_v31 = vrot.slane %v17326_v35, %v15633_v63  ;;  %v10692_v35 = vpack.c.bf16 %v5777_v43, %v5769_v12  ;;  %v5882_v15 = vld [vmem:[%s19875_s6 + $0x398] sm:$0xff] }
 0xc3c   : > { %10675 = vmatprep.subr.bf16.mxu1 %v10674_v44  ;;  %10867 = vmatprep.subr.bf16.mxu0 %v10866_v42  ;;  %v5794_v44 = vld [vmem:[%s19875_s6 + $0xd8] sm:$0xff] }
 0xc3d   : > { %v17556_v42 = vadd.f32 %v5760_v31, %v5747_v47  ;;  %v10694_v56 = vpack.c.bf16 %v5794_v44, %v5786_v26  ;;  %v5898_v3 = vld [vmem:[%s19875_s6 + $0x418] sm:$0xff]  ;;  %v5905_v47 = vld [vmem:[%s19875_s6 + $0x450] sm:$0xff] }
 0xc3e   : > { %v5914_v31 = vld [vmem:[%s19875_s6 + $0x498] sm:$0xff]  ;;  %v5913_v26 = vld [vmem:[%s19875_s6 + $0x490] sm:$0xff] }
 0xc3f   : > { %10677 = vmatpush1.bf16.msra.mxu1 %v10676_v46  ;;  %10869 = vmatpush1.bf16.msra.mxu0 %v10868_v62  ;;  %v10698_v46 = vpack.c.bf16 %v5810_v50, %v5802_v41  ;;  %v5801_v62 = vld [vmem:[%s19875_s6 + $0x110] sm:$0xff] }
 0xc40   : > { %10679 = vmatprep.subr.bf16.mxu1 %v10678_v57  ;;  %10871 = vmatprep.subr.bf16.mxu0 %v10870_v59  ;;  %v5826_v57 = vld [vmem:[%s19875_s6 + $0x1d8] sm:$0xff]  ;;  %v10700_v59 = vpack.c.bf16 %v5809_v49, %v5801_v62  ;;  %v5921_v44 = vld [vmem:[%s19875_s6 + $0x4d0] sm:$0xff] }
 0xc41   : > { %v10702_v6 = vpack.c.bf16 %v5826_v57, %v5818_v0  ;;  %v10728_v45 = vpack.c.bf16 %v5921_v44, %v5913_v26  ;;  %v5929_v41 = vld [vmem:[%s19875_s6 + $0x510] sm:$0xff]  ;;  %v6820_v26 = vld [vmem:[%s19877_s8 + $0x98] sm:$0xff] }
 0xc42   : > { %v5937_v50 = vld [vmem:[%s19875_s6 + $0x550] sm:$0xff] }
 0xc43   : > { %10681 = vmatpush1.bf16.msra.mxu1 %v10680_v60  ;;  %10873 = vmatpush1.bf16.msra.mxu0 %v10872_v22  ;;  %v10706_v60 = vpack.c.bf16 %v5842_v10, %v5834_v8  ;;  %v5833_v22 = vld [vmem:[%s19875_s6 + $0x210] sm:$0xff]  ;;  %v10732_v62 = vpack.c.bf16 %v5937_v50, %v5929_v41  ;;  %v10978_v8 = vpack.c.bf16 %v6805_v7, %v6802_v40  ;;  %v6801_v10 = vld [vmem:[%s19877_s8] sm:$0xff]  ;;  %v6828_v40 = vld [vmem:[%s19877_s8 + $0xd8] sm:$0xff] }
 0xc44   : > { %10683 = vmatprep.subr.bf16.mxu1 %v10682_v24  ;;  %10875 = vmatprep.subr.bf16.mxu0 %v10874_v16  ;;  %v5858_v24 = vld [vmem:[%s19875_s6 + $0x2d8] sm:$0xff]  ;;  %v10708_v16 = vpack.c.bf16 %v5841_v1, %v5833_v22  ;;  %v5945_v0 = vld [vmem:[%s19875_s6 + $0x590] sm:$0xff] }
 0xc45   : > { %v10710_v30 = vpack.c.bf16 %v5858_v24, %v5850_v13  ;;  %v5953_v57 = vld [vmem:[%s19875_s6 + $0x5d0] sm:$0xff] }
 0xc46   : > { %v5961_v13 = vld [vmem:[%s19875_s6 + $0x610] sm:$0xff] }
 0xc47   : > { %10685 = vmatpush1.bf16.msra.mxu1 %v10684_v17  ;;  %10877 = vmatpush1.bf16.msra.mxu0 %v10876_v19  ;;  %v10714_v17 = vpack.c.bf16 %v5874_v14, %v5866_v9  ;;  %v5865_v19 = vld [vmem:[%s19875_s6 + $0x310] sm:$0xff]  ;;  %v10982_v9 = vpack.c.bf16 %v6811_v52, %v6808_v55  ;;  %v6834_v55 = vld [vmem:[%s19877_s8 + $0x108] sm:$0xff] }
 0xc48   : > { %10687 = vmatprep.subr.bf16.mxu1 %v10686_v21  ;;  %10879 = vmatprep.subr.bf16.mxu0 %v10878_v29  ;;  %v5890_v21 = vld [vmem:[%s19875_s6 + $0x3d8] sm:$0xff]  ;;  %v10716_v29 = vpack.c.bf16 %v5873_v51, %v5865_v19  ;;  %v5969_v24 = vld [vmem:[%s19875_s6 + $0x650] sm:$0xff] }
 0xc49   : > { %v10718_v5 = vpack.c.bf16 %v5890_v21, %v5882_v15  ;;  %v6807_v14 = vld [vmem:[%s19877_s8 + $0x30] sm:$0xff] }
 0xc4a   : > { %v5977_v15 = vld [vmem:[%s19875_s6 + $0x690] sm:$0xff] }
 0xc4b   : > { %10689 = vmatpush1.bf16.msra.mxu1 %v10688_v48  ;;  %10881 = vmatpush1.bf16.msra.mxu0 %v10880_v38  ;;  %v10722_v48 = vpack.c.bf16 %v5906_v34, %v5898_v3  ;;  %v5897_v38 = vld [vmem:[%s19875_s6 + $0x410] sm:$0xff]  ;;  %v10986_v3 = vpack.c.bf16 %v6817_v25, %v6814_v33  ;;  %v6813_v34 = vld [vmem:[%s19877_s8 + $0x60] sm:$0xff]  ;;  %v6840_v25 = vld [vmem:[%s19877_s8 + $0x138] sm:$0xff] }
 0xc4c   : > { %10691 = vmatprep.subr.bf16.mxu1 %v10690_v27  ;;  %v5922_v27 = vld [vmem:[%s19875_s6 + $0x4d8] sm:$0xff]  ;;  %v10724_v12 = vpack.c.bf16 %v5905_v47, %v5897_v38  ;;  %10979 = vmatprep.subr.bf16.mxu0 %v10978_v8  ;;  %v5985_v21 = vld [vmem:[%s19875_s6 + $0x6d0] sm:$0xff]  ;;  %v6837_v33 = vld [vmem:[%s19877_s8 + $0x120] sm:$0xff] }
 0xc4d   : > { %v10726_v43 = vpack.c.bf16 %v5922_v27, %v5914_v31  ;;  %v5993_v31 = vld [vmem:[%s19875_s6 + $0x710] sm:$0xff] }
 0xc4e   : > { %6329 = vmatmul.mubr.f32.vlgmr.msra.gmra.mrb[42].mxu1 %v17556_v42  ;;  %6613 = vmatmul.mubr.f32.vlgmr.msra.gmra.mrb[24].mxu0 %v17556_v42  ;;  %v6001_v27 = vld [vmem:[%s19875_s6 + $0x750] sm:$0xff] }
 0xc4f   : > { %10693 = vmatpush1.bf16.msra.mxu1 %v10692_v35  ;;  %6399 = vmatprep.mubr.f32.mxu1 %v17366_v58  ;;  %v5930_v35 = vld [vmem:[%s19875_s6 + $0x518] sm:$0xff]  ;;  %v6823_v44 = vld [vmem:[%s19877_s8 + $0xb0] sm:$0xff] }
 0xc50   : > { %10695 = vmatprep.subr.bf16.mxu1 %v10694_v56  ;;  %v5938_v56 = vld [vmem:[%s19875_s6 + $0x558] sm:$0xff] }
 0xc51   : > { %v10730_v32 = vpack.c.bf16 %v5938_v56, %v5930_v35  ;;  %v10990_v35 = vpack.c.bf16 %v6823_v44, %v6820_v26  ;;  %v6819_v56 = vld [vmem:[%s19877_s8 + $0x90] sm:$0xff]  ;;  %v6853_v26 = vld [vmem:[%s19877_s8 + $0x1a0] sm:$0xff]  ;;  %v6074_v44 = vld [vmem:[%s19875_s6 + $0x998] sm:$0xff] }
 0xc53   : > { %10697 = vmatpush1.bf16.msra.mxu1 %v10696_v53  ;;  %v5946_v53 = vld [vmem:[%s19875_s6 + $0x598] sm:$0xff] }
 0xc54   : > { %10699 = vmatprep.subr.bf16.mxu1 %v10698_v46  ;;  %v5954_v46 = vld [vmem:[%s19875_s6 + $0x5d8] sm:$0xff] }
 0xc55   : > { %v10734_v49 = vpack.c.bf16 %v5954_v46, %v5946_v53  ;;  %v6009_v53 = vld [vmem:[%s19875_s6 + $0x790] sm:$0xff] }
 0xc56   : > { %v6017_v46 = vld [vmem:[%s19875_s6 + $0x7d0] sm:$0xff] }
 0xc57   : > { %10701 = vmatpush1.bf16.msra.mxu1 %v10700_v59  ;;  %v5962_v59 = vld [vmem:[%s19875_s6 + $0x618] sm:$0xff]  ;;  %v10752_v7 = vpack.c.bf16 %v6017_v46, %v6009_v53  ;;  %v6859_v46 = vld [vmem:[%s19877_s8 + $0x1d0] sm:$0xff] }
 0xc58   : > { %10703 = vmatprep.subr.bf16.mxu1 %v10702_v6  ;;  %v5970_v6 = vld [vmem:[%s19875_s6 + $0x658] sm:$0xff] }
 0xc59   : > { %v10738_v1 = vpack.c.bf16 %v5970_v6, %v5962_v59  ;;  %v6825_v6 = vld [vmem:[%s19877_s8 + $0xc0] sm:$0xff]  ;;  %v6856_v53 = vld [vmem:[%s19877_s8 + $0x1b8] sm:$0xff] }
 0xc5a   : > { %v10996_v8 = vpack.c.bf16 %v6828_v40, %v6825_v6  ;;  %v11014_v40 = vpack.c.bf16 %v6859_v46, %v6856_v53  ;;  %v6873_v53 = vld [vmem:[%s19877_s8 + $0x240] sm:$0xff]  ;;  %v6876_v46 = vld [vmem:[%s19877_s8 + $0x258] sm:$0xff] }
 0xc5b   : > { %10705 = vmatpush1.bf16.msra.mxu1 %v10704_v2  ;;  %v6804_v2 = vld [vmem:[%s19877_s8 + $0x18] sm:$0xff] }
 0xc5c   : > { %10707 = vmatprep.subr.bf16.mxu1 %v10706_v60  ;;  %v10736_v60 = vpack.c.bf16 %v5953_v57, %v5945_v0  ;;  %v10980_v22 = vpack.c.bf16 %v6804_v2, %v6801_v10  ;;  %v6826_v0 = vld [vmem:[%s19877_s8 + $0xc8] sm:$0xff]  ;;  %v6829_v57 = vld [vmem:[%s19877_s8 + $0xe0] sm:$0xff]  ;;  %v6025_v2 = vld [vmem:[%s19875_s6 + $0x810] sm:$0xff] }
 0xc5d   : > { %v10994_v59 = vpack.c.bf16 %v6829_v57, %v6826_v0  ;;  %v6081_v0 = vld [vmem:[%s19875_s6 + $0x9d0] sm:$0xff]  ;;  %v6090_v57 = vld [vmem:[%s19875_s6 + $0xa18] sm:$0xff] }
 0xc5e   : > { %10981 = vmatpush1.bf16.msra.mxu0 %v10980_v22  ;;  %v6042_v22 = vld [vmem:[%s19875_s6 + $0x898] sm:$0xff] }
 0xc5f   : > { %10709 = vmatpush1.bf16.msra.mxu1 %v10708_v16  ;;  %v5978_v16 = vld [vmem:[%s19875_s6 + $0x698] sm:$0xff]  ;;  %10983 = vmatprep.subr.bf16.mxu0 %v10982_v9 }
 0xc60   : > { %10711 = vmatprep.subr.bf16.mxu1 %v10710_v30  ;;  %v5986_v30 = vld [vmem:[%s19875_s6 + $0x6d8] sm:$0xff] }
 0xc61   : > { %v10742_v51 = vpack.c.bf16 %v5986_v30, %v5978_v16  ;;  %v6831_v30 = vld [vmem:[%s19877_s8 + $0xf0] sm:$0xff] }
 0xc62   : > { %v11000_v9 = vpack.c.bf16 %v6834_v55, %v6831_v30 }
 0xc63   : > { %10713 = vmatpush1.bf16.msra.mxu1 %v10712_v11  ;;  %v6810_v11 = vld [vmem:[%s19877_s8 + $0x48] sm:$0xff] }
 0xc64   : > { %10715 = vmatprep.subr.bf16.mxu1 %v10714_v17  ;;  %v10740_v17 = vpack.c.bf16 %v5969_v24, %v5961_v13  ;;  %v10984_v19 = vpack.c.bf16 %v6810_v11, %v6807_v14  ;;  %v6832_v13 = vld [vmem:[%s19877_s8 + $0xf8] sm:$0xff]  ;;  %v6835_v24 = vld [vmem:[%s19877_s8 + $0x110] sm:$0xff] }
 0xc65   : > { %v10998_v16 = vpack.c.bf16 %v6835_v24, %v6832_v13  ;;  %v6041_v11 = vld [vmem:[%s19875_s6 + $0x890] sm:$0xff]  ;;  %v6106_v24 = vld [vmem:[%s19875_s6 + $0xa98] sm:$0xff] }
 0xc66   : > { %10985 = vmatpush1.bf16.msra.mxu0 %v10984_v19  ;;  %v6058_v19 = vld [vmem:[%s19875_s6 + $0x918] sm:$0xff]  ;;  %v6097_v13 = vld [vmem:[%s19875_s6 + $0xa50] sm:$0xff] }
 0xc67   : > { %10717 = vmatpush1.bf16.msra.mxu1 %v10716_v29  ;;  %v5994_v29 = vld [vmem:[%s19875_s6 + $0x718] sm:$0xff]  ;;  %10987 = vmatprep.subr.bf16.mxu0 %v10986_v3 }
 0xc68   : > { %10719 = vmatprep.subr.bf16.mxu1 %v10718_v5  ;;  %v6002_v5 = vld [vmem:[%s19875_s6 + $0x758] sm:$0xff] }
 0xc69   : > { %v10746_v47 = vpack.c.bf16 %v6002_v5, %v5994_v29  ;;  %v6057_v29 = vld [vmem:[%s19875_s6 + $0x910] sm:$0xff]  ;;  %v6844_v3 = vld [vmem:[%s19877_s8 + $0x158] sm:$0xff] }
 0xc6b   : > { %10721 = vmatpush1.bf16.msra.mxu1 %v10720_v37  ;;  %v6816_v37 = vld [vmem:[%s19877_s8 + $0x78] sm:$0xff] }
 0xc6c   : > { %10723 = vmatprep.subr.bf16.mxu1 %v10722_v48  ;;  %v10744_v48 = vpack.c.bf16 %v5985_v21, %v5977_v15  ;;  %v10988_v38 = vpack.c.bf16 %v6816_v37, %v6813_v34  ;;  %v6838_v15 = vld [vmem:[%s19877_s8 + $0x128] sm:$0xff]  ;;  %v6841_v21 = vld [vmem:[%s19877_s8 + $0x140] sm:$0xff]  ;;  %v11004_v37 = vpack.c.bf16 %v6840_v25, %v6837_v33  ;;  %v6121_v33 = vld [vmem:[%s19875_s6 + $0xb10] sm:$0xff] }
 0xc6d   : > { %v11002_v5 = vpack.c.bf16 %v6841_v21, %v6838_v15  ;;  %v6130_v15 = vld [vmem:[%s19875_s6 + $0xb58] sm:$0xff]  ;;  %v6129_v25 = vld [vmem:[%s19875_s6 + $0xb50] sm:$0xff] }
 0xc6e   : > { %10989 = vmatpush1.bf16.msra.mxu0 %v10988_v38  ;;  %v6843_v38 = vld [vmem:[%s19877_s8 + $0x150] sm:$0xff] }
 0xc6f   : > { %10725 = vmatpush1.bf16.msra.mxu1 %v10724_v12  ;;  %v6010_v12 = vld [vmem:[%s19875_s6 + $0x798] sm:$0xff]  ;;  %10991 = vmatprep.subr.bf16.mxu0 %v10990_v35 }
 0xc70   : > { %10727 = vmatprep.subr.bf16.mxu1 %v10726_v43  ;;  %v6018_v43 = vld [vmem:[%s19875_s6 + $0x7d8] sm:$0xff] }
 0xc71   : > { %v10750_v50 = vpack.c.bf16 %v6018_v43, %v6010_v12  ;;  %v6850_v43 = vld [vmem:[%s19877_s8 + $0x188] sm:$0xff]  ;;  %v6082_v35 = vld [vmem:[%s19875_s6 + $0x9d8] sm:$0xff] }
 0xc73   : > { %10729 = vmatpush1.bf16.msra.mxu1 %v10728_v45  ;;  %v6822_v45 = vld [vmem:[%s19877_s8 + $0xa8] sm:$0xff] }
 0xc74   : > { %10731 = vmatprep.subr.bf16.mxu1 %v10730_v32  ;;  %v10748_v32 = vpack.c.bf16 %v6001_v27, %v5993_v31  ;;  %v10992_v41 = vpack.c.bf16 %v6822_v45, %v6819_v56  ;;  %v6065_v27 = vld [vmem:[%s19875_s6 + $0x950] sm:$0xff]  ;;  %v11010_v45 = vpack.c.bf16 %v6853_v26, %v6850_v43 }
 0xc75   : > { %v6137_v43 = vld [vmem:[%s19875_s6 + $0xb90] sm:$0xff] }
 0xc76   : > { %10993 = vmatpush1.bf16.msra.mxu0 %v10992_v41  ;;  %v6852_v41 = vld [vmem:[%s19877_s8 + $0x198] sm:$0xff]  ;;  %v6145_v26 = vld [vmem:[%s19875_s6 + $0xbd0] sm:$0xff] }
 0xc77   : > { %10733 = vmatpush1.bf16.msra.mxu1 %v10732_v62  ;;  %v6026_v62 = vld [vmem:[%s19875_s6 + $0x818] sm:$0xff]  ;;  %10995 = vmatprep.subr.bf16.mxu0 %v10994_v59 }
 0xc78   : > { %10735 = vmatprep.subr.bf16.mxu1 %v10734_v49  ;;  %v6034_v49 = vld [vmem:[%s19875_s6 + $0x858] sm:$0xff] }
 0xc79   : > { %v10754_v10 = vpack.c.bf16 %v6034_v49, %v6026_v62  ;;  %v10766_v62 = vpack.c.bf16 %v6082_v35, %v6074_v44  ;;  %v6073_v49 = vld [vmem:[%s19875_s6 + $0x990] sm:$0xff]  ;;  %v6098_v59 = vld [vmem:[%s19875_s6 + $0xa58] sm:$0xff] }
 0xc7a   : > { %10997 = vmatpush1.bf16.msra.mxu0 %v10996_v8  ;;  %v6858_v8 = vld [vmem:[%s19877_s8 + $0x1c8] sm:$0xff]  ;;  %v5774_v35 = vld [vmem:[%s19875_s6 + $0x38] sm:$0xff] }
 0xc7b   : > { %10737 = vmatpush1.bf16.msra.mxu1 %v10736_v60  ;;  %v6033_v60 = vld [vmem:[%s19875_s6 + $0x850] sm:$0xff]  ;;  %10999 = vmatprep.subr.bf16.mxu0 %v10998_v16  ;;  %v6114_v16 = vld [vmem:[%s19875_s6 + $0xad8] sm:$0xff] }
 0xc7c   : > { %10739 = vmatprep.subr.bf16.mxu1 %v10738_v1  ;;  %v6050_v1 = vld [vmem:[%s19875_s6 + $0x8d8] sm:$0xff]  ;;  %v10756_v52 = vpack.c.bf16 %v6033_v60, %v6025_v2  ;;  %v6862_v2 = vld [vmem:[%s19877_s8 + $0x1e8] sm:$0xff]  ;;  %v6865_v60 = vld [vmem:[%s19877_s8 + $0x200] sm:$0xff] }
 0xc7d   : > { %v10758_v14 = vpack.c.bf16 %v6050_v1, %v6042_v22  ;;  %v10770_v22 = vpack.c.bf16 %v6098_v59, %v6090_v57  ;;  %v6089_v1 = vld [vmem:[%s19875_s6 + $0xa10] sm:$0xff]  ;;  %v11018_v55 = vpack.c.bf16 %v6865_v60, %v6862_v2  ;;  %v11028_v57 = vpack.c.bf16 %v6876_v46, %v6873_v53  ;;  %v5790_v59 = vld [vmem:[%s19875_s6 + $0xb8] sm:$0xff]  ;;  %v6882_v60 = vld [vmem:[%s19877_s8 + $0x288] sm:$0xff] }
 0xc7e   : > { %11001 = vmatpush1.bf16.msra.mxu0 %v11000_v9  ;;  %v6864_v9 = vld [vmem:[%s19877_s8 + $0x1f8] sm:$0xff]  ;;  %v6879_v2 = vld [vmem:[%s19877_s8 + $0x270] sm:$0xff] }
 0xc7f   : > { %10741 = vmatpush1.bf16.msra.mxu1 %v10740_v17  ;;  %v6049_v17 = vld [vmem:[%s19875_s6 + $0x8d0] sm:$0xff]  ;;  %11003 = vmatprep.subr.bf16.mxu0 %v11002_v5 }
 0xc80   : > { %10743 = vmatprep.subr.bf16.mxu1 %v10742_v51  ;;  %v6066_v51 = vld [vmem:[%s19875_s6 + $0x958] sm:$0xff]  ;;  %v10760_v34 = vpack.c.bf16 %v6049_v17, %v6041_v11  ;;  %v10774_v11 = vpack.c.bf16 %v6114_v16, %v6106_v24  ;;  %v6105_v17 = vld [vmem:[%s19875_s6 + $0xa90] sm:$0xff]  ;;  %v11032_v24 = vpack.c.bf16 %v6882_v60, %v6879_v2 }
 0xc81   : > { %v10762_v31 = vpack.c.bf16 %v6066_v51, %v6058_v19  ;;  %v6113_v19 = vld [vmem:[%s19875_s6 + $0xad0] sm:$0xff]  ;;  %v6122_v51 = vld [vmem:[%s19875_s6 + $0xb18] sm:$0xff] }
 0xc82   : > { %11005 = vmatpush1.bf16.msra.mxu0 %v11004_v37  ;;  %v10778_v5 = vpack.c.bf16 %v6130_v15, %v6122_v51  ;;  %v6868_v37 = vld [vmem:[%s19877_s8 + $0x218] sm:$0xff]  ;;  %v5805_v51 = vld [vmem:[%s19875_s6 + $0x130] sm:$0xff] }
 0xc83   : > { %10745 = vmatpush1.bf16.msra.mxu1 %v10744_v48  ;;  %v6847_v48 = vld [vmem:[%s19877_s8 + $0x170] sm:$0xff]  ;;  %v5806_v16 = vld [vmem:[%s19875_s6 + $0x138] sm:$0xff] }
 0xc84   : > { %10747 = vmatprep.subr.bf16.mxu1 %v10746_v47  ;;  %v6846_v47 = vld [vmem:[%s19877_s8 + $0x168] sm:$0xff]  ;;  %v11006_v12 = vpack.c.bf16 %v6847_v48, %v6844_v3  ;;  %v6138_v3 = vld [vmem:[%s19875_s6 + $0xb98] sm:$0xff]  ;;  %v6871_v48 = vld [vmem:[%s19877_s8 + $0x230] sm:$0xff] }
 0xc85   : > { %v11008_v56 = vpack.c.bf16 %v6846_v47, %v6843_v38  ;;  %v10780_v38 = vpack.c.bf16 %v6129_v25, %v6121_v33  ;;  %v11022_v47 = vpack.c.bf16 %v6871_v48, %v6868_v37  ;;  %v6895_v33 = vld [vmem:[%s19877_s8 + $0x2f0] sm:$0xff]  ;;  %v6894_v37 = vld [vmem:[%s19877_s8 + $0x2e8] sm:$0xff] }
 0xc86   : > { %11007 = vmatprep.subr.bf16.mxu0 %v11006_v12 }
 0xc87   : > { %10749 = vmatpush1.bf16.msra.mxu1 %v10748_v32  ;;  %v6849_v32 = vld [vmem:[%s19877_s8 + $0x180] sm:$0xff]  ;;  %11009 = vmatpush1.bf16.msra.mxu0 %v11008_v56  ;;  %v5782_v56 = vld [vmem:[%s19875_s6 + $0x78] sm:$0xff] }
 0xc88   : > { %10751 = vmatprep.subr.bf16.mxu1 %v10750_v50  ;;  %v10764_v50 = vpack.c.bf16 %v6065_v27, %v6057_v29  ;;  %v11012_v6 = vpack.c.bf16 %v6852_v41, %v6849_v32  ;;  %11011 = vmatprep.subr.bf16.mxu0 %v11010_v45  ;;  %v10776_v29 = vpack.c.bf16 %v6113_v19, %v6105_v17  ;;  %v6870_v27 = vld [vmem:[%s19877_s8 + $0x228] sm:$0xff]  ;;  %v6877_v32 = vld [vmem:[%s19877_s8 + $0x260] sm:$0xff]  ;;  %v6888_v17 = vld [vmem:[%s19877_s8 + $0x2b8] sm:$0xff] }
 0xc89   : > { %v6874_v45 = vld [vmem:[%s19877_s8 + $0x248] sm:$0xff]  ;;  %v10784_v41 = vpack.c.bf16 %v6145_v26, %v6137_v43  ;;  %v5837_v26 = vld [vmem:[%s19875_s6 + $0x230] sm:$0xff] }
 0xc8b   : > { %10753 = vmatpush1.bf16.msra.mxu1 %v10752_v7  ;;  %v6855_v7 = vld [vmem:[%s19877_s8 + $0x1b0] sm:$0xff]  ;;  %11013 = vmatpush1.bf16.msra.mxu0 %v11012_v6  ;;  %v5798_v6 = vld [vmem:[%s19875_s6 + $0xf8] sm:$0xff] }
 0xc8c   : > { %10755 = vmatprep.subr.bf16.mxu1 %v10754_v10  ;;  %v10768_v10 = vpack.c.bf16 %v6081_v0, %v6073_v49  ;;  %v11016_v30 = vpack.c.bf16 %v6858_v8, %v6855_v7  ;;  %11015 = vmatprep.subr.bf16.mxu0 %v11014_v40  ;;  %v5773_v49 = vld [vmem:[%s19875_s6 + $0x30] sm:$0xff]  ;;  %v6880_v40 = vld [vmem:[%s19877_s8 + $0x278] sm:$0xff] }
 0xc8d   : > { %v5781_v0 = vld [vmem:[%s19875_s6 + $0x70] sm:$0xff] }
 0xc8e   : > { %6400 = vmatmul.mubr.f32.vlgmr.msra.gmra.mrb[44].mxu1 %v17368_v61  ;;  %v6883_v7 = vld [vmem:[%s19877_s8 + $0x290] sm:$0xff]  ;;  %v10884_v8 = vpack.c.bf16 %v5781_v0, %v5773_v49  ;;  %v5870_v0 = vld [vmem:[%s19875_s6 + $0x338] sm:$0xff] }
 0xc8f   : > { %10757 = vmatpush1.bf16.msra.mxu1 %v10756_v52  ;;  %6470 = vmatprep.mubr.f32.mxu1 %v11783_v39  ;;  %v6861_v52 = vld [vmem:[%s19877_s8 + $0x1e0] sm:$0xff]  ;;  %v5861_v49 = vld [vmem:[%s19875_s6 + $0x2f0] sm:$0xff] }
 0xc90   : > { %10759 = vmatprep.subr.bf16.mxu1 %v10758_v14  ;;  %v10772_v14 = vpack.c.bf16 %v6097_v13, %v6089_v1  ;;  %11017 = vmatpush1.bf16.msra.mxu0 %v11016_v30  ;;  %v11020_v21 = vpack.c.bf16 %v6864_v9, %v6861_v52  ;;  %v5789_v1 = vld [vmem:[%s19875_s6 + $0xb0] sm:$0xff]  ;;  %v5814_v30 = vld [vmem:[%s19875_s6 + $0x178] sm:$0xff]  ;;  %v6889_v52 = vld [vmem:[%s19877_s8 + $0x2c0] sm:$0xff] }
 0xc91   : > { %11019 = vmatprep.subr.bf16.mxu0 %v11018_v55  ;;  %v5797_v13 = vld [vmem:[%s19875_s6 + $0xf0] sm:$0xff]  ;;  %v6886_v55 = vld [vmem:[%s19877_s8 + $0x2a8] sm:$0xff]  ;;  %v10890_v19 = vpack.c.bf16 %v5814_v30, %v5806_v16 }
 0xc92   : > { %v10888_v9 = vpack.c.bf16 %v5797_v13, %v5789_v1  ;;  %v5893_v1 = vld [vmem:[%s19875_s6 + $0x3f0] sm:$0xff]  ;;  %v5902_v13 = vld [vmem:[%s19875_s6 + $0x438] sm:$0xff] }
 0xc93   : > { %10761 = vmatpush1.bf16.msra.mxu1 %v10760_v34  ;;  %v6146_v34 = vld [vmem:[%s19875_s6 + $0xbd8] sm:$0xff] }
 0xc94   : > { %10763 = vmatprep.subr.bf16.mxu1 %v10762_v31  ;;  %11021 = vmatpush1.bf16.msra.mxu0 %v11020_v21  ;;  %v6867_v31 = vld [vmem:[%s19877_s8 + $0x210] sm:$0xff]  ;;  %v10782_v12 = vpack.c.bf16 %v6146_v34, %v6138_v3  ;;  %v5822_v21 = vld [vmem:[%s19875_s6 + $0x1b8] sm:$0xff] }
 0xc95   : > { %v11024_v44 = vpack.c.bf16 %v6870_v27, %v6867_v31  ;;  %11023 = vmatprep.subr.bf16.mxu0 %v11022_v47  ;;  %v6891_v34 = vld [vmem:[%s19877_s8 + $0x2d0] sm:$0xff]  ;;  %v5838_v27 = vld [vmem:[%s19875_s6 + $0x238] sm:$0xff] }
 0xc96   : > { %v5829_v47 = vld [vmem:[%s19875_s6 + $0x1f0] sm:$0xff]  ;;  %v11040_v31 = vpack.c.bf16 %v6894_v37, %v6891_v34 }
 0xc97   : > { %10765 = vmatpush1.bf16.msra.mxu1 %v10764_v50  ;;  %v11026_v50 = vpack.c.bf16 %v6877_v32, %v6874_v45  ;;  %v6901_v45 = vld [vmem:[%s19877_s8 + $0x320] sm:$0xff]  ;;  %v5854_v32 = vld [vmem:[%s19875_s6 + $0x2b8] sm:$0xff] }
 0xc98   : > { %10767 = vmatprep.subr.bf16.mxu1 %v10766_v62  ;;  %11025 = vmatpush1.bf16.msra.mxu0 %v11024_v44  ;;  %v10882_v62 = vpack.c.bf16 %v5782_v56, %v5774_v35  ;;  %v5845_v35 = vld [vmem:[%s19875_s6 + $0x270] sm:$0xff]  ;;  %v6898_v56 = vld [vmem:[%s19877_s8 + $0x308] sm:$0xff] }
 0xc99   : > { %11027 = vmatprep.subr.bf16.mxu0 %v11026_v50  ;;  %v11042_v50 = vpack.c.bf16 %v6901_v45, %v6898_v56  ;;  %v10900_v53 = vpack.c.bf16 %v5845_v35, %v5837_v26  ;;  %v5973_v26 = vld [vmem:[%s19875_s6 + $0x670] sm:$0xff]  ;;  %v5990_v35 = vld [vmem:[%s19875_s6 + $0x6f8] sm:$0xff] }
 0xc9b   : > { %10769 = vmatpush1.bf16.msra.mxu1 %v10768_v10  ;;  %v11030_v10 = vpack.c.bf16 %v6883_v7, %v6880_v40  ;;  %v5869_v40 = vld [vmem:[%s19875_s6 + $0x330] sm:$0xff] }
 0xc9c   : > { %10771 = vmatprep.subr.bf16.mxu1 %v10770_v22  ;;  %11029 = vmatpush1.bf16.msra.mxu0 %v11028_v57  ;;  %v10886_v22 = vpack.c.bf16 %v5798_v6, %v5790_v59  ;;  %v5878_v57 = vld [vmem:[%s19875_s6 + $0x378] sm:$0xff]  ;;  %v5877_v7 = vld [vmem:[%s19875_s6 + $0x370] sm:$0xff] }
 0xc9d   : > { %11031 = vmatprep.subr.bf16.mxu0 %v11030_v10  ;;  %v10906_v6 = vpack.c.bf16 %v5878_v57, %v5870_v0  ;;  %v5894_v10 = vld [vmem:[%s19875_s6 + $0x3f8] sm:$0xff]  ;;  %v10908_v2 = vpack.c.bf16 %v5877_v7, %v5869_v40  ;;  %v6005_v0 = vld [vmem:[%s19875_s6 + $0x770] sm:$0xff] }
 0xc9e   : > { %v6014_v57 = vld [vmem:[%s19875_s6 + $0x7b8] sm:$0xff]  ;;  %v6013_v7 = vld [vmem:[%s19875_s6 + $0x7b0] sm:$0xff] }
 0xc9f   : > { %10773 = vmatpush1.bf16.msra.mxu1 %v10772_v14  ;;  %v11034_v14 = vpack.c.bf16 %v6889_v52, %v6886_v55  ;;  %v5901_v55 = vld [vmem:[%s19875_s6 + $0x430] sm:$0xff] }
 0xca0   : > { %10775 = vmatprep.subr.bf16.mxu1 %v10774_v11  ;;  %11033 = vmatpush1.bf16.msra.mxu0 %v11032_v24  ;;  %v6885_v11 = vld [vmem:[%s19877_s8 + $0x2a0] sm:$0xff]  ;;  %v5910_v24 = vld [vmem:[%s19875_s6 + $0x478] sm:$0xff]  ;;  %v5909_v52 = vld [vmem:[%s19875_s6 + $0x470] sm:$0xff] }
 0xca1   : > { %v11036_v15 = vpack.c.bf16 %v6888_v17, %v6885_v11  ;;  %11035 = vmatprep.subr.bf16.mxu0 %v11034_v14  ;;  %v10914_v30 = vpack.c.bf16 %v5910_v24, %v5902_v13  ;;  %v5926_v14 = vld [vmem:[%s19875_s6 + $0x4f8] sm:$0xff]  ;;  %v10916_v11 = vpack.c.bf16 %v5909_v52, %v5901_v55  ;;  %v6037_v13 = vld [vmem:[%s19875_s6 + $0x870] sm:$0xff] }
 0xca2   : > { %v6046_v24 = vld [vmem:[%s19875_s6 + $0x8b8] sm:$0xff]  ;;  %v6045_v52 = vld [vmem:[%s19875_s6 + $0x8b0] sm:$0xff] }
 0xca3   : > { %10777 = vmatpush1.bf16.msra.mxu1 %v10776_v29  ;;  %v5830_v29 = vld [vmem:[%s19875_s6 + $0x1f8] sm:$0xff] }
 0xca4   : > { %10779 = vmatprep.subr.bf16.mxu1 %v10778_v5  ;;  %11037 = vmatpush1.bf16.msra.mxu0 %v11036_v15  ;;  %v6892_v5 = vld [vmem:[%s19877_s8 + $0x2d8] sm:$0xff]  ;;  %v10894_v48 = vpack.c.bf16 %v5830_v29, %v5822_v21 }
 0xca5   : > { %v11038_v3 = vpack.c.bf16 %v6895_v33, %v6892_v5  ;;  %v5942_v15 = vld [vmem:[%s19875_s6 + $0x578] sm:$0xff]  ;;  %v5933_v5 = vld [vmem:[%s19875_s6 + $0x530] sm:$0xff] }
 0xca6   : > { %v5941_v33 = vld [vmem:[%s19875_s6 + $0x570] sm:$0xff] }
 0xca7   : > { %10781 = vmatpush1.bf16.msra.mxu1 %v10780_v38  ;;  %v5821_v38 = vld [vmem:[%s19875_s6 + $0x1b0] sm:$0xff]  ;;  %11039 = vmatprep.subr.bf16.mxu0 %v11038_v3  ;;  %v5958_v3 = vld [vmem:[%s19875_s6 + $0x5f8] sm:$0xff]  ;;  %v10924_v34 = vpack.c.bf16 %v5941_v33, %v5933_v5 }
 0xca8   : > { %10783 = vmatprep.subr.bf16.mxu1 %v10782_v12  ;;  %v5846_v12 = vld [vmem:[%s19875_s6 + $0x278] sm:$0xff]  ;;  %11041 = vmatpush1.bf16.msra.mxu0 %v11040_v31  ;;  %v10896_v43 = vpack.c.bf16 %v5829_v47, %v5821_v38  ;;  %v5957_v38 = vld [vmem:[%s19875_s6 + $0x5f0] sm:$0xff] }
 0xca9   : > { %v10898_v44 = vpack.c.bf16 %v5846_v12, %v5838_v27  ;;  %11043 = vmatprep.subr.bf16.mxu0 %v11042_v50  ;;  %v5966_v47 = vld [vmem:[%s19875_s6 + $0x638] sm:$0xff]  ;;  %v6077_v5 = vld [vmem:[%s19875_s6 + $0x9b0] sm:$0xff] }
 0xcaa   : > { %v5974_v31 = vld [vmem:[%s19875_s6 + $0x678] sm:$0xff]  ;;  %v6085_v33 = vld [vmem:[%s19875_s6 + $0x9f0] sm:$0xff] }
 0xcab   : > { %10785 = vmatpush1.bf16.msra.mxu1 %v10784_v41  ;;  %v5862_v41 = vld [vmem:[%s19875_s6 + $0x2f8] sm:$0xff]  ;;  %v10930_v12 = vpack.c.bf16 %v5974_v31, %v5966_v47 }
 0xcac   : > { %10883 = vmatprep.subr.bf16.mxu1 %v10882_v62  ;;  %v10902_v46 = vpack.c.bf16 %v5862_v41, %v5854_v32  ;;  %v5853_v62 = vld [vmem:[%s19875_s6 + $0x2b0] sm:$0xff]  ;;  %v5998_v50 = vld [vmem:[%s19875_s6 + $0x738] sm:$0xff] }
 0xcad   : > { %v10904_v59 = vpack.c.bf16 %v5861_v49, %v5853_v62  ;;  %v5981_v32 = vld [vmem:[%s19875_s6 + $0x6b0] sm:$0xff]  ;;  %v6110_v47 = vld [vmem:[%s19875_s6 + $0xab8] sm:$0xff] }
 0xcae   : > { %6471 = vmatmul.mubr.f32.vlgmr.msra.gmra.mrb[44].mxu1 %v17556_v42  ;;  %v5989_v41 = vld [vmem:[%s19875_s6 + $0x6f0] sm:$0xff]  ;;  %v6118_v31 = vld [vmem:[%s19875_s6 + $0xaf8] sm:$0xff] }
 0xcaf   : > { %10885 = vmatpush1.bf16.msra.mxu1 %v10884_v8  ;;  %6683 = vmatprep.mubr.f32.mxu1 %v17366_v58  ;;  %v5813_v58 = vld [vmem:[%s19875_s6 + $0x170] sm:$0xff]  ;;  %v5886_v8 = vld [vmem:[%s19875_s6 + $0x3b8] sm:$0xff] }
 0xcb0   : > { %10887 = vmatprep.subr.bf16.mxu1 %v10886_v22  ;;  %v10892_v25 = vpack.c.bf16 %v5813_v58, %v5805_v51  ;;  %v10910_v60 = vpack.c.bf16 %v5894_v10, %v5886_v8  ;;  %v5885_v22 = vld [vmem:[%s19875_s6 + $0x3b0] sm:$0xff]  ;;  %v5934_v58 = vld [vmem:[%s19875_s6 + $0x538] sm:$0xff] }
 0xcb1   : > { %v10912_v16 = vpack.c.bf16 %v5893_v1, %v5885_v22  ;;  %v5925_v51 = vld [vmem:[%s19875_s6 + $0x4f0] sm:$0xff]  ;;  %v10922_v29 = vpack.c.bf16 %v5942_v15, %v5934_v58  ;;  %v6030_v10 = vld [vmem:[%s19875_s6 + $0x838] sm:$0xff] }
 0xcb2   : > { %v5997_v49 = vld [vmem:[%s19875_s6 + $0x730] sm:$0xff]  ;;  %v6078_v15 = vld [vmem:[%s19875_s6 + $0x9b8] sm:$0xff] }
 0xcb3   : > { %10889 = vmatpush1.bf16.msra.mxu1 %v10888_v9  ;;  %v5918_v9 = vld [vmem:[%s19875_s6 + $0x4b8] sm:$0xff]  ;;  %v6021_v8 = vld [vmem:[%s19875_s6 + $0x7f0] sm:$0xff] }
 0xcb4   : > { %10891 = vmatprep.subr.bf16.mxu1 %v10890_v19  ;;  %v10918_v17 = vpack.c.bf16 %v5926_v14, %v5918_v9  ;;  %v5917_v19 = vld [vmem:[%s19875_s6 + $0x4b0] sm:$0xff]  ;;  %v6062_v14 = vld [vmem:[%s19875_s6 + $0x938] sm:$0xff] }
 0xcb5   : > { %v10920_v21 = vpack.c.bf16 %v5925_v51, %v5917_v19  ;;  %v6029_v1 = vld [vmem:[%s19875_s6 + $0x830] sm:$0xff] }
 0xcb6   : > { %v6053_v9 = vld [vmem:[%s19875_s6 + $0x8f0] sm:$0xff] }
 0xcb7   : > { %10893 = vmatpush1.bf16.msra.mxu1 %v10892_v25  ;;  %v5950_v25 = vld [vmem:[%s19875_s6 + $0x5b8] sm:$0xff]  ;;  %v6061_v51 = vld [vmem:[%s19875_s6 + $0x930] sm:$0xff] }
 0xcb8   : > { %10895 = vmatprep.subr.bf16.mxu1 %v10894_v48  ;;  %v10926_v37 = vpack.c.bf16 %v5958_v3, %v5950_v25  ;;  %v5949_v48 = vld [vmem:[%s19875_s6 + $0x5b0] sm:$0xff]  ;;  %v6094_v25 = vld [vmem:[%s19875_s6 + $0xa38] sm:$0xff] }
 0xcb9   : > { %v10928_v27 = vpack.c.bf16 %v5957_v38, %v5949_v48  ;;  %v6069_v58 = vld [vmem:[%s19875_s6 + $0x970] sm:$0xff]  ;;  %v6102_v3 = vld [vmem:[%s19875_s6 + $0xa78] sm:$0xff] }
 0xcba   : > { %v6093_v48 = vld [vmem:[%s19875_s6 + $0xa30] sm:$0xff] }
 0xcbb   : > { %10897 = vmatpush1.bf16.msra.mxu1 %v10896_v43  ;;  %v5965_v43 = vld [vmem:[%s19875_s6 + $0x630] sm:$0xff] }
 0xcbc   : > { %10899 = vmatprep.subr.bf16.mxu1 %v10898_v44  ;;  %v5982_v44 = vld [vmem:[%s19875_s6 + $0x6b8] sm:$0xff]  ;;  %v10932_v56 = vpack.c.bf16 %v5973_v26, %v5965_v43  ;;  %v6101_v38 = vld [vmem:[%s19875_s6 + $0xa70] sm:$0xff] }
 0xcbd   : > { %v10934_v45 = vpack.c.bf16 %v5990_v35, %v5982_v44  ;;  %v6109_v43 = vld [vmem:[%s19875_s6 + $0xab0] sm:$0xff]  ;;  %v6126_v44 = vld [vmem:[%s19875_s6 + $0xb38] sm:$0xff] }
 0xcbe   : > { %v6117_v26 = vld [vmem:[%s19875_s6 + $0xaf0] sm:$0xff]  ;;  %v6134_v35 = vld [vmem:[%s19875_s6 + $0xb78] sm:$0xff] }
 0xcbf   : > { %10901 = vmatpush1.bf16.msra.mxu1 %v10900_v53  ;;  %v6006_v53 = vld [vmem:[%s19875_s6 + $0x778] sm:$0xff] }
 0xcc0   : > { %10903 = vmatprep.subr.bf16.mxu1 %v10902_v46  ;;  %v10936_v46 = vpack.c.bf16 %v5989_v41, %v5981_v32  ;;  %v10938_v62 = vpack.c.bf16 %v6006_v53, %v5998_v50  ;;  %v6125_v32 = vld [vmem:[%s19875_s6 + $0xb30] sm:$0xff]  ;;  %v6142_v50 = vld [vmem:[%s19875_s6 + $0xbb8] sm:$0xff] }
 0xcc1   : > { %v6133_v41 = vld [vmem:[%s19875_s6 + $0xb70] sm:$0xff]  ;;  %v6150_v53 = vld [vmem:[%s19875_s6 + $0xbf8] sm:$0xff] }
 0xcc3   : > { %10905 = vmatpush1.bf16.msra.mxu1 %v10904_v59  ;;  %v6022_v59 = vld [vmem:[%s19875_s6 + $0x7f8] sm:$0xff] }
 0xcc4   : > { %10907 = vmatprep.subr.bf16.mxu1 %v10906_v6  ;;  %v10940_v6 = vpack.c.bf16 %v6005_v0, %v5997_v49  ;;  %v10942_v40 = vpack.c.bf16 %v6022_v59, %v6014_v57  ;;  %v6141_v49 = vld [vmem:[%s19875_s6 + $0xbb0] sm:$0xff]  ;;  %v6854_v59 = vld [vmem:[%s19877_s8 + $0x1a8] sm:$0xff] }
 0xcc5   : > { %v6149_v0 = vld [vmem:[%s19875_s6 + $0xbf0] sm:$0xff] }
 0xcc6   : > { %v6851_v57 = vld [vmem:[%s19877_s8 + $0x190] sm:$0xff] }
 0xcc7   : > { %10909 = vmatpush1.bf16.msra.mxu1 %v10908_v2  ;;  %v6038_v2 = vld [vmem:[%s19875_s6 + $0x878] sm:$0xff] }
 0xcc8   : > { %10911 = vmatprep.subr.bf16.mxu1 %v10910_v60  ;;  %v10944_v60 = vpack.c.bf16 %v6021_v8, %v6013_v7  ;;  %v10946_v22 = vpack.c.bf16 %v6038_v2, %v6030_v10  ;;  %v6803_v7 = vld [vmem:[%s19877_s8 + $0x10] sm:$0xff]  ;;  %v6806_v8 = vld [vmem:[%s19877_s8 + $0x28] sm:$0xff]  ;;  %v6857_v10 = vld [vmem:[%s19877_s8 + $0x1c0] sm:$0xff] }
 0xcc9   : > { %v6860_v2 = vld [vmem:[%s19877_s8 + $0x1d8] sm:$0xff] }
 0xccb   : > { %10913 = vmatpush1.bf16.msra.mxu1 %v10912_v16  ;;  %v6054_v16 = vld [vmem:[%s19875_s6 + $0x8f8] sm:$0xff] }
 0xccc   : > { %10915 = vmatprep.subr.bf16.mxu1 %v10914_v30  ;;  %v10948_v30 = vpack.c.bf16 %v6037_v13, %v6029_v1  ;;  %v10950_v55 = vpack.c.bf16 %v6054_v16, %v6046_v24  ;;  %v6809_v1 = vld [vmem:[%s19877_s8 + $0x40] sm:$0xff]  ;;  %v6812_v13 = vld [vmem:[%s19877_s8 + $0x58] sm:$0xff]  ;;  %v6863_v24 = vld [vmem:[%s19877_s8 + $0x1f0] sm:$0xff] }
 0xccd   : > { %v6866_v16 = vld [vmem:[%s19877_s8 + $0x208] sm:$0xff] }
 0xccf   : > { %10917 = vmatpush1.bf16.msra.mxu1 %v10916_v11  ;;  %v6070_v11 = vld [vmem:[%s19875_s6 + $0x978] sm:$0xff] }
 0xcd0   : > { %10919 = vmatprep.subr.bf16.mxu1 %v10918_v17  ;;  %v10952_v17 = vpack.c.bf16 %v6053_v9, %v6045_v52  ;;  %v10954_v19 = vpack.c.bf16 %v6070_v11, %v6062_v14  ;;  %v6815_v52 = vld [vmem:[%s19877_s8 + $0x70] sm:$0xff]  ;;  %v6818_v9 = vld [vmem:[%s19877_s8 + $0x88] sm:$0xff]  ;;  %v6869_v14 = vld [vmem:[%s19877_s8 + $0x220] sm:$0xff] }
 0xcd1   : > { %v11244_v11 = vpack.c.bf16 %v6818_v9, %v6815_v52 }
 0xcd3   : > { %10921 = vmatpush1.bf16.msra.mxu1 %v10920_v21  ;;  %v10956_v21 = vpack.c.bf16 %v6069_v58, %v6061_v51  ;;  %v6824_v51 = vld [vmem:[%s19877_s8 + $0xb8] sm:$0xff]  ;;  %v6875_v58 = vld [vmem:[%s19877_s8 + $0x250] sm:$0xff] }
 0xcd4   : > { %10923 = vmatprep.subr.bf16.mxu1 %v10922_v29 }
 0xcd7   : > { %10925 = vmatpush1.bf16.msra.mxu1 %v10924_v34  ;;  %v10960_v34 = vpack.c.bf16 %v6085_v33, %v6077_v5  ;;  %v6830_v5 = vld [vmem:[%s19877_s8 + $0xe8] sm:$0xff]  ;;  %v6881_v33 = vld [vmem:[%s19877_s8 + $0x280] sm:$0xff] }
 0xcd8   : > { %10927 = vmatprep.subr.bf16.mxu1 %v10926_v37  ;;  %v10962_v37 = vpack.c.bf16 %v6102_v3, %v6094_v25  ;;  %v6884_v25 = vld [vmem:[%s19877_s8 + $0x298] sm:$0xff]  ;;  %v18393_v3 = vld [vmem:[%s19876_s7] sm:$0xff] }
 0xcdb   : > { %10929 = vmatpush1.bf16.msra.mxu1 %v10928_v27  ;;  %v10964_v27 = vpack.c.bf16 %v6101_v38, %v6093_v48  ;;  %v6833_v48 = vld [vmem:[%s19877_s8 + $0x100] sm:$0xff]  ;;  %v6836_v38 = vld [vmem:[%s19877_s8 + $0x118] sm:$0xff] }
 0xcdc   : > { %10931 = vmatprep.subr.bf16.mxu1 %v10930_v12  ;;  %v10966_v12 = vpack.c.bf16 %v6118_v31, %v6110_v47  ;;  %v6887_v47 = vld [vmem:[%s19877_s8 + $0x2b0] sm:$0xff]  ;;  %v6890_v31 = vld [vmem:[%s19877_s8 + $0x2c8] sm:$0xff] }
 0xcdf   : > { %10933 = vmatpush1.bf16.msra.mxu1 %v10932_v56  ;;  %v10968_v56 = vpack.c.bf16 %v6117_v26, %v6109_v43  ;;  %v11256_v43 = vpack.c.bf16 %v6836_v38, %v6833_v48  ;;  %v11258_v26 = vpack.c.bf16 %v6890_v31, %v6887_v47  ;;  %v6959_v48 = vld [vmem:[%s19877_s8 + $0x4f0] sm:$0xff]  ;;  %v6962_v38 = vld [vmem:[%s19877_s8 + $0x508] sm:$0xff]  ;;  %v6909_v31 = vld [vmem:[%s19877_s8 + $0x360] sm:$0xff] }
 0xce0   : > { %10935 = vmatprep.subr.bf16.mxu1 %v10934_v45  ;;  %v10970_v45 = vpack.c.bf16 %v6134_v35, %v6126_v44  ;;  %v6839_v44 = vld [vmem:[%s19877_s8 + $0x130] sm:$0xff]  ;;  %v6842_v35 = vld [vmem:[%s19877_s8 + $0x148] sm:$0xff] }
 0xce3   : > { %10937 = vmatpush1.bf16.msra.mxu1 %v10936_v46  ;;  %v10972_v46 = vpack.c.bf16 %v6133_v41, %v6125_v32  ;;  %v6893_v32 = vld [vmem:[%s19877_s8 + $0x2e0] sm:$0xff]  ;;  %v6896_v41 = vld [vmem:[%s19877_s8 + $0x2f8] sm:$0xff] }
 0xce4   : > { %10939 = vmatprep.subr.bf16.mxu1 %v10938_v62  ;;  %v10974_v62 = vpack.c.bf16 %v6150_v53, %v6142_v50 }
 0xce7   : > { %10941 = vmatpush1.bf16.msra.mxu1 %v10940_v6  ;;  %v10976_v6 = vpack.c.bf16 %v6149_v0, %v6141_v49  ;;  %v11260_v49 = vpack.c.bf16 %v6842_v35, %v6839_v44  ;;  %v11274_v44 = vpack.c.bf16 %v6962_v38, %v6959_v48  ;;  %v6911_v35 = vld [vmem:[%s19877_s8 + $0x370] sm:$0xff]  ;;  %v6936_v48 = vld [vmem:[%s19877_s8 + $0x438] sm:$0xff] }
 0xce8   : > { %10943 = vmatprep.subr.bf16.mxu1 %v10942_v40  ;;  %v11234_v40 = vpack.c.bf16 %v6854_v59, %v6851_v57  ;;  %v11262_v57 = vpack.c.bf16 %v6896_v41, %v6893_v32  ;;  %v6845_v59 = vld [vmem:[%s19877_s8 + $0x160] sm:$0xff]  ;;  %v6919_v32 = vld [vmem:[%s19877_s8 + $0x3b0] sm:$0xff] }
 0xce9   : > { %v6965_v41 = vld [vmem:[%s19877_s8 + $0x520] sm:$0xff] }
 0xceb   : > { %10945 = vmatpush1.bf16.msra.mxu1 %v10944_v60  ;;  %v11236_v60 = vpack.c.bf16 %v6806_v8, %v6803_v7  ;;  %v6947_v7 = vld [vmem:[%s19877_s8 + $0x490] sm:$0xff]  ;;  %v6950_v8 = vld [vmem:[%s19877_s8 + $0x4a8] sm:$0xff] }
 0xcec   : > { %10947 = vmatprep.subr.bf16.mxu1 %v10946_v22  ;;  %v11238_v22 = vpack.c.bf16 %v6860_v2, %v6857_v10  ;;  %v11266_v2 = vpack.c.bf16 %v6950_v8, %v6947_v7  ;;  %v6920_v7 = vld [vmem:[%s19877_s8 + $0x3b8] sm:$0xff]  ;;  %v6925_v8 = vld [vmem:[%s19877_s8 + $0x3e0] sm:$0xff] }
 0xcee   : > { %6684 = vmatmul.mubr.f32.vlgmr.msra.gmra.mrb[46].mxu1 %v17368_v61  ;;  %v6086_v61 = vld [vmem:[%s19875_s6 + $0x9f8] sm:$0xff] }
 0xcef   : > { %10949 = vmatpush1.bf16.msra.mxu1 %v10948_v30  ;;  %6754 = vmatprep.mubr.f32.mxu1 %v11783_v39  ;;  %v10958_v29 = vpack.c.bf16 %v6086_v61, %v6078_v15  ;;  %v11240_v30 = vpack.c.bf16 %v6812_v13, %v6809_v1  ;;  %v6878_v15 = vld [vmem:[%s19877_s8 + $0x268] sm:$0xff]  ;;  %v6900_v1 = vld [vmem:[%s19877_s8 + $0x318] sm:$0xff] }
 0xcf0   : > { %10951 = vmatprep.subr.bf16.mxu1 %v10950_v55  ;;  %v11242_v55 = vpack.c.bf16 %v6866_v16, %v6863_v24  ;;  %v6904_v16 = vld [vmem:[%s19877_s8 + $0x338] sm:$0xff] }
 0xcf3   : > { %10953 = vmatpush1.bf16.msra.mxu1 %v10952_v17 }
 0xcf4   : > { %10955 = vmatprep.subr.bf16.mxu1 %v10954_v19  ;;  %v6821_v19 = vld [vmem:[%s19877_s8 + $0xa0] sm:$0xff] }
 0xcf5   : > { %v11248_v61 = vpack.c.bf16 %v6824_v51, %v6821_v19 }
 0xcf7   : > { %10957 = vmatpush1.bf16.msra.mxu1 %v10956_v21  ;;  %v11250_v21 = vpack.c.bf16 %v6878_v15, %v6875_v58  ;;  %v6903_v58 = vld [vmem:[%s19877_s8 + $0x330] sm:$0xff]  ;;  %v6906_v15 = vld [vmem:[%s19877_s8 + $0x348] sm:$0xff] }
 0xcf8   : > { %10959 = vmatprep.subr.bf16.mxu1 %v10958_v29  ;;  %v6827_v29 = vld [vmem:[%s19877_s8 + $0xd0] sm:$0xff]  ;;  %v11048_v47 = vpack.c.bf16 %v6906_v15, %v6903_v58  ;;  %v6934_v15 = vld [vmem:[%s19877_s8 + $0x428] sm:$0xff] }
 0xcfb   : > { %10961 = vmatpush1.bf16.msra.mxu1 %v10960_v34  ;;  %v11252_v34 = vpack.c.bf16 %v6830_v5, %v6827_v29  ;;  %v6910_v5 = vld [vmem:[%s19877_s8 + $0x368] sm:$0xff] }
 0xcfc   : > { %10963 = vmatprep.subr.bf16.mxu1 %v10962_v37  ;;  %v11254_v37 = vpack.c.bf16 %v6884_v25, %v6881_v33  ;;  %v6905_v25 = vld [vmem:[%s19877_s8 + $0x340] sm:$0xff] }
 0xcff   : > { %10965 = vmatpush1.bf16.msra.mxu1 %v10964_v27  ;;  %v6156_v27 = vrot.slane %v18393_v3, %v15493_v4 }
 0xd00   : > { %10967 = vmatprep.subr.bf16.mxu1 %v10966_v12  ;;  %v6160_v12 = vrot.slane %v18393_v3, %v15606_v18 }
 0xd03   : > { %10969 = vmatpush1.bf16.msra.mxu1 %v10968_v56 }
 0xd04   : > { %10971 = vmatprep.subr.bf16.mxu1 %v10970_v45 }
 0xd07   : > { %10973 = vmatpush1.bf16.msra.mxu1 %v10972_v46 }
 0xd08   : > { %10975 = vmatprep.subr.bf16.mxu1 %v10974_v62 }
 0xd0b   : > { %10977 = vmatpush1.bf16.msra.mxu1 %v10976_v6  ;;  %v6848_v6 = vld [vmem:[%s19877_s8 + $0x178] sm:$0xff] }
 0xd0c   : > { %11235 = vmatprep.subr.bf16.mxu1 %v11234_v40  ;;  %v11264_v10 = vpack.c.bf16 %v6848_v6, %v6845_v59  ;;  %v6922_v59 = vld [vmem:[%s19877_s8 + $0x3c8] sm:$0xff] }
 0xd0e   : > { %6755 = vmatmul.mubr.f32.vlgmr.msra.gmra.mrb[46].mxu1 %v17556_v42  ;;  %v6872_v42 = vld [vmem:[%s19877_s8 + $0x238] sm:$0xff] }
 0xd0f   : > { %11237 = vmatpush3.bf16.msra.mxu1 %v11236_v60  ;;  %v11246_v17 = vpack.c.bf16 %v6872_v42, %v6869_v14  ;;  %v6907_v14 = vld [vmem:[%s19877_s8 + $0x350] sm:$0xff]  ;;  %v6953_v42 = vld [vmem:[%s19877_s8 + $0x4c0] sm:$0xff] }
 0xd10   : > { %11239 = vmatprep.subr.bf16.mxu1 %v11238_v22  ;;  %v6897_v22 = vld [vmem:[%s19877_s8 + $0x300] sm:$0xff]  ;;  %v11046_v29 = vpack.c.bf16 %v6907_v14, %v6904_v16  ;;  %v6928_v16 = vld [vmem:[%s19877_s8 + $0x3f8] sm:$0xff] }
 0xd11   : > { %v11044_v51 = vpack.c.bf16 %v6900_v1, %v6897_v22  ;;  %v6921_v22 = vld [vmem:[%s19877_s8 + $0x3c0] sm:$0xff]  ;;  %v6924_v1 = vld [vmem:[%s19877_s8 + $0x3d8] sm:$0xff] }
 0xd12   : > { %v6977_v14 = vld [vmem:[%s19877_s8 + $0x580] sm:$0xff] }
 0xd13   : > { %11241 = vmatpush3.bf16.msra.mxu1 %v11240_v30  ;;  %v6899_v30 = vld [vmem:[%s19877_s8 + $0x310] sm:$0xff] }
 0xd14   : > { %11243 = vmatprep.subr.bf16.mxu1 %v11242_v55  ;;  %v6902_v55 = vld [vmem:[%s19877_s8 + $0x328] sm:$0xff] }
 0xd17   : > { %11245 = vmatpush3.bf16.msra.mxu1 %v11244_v11  ;;  %v6956_v11 = vld [vmem:[%s19877_s8 + $0x4d8] sm:$0xff] }
 0xd18   : > { %11247 = vmatprep.subr.bf16.mxu1 %v11246_v17  ;;  %v11270_v33 = vpack.c.bf16 %v6956_v11, %v6953_v42  ;;  %v6980_v42 = vld [vmem:[%s19877_s8 + $0x598] sm:$0xff]  ;;  %v11060_v11 = vpack.c.bf16 %v6924_v1, %v6921_v22 }
 0xd19   : > { %v6952_v1 = vld [vmem:[%s19877_s8 + $0x4b8] sm:$0xff] }
 0xd1b   : > { %11249 = vmatpush3.bf16.msra.mxu1 %v11248_v61  ;;  %v11268_v61 = vpack.c.bf16 %v6902_v55, %v6899_v30  ;;  %v6923_v55 = vld [vmem:[%s19877_s8 + $0x3d0] sm:$0xff] }
 0xd1c   : > { %11251 = vmatprep.subr.bf16.mxu1 %v11250_v21 }
 0xd1f   : > { %11253 = vmatpush3.bf16.msra.mxu1 %v11252_v34  ;;  %v6908_v34 = vld [vmem:[%s19877_s8 + $0x358] sm:$0xff] }
 0xd20   : > { %11255 = vmatprep.subr.bf16.mxu1 %v11254_v37  ;;  %v6913_v37 = vld [vmem:[%s19877_s8 + $0x380] sm:$0xff] }
 0xd21   : > { %v6330_v56 = vpop.f32.mrb[42].mxu1  ;;  %v18417_v45 = vpop.f32.mrb[24].mxu0 }
 0xd22   : > { %v11540_v50 = vadd.f32 %v6330_v56, %v6156_v27  ;;  %v6332_v53 = vpop.f32.mrb[43].mxu1  ;;  %v18425_v46 = vpop.f32.mrb[25].mxu0  ;;  %v6912_v27 = vld [vmem:[%s19877_s8 + $0x378] sm:$0xff]  ;;  %v6914_v56 = vld [vmem:[%s19877_s8 + $0x388] sm:$0xff] }
 0xd23   : > { %v11541_v62 = vadd.f32 %v6332_v53, %v6160_v12  ;;  %11257 = vmatpush3.bf16.msra.mxu1 %v11256_v43  ;;  %v11272_v12 = vpack.c.bf16 %v6908_v34, %v6905_v25  ;;  %v11050_v43 = vpack.c.bf16 %v6913_v37, %v6910_v5  ;;  %v11052_v53 = vpack.c.bf16 %v6912_v27, %v6909_v31  ;;  %v6937_v5 = vld [vmem:[%s19877_s8 + $0x440] sm:$0xff]  ;;  %v6986_v25 = vld [vmem:[%s19877_s8 + $0x5c8] sm:$0xff]  ;;  %v6940_v31 = vld [vmem:[%s19877_s8 + $0x458] sm:$0xff] }
 0xd24   : > { %v6769_v0 = vmul.f32 0.70710677, %v11540_v50  ;;  %11259 = vmatprep.subr.bf16.mxu1 %v11258_v26  ;;  %v6761_v17 = vmul.f32 0.5, %v11540_v50  ;;  %v6916_v26 = vld [vmem:[%s19877_s8 + $0x398] sm:$0xff]  ;;  %v6933_v37 = vld [vmem:[%s19877_s8 + $0x420] sm:$0xff] }
 0xd25   : > { %v6770_v40 = vmul.f32 0.70710677, %v11541_v62  ;;  %v6762_v52 = vmul.f32 0.5, %v11541_v62  ;;  %v6968_v50 = vld [vmem:[%s19877_s8 + $0x538] sm:$0xff]  ;;  %v6915_v62 = vld [vmem:[%s19877_s8 + $0x390] sm:$0xff] }
 0xd26   : > { %11676 = verf.f32 %v6769_v0  ;;  %v11276_v0 = vpack.c.bf16 %v6914_v56, %v6911_v35  ;;  %v11278_v6 = vpack.c.bf16 %v6968_v50, %v6965_v41  ;;  %v6992_v35 = vld [vmem:[%s19877_s8 + $0x5f8] sm:$0xff]  ;;  %v11068_v56 = vpack.c.bf16 %v6936_v48, %v6933_v37  ;;  %v6942_v41 = vld [vmem:[%s19877_s8 + $0x468] sm:$0xff] }
 0xd27   : > { %11261 = vmatpush3.bf16.msra.mxu1 %v11260_v49  ;;  %11678 = verf.f32 %v6770_v40  ;;  %v6918_v49 = vld [vmem:[%s19877_s8 + $0x3a8] sm:$0xff]  ;;  %v6917_v40 = vld [vmem:[%s19877_s8 + $0x3a0] sm:$0xff]  ;;  %v6972_v37 = vld [vmem:[%s19877_s8 + $0x558] sm:$0xff] }
 0xd28   : > { %11263 = vmatprep.subr.bf16.mxu1 %v11262_v57  ;;  %v11054_v57 = vpack.c.bf16 %v6919_v32, %v6916_v26  ;;  %v6943_v26 = vld [vmem:[%s19877_s8 + $0x470] sm:$0xff]  ;;  %v6976_v48 = vld [vmem:[%s19877_s8 + $0x578] sm:$0xff] }
 0xd29   : > { %v6939_v32 = vld [vmem:[%s19877_s8 + $0x450] sm:$0xff] }
 0xd2b   : > { %11265 = vmatpush3.bf16.msra.mxu1 %v11264_v10  ;;  %v6971_v10 = vld [vmem:[%s19877_s8 + $0x550] sm:$0xff] }
 0xd2c   : > { %11267 = vmatprep.subr.bf16.mxu1 %v11266_v2  ;;  %v6974_v2 = vld [vmem:[%s19877_s8 + $0x568] sm:$0xff] }
 0xd2d   : > { %v11282_v30 = vpack.c.bf16 %v6974_v2, %v6971_v10  ;;  %v6945_v2 = vld [vmem:[%s19877_s8 + $0x480] sm:$0xff] }
 0xd30   : > { %v11677_v60 = vpop.eup %11676 }
 0xd31   : > { %v11679_v13 = vpop.eup %11678  ;;  %v6785_v24 = vadd.f32 1.0, %v11677_v60  ;;  %v11056_v60 = vpack.c.bf16 %v6918_v49, %v6915_v62  ;;  %v6946_v62 = vld [vmem:[%s19877_s8 + $0x488] sm:$0xff] }
 0xd32   : > { %v6786_v9 = vadd.f32 1.0, %v11679_v13  ;;  %v11280_v13 = vpack.c.bf16 %v6920_v7, %v6917_v40  ;;  %v7046_v40 = vld [vmem:[%s19877_s8 + $0x7a8] sm:$0xff]  ;;  %v11072_v7 = vpack.c.bf16 %v6942_v41, %v6939_v32  ;;  %v6984_v32 = vld [vmem:[%s19877_s8 + $0x5b8] sm:$0xff] }
 0xd33   : > { %v6793_v21 = vmul.f32 %v6785_v24, %v6761_v17  ;;  %v11058_v24 = vpack.c.bf16 %v6925_v8, %v6922_v59  ;;  %v6927_v17 = vld [vmem:[%s19877_s8 + $0x3f0] sm:$0xff]  ;;  %v6949_v59 = vld [vmem:[%s19877_s8 + $0x4a0] sm:$0xff]  ;;  %v6988_v41 = vld [vmem:[%s19877_s8 + $0x5d8] sm:$0xff] }
 0xd34   : > { %v6794_v19 = vmul.f32 %v6786_v9, %v6762_v52  ;;  %v6926_v52 = vld [vmem:[%s19877_s8 + $0x3e8] sm:$0xff]  ;;  %v6931_v9 = vld [vmem:[%s19877_s8 + $0x410] sm:$0xff]  ;;  %v11074_v10 = vpack.c.bf16 %v6949_v59, %v6946_v62  ;;  %v6997_v59 = vld [vmem:[%s19877_s8 + $0x620] sm:$0xff] }
 0xd35   : > { %v11062_v58 = vpack.c.bf16 %v6931_v9, %v6928_v16  ;;  %v6961_v9 = vld [vmem:[%s19877_s8 + $0x500] sm:$0xff] }
 0xd36   : > { %7265 = vmatprep.mubr.f32.mxu0 %v6794_v19  ;;  %7549 = vmatprep.mubr.f32.mxu1 %v6794_v19  ;;  %v6930_v19 = vld [vmem:[%s19877_s8 + $0x408] sm:$0xff] }
 0xd37   : > { %7266 = vmatmul.mubr.f32.vlgmr.msra.gmra.mrb[26].mxu0 %v6793_v21  ;;  %7550 = vmatmul.mubr.f32.vlgmr.msra.gmra.mrb[48].mxu1 %v6793_v21  ;;  %v6929_v21 = vld [vmem:[%s19877_s8 + $0x400] sm:$0xff]  ;;  %v11064_v34 = vpack.c.bf16 %v6930_v19, %v6927_v17  ;;  %v6960_v17 = vld [vmem:[%s19877_s8 + $0x4f8] sm:$0xff] }
 0xd38   : > { %11045 = vmatpush1.bf16.msra.mxu0 %v11044_v51  ;;  %11269 = vmatpush3.bf16.msra.mxu1 %v11268_v61  ;;  %v11284_v51 = vpack.c.bf16 %v6926_v52, %v6923_v55  ;;  %v11286_v61 = vpack.c.bf16 %v6980_v42, %v6977_v14  ;;  %v6954_v55 = vld [vmem:[%s19877_s8 + $0x4c8] sm:$0xff]  ;;  %v6964_v19 = vld [vmem:[%s19877_s8 + $0x518] sm:$0xff] }
 0xd39   : > { %11047 = vmatprep.subr.bf16.mxu0 %v11046_v29  ;;  %11271 = vmatprep.subr.bf16.mxu1 %v11270_v33  ;;  %v6932_v29 = vld [vmem:[%s19877_s8 + $0x418] sm:$0xff]  ;;  %v6983_v33 = vld [vmem:[%s19877_s8 + $0x5b0] sm:$0xff]  ;;  %v6958_v52 = vld [vmem:[%s19877_s8 + $0x4e8] sm:$0xff] }
 0xd3a   : > { %v11288_v38 = vpack.c.bf16 %v6932_v29, %v6929_v21  ;;  %v11290_v27 = vpack.c.bf16 %v6986_v25, %v6983_v33  ;;  %v11082_v42 = vpack.c.bf16 %v6961_v9, %v6958_v52  ;;  %v6966_v21 = vld [vmem:[%s19877_s8 + $0x528] sm:$0xff] }
 0xd3b   : > { %v6970_v29 = vld [vmem:[%s19877_s8 + $0x548] sm:$0xff] }
 0xd3c   : > { %11049 = vmatpush1.bf16.msra.mxu0 %v11048_v47  ;;  %11273 = vmatpush3.bf16.msra.mxu1 %v11272_v12  ;;  %v11066_v47 = vpack.c.bf16 %v6937_v5, %v6934_v15  ;;  %v6935_v12 = vld [vmem:[%s19877_s8 + $0x430] sm:$0xff]  ;;  %v6973_v5 = vld [vmem:[%s19877_s8 + $0x560] sm:$0xff] }
 0xd3d   : > { %11051 = vmatprep.subr.bf16.mxu0 %v11050_v43  ;;  %11275 = vmatprep.subr.bf16.mxu1 %v11274_v44  ;;  %v6938_v43 = vld [vmem:[%s19877_s8 + $0x448] sm:$0xff]  ;;  %v6989_v44 = vld [vmem:[%s19877_s8 + $0x5e0] sm:$0xff]  ;;  %v11090_v25 = vpack.c.bf16 %v6973_v5, %v6970_v29 }
 0xd3e   : > { %v11292_v50 = vpack.c.bf16 %v6938_v43, %v6935_v12  ;;  %v11294_v49 = vpack.c.bf16 %v6992_v35, %v6989_v44  ;;  %v6978_v12 = vld [vmem:[%s19877_s8 + $0x588] sm:$0xff] }
 0xd3f   : > { %v6982_v43 = vld [vmem:[%s19877_s8 + $0x5a8] sm:$0xff] }
 0xd40   : > { %11053 = vmatpush1.bf16.msra.mxu0 %v11052_v53  ;;  %11277 = vmatpush3.bf16.msra.mxu1 %v11276_v0  ;;  %v11070_v53 = vpack.c.bf16 %v6943_v26, %v6940_v31  ;;  %v6941_v0 = vld [vmem:[%s19877_s8 + $0x460] sm:$0xff] }
 0xd41   : > { %11055 = vmatprep.subr.bf16.mxu0 %v11054_v57  ;;  %11279 = vmatprep.subr.bf16.mxu1 %v11278_v6  ;;  %v6944_v57 = vld [vmem:[%s19877_s8 + $0x478] sm:$0xff]  ;;  %v7043_v6 = vld [vmem:[%s19877_s8 + $0x790] sm:$0xff]  ;;  %v6985_v26 = vld [vmem:[%s19877_s8 + $0x5c0] sm:$0xff] }
 0xd42   : > { %v11296_v8 = vpack.c.bf16 %v6944_v57, %v6941_v0  ;;  %v11298_v22 = vpack.c.bf16 %v7046_v40, %v7043_v6  ;;  %v11098_v35 = vpack.c.bf16 %v6985_v26, %v6982_v43  ;;  %v6990_v0 = vld [vmem:[%s19877_s8 + $0x5e8] sm:$0xff]  ;;  %v7009_v43 = vld [vmem:[%s19877_s8 + $0x680] sm:$0xff]  ;;  %v7055_v26 = vld [vmem:[%s19877_s8 + $0x7f0] sm:$0xff] }
 0xd43   : > { %v6994_v57 = vld [vmem:[%s19877_s8 + $0x608] sm:$0xff] }
 0xd44   : > { %11057 = vmatpush1.bf16.msra.mxu0 %v11056_v60  ;;  %11281 = vmatpush3.bf16.msra.mxu1 %v11280_v13  ;;  %v6948_v60 = vld [vmem:[%s19877_s8 + $0x498] sm:$0xff]  ;;  %v6955_v13 = vld [vmem:[%s19877_s8 + $0x4d0] sm:$0xff]  ;;  %v11106_v40 = vpack.c.bf16 %v6997_v59, %v6994_v57  ;;  %v7010_v57 = vld [vmem:[%s19877_s8 + $0x688] sm:$0xff] }
 0xd45   : > { %11059 = vmatprep.subr.bf16.mxu0 %v11058_v24  ;;  %11283 = vmatprep.subr.bf16.mxu1 %v11282_v30  ;;  %v11076_v24 = vpack.c.bf16 %v6948_v60, %v6945_v2  ;;  %v11078_v16 = vpack.c.bf16 %v6955_v13, %v6952_v1  ;;  %v6951_v30 = vld [vmem:[%s19877_s8 + $0x4b0] sm:$0xff]  ;;  %v6168_v2 = vrot.slane %v18393_v3, %v15489_v36  ;;  %v6996_v36 = vld [vmem:[%s19877_s8 + $0x618] sm:$0xff] }
 0xd46   : > { %v11080_v14 = vpack.c.bf16 %v6954_v55, %v6951_v30  ;;  %v7012_v59 = vld [vmem:[%s19877_s8 + $0x698] sm:$0xff] }
 0xd48   : > { %11061 = vmatpush1.bf16.msra.mxu0 %v11060_v11  ;;  %11285 = vmatpush3.bf16.msra.mxu1 %v11284_v51  ;;  %v6957_v11 = vld [vmem:[%s19877_s8 + $0x4e0] sm:$0xff]  ;;  %v6967_v51 = vld [vmem:[%s19877_s8 + $0x530] sm:$0xff] }
 0xd49   : > { %11063 = vmatprep.subr.bf16.mxu0 %v11062_v58  ;;  %11287 = vmatprep.subr.bf16.mxu1 %v11286_v61  ;;  %v11084_v58 = vpack.c.bf16 %v6960_v17, %v6957_v11  ;;  %v11086_v15 = vpack.c.bf16 %v6967_v51, %v6964_v19  ;;  %v6963_v61 = vld [vmem:[%s19877_s8 + $0x510] sm:$0xff]  ;;  %v7000_v19 = vld [vmem:[%s19877_s8 + $0x638] sm:$0xff] }
 0xd4a   : > { %v11088_v33 = vpack.c.bf16 %v6966_v21, %v6963_v61  ;;  %v7049_v61 = vld [vmem:[%s19877_s8 + $0x7c0] sm:$0xff]  ;;  %v7052_v21 = vld [vmem:[%s19877_s8 + $0x7d8] sm:$0xff] }
 0xd4c   : > { %11065 = vmatpush1.bf16.msra.mxu0 %v11064_v34  ;;  %11289 = vmatpush3.bf16.msra.mxu1 %v11288_v38  ;;  %v6969_v34 = vld [vmem:[%s19877_s8 + $0x540] sm:$0xff]  ;;  %v6979_v38 = vld [vmem:[%s19877_s8 + $0x590] sm:$0xff] }
 0xd4d   : > { %11067 = vmatprep.subr.bf16.mxu0 %v11066_v47  ;;  %11291 = vmatprep.subr.bf16.mxu1 %v11290_v27  ;;  %v11092_v47 = vpack.c.bf16 %v6972_v37, %v6969_v34  ;;  %v11094_v31 = vpack.c.bf16 %v6979_v38, %v6976_v48  ;;  %v6975_v27 = vld [vmem:[%s19877_s8 + $0x570] sm:$0xff]  ;;  %v7002_v34 = vld [vmem:[%s19877_s8 + $0x648] sm:$0xff]  ;;  %v7001_v38 = vld [vmem:[%s19877_s8 + $0x640] sm:$0xff] }
 0xd4e   : > { %v11096_v44 = vpack.c.bf16 %v6978_v12, %v6975_v27  ;;  %v11302_v12 = vpack.c.bf16 %v7052_v21, %v7049_v61  ;;  %v7076_v61 = vld [vmem:[%s19877_s8 + $0x898] sm:$0xff] }
 0xd50   : > { %11069 = vmatpush1.bf16.msra.mxu0 %v11068_v56  ;;  %11293 = vmatpush3.bf16.msra.mxu1 %v11292_v50  ;;  %v6981_v56 = vld [vmem:[%s19877_s8 + $0x5a0] sm:$0xff]  ;;  %v6991_v50 = vld [vmem:[%s19877_s8 + $0x5f0] sm:$0xff] }
 0xd51   : > { %11071 = vmatprep.subr.bf16.mxu0 %v11070_v53  ;;  %11295 = vmatprep.subr.bf16.mxu1 %v11294_v49  ;;  %v11100_v53 = vpack.c.bf16 %v6984_v32, %v6981_v56  ;;  %v11102_v62 = vpack.c.bf16 %v6991_v50, %v6988_v41  ;;  %v6987_v49 = vld [vmem:[%s19877_s8 + $0x5d0] sm:$0xff]  ;;  %v6172_v56 = vrot.slane %v18393_v3, %v15526_v54  ;;  %v7005_v50 = vld [vmem:[%s19877_s8 + $0x660] sm:$0xff] }
 0xd52   : > { %v11104_v6 = vpack.c.bf16 %v6990_v0, %v6987_v49 }
 0xd54   : > { %11073 = vmatpush1.bf16.msra.mxu0 %v11072_v7  ;;  %11297 = vmatpush3.bf16.msra.mxu1 %v11296_v8  ;;  %v6176_v7 = vrot.slane %v18393_v3, %v15529_v28 }
 0xd55   : > { %11075 = vmatprep.subr.bf16.mxu0 %v11074_v10  ;;  %11299 = vmatprep.subr.bf16.mxu1 %v11298_v22  ;;  %v6164_v10 = vrot.slane %v18393_v3, %v15633_v63  ;;  %v7007_v3 = vld [vmem:[%s19877_s8 + $0x670] sm:$0xff] }
 0xd56   : > { %v11545_v8 = vadd.f32 %v18425_v46, %v6176_v7  ;;  %v6993_v46 = vld [vmem:[%s19877_s8 + $0x600] sm:$0xff]  ;;  %v7064_v7 = vld [vmem:[%s19877_s8 + $0x838] sm:$0xff] }
 0xd57   : > { %v11108_v5 = vpack.c.bf16 %v6996_v36, %v6993_v46  ;;  %v7017_v36 = vld [vmem:[%s19877_s8 + $0x6c0] sm:$0xff] }
 0xd58   : > { %11077 = vmatpush1.bf16.msra.mxu0 %v11076_v24  ;;  %v6774_v60 = vmul.f32 0.70710677, %v11545_v8  ;;  %v6766_v37 = vmul.f32 0.5, %v11545_v8  ;;  %v18813_v8 = vadd.f32 %v18417_v45, %v6172_v56  ;;  %v7013_v45 = vld [vmem:[%s19877_s8 + $0x6a0] sm:$0xff] }
 0xd59   : > { %11079 = vmatprep.subr.bf16.mxu0 %v11078_v16 }
 0xd5a   : > { %11680 = verf.f32 %v6774_v60  ;;  %v7011_v60 = vld [vmem:[%s19877_s8 + $0x690] sm:$0xff]  ;;  %v6773_v46 = vmul.f32 0.70710677, %v18813_v8 }
 0xd5c   : > { %11081 = vmatpush1.bf16.msra.mxu0 %v11080_v14  ;;  %v6995_v14 = vld [vmem:[%s19877_s8 + $0x610] sm:$0xff] }
 0xd5d   : > { %11083 = vmatprep.subr.bf16.mxu0 %v11082_v42  ;;  %v6998_v42 = vld [vmem:[%s19877_s8 + $0x628] sm:$0xff] }
 0xd60   : > { %11085 = vmatpush1.bf16.msra.mxu0 %v11084_v58 }
 0xd61   : > { %11087 = vmatprep.subr.bf16.mxu0 %v11086_v15  ;;  %v7003_v15 = vld [vmem:[%s19877_s8 + $0x650] sm:$0xff] }
 0xd62   : > { %v11110_v27 = vpack.c.bf16 %v7003_v15, %v7000_v19  ;;  %v7022_v19 = vld [vmem:[%s19877_s8 + $0x6e8] sm:$0xff]  ;;  %v7073_v15 = vld [vmem:[%s19877_s8 + $0x880] sm:$0xff] }
 0xd64   : > { %11089 = vmatpush1.bf16.msra.mxu0 %v11088_v33  ;;  %v11681_v55 = vpop.eup %11680  ;;  %v11300_v33 = vpack.c.bf16 %v6998_v42, %v6995_v14  ;;  %v7020_v14 = vld [vmem:[%s19877_s8 + $0x6d8] sm:$0xff] }
 0xd65   : > { %11091 = vmatprep.subr.bf16.mxu0 %v11090_v25  ;;  %v6790_v51 = vadd.f32 1.0, %v11681_v55  ;;  %v6999_v25 = vld [vmem:[%s19877_s8 + $0x630] sm:$0xff]  ;;  %v11124_v21 = vpack.c.bf16 %v7020_v14, %v7017_v36  ;;  %v7094_v36 = vld [vmem:[%s19877_s8 + $0x928] sm:$0xff] }
 0xd66   : > { %v11112_v32 = vpack.c.bf16 %v7002_v34, %v6999_v25  ;;  %v7067_v55 = vld [vmem:[%s19877_s8 + $0x850] sm:$0xff]  ;;  %v11318_v34 = vpack.c.bf16 %v7076_v61, %v7073_v15 }
 0xd67   : > { %v7051_v14 = vld [vmem:[%s19877_s8 + $0x7d0] sm:$0xff] }
 0xd68   : > { %11093 = vmatpush1.bf16.msra.mxu0 %v11092_v47  ;;  %v7004_v47 = vld [vmem:[%s19877_s8 + $0x658] sm:$0xff] }
 0xd69   : > { %11095 = vmatprep.subr.bf16.mxu0 %v11094_v31  ;;  %v7006_v31 = vld [vmem:[%s19877_s8 + $0x668] sm:$0xff]  ;;  %v11304_v41 = vpack.c.bf16 %v7004_v47, %v7001_v38  ;;  %v7033_v47 = vld [vmem:[%s19877_s8 + $0x740] sm:$0xff] }
 0xd6a   : > { %v11114_v0 = vpack.c.bf16 %v7009_v43, %v7006_v31  ;;  %v7030_v38 = vld [vmem:[%s19877_s8 + $0x728] sm:$0xff]  ;;  %v7079_v31 = vld [vmem:[%s19877_s8 + $0x8b0] sm:$0xff] }
 0xd6c   : > { %11097 = vmatpush1.bf16.msra.mxu0 %v11096_v44  ;;  %v7058_v44 = vld [vmem:[%s19877_s8 + $0x808] sm:$0xff] }
 0xd6d   : > { %11099 = vmatprep.subr.bf16.mxu0 %v11098_v35  ;;  %v6798_v35 = vmul.f32 %v6790_v51, %v6766_v37  ;;  %v11306_v54 = vpack.c.bf16 %v7058_v44, %v7055_v26  ;;  %v7024_v51 = vld [vmem:[%s19877_s8 + $0x6f8] sm:$0xff]  ;;  %v7025_v37 = vld [vmem:[%s19877_s8 + $0x700] sm:$0xff] }
 0xd6e   : > { %v7029_v26 = vld [vmem:[%s19877_s8 + $0x720] sm:$0xff]  ;;  %v7032_v44 = vld [vmem:[%s19877_s8 + $0x738] sm:$0xff] }
 0xd70   : > { %11101 = vmatpush1.bf16.msra.mxu0 %v11100_v53  ;;  %v7008_v53 = vld [vmem:[%s19877_s8 + $0x678] sm:$0xff] }
 0xd71   : > { %11103 = vmatprep.subr.bf16.mxu0 %v11102_v62  ;;  %v18791_v62 = vld [vmem:[%s15582_s18] sm:$0x1] }
 0xd72   : > { %v7766_v49 = vsel %vm7765_vm3, %v18791_v62, 0.0 }
 0xd73   : > { %7767 = vadd.xlane.f32.xlu0 %v7766_v49  ;;  %v7085_v49 = vld [vmem:[%s19877_s8 + $0x8e0] sm:$0xff] }
 0xd74   : > { %11105 = vmatpush1.bf16.msra.mxu0 %v11104_v6  ;;  %v7015_v6 = vld [vmem:[%s19877_s8 + $0x6b0] sm:$0xff] }
 0xd75   : > { %11107 = vmatprep.subr.bf16.mxu0 %v11106_v40  ;;  %v7061_v40 = vld [vmem:[%s19877_s8 + $0x820] sm:$0xff] }
 0xd81   : > { %v6472_v22 = vpop.f32.mrb[44].mxu1 }
 0xd82   : > { %v11542_v1 = vadd.f32 %v6472_v22, %v6164_v10  ;;  %v6474_v13 = vpop.f32.mrb[45].mxu1  ;;  %v11116_v10 = vpack.c.bf16 %v7008_v53, %v7005_v50  ;;  %v7014_v22 = vld [vmem:[%s19877_s8 + $0x6a8] sm:$0xff]  ;;  %v7036_v50 = vld [vmem:[%s19877_s8 + $0x758] sm:$0xff]  ;;  %v7039_v53 = vld [vmem:[%s19877_s8 + $0x770] sm:$0xff] }
 0xd83   : > { %v11543_v24 = vadd.f32 %v6474_v13, %v6168_v2  ;;  %v11308_v2 = vpack.c.bf16 %v7010_v57, %v7007_v3  ;;  %v11310_v13 = vpack.c.bf16 %v7064_v7, %v7061_v40  ;;  %v7035_v57 = vld [vmem:[%s19877_s8 + $0x750] sm:$0xff]  ;;  %v7037_v7 = vld [vmem:[%s19877_s8 + $0x760] sm:$0xff] }
 0xd84   : > { %v6771_v16 = vmul.f32 0.70710677, %v11542_v1  ;;  %v6763_v58 = vmul.f32 0.5, %v11542_v1  ;;  %v11118_v1 = vpack.c.bf16 %v7015_v6, %v7012_v59  ;;  %v7038_v59 = vld [vmem:[%s19877_s8 + $0x768] sm:$0xff]  ;;  %v11134_v6 = vpack.c.bf16 %v7039_v53, %v7036_v50  ;;  %v7059_v50 = vld [vmem:[%s19877_s8 + $0x810] sm:$0xff] }
 0xd85   : > { %v6772_v30 = vmul.f32 0.70710677, %v11543_v24  ;;  %v6764_v11 = vmul.f32 0.5, %v11543_v24  ;;  %v7016_v24 = vld [vmem:[%s19877_s8 + $0x6b8] sm:$0xff]  ;;  %v7062_v53 = vld [vmem:[%s19877_s8 + $0x828] sm:$0xff] }
 0xd86   : > { %11682 = verf.f32 %v6771_v16  ;;  %v7018_v16 = vld [vmem:[%s19877_s8 + $0x6c8] sm:$0xff] }
 0xd87   : > { %11684 = verf.f32 %v6772_v30  ;;  %v7021_v30 = vld [vmem:[%s19877_s8 + $0x6e0] sm:$0xff] }
 0xd88   : > { %v11122_v42 = vpack.c.bf16 %v7021_v30, %v7018_v16  ;;  %11686 = verf.f32 %v6773_v46  ;;  %v7041_v16 = vld [vmem:[%s19877_s8 + $0x780] sm:$0xff]  ;;  %v7044_v30 = vld [vmem:[%s19877_s8 + $0x798] sm:$0xff] }
 0xd89   : > { %v7048_v46 = vld [vmem:[%s19877_s8 + $0x7b8] sm:$0xff] }
 0xd90   : > { %v11683_v28 = vpop.eup %11682 }
 0xd91   : > { %v11685_v52 = vpop.eup %11684  ;;  %v6787_v9 = vadd.f32 1.0, %v11683_v28  ;;  %v7070_v28 = vld [vmem:[%s19877_s8 + $0x868] sm:$0xff] }
 0xd92   : > { %v6788_v17 = vadd.f32 1.0, %v11685_v52  ;;  %v11120_v52 = vpack.c.bf16 %v7014_v22, %v7011_v60  ;;  %v11687_v60 = vpop.eup %11686  ;;  %v7045_v22 = vld [vmem:[%s19877_s8 + $0x7a0] sm:$0xff] }
 0xd93   : > { %v6795_v48 = vmul.f32 %v6787_v9, %v6763_v58  ;;  %v11312_v9 = vpack.c.bf16 %v7016_v24, %v7013_v45  ;;  %v7027_v58 = vld [vmem:[%s19877_s8 + $0x710] sm:$0xff]  ;;  %v11136_v45 = vpack.c.bf16 %v7038_v59, %v7035_v57  ;;  %v7109_v57 = vld [vmem:[%s19877_s8 + $0x9a0] sm:$0xff]  ;;  %v7112_v59 = vld [vmem:[%s19877_s8 + $0x9b8] sm:$0xff] }
 0xd94   : > { %v6796_v29 = vmul.f32 %v6788_v17, %v6764_v11  ;;  %v11314_v11 = vpack.c.bf16 %v7070_v28, %v7067_v55  ;;  %v7019_v17 = vld [vmem:[%s19877_s8 + $0x6d0] sm:$0xff]  ;;  %v11126_v25 = vpack.c.bf16 %v7027_v58, %v7024_v51  ;;  %v6789_v55 = vadd.f32 1.0, %v11687_v60  ;;  %v7050_v58 = vld [vmem:[%s19877_s8 + $0x7c8] sm:$0xff]  ;;  %v7068_v60 = vld [vmem:[%s19877_s8 + $0x858] sm:$0xff] }
 0xd95   : > { %v7047_v51 = vld [vmem:[%s19877_s8 + $0x7b0] sm:$0xff] }
 0xd96   : > { %7336 = vmatprep.mubr.f32.mxu0 %v6796_v29  ;;  %7619 = vmatprep.mubr.f32.mxu1 %v6796_v29  ;;  %v11316_v29 = vpack.c.bf16 %v7022_v19, %v7019_v17  ;;  %v6765_v17 = vmul.f32 0.5, %v18813_v8  ;;  %v11140_v19 = vpack.c.bf16 %v7044_v30, %v7041_v16  ;;  %v7054_v8 = vld [vmem:[%s19877_s8 + $0x7e8] sm:$0xff]  ;;  %v7075_v30 = vld [vmem:[%s19877_s8 + $0x890] sm:$0xff] }
 0xd97   : > { %7337 = vmatmul.mubr.f32.vlgmr.msra.gmra.mrb[26].mxu0 %v6795_v48  ;;  %7620 = vmatmul.mubr.f32.vlgmr.msra.gmra.mrb[50].mxu1 %v6795_v48  ;;  %v7028_v48 = vld [vmem:[%s19877_s8 + $0x718] sm:$0xff]  ;;  %v7118_v16 = vld [vmem:[%s19877_s8 + $0x9e8] sm:$0xff] }
 0xd98   : > { %11109 = vmatpush1.bf16.msra.mxu0 %v11108_v5  ;;  %11301 = vmatpush3.bf16.msra.mxu1 %v11300_v33  ;;  %v7023_v5 = vld [vmem:[%s19877_s8 + $0x6f0] sm:$0xff]  ;;  %v7026_v33 = vld [vmem:[%s19877_s8 + $0x708] sm:$0xff]  ;;  %v11320_v43 = vpack.c.bf16 %v7028_v48, %v7025_v37  ;;  %v18967_v61 = vmul.f32 %v6789_v55, %v6765_v17  ;;  %v11144_v48 = vpack.c.bf16 %v7050_v58, %v7047_v51  ;;  %v7169_v55 = vld [vmem:[%s19877_s8 + $0xb80] sm:$0xff] }
 0xd99   : > { %7407 = vmatprep.mubr.f32.mxu0 %v6798_v35  ;;  %7689 = vmatprep.mubr.f32.mxu1 %v6798_v35  ;;  %v11130_v35 = vpack.c.bf16 %v7033_v47, %v7030_v38  ;;  %v7154_v37 = vld [vmem:[%s19877_s8 + $0xb08] sm:$0xff]  ;;  %v7053_v38 = vld [vmem:[%s19877_s8 + $0x7e0] sm:$0xff]  ;;  %v7056_v47 = vld [vmem:[%s19877_s8 + $0x7f8] sm:$0xff] }
 0xd9a   : > { %11111 = vmatprep.subr.bf16.mxu0 %v11110_v27  ;;  %11303 = vmatprep.subr.bf16.mxu1 %v11302_v12  ;;  %v7082_v27 = vld [vmem:[%s19877_s8 + $0x8c8] sm:$0xff]  ;;  %v11128_v12 = vpack.c.bf16 %v7026_v33, %v7023_v5  ;;  %v7097_v5 = vld [vmem:[%s19877_s8 + $0x940] sm:$0xff]  ;;  %v7100_v33 = vld [vmem:[%s19877_s8 + $0x958] sm:$0xff] }
 0xd9b   : > { %v11322_v56 = vpack.c.bf16 %v7082_v27, %v7079_v31  ;;  %v11336_v31 = vpack.c.bf16 %v7100_v33, %v7097_v5  ;;  %v7121_v17 = vld [vmem:[%s19877_s8 + $0xa00] sm:$0xff]  ;;  %v7175_v58 = vld [vmem:[%s19877_s8 + $0xbb0] sm:$0xff] }
 0xd9c   : > { %11113 = vmatpush1.bf16.msra.mxu0 %v11112_v32  ;;  %11305 = vmatpush3.bf16.msra.mxu1 %v11304_v41  ;;  %v7031_v32 = vld [vmem:[%s19877_s8 + $0x730] sm:$0xff]  ;;  %v7034_v41 = vld [vmem:[%s19877_s8 + $0x748] sm:$0xff]  ;;  %v7081_v51 = vld [vmem:[%s19877_s8 + $0x8c0] sm:$0xff] }
 0xd9d   : > { %11115 = vmatprep.subr.bf16.mxu0 %v11114_v0  ;;  %11307 = vmatprep.subr.bf16.mxu1 %v11306_v54  ;;  %v7088_v0 = vld [vmem:[%s19877_s8 + $0x8f8] sm:$0xff]  ;;  %v11132_v54 = vpack.c.bf16 %v7032_v44, %v7029_v26  ;;  %v11324_v3 = vpack.c.bf16 %v7034_v41, %v7031_v32  ;;  %v7103_v26 = vld [vmem:[%s19877_s8 + $0x970] sm:$0xff]  ;;  %v7106_v44 = vld [vmem:[%s19877_s8 + $0x988] sm:$0xff]  ;;  %v11148_v41 = vpack.c.bf16 %v7056_v47, %v7053_v38 }
 0xd9e   : > { %v11326_v40 = vpack.c.bf16 %v7088_v0, %v7085_v49  ;;  %v7160_v32 = vld [vmem:[%s19877_s8 + $0xb38] sm:$0xff]  ;;  %v11340_v49 = vpack.c.bf16 %v7106_v44, %v7103_v26  ;;  %v7087_v38 = vld [vmem:[%s19877_s8 + $0x8f0] sm:$0xff]  ;;  %v7181_v47 = vld [vmem:[%s19877_s8 + $0xbe0] sm:$0xff] }
 0xd9f   : > { %v7086_v44 = vld [vmem:[%s19877_s8 + $0x8e8] sm:$0xff] }
 0xda0   : > { %11117 = vmatpush1.bf16.msra.mxu0 %v11116_v10  ;;  %11309 = vmatpush3.bf16.msra.mxu1 %v11308_v2  ;;  %v7040_v10 = vld [vmem:[%s19877_s8 + $0x778] sm:$0xff]  ;;  %v7042_v2 = vld [vmem:[%s19877_s8 + $0x788] sm:$0xff] }
 0xda1   : > { %11119 = vmatprep.subr.bf16.mxu0 %v11118_v1  ;;  %11311 = vmatprep.subr.bf16.mxu1 %v11310_v13  ;;  %v7139_v1 = vld [vmem:[%s19877_s8 + $0xa90] sm:$0xff]  ;;  %v7142_v13 = vld [vmem:[%s19877_s8 + $0xaa8] sm:$0xff]  ;;  %v11328_v24 = vpack.c.bf16 %v7040_v10, %v7037_v7  ;;  %v11138_v28 = vpack.c.bf16 %v7045_v22, %v7042_v2  ;;  %v11152_v10 = vpack.c.bf16 %v7062_v53, %v7059_v50  ;;  %v7065_v2 = vld [vmem:[%s19877_s8 + $0x840] sm:$0xff] }
 0xda2   : > { %v7166_v7 = vld [vmem:[%s19877_s8 + $0xb68] sm:$0xff]  ;;  %v11344_v22 = vpack.c.bf16 %v7112_v59, %v7109_v57  ;;  %v7093_v50 = vld [vmem:[%s19877_s8 + $0x920] sm:$0xff]  ;;  %v7096_v57 = vld [vmem:[%s19877_s8 + $0x938] sm:$0xff] }
 0xda3   : > { %v7099_v59 = vld [vmem:[%s19877_s8 + $0x950] sm:$0xff] }
 0xda4   : > { %11121 = vmatpush1.bf16.msra.mxu0 %v11120_v52  ;;  %11313 = vmatpush3.bf16.msra.mxu1 %v11312_v9  ;;  %v11330_v52 = vpack.c.bf16 %v7142_v13, %v7139_v1  ;;  %v7091_v9 = vld [vmem:[%s19877_s8 + $0x910] sm:$0xff]  ;;  %v7072_v13 = vld [vmem:[%s19877_s8 + $0x878] sm:$0xff] }
 0xda5   : > { %11123 = vmatprep.subr.bf16.mxu0 %v11122_v42  ;;  %11315 = vmatprep.subr.bf16.mxu1 %v11314_v11  ;;  %v7145_v42 = vld [vmem:[%s19877_s8 + $0xac0] sm:$0xff]  ;;  %v7148_v11 = vld [vmem:[%s19877_s8 + $0xad8] sm:$0xff]  ;;  %v11332_v15 = vpack.c.bf16 %v7094_v36, %v7091_v9  ;;  %v7074_v9 = vld [vmem:[%s19877_s8 + $0x888] sm:$0xff] }
 0xda8   : > { %11125 = vmatpush1.bf16.msra.mxu0 %v11124_v21  ;;  %11317 = vmatpush3.bf16.msra.mxu1 %v11316_v29  ;;  %v11142_v21 = vpack.c.bf16 %v7051_v14, %v7048_v46  ;;  %v11334_v29 = vpack.c.bf16 %v7148_v11, %v7145_v42  ;;  %v11156_v46 = vpack.c.bf16 %v7068_v60, %v7065_v2  ;;  %v7078_v42 = vld [vmem:[%s19877_s8 + $0x8a8] sm:$0xff]  ;;  %v7105_v60 = vld [vmem:[%s19877_s8 + $0x980] sm:$0xff] }
 0xda9   : > { %11127 = vmatprep.subr.bf16.mxu0 %v11126_v25  ;;  %11319 = vmatprep.subr.bf16.mxu1 %v11318_v34  ;;  %v7057_v25 = vld [vmem:[%s19877_s8 + $0x800] sm:$0xff]  ;;  %v7151_v34 = vld [vmem:[%s19877_s8 + $0xaf0] sm:$0xff]  ;;  %v11158_v14 = vpack.c.bf16 %v7075_v30, %v7072_v13  ;;  %v11162_v33 = vpack.c.bf16 %v7081_v51, %v7078_v42  ;;  %v7102_v2 = vld [vmem:[%s19877_s8 + $0x968] sm:$0xff] }
 0xdaa   : > { %v11146_v27 = vpack.c.bf16 %v7057_v25, %v7054_v8  ;;  %v7077_v8 = vld [vmem:[%s19877_s8 + $0x8a0] sm:$0xff]  ;;  %v7084_v25 = vld [vmem:[%s19877_s8 + $0x8d8] sm:$0xff] }
 0xdab   : > { %v11166_v26 = vpack.c.bf16 %v7087_v38, %v7084_v25  ;;  %v7101_v13 = vld [vmem:[%s19877_s8 + $0x960] sm:$0xff]  ;;  %v7119_v25 = vld [vmem:[%s19877_s8 + $0x9f0] sm:$0xff] }
 0xdac   : > { %11129 = vmatpush1.bf16.msra.mxu0 %v11128_v12  ;;  %11321 = vmatpush3.bf16.msra.mxu1 %v11320_v43  ;;  %v7060_v12 = vld [vmem:[%s19877_s8 + $0x818] sm:$0xff]  ;;  %v11338_v43 = vpack.c.bf16 %v7154_v37, %v7151_v34  ;;  %v7127_v37 = vld [vmem:[%s19877_s8 + $0xa30] sm:$0xff] }
 0xdad   : > { %11131 = vmatprep.subr.bf16.mxu0 %v11130_v35  ;;  %11323 = vmatprep.subr.bf16.mxu1 %v11322_v56  ;;  %v7063_v35 = vld [vmem:[%s19877_s8 + $0x830] sm:$0xff]  ;;  %v7157_v56 = vld [vmem:[%s19877_s8 + $0xb20] sm:$0xff] }
 0xdae   : > { %v11150_v0 = vpack.c.bf16 %v7063_v35, %v7060_v12  ;;  %v7083_v12 = vld [vmem:[%s19877_s8 + $0x8d0] sm:$0xff] }
 0xdaf   : > { %v11168_v53 = vpack.c.bf16 %v7086_v44, %v7083_v12  ;;  %v7132_v12 = vld [vmem:[%s19877_s8 + $0xa58] sm:$0xff] }
 0xdb0   : > { %11133 = vmatpush1.bf16.msra.mxu0 %v11132_v54  ;;  %11325 = vmatpush3.bf16.msra.mxu1 %v11324_v3  ;;  %v7066_v54 = vld [vmem:[%s19877_s8 + $0x848] sm:$0xff]  ;;  %v11342_v3 = vpack.c.bf16 %v7160_v32, %v7157_v56  ;;  %v7133_v56 = vld [vmem:[%s19877_s8 + $0xa60] sm:$0xff]  ;;  %v7136_v32 = vld [vmem:[%s19877_s8 + $0xa78] sm:$0xff] }
 0xdb1   : > { %11135 = vmatprep.subr.bf16.mxu0 %v11134_v6  ;;  %11327 = vmatprep.subr.bf16.mxu1 %v11326_v40  ;;  %v7069_v6 = vld [vmem:[%s19877_s8 + $0x860] sm:$0xff]  ;;  %v7163_v40 = vld [vmem:[%s19877_s8 + $0xb50] sm:$0xff] }
 0xdb2   : > { %v11154_v1 = vpack.c.bf16 %v7069_v6, %v7066_v54  ;;  %v7089_v54 = vld [vmem:[%s19877_s8 + $0x900] sm:$0xff] }
 0xdb4   : > { %11137 = vmatpush1.bf16.msra.mxu0 %v11136_v45  ;;  %11329 = vmatpush3.bf16.msra.mxu1 %v11328_v24  ;;  %v11346_v45 = vpack.c.bf16 %v7166_v7, %v7163_v40  ;;  %v7115_v24 = vld [vmem:[%s19877_s8 + $0x9d0] sm:$0xff]  ;;  %v11174_v40 = vpack.c.bf16 %v7099_v59, %v7096_v57  ;;  %v7140_v57 = vld [vmem:[%s19877_s8 + $0xa98] sm:$0xff] }
 0xdb5   : > { %11139 = vmatprep.subr.bf16.mxu0 %v11138_v28  ;;  %11331 = vmatprep.subr.bf16.mxu1 %v11330_v52  ;;  %v7172_v28 = vld [vmem:[%s19877_s8 + $0xb98] sm:$0xff]  ;;  %v7071_v52 = vld [vmem:[%s19877_s8 + $0x870] sm:$0xff]  ;;  %v11348_v36 = vpack.c.bf16 %v7118_v16, %v7115_v24 }
 0xdb6   : > { %v11350_v11 = vpack.c.bf16 %v7172_v28, %v7169_v55  ;;  %v7095_v7 = vld [vmem:[%s19877_s8 + $0x930] sm:$0xff]  ;;  %v7108_v24 = vld [vmem:[%s19877_s8 + $0x998] sm:$0xff]  ;;  %v7110_v28 = vld [vmem:[%s19877_s8 + $0x9a8] sm:$0xff] }
 0xdb7   : > { %7690 = vmatmul.mubr.f32.vlgmr.msra.gmra.mrb[52].mxu1 %v18967_v61  ;;  %v7107_v55 = vld [vmem:[%s19877_s8 + $0x990] sm:$0xff] }
 0xdb8   : > { %11141 = vmatpush1.bf16.msra.mxu0 %v11140_v19  ;;  %11333 = vmatpush3.bf16.msra.mxu1 %v11332_v15  ;;  %v7124_v19 = vld [vmem:[%s19877_s8 + $0xa18] sm:$0xff]  ;;  %v7178_v15 = vld [vmem:[%s19877_s8 + $0xbc8] sm:$0xff]  ;;  %v11184_v42 = vpack.c.bf16 %v7110_v28, %v7107_v55  ;;  %v7149_v55 = vld [vmem:[%s19877_s8 + $0xae0] sm:$0xff] }
 0xdb9   : > { %11143 = vmatprep.subr.bf16.mxu0 %v11142_v21  ;;  %11335 = vmatprep.subr.bf16.mxu1 %v11334_v29  ;;  %v11160_v21 = vpack.c.bf16 %v7074_v9, %v7071_v52  ;;  %v7080_v29 = vld [vmem:[%s19877_s8 + $0x8b8] sm:$0xff]  ;;  %v11352_v5 = vpack.c.bf16 %v7124_v19, %v7121_v17  ;;  %v11354_v34 = vpack.c.bf16 %v7178_v15, %v7175_v58  ;;  %v7114_v9 = vld [vmem:[%s19877_s8 + $0x9c8] sm:$0xff]  ;;  %v7113_v19 = vld [vmem:[%s19877_s8 + $0x9c0] sm:$0xff] }
 0xdba   : > { %v7120_v15 = vld [vmem:[%s19877_s8 + $0x9f8] sm:$0xff] }
 0xdbb   : > { %v7152_v28 = vld [vmem:[%s19877_s8 + $0xaf8] sm:$0xff] }
 0xdbc   : > { %11145 = vmatpush1.bf16.msra.mxu0 %v11144_v48  ;;  %11337 = vmatpush3.bf16.msra.mxu1 %v11336_v31  ;;  %v7130_v48 = vld [vmem:[%s19877_s8 + $0xa48] sm:$0xff]  ;;  %v7184_v31 = vld [vmem:[%s19877_s8 + $0xbf8] sm:$0xff] }
 0xdbd   : > { %11147 = vmatprep.subr.bf16.mxu0 %v11146_v27  ;;  %11339 = vmatprep.subr.bf16.mxu1 %v11338_v43  ;;  %v11164_v27 = vpack.c.bf16 %v7080_v29, %v7077_v8  ;;  %v11356_v43 = vpack.c.bf16 %v7130_v48, %v7127_v37  ;;  %v11358_v35 = vpack.c.bf16 %v7184_v31, %v7181_v47  ;;  %v7126_v37 = vld [vmem:[%s19877_s8 + $0xa28] sm:$0xff]  ;;  %v7129_v48 = vld [vmem:[%s19877_s8 + $0xa40] sm:$0xff] }
 0xdbe   : > { %v11194_v47 = vpack.c.bf16 %v7129_v48, %v7126_v37  ;;  %v7125_v31 = vld [vmem:[%s19877_s8 + $0xa20] sm:$0xff] }
 0xdbf   : > { %v7173_v48 = vld [vmem:[%s19877_s8 + $0xba0] sm:$0xff] }
 0xdc0   : > { %11149 = vmatpush1.bf16.msra.mxu0 %v11148_v41  ;;  %11341 = vmatpush3.bf16.msra.mxu1 %v11340_v49  ;;  %v7090_v41 = vld [vmem:[%s19877_s8 + $0x908] sm:$0xff]  ;;  %v11360_v49 = vpack.c.bf16 %v7136_v32, %v7133_v56 }
 0xdc1   : > { %11151 = vmatprep.subr.bf16.mxu0 %v11150_v0  ;;  %11343 = vmatprep.subr.bf16.mxu1 %v11342_v3  ;;  %v11170_v0 = vpack.c.bf16 %v7093_v50, %v7090_v41  ;;  %v7092_v3 = vld [vmem:[%s19877_s8 + $0x918] sm:$0xff]  ;;  %v7134_v56 = vld [vmem:[%s19877_s8 + $0xa68] sm:$0xff]  ;;  %v7141_v41 = vld [vmem:[%s19877_s8 + $0xaa0] sm:$0xff] }
 0xdc2   : > { %v11172_v6 = vpack.c.bf16 %v7092_v3, %v7089_v54  ;;  %v7138_v32 = vld [vmem:[%s19877_s8 + $0xa88] sm:$0xff]  ;;  %v7137_v3 = vld [vmem:[%s19877_s8 + $0xa80] sm:$0xff] }
 0xdc3   : > { %v11202_v54 = vpack.c.bf16 %v7141_v41, %v7138_v32  ;;  %v8564_v41 = vld [vmem:[%s19874_s5 + $0x3] ss:$4 sm:$0x7] }
 0xdc4   : > { %11153 = vmatpush1.bf16.msra.mxu0 %v11152_v10  ;;  %11345 = vmatpush3.bf16.msra.mxu1 %v11344_v22  ;;  %v7098_v10 = vld [vmem:[%s19877_s8 + $0x948] sm:$0xff] }
 0xdc5   : > { %11155 = vmatprep.subr.bf16.mxu0 %v11154_v1  ;;  %11347 = vmatprep.subr.bf16.mxu1 %v11346_v45  ;;  %v11176_v22 = vpack.c.bf16 %v7098_v10, %v7095_v7  ;;  %v11178_v1 = vpack.c.bf16 %v7105_v60, %v7102_v2  ;;  %v7104_v45 = vld [vmem:[%s19877_s8 + $0x978] sm:$0xff]  ;;  %v7147_v7 = vld [vmem:[%s19877_s8 + $0xad0] sm:$0xff]  ;;  %v11204_v60 = vpack.c.bf16 %v7140_v57, %v7137_v3 }
 0xdc6   : > { %v11180_v16 = vpack.c.bf16 %v7104_v45, %v7101_v13  ;;  %v7143_v13 = vld [vmem:[%s19877_s8 + $0xab0] sm:$0xff]  ;;  %v7146_v45 = vld [vmem:[%s19877_s8 + $0xac8] sm:$0xff] }
 0xdc8   : > { %11157 = vmatpush1.bf16.msra.mxu0 %v11156_v46  ;;  %11349 = vmatpush3.bf16.msra.mxu1 %v11348_v36  ;;  %v11718_v46 = vld [vmem:[%s19876_s7] sm:$0xff] }
 0xdc9   : > { %11159 = vmatprep.subr.bf16.mxu0 %v11158_v14  ;;  %11351 = vmatprep.subr.bf16.mxu1 %v11350_v11  ;;  %v6180_v52 = vrot.slane %v11718_v46, %v15538_v20  ;;  %v7117_v36 = vld [vmem:[%s19877_s8 + $0x9e0] sm:$0xff]  ;;  %v6184_v14 = vrot.slane %v11718_v46, %v15547_v23  ;;  %v7116_v20 = vld [vmem:[%s19877_s8 + $0x9d8] sm:$0xff]  ;;  %v7123_v23 = vld [vmem:[%s19877_s8 + $0xa10] sm:$0xff] }
 0xdca   : > { %v11186_v17 = vpack.c.bf16 %v7117_v36, %v7114_v9  ;;  %v11188_v29 = vpack.c.bf16 %v7116_v20, %v7113_v19  ;;  %v7156_v46 = vld [vmem:[%s19877_s8 + $0xb18] sm:$0xff]  ;;  %v11212_v9 = vpack.c.bf16 %v7152_v28, %v7149_v55 }
 0xdcc   : > { %11161 = vmatpush1.bf16.msra.mxu0 %v11160_v21  ;;  %11353 = vmatpush3.bf16.msra.mxu1 %v11352_v5 }
 0xdcd   : > { %11163 = vmatprep.subr.bf16.mxu0 %v11162_v33  ;;  %11355 = vmatprep.subr.bf16.mxu1 %v11354_v34  ;;  %v11190_v33 = vpack.c.bf16 %v7123_v23, %v7120_v15  ;;  %v7122_v34 = vld [vmem:[%s19877_s8 + $0xa08] sm:$0xff]  ;;  %v7168_v15 = vld [vmem:[%s19877_s8 + $0xb78] sm:$0xff]  ;;  %v7171_v23 = vld [vmem:[%s19877_s8 + $0xb90] sm:$0xff] }
 0xdce   : > { %v11192_v38 = vpack.c.bf16 %v7122_v34, %v7119_v25  ;;  %v7177_v25 = vld [vmem:[%s19877_s8 + $0xbc0] sm:$0xff] }
 0xdd0   : > { %11165 = vmatpush1.bf16.msra.mxu0 %v11164_v27  ;;  %11357 = vmatpush3.bf16.msra.mxu1 %v11356_v43  ;;  %v7128_v27 = vld [vmem:[%s19877_s8 + $0xa38] sm:$0xff]  ;;  %v7135_v43 = vld [vmem:[%s19877_s8 + $0xa70] sm:$0xff] }
 0xdd1   : > { %11167 = vmatprep.subr.bf16.mxu0 %v11166_v26  ;;  %11359 = vmatprep.subr.bf16.mxu1 %v11358_v35  ;;  %v11196_v26 = vpack.c.bf16 %v7128_v27, %v7125_v31  ;;  %v11198_v44 = vpack.c.bf16 %v7135_v43, %v7132_v12  ;;  %v7131_v35 = vld [vmem:[%s19877_s8 + $0xa50] sm:$0xff] }
 0xdd2   : > { %v7183_v31 = vld [vmem:[%s19877_s8 + $0xbf0] sm:$0xff] }
 0xdd4   : > { %11169 = vmatpush1.bf16.msra.mxu0 %v11168_v53  ;;  %11361 = vmatpush3.bf16.msra.mxu1 %v11360_v49  ;;  %v11200_v53 = vpack.c.bf16 %v7134_v56, %v7131_v35  ;;  %v7179_v35 = vld [vmem:[%s19877_s8 + $0xbd0] sm:$0xff]  ;;  %v7182_v56 = vld [vmem:[%s19877_s8 + $0xbe8] sm:$0xff] }
 0xdd5   : > { %11171 = vmatprep.subr.bf16.mxu0 %v11170_v0  ;;  %v11232_v32 = vpack.c.bf16 %v7182_v56, %v7179_v35  ;;  %v7936_v35 = vld [vmem:[%s19878_s9 + $0xa0] sm:$0xff]  ;;  %v7938_v56 = vld [vmem:[%s19878_s9 + $0xb0] sm:$0xff] }
 0xdd7   : > { %7408 = vmatmul.mubr.f32.vlgmr.msra.gmra.mrb[26].mxu0 %v18967_v61  ;;  %v7111_v61 = vld [vmem:[%s19877_s8 + $0x9b0] sm:$0xff] }
 0xdd8   : > { %11173 = vmatpush1.bf16.msra.mxu0 %v11172_v6  ;;  %v11182_v30 = vpack.c.bf16 %v7111_v61, %v7108_v24  ;;  %v7150_v24 = vld [vmem:[%s19877_s8 + $0xae8] sm:$0xff]  ;;  %v7153_v61 = vld [vmem:[%s19877_s8 + $0xb00] sm:$0xff] }
 0xdd9   : > { %11175 = vmatprep.subr.bf16.mxu0 %v11174_v40  ;;  %v7144_v40 = vld [vmem:[%s19877_s8 + $0xab8] sm:$0xff] }
 0xddc   : > { %11177 = vmatpush1.bf16.msra.mxu0 %v11176_v22 }
 0xddd   : > { %11179 = vmatprep.subr.bf16.mxu0 %v11178_v1  ;;  %v11206_v1 = vpack.c.bf16 %v7147_v7, %v7144_v40 }
 0xde0   : > { %11181 = vmatpush1.bf16.msra.mxu0 %v11180_v16  ;;  %v11208_v16 = vpack.c.bf16 %v7146_v45, %v7143_v13  ;;  %v7193_v13 = vrot.slane %v8564_v41, %v15606_v18 }
 0xde1   : > { %v6756_v11 = vpop.f32.mrb[46].mxu1  ;;  %11183 = vmatprep.subr.bf16.mxu0 %v11182_v30  ;;  %v11210_v30 = vpack.c.bf16 %v7153_v61, %v7150_v24 }
 0xde2   : > { %v11546_v51 = vadd.f32 %v6756_v11, %v6180_v52  ;;  %v6758_v58 = vpop.f32.mrb[47].mxu1  ;;  %v7159_v52 = vld [vmem:[%s19877_s8 + $0xb30] sm:$0xff]  ;;  %v7162_v11 = vld [vmem:[%s19877_s8 + $0xb48] sm:$0xff] }
 0xde3   : > { %v11547_v21 = vadd.f32 %v6758_v58, %v6184_v14  ;;  %v11214_v36 = vpack.c.bf16 %v7159_v52, %v7156_v46  ;;  %v7155_v14 = vld [vmem:[%s19877_s8 + $0xb10] sm:$0xff]  ;;  %v7164_v58 = vld [vmem:[%s19877_s8 + $0xb58] sm:$0xff] }
 0xde4   : > { %v6775_v8 = vmul.f32 0.70710677, %v11546_v51  ;;  %11185 = vmatpush1.bf16.msra.mxu0 %v11184_v42  ;;  %v6767_v10 = vmul.f32 0.5, %v11546_v51  ;;  %v7158_v42 = vld [vmem:[%s19877_s8 + $0xb28] sm:$0xff]  ;;  %v7161_v51 = vld [vmem:[%s19877_s8 + $0xb40] sm:$0xff] }
 0xde5   : > { %v6776_v5 = vmul.f32 0.70710677, %v11547_v21  ;;  %11187 = vmatprep.subr.bf16.mxu0 %v11186_v17  ;;  %v6768_v59 = vmul.f32 0.5, %v11547_v21  ;;  %v7165_v17 = vld [vmem:[%s19877_s8 + $0xb60] sm:$0xff]  ;;  %v11216_v19 = vpack.c.bf16 %v7158_v42, %v7155_v14  ;;  %v11220_v21 = vpack.c.bf16 %v7164_v58, %v7161_v51  ;;  %v7921_v14 = vld [vmem:[%s19878_s9 + $0x28] sm:$0xff]  ;;  %v7927_v51 = vld [vmem:[%s19878_s9 + $0x58] sm:$0xff] }
 0xde6   : > { %11688 = verf.f32 %v6775_v8  ;;  %v11218_v20 = vpack.c.bf16 %v7165_v17, %v7162_v11  ;;  %v11222_v8 = vpack.c.bf16 %v7171_v23, %v7168_v15  ;;  %v7920_v17 = vld [vmem:[%s19878_s9 + $0x20] sm:$0xff] }
 0xde7   : > { %11690 = verf.f32 %v6776_v5  ;;  %v7170_v5 = vld [vmem:[%s19877_s8 + $0xb88] sm:$0xff]  ;;  %v7924_v23 = vld [vmem:[%s19878_s9 + $0x40] sm:$0xff] }
 0xde8   : > { %11189 = vmatpush1.bf16.msra.mxu0 %v11188_v29  ;;  %v7167_v29 = vld [vmem:[%s19877_s8 + $0xb70] sm:$0xff] }
 0xde9   : > { %11191 = vmatprep.subr.bf16.mxu0 %v11190_v33  ;;  %v7174_v33 = vld [vmem:[%s19877_s8 + $0xba8] sm:$0xff]  ;;  %v11224_v34 = vpack.c.bf16 %v7170_v5, %v7167_v29  ;;  %v7931_v29 = vld [vmem:[%s19878_s9 + $0x78] sm:$0xff] }
 0xdea   : > { %v11226_v37 = vpack.c.bf16 %v7177_v25, %v7174_v33  ;;  %v7928_v25 = vld [vmem:[%s19878_s9 + $0x60] sm:$0xff] }
 0xdec   : > { %11193 = vmatpush1.bf16.msra.mxu0 %v11192_v38  ;;  %v7176_v38 = vld [vmem:[%s19877_s8 + $0xbb8] sm:$0xff] }
 0xded   : > { %11195 = vmatprep.subr.bf16.mxu0 %v11194_v47  ;;  %v7180_v47 = vld [vmem:[%s19877_s8 + $0xbd8] sm:$0xff]  ;;  %v11228_v43 = vpack.c.bf16 %v7176_v38, %v7173_v48 }
 0xdee   : > { %v7935_v48 = vld [vmem:[%s19878_s9 + $0x98] sm:$0xff] }
 0xdf0   : > { %v11689_v50 = vpop.eup %11688  ;;  %11197 = vmatpush1.bf16.msra.mxu0 %v11196_v26 }
 0xdf1   : > { %v11691_v49 = vpop.eup %11690  ;;  %v6791_v0 = vadd.f32 1.0, %v11689_v50  ;;  %11199 = vmatprep.subr.bf16.mxu0 %v11198_v44  ;;  %v11230_v44 = vpack.c.bf16 %v7183_v31, %v7180_v47  ;;  %v7197_v50 = vrot.slane %v8564_v41, %v15633_v63  ;;  %v7189_v63 = vrot.slane %v8564_v41, %v15493_v4  ;;  %v7932_v31 = vld [vmem:[%s19878_s9 + $0x80] sm:$0xff]  ;;  %v7943_v41 = vld [vmem:[%s19878_s9 + $0xd8] sm:$0xff] }
 0xdf2   : > { %v6792_v6 = vadd.f32 1.0, %v11691_v49 }
 0xdf3   : > { %v19240_v22 = vmul.f32 %v6791_v0, %v6767_v10 }
 0xdf4   : > { %11201 = vmatpush1.bf16.msra.mxu0 %v11200_v53  ;;  %v6800_v2 = vmul.f32 %v6792_v6, %v6768_v59 }
 0xdf5   : > { %11203 = vmatprep.subr.bf16.mxu0 %v11202_v54 }
 0xdf6   : > { %7478 = vmatprep.mubr.f32.mxu0 %v6800_v2  ;;  %7759 = vmatprep.mubr.f32.mxu1 %v6800_v2 }
 0xdf7   : > { %7760 = vmatmul.mubr.f32.vlgmr.msra.gmra.mrb[54].mxu1 %v19240_v22 }
 0xdf8   : > { %11205 = vmatpush1.bf16.msra.mxu0 %v11204_v60  ;;  %7839 = vmatprep.mubr.f32.mxu1 %v11783_v39 }
 0xdf9   : > { %11207 = vmatprep.subr.bf16.mxu0 %v11206_v1 }
 0xdfc   : > { %11209 = vmatpush1.bf16.msra.mxu0 %v11208_v16  ;;  %v7917_v16 = vld [vmem:[%s19878_s9 + $0x8] sm:$0xff] }
 0xdfd   : > { %11211 = vmatprep.subr.bf16.mxu0 %v11210_v30  ;;  %v7919_v30 = vld [vmem:[%s19878_s9 + $0x18] sm:$0xff] }
 0xdfe   : > { %v11362_v52 = vpack.c.bf16 %v7919_v30, %v7917_v16  ;;  %v7954_v16 = vld [vmem:[%s19878_s9 + $0x130] sm:$0xff]  ;;  %v7957_v30 = vld [vmem:[%s19878_s9 + $0x148] sm:$0xff] }
 0xe00   : > { %11213 = vmatpush1.bf16.msra.mxu0 %v11212_v9  ;;  %v7916_v9 = vld [vmem:[%s19878_s9] sm:$0xff] }
 0xe01   : > { %11215 = vmatprep.subr.bf16.mxu0 %v11214_v36  ;;  %v7918_v36 = vld [vmem:[%s19878_s9 + $0x10] sm:$0xff] }
 0xe02   : > { %v11364_v42 = vpack.c.bf16 %v7918_v36, %v7916_v9  ;;  %v7958_v9 = vld [vmem:[%s19878_s9 + $0x150] sm:$0xff]  ;;  %v7961_v36 = vld [vmem:[%s19878_s9 + $0x168] sm:$0xff] }
 0xe04   : > { %11217 = vmatpush1.bf16.msra.mxu0 %v11216_v19  ;;  %v7922_v19 = vld [vmem:[%s19878_s9 + $0x30] sm:$0xff] }
 0xe05   : > { %11219 = vmatprep.subr.bf16.mxu0 %v11218_v20  ;;  %v7925_v20 = vld [vmem:[%s19878_s9 + $0x48] sm:$0xff]  ;;  %v11368_v58 = vpack.c.bf16 %v7922_v19, %v7920_v17  ;;  %v7962_v17 = vld [vmem:[%s19878_s9 + $0x170] sm:$0xff] }
 0xe06   : > { %v11370_v15 = vpack.c.bf16 %v7927_v51, %v7925_v20  ;;  %v7965_v19 = vld [vmem:[%s19878_s9 + $0x188] sm:$0xff]  ;;  %v7967_v20 = vld [vmem:[%s19878_s9 + $0x198] sm:$0xff] }
 0xe08   : > { %11221 = vmatpush1.bf16.msra.mxu0 %v11220_v21  ;;  %v7926_v21 = vld [vmem:[%s19878_s9 + $0x50] sm:$0xff] }
 0xe09   : > { %11223 = vmatprep.subr.bf16.mxu0 %v11222_v8  ;;  %v7929_v8 = vld [vmem:[%s19878_s9 + $0x68] sm:$0xff]  ;;  %v11372_v5 = vpack.c.bf16 %v7926_v21, %v7924_v23  ;;  %v7966_v23 = vld [vmem:[%s19878_s9 + $0x190] sm:$0xff] }
 0xe0a   : > { %v8776_v27 = vpop.f32.mrb[48].mxu1  ;;  %v11374_v33 = vpack.c.bf16 %v7931_v29, %v7929_v8  ;;  %v7969_v21 = vld [vmem:[%s19878_s9 + $0x1a8] sm:$0xff]  ;;  %v7971_v8 = vld [vmem:[%s19878_s9 + $0x1b8] sm:$0xff] }
 0xe0b   : > { %v8777_v12 = vpop.f32.mrb[49].mxu1 }
 0xe0c   : > { %11225 = vmatpush1.bf16.msra.mxu0 %v11224_v34  ;;  %v8778_v26 = vadd.f32 %v8777_v12, %v8776_v27  ;;  %v7930_v34 = vld [vmem:[%s19878_s9 + $0x70] sm:$0xff]  ;;  %v7937_v12 = vld [vmem:[%s19878_s9 + $0xa8] sm:$0xff] }
 0xe0d   : > { %11227 = vmatprep.subr.bf16.mxu0 %v11226_v37  ;;  %v7933_v37 = vld [vmem:[%s19878_s9 + $0x88] sm:$0xff]  ;;  %v11376_v38 = vpack.c.bf16 %v7930_v34, %v7928_v25  ;;  %v7934_v27 = vld [vmem:[%s19878_s9 + $0x90] sm:$0xff] }
 0xe0e   : > { %v7552_v0 = vadd.f32 %v8778_v26, %v7197_v50  ;;  %v11378_v47 = vpack.c.bf16 %v7935_v48, %v7933_v37  ;;  %v11380_v26 = vpack.c.bf16 %v7934_v27, %v7932_v31  ;;  %v11384_v50 = vpack.c.bf16 %v7938_v56, %v7936_v35  ;;  %v7970_v25 = vld [vmem:[%s19878_s9 + $0x1b0] sm:$0xff]  ;;  %v7973_v34 = vld [vmem:[%s19878_s9 + $0x1c8] sm:$0xff]  ;;  %v7975_v37 = vld [vmem:[%s19878_s9 + $0x1d8] sm:$0xff] }
 0xe0f   : > { %v7974_v31 = vld [vmem:[%s19878_s9 + $0x1d0] sm:$0xff]  ;;  %v7977_v27 = vld [vmem:[%s19878_s9 + $0x1e8] sm:$0xff] }
 0xe10   : > { %11229 = vmatpush1.bf16.msra.mxu0 %v11228_v43  ;;  %v7939_v43 = vld [vmem:[%s19878_s9 + $0xb8] sm:$0xff]  ;;  %v7978_v35 = vld [vmem:[%s19878_s9 + $0x1f0] sm:$0xff] }
 0xe11   : > { %11231 = vmatprep.subr.bf16.mxu0 %v11230_v44  ;;  %v11382_v44 = vpack.c.bf16 %v7939_v43, %v7937_v12  ;;  %v7979_v12 = vld [vmem:[%s19878_s9 + $0x1f8] sm:$0xff] }
 0xe14   : > { %11233 = vmatpush1.bf16.msra.mxu0 %v11232_v32  ;;  %v7941_v32 = vld [vmem:[%s19878_s9 + $0xc8] sm:$0xff] }
 0xe17   : > { %7479 = vmatmul.mubr.f32.vlgmr.msra.gmra.mrb[26].mxu0 %v19240_v22  ;;  %v7768_v22 = vpop.xlane.xlu0 %7767 }
 0xe18   : > { %v7769_v1 = vmax.f32 %v7768_v22, 1.0  ;;  %v7948_v22 = vld [vmem:[%s19878_s9 + $0x100] sm:$0xff] }
 0xe1a   : > { %11692 = vrcp.f32 %v7769_v1  ;;  %v7950_v1 = vld [vmem:[%s19878_s9 + $0x110] sm:$0xff] }
 0xe24   : > { %v11693_v45 = vpop.eup %11692 }
 0xe25   : > { %v7771_v28 = vmul.f32 %v18791_v62, %v11693_v45  ;;  %v7923_v62 = vld [vmem:[%s19878_s9 + $0x38] sm:$0xff] }
 0xe26   : > { %v11366_v11 = vpack.c.bf16 %v7923_v62, %v7921_v14  ;;  %v7955_v45 = vld [vmem:[%s19878_s9 + $0x138] sm:$0xff] }
 0xe27   : > { %v7963_v14 = vld [vmem:[%s19878_s9 + $0x178] sm:$0xff] }
 0xe6a   : > { %v8811_v53 = vpop.f32.mrb[50].mxu1 }
 0xe6b   : > { %v8812_v49 = vpop.f32.mrb[51].mxu1 }
 0xe6c   : > { %v8813_v54 = vadd.f32 %v8812_v49, %v8811_v53  ;;  %v11386_v53 = vpack.c.bf16 %v7943_v41, %v7941_v32  ;;  %v7940_v49 = vld [vmem:[%s19878_s9 + $0xc0] sm:$0xff]  ;;  %v7981_v32 = vld [vmem:[%s19878_s9 + $0x208] sm:$0xff]  ;;  %v7983_v41 = vld [vmem:[%s19878_s9 + $0x218] sm:$0xff] }
 0xe6e   : > { %v7622_v3 = vadd.f32 %v8813_v54, %v7552_v0  ;;  %v7942_v0 = vld [vmem:[%s19878_s9 + $0xd0] sm:$0xff]  ;;  %v7945_v54 = vld [vmem:[%s19878_s9 + $0xe8] sm:$0xff] }
 0xe8a   : > { %v8846_v57 = vpop.f32.mrb[52].mxu1 }
 0xe8b   : > { %v8847_v59 = vpop.f32.mrb[53].mxu1 }
 0xe8c   : > { %v8848_v6 = vadd.f32 %v8847_v59, %v8846_v57  ;;  %v11388_v57 = vpack.c.bf16 %v7942_v0, %v7940_v49  ;;  %v7982_v49 = vld [vmem:[%s19878_s9 + $0x210] sm:$0xff]  ;;  %v7985_v0 = vld [vmem:[%s19878_s9 + $0x228] sm:$0xff] }
 0xe8e   : > { %v7692_v40 = vadd.f32 %v8848_v6, %v7622_v3  ;;  %v7947_v3 = vld [vmem:[%s19878_s9 + $0xf8] sm:$0xff]  ;;  %v7944_v6 = vld [vmem:[%s19878_s9 + $0xe0] sm:$0xff] }
 0xe8f   : > { %v11390_v59 = vpack.c.bf16 %v7947_v3, %v7945_v54  ;;  %v7987_v54 = vld [vmem:[%s19878_s9 + $0x238] sm:$0xff] }
 0xeca   : > { %v8881_v7 = vpop.f32.mrb[54].mxu1 }
 0xecb   : > { %v8882_v10 = vpop.f32.mrb[55].mxu1 }
 0xecc   : > { %v8883_v2 = vadd.f32 %v8882_v10, %v8881_v7  ;;  %v7949_v7 = vld [vmem:[%s19878_s9 + $0x108] sm:$0xff]  ;;  %v7951_v10 = vld [vmem:[%s19878_s9 + $0x118] sm:$0xff] }
 0xece   : > { %v7762_v60 = vadd.f32 %v8883_v2, %v7692_v40  ;;  %v7946_v40 = vld [vmem:[%s19878_s9 + $0xf0] sm:$0xff] }
 0xecf   : > { %v11392_v2 = vpack.c.bf16 %v7946_v40, %v7944_v6  ;;  %v11430_v6 = vpack.c.bf16 %v7987_v54, %v7985_v0  ;;  %v7984_v40 = vld [vmem:[%s19878_s9 + $0x220] sm:$0xff] }
 0xeea   : > { %v7480_v24 = vpop.f32.mrb[26].mxu0 }
 0xeeb   : > { %v7482_v61 = vpop.f32.mrb[27].mxu0  ;;  %v11548_v46 = vadd.f32 %v7480_v24, %v7189_v63  ;;  %v11396_v63 = vpack.c.bf16 %v7950_v1, %v7948_v22 }
 0xeec   : > { %v11549_v55 = vadd.f32 %v7482_v61, %v7193_v13  ;;  %v7953_v13 = vld [vmem:[%s19878_s9 + $0x128] sm:$0xff]  ;;  %v7952_v61 = vld [vmem:[%s19878_s9 + $0x120] sm:$0xff] }
 0xeed   : > { %v11398_v24 = vpack.c.bf16 %v7955_v45, %v7953_v13  ;;  %v7988_v45 = vld [vmem:[%s19878_s9 + $0x240] sm:$0xff] }
 0xeee   : > { %7775 = vmatprep.subr.mxu1 %v11549_v55  ;;  %v7959_v55 = vld [vmem:[%s19878_s9 + $0x158] sm:$0xff] }
 0xeef   : > { %7776 = vmatpush1.msra.mxu1 %v11548_v46  ;;  %v11402_v46 = vpack.c.bf16 %v7959_v55, %v7957_v30  ;;  %v7992_v55 = vld [vmem:[%s19878_s9 + $0x260] sm:$0xff] }
 0xef0   : > { %8565 = vmatmul.mubr.msk.f32.vlgmr.msra.gmra.mrb[56].mxu1 %vm3570_vm2, %v7771_v28  ;;  %9018 = vmatprep.subr.mxu1 %v11783_v39 }
 0xef1   : > { %9019 = vmatpush3.msra.mxu1 %v7762_v60  ;;  %9020 = vmatprep.mubr.msk.f32.mxu1 %vm11784_vm0, %v11783_v39  ;;  %v11394_v60 = vpack.c.bf16 %v7951_v10, %v7949_v7  ;;  %v7986_v7 = vld [vmem:[%s19878_s9 + $0x230] sm:$0xff]  ;;  %v7989_v10 = vld [vmem:[%s19878_s9 + $0x248] sm:$0xff] }
 0xef2   : > { %11363 = vmatprep.subr.bf16.mxu1 %v11362_v52  ;;  %v7956_v52 = vld [vmem:[%s19878_s9 + $0x140] sm:$0xff]  ;;  %v11432_v22 = vpack.c.bf16 %v7986_v7, %v7984_v40  ;;  %v8245_v40 = vld [vmem:[%s19880_s11 + $0x88] sm:$0xff] }
 0xef3   : > { %v11404_v62 = vpack.c.bf16 %v7958_v9, %v7956_v52  ;;  %v7999_v52 = vld [vmem:[%s19878_s9 + $0x298] sm:$0xff] }
 0xef4   : > { %9021 = vmatmul.mubr.msk.f32.vlgmr.msra.gmra.mrb[58].mxu1 %vm3570_vm2, %v7771_v28  ;;  %v11400_v28 = vpack.c.bf16 %v7954_v16, %v7952_v61  ;;  %v7995_v61 = vld [vmem:[%s19878_s9 + $0x278] sm:$0xff] }
 0xef5   : > { %11365 = vmatpush1.bf16.msra.mxu1 %v11364_v42  ;;  %v11406_v42 = vpack.c.bf16 %v7963_v14, %v7961_v36  ;;  %v7996_v14 = vld [vmem:[%s19878_s9 + $0x280] sm:$0xff] }
 0xef6   : > { %11367 = vmatprep.subr.bf16.mxu1 %v11366_v11  ;;  %v7960_v11 = vld [vmem:[%s19878_s9 + $0x160] sm:$0xff] }
 0xef7   : > { %v11408_v51 = vpack.c.bf16 %v7962_v17, %v7960_v11  ;;  %v8003_v11 = vld [vmem:[%s19878_s9 + $0x2b8] sm:$0xff] }
 0xef9   : > { %11369 = vmatpush1.bf16.msra.mxu1 %v11368_v58  ;;  %v11410_v58 = vpack.c.bf16 %v7967_v20, %v7965_v19  ;;  %v8000_v20 = vld [vmem:[%s19878_s9 + $0x2a0] sm:$0xff] }
 0xefa   : > { %11371 = vmatprep.subr.bf16.mxu1 %v11370_v15  ;;  %v7964_v15 = vld [vmem:[%s19878_s9 + $0x180] sm:$0xff] }
 0xefb   : > { %v11412_v29 = vpack.c.bf16 %v7966_v23, %v7964_v15  ;;  %v8007_v15 = vld [vmem:[%s19878_s9 + $0x2d8] sm:$0xff] }
 0xefd   : > { %11373 = vmatpush1.bf16.msra.mxu1 %v11372_v5  ;;  %v11414_v5 = vpack.c.bf16 %v7971_v8, %v7969_v21  ;;  %v8004_v8 = vld [vmem:[%s19878_s9 + $0x2c0] sm:$0xff] }
 0xefe   : > { %11375 = vmatprep.subr.bf16.mxu1 %v11374_v33  ;;  %v7968_v33 = vld [vmem:[%s19878_s9 + $0x1a0] sm:$0xff] }
 0xeff   : > { %v11416_v48 = vpack.c.bf16 %v7970_v25, %v7968_v33  ;;  %v8011_v33 = vld [vmem:[%s19878_s9 + $0x2f8] sm:$0xff] }
 0xf01   : > { %11377 = vmatpush1.bf16.msra.mxu1 %v11376_v38  ;;  %v11418_v38 = vpack.c.bf16 %v7975_v37, %v7973_v34  ;;  %v8008_v37 = vld [vmem:[%s19878_s9 + $0x2e0] sm:$0xff] }
 0xf02   : > { %11379 = vmatprep.subr.bf16.mxu1 %v11378_v47  ;;  %v7972_v47 = vld [vmem:[%s19878_s9 + $0x1c0] sm:$0xff] }
 0xf03   : > { %v11420_v43 = vpack.c.bf16 %v7974_v31, %v7972_v47  ;;  %v8012_v47 = vld [vmem:[%s19879_s10] ss:$4 sm:$0x3] }
 0xf04   : > { %v8017_v31 = vrot.slane %v8012_v47, %v15493_v4 }
 0xf05   : > { %11381 = vmatpush1.bf16.msra.mxu1 %v11380_v26  ;;  %v11422_v26 = vpack.c.bf16 %v7979_v12, %v7977_v27  ;;  %v8021_v27 = vrot.slane %v8012_v47, %v15606_v18  ;;  %v8259_v47 = vld [vmem:[%s19880_s11 + $0xf8] sm:$0xff] }
 0xf06   : > { %11383 = vmatprep.subr.bf16.mxu1 %v11382_v44  ;;  %v7976_v44 = vld [vmem:[%s19878_s9 + $0x1e0] sm:$0xff] }
 0xf07   : > { %v11424_v56 = vpack.c.bf16 %v7978_v35, %v7976_v44 }
 0xf09   : > { %11385 = vmatpush1.bf16.msra.mxu1 %v11384_v50  ;;  %v11426_v50 = vpack.c.bf16 %v7983_v41, %v7981_v32 }
 0xf0a   : > { %11387 = vmatprep.subr.bf16.mxu1 %v11386_v53  ;;  %v7980_v53 = vld [vmem:[%s19878_s9 + $0x200] sm:$0xff] }
 0xf0d   : > { %11389 = vmatpush1.bf16.msra.mxu1 %v11388_v57  ;;  %v11428_v57 = vpack.c.bf16 %v7982_v49, %v7980_v53 }
 0xf0e   : > { %11391 = vmatprep.subr.bf16.mxu1 %v11390_v59 }
 0xf11   : > { %11393 = vmatpush1.bf16.msra.mxu1 %v11392_v2  ;;  %v7991_v2 = vld [vmem:[%s19878_s9 + $0x258] sm:$0xff] }
 0xf12   : > { %11395 = vmatprep.subr.bf16.mxu1 %v11394_v60  ;;  %v11434_v13 = vpack.c.bf16 %v7991_v2, %v7989_v10  ;;  %v8228_v10 = vld [vmem:[%s19880_s11] sm:$0xff]  ;;  %v8229_v2 = vld [vmem:[%s19880_s11 + $0x8] sm:$0xff] }
 0xf15   : > { %11397 = vmatpush1.bf16.msra.mxu1 %v11396_v63  ;;  %v7990_v63 = vld [vmem:[%s19878_s9 + $0x250] sm:$0xff] }
 0xf16   : > { %11399 = vmatprep.subr.bf16.mxu1 %v11398_v24  ;;  %v7993_v24 = vld [vmem:[%s19878_s9 + $0x268] sm:$0xff]  ;;  %v11436_v16 = vpack.c.bf16 %v7990_v63, %v7988_v45  ;;  %v8230_v45 = vld [vmem:[%s19880_s11 + $0x10] sm:$0xff]  ;;  %v8231_v63 = vld [vmem:[%s19880_s11 + $0x18] sm:$0xff] }
 0xf17   : > { %v11438_v30 = vpack.c.bf16 %v7995_v61, %v7993_v24  ;;  %v11464_v24 = vpack.c.bf16 %v8231_v63, %v8230_v45  ;;  %v8248_v61 = vld [vmem:[%s19880_s11 + $0xa0] sm:$0xff] }
 0xf19   : > { %11401 = vmatpush1.bf16.msra.mxu1 %v11400_v28  ;;  %v7994_v28 = vld [vmem:[%s19878_s9 + $0x270] sm:$0xff] }
 0xf1a   : > { %11403 = vmatprep.subr.bf16.mxu1 %v11402_v46  ;;  %v7997_v46 = vld [vmem:[%s19878_s9 + $0x288] sm:$0xff]  ;;  %v11440_v9 = vpack.c.bf16 %v7994_v28, %v7992_v55  ;;  %v8232_v55 = vld [vmem:[%s19880_s11 + $0x20] sm:$0xff] }
 0xf1b   : > { %v11442_v36 = vpack.c.bf16 %v7999_v52, %v7997_v46  ;;  %v8233_v28 = vld [vmem:[%s19880_s11 + $0x28] sm:$0xff]  ;;  %v8250_v52 = vld [vmem:[%s19880_s11 + $0xb0] sm:$0xff] }
 0xf1c   : > { %v11468_v46 = vpack.c.bf16 %v8233_v28, %v8232_v55 }
 0xf1d   : > { %11405 = vmatpush1.bf16.msra.mxu1 %v11404_v62  ;;  %v7998_v62 = vld [vmem:[%s19878_s9 + $0x290] sm:$0xff] }
 0xf1e   : > { %11407 = vmatprep.subr.bf16.mxu1 %v11406_v42  ;;  %v8001_v42 = vld [vmem:[%s19878_s9 + $0x2a8] sm:$0xff]  ;;  %v11444_v17 = vpack.c.bf16 %v7998_v62, %v7996_v14  ;;  %v8235_v62 = vld [vmem:[%s19880_s11 + $0x38] sm:$0xff] }
 0xf1f   : > { %v11446_v19 = vpack.c.bf16 %v8003_v11, %v8001_v42  ;;  %v8252_v42 = vld [vmem:[%s19880_s11 + $0xc0] sm:$0xff]  ;;  %v8253_v11 = vld [vmem:[%s19880_s11 + $0xc8] sm:$0xff] }
 0xf21   : > { %11409 = vmatpush1.bf16.msra.mxu1 %v11408_v51  ;;  %v8002_v51 = vld [vmem:[%s19878_s9 + $0x2b0] sm:$0xff] }
 0xf22   : > { %11411 = vmatprep.subr.bf16.mxu1 %v11410_v58  ;;  %v8005_v58 = vld [vmem:[%s19878_s9 + $0x2c8] sm:$0xff]  ;;  %v11448_v23 = vpack.c.bf16 %v8002_v51, %v8000_v20  ;;  %v8236_v20 = vld [vmem:[%s19880_s11 + $0x40] sm:$0xff] }
 0xf23   : > { %v11450_v21 = vpack.c.bf16 %v8007_v15, %v8005_v58  ;;  %v8237_v51 = vld [vmem:[%s19880_s11 + $0x48] sm:$0xff]  ;;  %v8254_v58 = vld [vmem:[%s19880_s11 + $0xd0] sm:$0xff]  ;;  %v8255_v15 = vld [vmem:[%s19880_s11 + $0xd8] sm:$0xff] }
 0xf25   : > { %11413 = vmatpush1.bf16.msra.mxu1 %v11412_v29  ;;  %v8006_v29 = vld [vmem:[%s19878_s9 + $0x2d0] sm:$0xff] }
 0xf26   : > { %11415 = vmatprep.subr.bf16.mxu1 %v11414_v5  ;;  %v8009_v5 = vld [vmem:[%s19878_s9 + $0x2e8] sm:$0xff]  ;;  %v11452_v25 = vpack.c.bf16 %v8006_v29, %v8004_v8  ;;  %v8238_v8 = vld [vmem:[%s19880_s11 + $0x50] sm:$0xff]  ;;  %v8239_v29 = vld [vmem:[%s19880_s11 + $0x58] sm:$0xff] }
 0xf27   : > { %v11454_v34 = vpack.c.bf16 %v8011_v33, %v8009_v5  ;;  %v8256_v5 = vld [vmem:[%s19880_s11 + $0xe0] sm:$0xff]  ;;  %v8257_v33 = vld [vmem:[%s19880_s11 + $0xe8] sm:$0xff] }
 0xf29   : > { %11417 = vmatpush1.bf16.msra.mxu1 %v11416_v48  ;;  %v8010_v48 = vld [vmem:[%s19878_s9 + $0x2f0] sm:$0xff] }
 0xf2a   : > { %11419 = vmatprep.subr.bf16.mxu1 %v11418_v38  ;;  %v11456_v38 = vpack.c.bf16 %v8010_v48, %v8008_v37  ;;  %v8240_v37 = vld [vmem:[%s19880_s11 + $0x60] sm:$0xff]  ;;  %v8241_v48 = vld [vmem:[%s19880_s11 + $0x68] sm:$0xff] }
 0xf2d   : > { %11421 = vmatpush1.bf16.msra.mxu1 %v11420_v43 }
 0xf2e   : > { %11423 = vmatprep.subr.bf16.mxu1 %v11422_v26 }
 0xf31   : > { %11425 = vmatpush1.bf16.msra.mxu1 %v11424_v56 }
 0xf32   : > { %11427 = vmatprep.subr.bf16.mxu1 %v11426_v50 }
 0xfc3   : > { %v7841_v3 = vpop.f32.mrb[56].mxu1 }
 0xfc4   : > { %v7843_v59 = vpop.f32.mrb[57].mxu1 }
 0xfc5   : > { %8088 = vmatprep.mubr.f32.mxu1 %v7843_v59 }
 0xfc6   : > { %8089 = vmatmul.mubr.f32.vlgmr.msra.gmra.mrb[60].mxu1 %v7841_v3 }
 0xfc7   : > { %11429 = vmatpush1.bf16.msra.mxu1 %v11428_v57  ;;  %v7912_v60 = vpop.f32.mrb[58].mxu1  ;;  %8159 = vmatprep.mubr.f32.mxu1 %v11783_v39 }
 0xfc8   : > { %v9022_v1 = vpop.f32.mrb[59].mxu1  ;;  %11431 = vmatprep.subr.bf16.mxu1 %v11430_v6  ;;  %v8244_v6 = vld [vmem:[%s19880_s11 + $0x80] sm:$0xff] }
 0xfc9   : > { %v11458_v7 = vpack.c.bf16 %v8245_v40, %v8244_v6  ;;  %v8247_v1 = vld [vmem:[%s19880_s11 + $0x98] sm:$0xff] }
 0xfcb   : > { %11433 = vmatpush1.bf16.msra.mxu1 %v11432_v22  ;;  %11459 = vmatprep.subr.bf16.mxu0 %v11458_v7  ;;  %v8246_v22 = vld [vmem:[%s19880_s11 + $0x90] sm:$0xff] }
 0xfcc   : > { %11435 = vmatprep.subr.bf16.mxu1 %v11434_v13  ;;  %v11462_v13 = vpack.c.bf16 %v8247_v1, %v8246_v22 }
 0xfcf   : > { %11437 = vmatpush1.bf16.msra.mxu1 %v11436_v16  ;;  %v8249_v16 = vld [vmem:[%s19880_s11 + $0xa8] sm:$0xff] }
 0xfd0   : > { %11439 = vmatprep.subr.bf16.mxu1 %v11438_v30  ;;  %v11466_v30 = vpack.c.bf16 %v8249_v16, %v8248_v61  ;;  %v8260_v16 = vld [vmem:[%s19881_s12] sm:$0x1] }
 0xfd3   : > { %11441 = vmatpush1.bf16.msra.mxu1 %v11440_v9  ;;  %v8251_v9 = vld [vmem:[%s19880_s11 + $0xb8] sm:$0xff] }
 0xfd4   : > { %11443 = vmatprep.subr.bf16.mxu1 %v11442_v36  ;;  %v8234_v36 = vld [vmem:[%s19880_s11 + $0x30] sm:$0xff]  ;;  %v11470_v14 = vpack.c.bf16 %v8251_v9, %v8250_v52  ;;  %v8350_v52 = vld [vmem:[%s19882_s13 + $0x8] sm:$0xff]  ;;  %v11786_v9 = vmov 0.0|0.0  }
 0xfd7   : > { %11445 = vmatpush1.bf16.msra.mxu1 %v11444_v17  ;;  %v11472_v17 = vpack.c.bf16 %v8235_v62, %v8234_v36 }
 0xfd8   : > { %11447 = vmatprep.subr.bf16.mxu1 %v11446_v19  ;;  %v11474_v19 = vpack.c.bf16 %v8253_v11, %v8252_v42  ;;  %v8353_v42 = vld [vmem:[%s19882_s13 + $0x20] sm:$0xff]  ;;  %v8354_v11 = vld [vmem:[%s19882_s13 + $0x28] sm:$0xff] }
 0xfdb   : > { %11449 = vmatpush1.bf16.msra.mxu1 %v11448_v23  ;;  %v11476_v23 = vpack.c.bf16 %v8237_v51, %v8236_v20 }
 0xfdc   : > { %11451 = vmatprep.subr.bf16.mxu1 %v11450_v21  ;;  %v11478_v21 = vpack.c.bf16 %v8255_v15, %v8254_v58 }
 0xfdf   : > { %11453 = vmatpush1.bf16.msra.mxu1 %v11452_v25  ;;  %v11480_v25 = vpack.c.bf16 %v8239_v29, %v8238_v8  ;;  %v8357_v29 = vld [vmem:[%s19882_s13 + $0x40] sm:$0xff] }
 0xfe0   : > { %11455 = vmatprep.subr.bf16.mxu1 %v11454_v34  ;;  %v11482_v34 = vpack.c.bf16 %v8257_v33, %v8256_v5  ;;  %v8358_v5 = vld [vmem:[%s19882_s13 + $0x48] sm:$0xff]  ;;  %v8359_v33 = vld [vmem:[%s19882_s13 + $0x50] sm:$0xff] }
 0xfe3   : > { %11457 = vmatpush1.bf16.msra.mxu1 %v11456_v38  ;;  %v8258_v38 = vld [vmem:[%s19880_s11 + $0xf0] sm:$0xff] }
 0xfe6   : > { %8160 = vmatmul.mubr.f32.vlgmr.msra.gmra.mrb[60].mxu1 %v7912_v60  ;;  %v11460_v60 = vpack.c.bf16 %v8229_v2, %v8228_v10 }
 0xfe8   : > { %11461 = vmatpush3.bf16.msra.mxu0 %v11460_v60 }
 0xfe9   : > { %11463 = vmatprep.subr.bf16.mxu0 %v11462_v13 }
 0xfec   : > { %11465 = vmatpush3.bf16.msra.mxu0 %v11464_v24 }
 0xfed   : > { %11467 = vmatprep.subr.bf16.mxu0 %v11466_v30 }
 0xff0   : > { %11469 = vmatpush3.bf16.msra.mxu0 %v11468_v46  ;;  %v8349_v46 = vld [vmem:[%s19882_s13] sm:$0xff] }
 0xff1   : > { %11471 = vmatprep.subr.bf16.mxu0 %v11470_v14  ;;  %v11491_v36 = vpack.c.bf16 %v8350_v52, %v8349_v46  ;;  %v8352_v14 = vld [vmem:[%s19882_s13 + $0x18] sm:$0xff] }
 0xff4   : > { %11473 = vmatpush3.bf16.msra.mxu0 %v11472_v17  ;;  %v11497_v17 = vpack.c.bf16 %v8354_v11, %v8353_v42 }
 0xff5   : > { %11475 = vmatprep.subr.bf16.mxu0 %v11474_v19 }
 0xff8   : > { %11477 = vmatpush3.bf16.msra.mxu0 %v11476_v23  ;;  %v8355_v23 = vld [vmem:[%s19882_s13 + $0x30] sm:$0xff] }
 0xff9   : > { %11479 = vmatprep.subr.bf16.mxu0 %v11478_v21  ;;  %v8356_v21 = vld [vmem:[%s19882_s13 + $0x38] sm:$0xff] }
 0xffa   : > { %v11500_v8 = vpack.c.bf16 %v8356_v21, %v8355_v23 }
 0xffc   : > { %11481 = vmatpush3.bf16.msra.mxu0 %v11480_v25  ;;  %v11503_v25 = vpack.c.bf16 %v8358_v5, %v8357_v29 }
 0xffd   : > { %11483 = vmatprep.subr.bf16.mxu0 %v11482_v34  ;;  %v8360_v34 = vld [vmem:[%s19882_s13 + $0x58] sm:$0xff] }
0x10b9   : > { %v8161_v12 = vpop.f32.mrb[60].mxu1 }
0x10ba   : > { %v11550_v43 = vadd.f32 %v8161_v12, %v8017_v31  ;;  %v8163_v26 = vpop.f32.mrb[61].mxu1  ;;  %v11484_v31 = vpack.c.bf16 %v8241_v48, %v8240_v37  ;;  %v8242_v12 = vld [vmem:[%s19880_s11 + $0x70] sm:$0xff]  ;;  %v11506_v37 = vpack.c.bf16 %v8360_v34, %v8359_v33  ;;  %v8361_v48 = vld [vmem:[%s19882_s13 + $0x60] sm:$0xff] }
0x10bb   : > { %v11551_v44 = vadd.f32 %v8163_v26, %v8021_v27  ;;  %v11486_v27 = vpack.c.bf16 %v8259_v47, %v8258_v38  ;;  %v8362_v38 = vld [vmem:[%s19882_s13 + $0x68] sm:$0xff] }
0x10bc   : > { %v8171_v35 = vsel %vm8170_vm4, %v11550_v43, 0.0  ;;  %11485 = vmatpush3.bf16.msra.mxu0 %v11484_v31  ;;  %v11509_v47 = vpack.c.bf16 %v8362_v38, %v8361_v48  ;;  %v8363_v31 = vld [vmem:[%s19882_s13 + $0x70] sm:$0xff] }
0x10bd   : > { %v8172_v56 = vsel %vm8170_vm4, %v11551_v44, 0.0  ;;  %11487 = vmatprep.subr.bf16.mxu0 %v11486_v27  ;;  %v8364_v27 = vld [vmem:[%s19882_s13 + $0x78] sm:$0xff] }
0x10be   : > { %v8173_v32 = vadd.f32 %v8172_v56, %v8171_v35 }
0x10c0   : > { %8174 = vadd.xlane.f32.xlu1 %v8173_v32  ;;  %v8567_v32 = vld [vmem:[%s19879_s10 + $0x1] ss:$4 sm:$0x3] }
0x114d   : > { %v8175_v41 = vpop.xlane.xlu1 %8174 }
0x114e   : > { %v8177_v50 = vmul.f32 0.00390625, %v8175_v41  ;;  %v8568_v41 = vld [vmem:[%s19879_s10 + $0x2] ss:$4 sm:$0x3] }
0x114f   : > { %v8213_v6 = vrot.slane %v8568_v41, %v15606_v18 }
0x1150   : > { %v19631_v53 = vsub.f32 %v11550_v43, %v8177_v50  ;;  %v19633_v49 = vsub.f32 %v11551_v44, %v8177_v50  ;;  %v8243_v43 = vld [vmem:[%s19880_s11 + $0x78] sm:$0xff]  ;;  %v8196_v50 = vrot.slane %v8567_v32, %v15493_v4 }
0x1151   : > { %v11488_v26 = vpack.c.bf16 %v8243_v43, %v8242_v12  ;;  %v11512_v12 = vpack.c.bf16 %v8364_v27, %v8363_v31 }
0x1152   : > { %v8180_v0 = vmul.f32 %v19631_v53, %v19631_v53  ;;  %v8181_v54 = vmul.f32 %v19633_v49, %v19633_v49 }
0x1153   : > { %11489 = vmatpush3.bf16.msra.mxu0 %v11488_v26 }
0x1154   : > { %v8182_v3 = vsel %vm8170_vm4, %v8180_v0, 0.0  ;;  %v8183_v57 = vsel %vm8170_vm4, %v8181_v54, 0.0  ;;  %v8200_v0 = vrot.slane %v8567_v32, %v15606_v18  ;;  %11490 = vmatprep.subr.bf16.mxu0 %v11786_v9 }
0x1155   : > { %v8184_v59 = vadd.f32 %v8183_v57, %v8182_v3 }
0x1157   : > { %8185 = vadd.xlane.f32.xlu0 %v8184_v59  ;;  %v8209_v59 = vrot.slane %v8568_v41, %v15493_v4  ;;  %v8332_v41 = vld [vmem:[%s19881_s12 + $0x2] sm:$0x1] }
0x11e4   : > { %v8186_v44 = vpop.xlane.xlu0 %8185 }
0x11e5   : > { %v8187_v35 = vmul.f32 0.00390625, %v8186_v44 }
0x11e7   : > { %v8188_v56 = vadd.f32 1e-05, %v8187_v35 }
0x11e9   : > { %11694 = vrsqrt.f32 %v8188_v56  ;;  %v8331_v56 = vld [vmem:[%s19881_s12 + $0x1] sm:$0x1] }
0x11f3   : > { %v11695_v54 = vpop.eup %11694 }
0x11f4   : > { %v8190_v3 = vmul.f32 %v11695_v54, %v19631_v53  ;;  %v8191_v57 = vmul.f32 %v11695_v54, %v19633_v49  ;;  %v8365_v54 = vld [vmem:[%s19883_s14] sm:$0x1] }
0x11f6   : > { %v8204_v40 = vmul.f32 %v8200_v0, %v8191_v57  ;;  %v8203_v7 = vmul.f32 %v8196_v50, %v8190_v3 }
0x11f8   : > { %v8217_v10 = vadd.f32 %v8213_v6, %v8204_v40  ;;  %v8216_v2 = vadd.f32 %v8209_v59, %v8203_v7 }
0x11fa   : > { %v8221_v60 = vmul.f32 0.70710677, %v8217_v10  ;;  %v8220_v22 = vmul.f32 0.70710677, %v8216_v2  ;;  %v8219_v45 = vmul.f32 0.5, %v8217_v10  ;;  %v8218_v24 = vmul.f32 0.5, %v8216_v2 }
0x11fc   : > { %11696 = verf.f32 %v8221_v60 }
0x11fd   : > { %11698 = verf.f32 %v8220_v22 }
0x1206   : > { %v11697_v1 = vpop.eup %11696 }
0x1207   : > { %v11699_v13 = vpop.eup %11698  ;;  %v8225_v63 = vadd.f32 1.0, %v11697_v1 }
0x1208   : > { %v8224_v53 = vadd.f32 1.0, %v11699_v13 }
0x1209   : > { %v8227_v61 = vmul.f32 %v8225_v63, %v8219_v45  ;;  %v8436_v63 = vld [vmem:[%s19883_s14 + $0x1] sm:$0x1] }
0x120a   : > { %v8226_v49 = vmul.f32 %v8224_v53, %v8218_v24  ;;  %v8437_v53 = vld [vmem:[%s19883_s14 + $0x2] sm:$0x1] }
0x120b   : > { %8325 = vmatprep.mubr.f32.mxu0 %v8227_v61 }
0x120c   : > { %8326 = vmatmul.mubr.f32.vlgmr.msra.gmra.mrb[28].mxu0 %v8226_v49 }
0x120d   : > { %9055 = vmatprep.mubr.msk.f32.mxu0 %vm11784_vm0, %v11783_v39  ;;  %v8351_v39 = vld [vmem:[%s19882_s13 + $0x10] sm:$0xff]  ;;  %11492 = vmatpush3.bf16.msra.mxu0 %v11491_v36 }
0x120e   : > { %v11494_v62 = vpack.c.bf16 %v8352_v14, %v8351_v39  ;;  %11493 = vmatprep.subr.bf16.mxu0 %v11786_v9 }
0x1211   : > { %11495 = vmatpush3.bf16.msra.mxu0 %v11494_v62 }
0x1212   : > { %11496 = vmatprep.subr.bf16.mxu0 %v11786_v9 }
0x1215   : > { %11498 = vmatpush3.bf16.msra.mxu0 %v11497_v17 }
0x1216   : > { %11499 = vmatprep.subr.bf16.mxu0 %v11786_v9 }
0x1219   : > { %11501 = vmatpush3.bf16.msra.mxu0 %v11500_v8 }
0x121a   : > { %11502 = vmatprep.subr.bf16.mxu0 %v11786_v9 }
0x121d   : > { %11504 = vmatpush3.bf16.msra.mxu0 %v11503_v25 }
0x121e   : > { %11505 = vmatprep.subr.bf16.mxu0 %v11786_v9 }
0x1221   : > { %11507 = vmatpush3.bf16.msra.mxu0 %v11506_v37 }
0x1222   : > { %11508 = vmatprep.subr.bf16.mxu0 %v11786_v9 }
0x1225   : > { %11510 = vmatpush3.bf16.msra.mxu0 %v11509_v47 }
0x1226   : > { %11511 = vmatprep.subr.bf16.mxu0 %v11786_v9 }
0x1229   : > { %11513 = vmatpush3.bf16.msra.mxu0 %v11512_v12 }
0x12df   : > { %v8918_v4 = vpop.f32.mrb[28].mxu0 }
0x12e0   : > { %v8919_v18 = vpop.f32.mrb[29].mxu0 }
0x12e1   : > { %v8920_v30 = vadd.f32 %v8919_v18, %v8918_v4 }
0x12e3   : > { %v8328_v55 = vadd.f32 %v8920_v30, %v8260_v16 }
0x12e5   : > { %v8333_v28 = vsel %vm8170_vm4, %v8328_v55, 0.0 }
0x12e6   : > { %8334 = vadd.xlane.f32.xlu1 %v8333_v28 }
0x1373   : > { %v8335_v19 = vpop.xlane.xlu1 %8334 }
0x1374   : > { %v8337_v20 = vmul.f32 0.0078125, %v8335_v19 }
0x1376   : > { %v8338_v51 = vsub.f32 %v8328_v55, %v8337_v20 }
0x1378   : > { %v8339_v58 = vmul.f32 %v8338_v51, %v8338_v51 }
0x137a   : > { %v8340_v15 = vsel %vm8170_vm4, %v8339_v58, 0.0 }
0x137b   : > { %8341 = vadd.xlane.f32.xlu0 %v8340_v15 }
0x1408   : > { %v8342_v43 = vpop.xlane.xlu0 %8341 }
0x1409   : > { %v8343_v26 = vmul.f32 0.0078125, %v8342_v43 }
0x140b   : > { %v8344_v44 = vadd.f32 1e-05, %v8343_v26 }
0x140d   : > { %11700 = vrsqrt.f32 %v8344_v44 }
0x1417   : > { %v11701_v35 = vpop.eup %11700 }
0x1418   : > { %v8346_v32 = vmul.f32 %v11701_v35, %v8338_v51 }
0x141a   : > { %v8347_v50 = vmul.f32 %v8346_v32, %v8331_v56 }
0x141c   : > { %v8348_v0 = vadd.f32 %v8347_v50, %v8332_v41 }
0x141e   : > { %9056 = vmatmul.mubr.f32.vlgmr.msra.gmra.mrb[30].mxu0 %v8348_v0 }
0x14f1   : > { %v8432_v3 = vpop.f32.mrb[30].mxu0 }
0x14f2   : > { %v8433_v57 = vadd.f32 %v8432_v3, %v8365_v54  ;;  %v9057_v59 = vpop.f32.mrb[31].mxu0 }
0x14f4   : > { %v8439_v6 = vsel %vm8438_vm5, %v8433_v57, 0.0 }
0x14f5   : > { %8440 = vadd.xlane.f32.xlu1 %v8439_v6 }
0x1582   : > { %v8441_v40 = vpop.xlane.xlu1 %8440 }
0x1583   : > { %v8443_v7 = vmul.f32 0.05, %v8441_v40 }
0x1585   : > { %v8444_v10 = vsub.f32 %v8433_v57, %v8443_v7 }
0x1587   : > { %v8445_v2 = vmul.f32 %v8444_v10, %v8444_v10 }
0x1589   : > { %v8446_v60 = vsel %vm8438_vm5, %v8445_v2, 0.0 }
0x158a   : > { %8447 = vadd.xlane.f32.xlu0 %v8446_v60 }
0x1617   : > { %v8448_v22 = vpop.xlane.xlu0 %8447 }
0x1618   : > { %v8449_v1 = vmul.f32 0.05, %v8448_v22 }
0x161a   : > { %v8450_v13 = vadd.f32 1e-05, %v8449_v1 }
0x161c   : > { %11702 = vrsqrt.f32 %v8450_v13 }
0x1626   : > { %v11703_v45 = vpop.eup %11702 }
0x1627   : > { %v8452_v24 = vmul.f32 %v11703_v45, %v8444_v10 }
0x1629   : > { %v8453_v61 = vmul.f32 %v8452_v24, %v8436_v63 }
0x162b   : > { %v8454_v49 = vadd.f32 %v8453_v61, %v8437_v53 }
0x162d   : > { %v8455_v4 = vmul.f32 %v8454_v49, %v8454_v49 }
0x162f   : > { %v8456_v18 = vsel %vm8438_vm5, %v8455_v4, 0.0 }
0x1630   : > { %8457 = vadd.xlane.f32.xlu1 %v8456_v18 }
0x16bd   : > { %v8458_v16 = vpop.xlane.xlu1 %8457 }
0x16be   : > { %11704 = vrsqrt.f32 %v8458_v16  ;;  %vm8461_vm6 = vcmp.eq.f32.partialorder %v8458_v16, inf  ;;  %v8464_v28 = vand.u32 2147483648, %v8458_v16  ;;  %vm8463_vm7 = vcmp.eq.f32.partialorder %v8458_v16, 0.0 }
0x16c8   : > { %v11705_v30 = vpop.eup %11704 }
0x16c9   : > { %v8460_v55 = vmul.f32 %v11705_v30, %v8458_v16 }
0x16cb   : > { %v8462_v46 = vsel %vm8461_vm6, %v8458_v16, %v8460_v55 }
0x16cc   : > { %v8465_v52 = vsel %vm8463_vm7, %v8464_v28, %v8462_v46 }
0x16cd   : > { %v8466_v39 = vmax.f32 %v8465_v52, 1e-12 }
0x16cf   : > { %11706 = vrcp.f32 %v8466_v39 }
0x16d9   : > { %v11707_v9 = vpop.eup %11706 }
0x16da   : > { %v8468_v36 = vmul.f32 %v11707_v9, %v8454_v49 }
0x16dc   : > { %v8470_v14 = vsel %vm8469_vm8, %v8468_v36, 0.0 }
0x16dd   : > { %8471 = vst [vmem:[%s497_s28] sm:$0x1] %v8470_v14 }
0x16de   : > { %11732 = shalt.err (!%p11729_p3)
}
0x16df   : > { %s11733_s16 = scalar_lea.hbm %s19827_s23, 16  ;;  %s11737_s28 = scalar_lea.hbm %s19905_s17, 32 }
0x16e0   : > { %p11734_p4 = scmp.ne.s32.totalorder %s19827_s23, %s11733_s16  ;;  %p11738_p9 = scmp.lt.u32.totalorder %s19827_s23, %s19905_s17 }
0x16e1   : > { %p11739_p10 = scmp.lt.u32.totalorder %s11737_s28, %s11733_s16  ;;  %p11741_p12 = scmp.lt.u32.totalorder %s11733_s16, %s19827_s23 }
0x16e2   : > { %p11735_p7 = pnand %p11734_p4, %p11906_p5 }
0x16e3   : > { %p11740_p11 = por %p11739_p10, %p11738_p9 }
0x16e4   : > { %p11736_p8 = pneg %p11735_p7 }
0x16e5   : > { %p11742_p13 = por %p11741_p12, %p11740_p11 }
0x16e7   : > { %p11743_p0 = pnand %p11742_p13, %p11736_p8 }
0x16e9   : > { %11746 = shalt.err (!%p11743_p0)
}
0x16ea   : > { %11599 = dma.vmem_to_hbm [thread:$0]  (%p11906_p5), %s19829_s24, 16, %s19827_s23, %s8473_s25  }
0x16eb PF: > { %s19906_s20 = sld [smem:[#allocation7_spill]]  ;;  %s19907_s22 = sld [smem:[#allocation5_spill]] }
0x16f1   : > { %p11605_p1 = scmp.ge.s32.totalorder %s19906_s20, 2  ;;  %s8497_s29 = sand.u32 1, %s19907_s22  }
0x16f2   : > { %s8498_s26 = scalar_lea.sflag [#allocation3], %s8497_s29 }
0x16f3   : > { %p11602_p2 = pnand %p11605_p1, %p11910_p6 }
0x16f5   : > { %11764 = dma.done.wait (!%p11602_p2), %s8498_s26, 16  }
0x16f6   : > { %11766 = vsyncadd (!%p11602_p2), %s8498_s26, 4294967280  ;;  %s19909_s21 = sld [smem:[#allocation8_spill]]  ;;  %s19910_s16 = sld [smem:[#allocation6_spill]] }
0x16f7   : > { %s19911_s20 = sld [smem:[#allocation9_spill]]  ;;  %s19912_s18 = smov %s11773_s19 }
0x16fc   : > { %p25_p3 = scmp.ge.s32.totalorder %s19909_s21, 4   ;;  %s19913_s19 = smov %s19910_s16 }
0x16fe   :  { %27 = sbr.rel (!%p25_p3) target bundleno = 5 (0x5), region = 123 }
0x1705   :  { %8502 = vsyncpa [#allocation3], 1 }
0x1706   :  { %8504 = vsyncpa [#allocation3 + $0x1], 1 }

</bundles_post_ra>
